<compile_context>
chip_gen: v7x
topology: tpu7x:2x2x1
jax: 0.10.0
libtpu: 0.0.40
codegen_flags: <defaults>
</compile_context>

<pallas_src>
import jax
import jax.numpy as jnp
from jax.experimental import pallas as pl
from jax.experimental.pallas import tpu as pltpu

D_IN, D1, D2, D3, D4, D_OUT = 5, 512, 256, 128, 64, 1
BN_EPS = 1e-5


def mlp_kernel(x_ref,
               w1_ref, b1_ref,          # f32, BN already folded in
               w2_ref, b2_ref,          # w bf16, b f32
               w3_ref, b3_ref,
               w4_ref, b4_ref,
               w5_ref, b5_ref,          # w5 stored as (1, 64) f32, b5 (1, 1) f32
               o_ref):
    x = x_ref[...]                                            # (tb, 5) f32

    # ---- layer1 (+ folded BN) + relu: K=5 -> VPU broadcast-FMA, skip the MXU ----
    h = b1_ref[...] + x[:, 0:1] * w1_ref[0:1, :]
    for k in range(1, D_IN):
        h = h + x[:, k:k + 1] * w1_ref[k:k + 1, :]
    h = jnp.maximum(h, 0.0)                                   # (tb, 512) f32

    # ---- layer2 + relu (dropout is identity in eval mode) ----
    h = jnp.dot(h.astype(jnp.bfloat16), w2_ref[...],
                preferred_element_type=jnp.float32) + b2_ref[...]
    h = jnp.maximum(h, 0.0)                                   # (tb, 256) f32

    # ---- layer3 + relu ----
    h = jnp.dot(h.astype(jnp.bfloat16), w3_ref[...],
                preferred_element_type=jnp.float32) + b3_ref[...]
    h = jnp.maximum(h, 0.0)                                   # (tb, 128) f32

    # ---- layer4 + relu ----
    h = jnp.dot(h.astype(jnp.bfloat16), w4_ref[...],
                preferred_element_type=jnp.float32) + b4_ref[...]
    h = jnp.maximum(h, 0.0)                                   # (tb, 64) f32

    # ---- output: N=1 -> elementwise multiply + lane reduction (XLU), skip the MXU ----
    o_ref[...] = jnp.sum(h * w5_ref[...], axis=-1, keepdims=True) + b5_ref[...]


def complex_torch_model_forward(x, params, *, tb=512):
    """x: [B, 5] float32.  Returns [B, 1] float32."""
    B = x.shape[0]
    assert tb % 8 == 0

    # Pad batch to a multiple of tb; padded rows are computed and sliced off.
    Bp = ((B + tb - 1) // tb) * tb
    if Bp != B:
        x = jnp.pad(x, ((0, Bp - B), (0, 0)))

    grid = (Bp // tb,)

    in_specs = [pl.BlockSpec((tb, D_IN), lambda i: (i, 0))] + [
        pl.BlockSpec(p.shape, lambda i: (0, 0)) for p in params
    ]
    out_specs = pl.BlockSpec((tb, D_OUT), lambda i: (i, 0))

    flops = 2 * Bp * (D_IN * D1 + D1 * D2 + D2 * D3 + D3 * D4 + D4 * D_OUT)
    bytes_accessed = (x.size * x.dtype.itemsize
                      + sum(int(p.size) * p.dtype.itemsize for p in params)
                      + Bp * D_OUT * 4)

    out = pl.pallas_call(
        mlp_kernel,
        out_shape=jax.ShapeDtypeStruct((Bp, D_OUT), jnp.float32),
        grid_spec=pltpu.PrefetchScalarGridSpec(
            num_scalar_prefetch=0,
            grid=grid,
            in_specs=in_specs,
            out_specs=out_specs,
        ),
        compiler_params=pltpu.CompilerParams(
            dimension_semantics=("parallel",)),
        cost_estimate=pl.CostEstimate(
            flops=flops, transcendentals=0, bytes_accessed=bytes_accessed),
    )(x, *params)

    return out[:B]


def init_params(key):
    """Deterministic init mirroring PyTorch layer shapes, then BN-fold + bf16 cast."""
    ks = jax.random.split(key, 10)

    def linear(kw, kb, fan_in, fan_out):
        bound = 1.0 / jnp.sqrt(jnp.float32(fan_in))
        w = jax.random.uniform(kw, (fan_in, fan_out), jnp.float32, -bound, bound)
        b = jax.random.uniform(kb, (1, fan_out), jnp.float32, -bound, bound)
        return w, b

    w1, b1 = linear(ks[0], ks[1], D_IN, D1)
    w2, b2 = linear(ks[2], ks[3], D1, D2)
    w3, b3 = linear(ks[4], ks[5], D2, D3)
    w4, b4 = linear(ks[6], ks[7], D3, D4)
    w5, b5 = linear(ks[8], ks[9], D4, D_OUT)

    # BatchNorm1d(512) defaults: gamma=1, beta=0, running_mean=0, running_var=1.
    gamma = jnp.ones((1, D1), jnp.float32)
    beta = jnp.zeros((1, D1), jnp.float32)
    run_mean = jnp.zeros((1, D1), jnp.float32)
    run_var = jnp.ones((1, D1), jnp.float32)
    bn_s = gamma / jnp.sqrt(run_var + BN_EPS)                 # folded scale
    bn_b = beta - run_mean * bn_s                             # folded bias

    # Fold BN into layer1 (eval mode): y = (x@w1 + b1)*s + t == x@(w1*s) + (b1*s + t)
    w1f = w1 * bn_s                                           # (5, 512) f32
    b1f = b1 * bn_s + bn_b                                    # (1, 512) f32

    # bf16 weights for the MXU layers; accumulation stays f32 in-kernel.
    w2b = w2.astype(jnp.bfloat16)
    w3b = w3.astype(jnp.bfloat16)
    w4b = w4.astype(jnp.bfloat16)

    # Output layer stays on the VPU/XLU in f32; store w5 as a (1, 64) row.
    w5r = w5.T                                                # (1, 64) f32

    return (w1f, b1f, w2b, b2, w3b, b3, w4b, b4, w5r, b5)


def reference_forward(x, params):
    """Pure-JAX reference that mirrors the kernel's math (bf16 matmuls, f32 accumulation)."""
    (w1, b1, w2, b2, w3, b3, w4, b4, w5, b5) = params
    h = b1 + sum(x[:, k:k + 1] * w1[k:k + 1, :] for k in range(D_IN))
    h = jnp.maximum(h, 0.0)
    for w, bb in ((w2, b2), (w3, b3), (w4, b4)):
        h = jnp.dot(h.astype(jnp.bfloat16), w,
                    preferred_element_type=jnp.float32) + bb
        h = jnp.maximum(h, 0.0)
    return jnp.sum(h * w5, axis=-1, keepdims=True) + b5


if __name__ == "__main__":
    key = jax.random.PRNGKey(0)
    k_x, k_p = jax.random.split(key)

    B = 16
    x = jax.random.normal(k_x, (B, D_IN), jnp.float32)
    params = init_params(k_p)

    out = complex_torch_model_forward(x, params)              # tb=512, batch padded internally
    out = jax.block_until_ready(out)

    ref = reference_forward(x, params)
    assert out.shape == (B, D_OUT)
    assert jnp.max(jnp.abs(out - ref)) < 2e-3

    print("KERNEL_OK")
</pallas_src>

<mosaic_0001>
module attributes {stable_mosaic.version = 11 : i64} {
  func.func @mlp_kernel(%arg0: i32, %arg1: memref<512x5xf32, #tpu.memory_space<vmem>>, %arg2: memref<5x512xf32, #tpu.memory_space<vmem>>, %arg3: memref<1x512xf32, #tpu.memory_space<vmem>>, %arg4: memref<512x256xbf16, #tpu.memory_space<vmem>>, %arg5: memref<1x256xf32, #tpu.memory_space<vmem>>, %arg6: memref<256x128xbf16, #tpu.memory_space<vmem>>, %arg7: memref<1x128xf32, #tpu.memory_space<vmem>>, %arg8: memref<128x64xbf16, #tpu.memory_space<vmem>>, %arg9: memref<1x64xf32, #tpu.memory_space<vmem>>, %arg10: memref<1x64xf32, #tpu.memory_space<vmem>>, %arg11: memref<1x1xf32, #tpu.memory_space<vmem>>, %arg12: memref<512x1xf32, #tpu.memory_space<vmem>>) attributes {dimension_semantics = [#tpu.dimension_semantics<parallel>], iteration_bounds = array<i64: 1>, scalar_prefetch = 0 : i64, scratch_operands = 0 : i64, tpu.core_type = #tpu.core_type<tc>, window_params = [{transform_indices = @transform_0, window_bounds = array<i64: 512, 5>}, {pipeline_mode = #tpu.pipeline_mode<synchronous>, transform_indices = @transform_1, window_bounds = array<i64: 5, 512>}, {pipeline_mode = #tpu.pipeline_mode<synchronous>, transform_indices = @transform_2, window_bounds = array<i64: 1, 512>}, {pipeline_mode = #tpu.pipeline_mode<synchronous>, transform_indices = @transform_3, window_bounds = array<i64: 512, 256>}, {pipeline_mode = #tpu.pipeline_mode<synchronous>, transform_indices = @transform_4, window_bounds = array<i64: 1, 256>}, {pipeline_mode = #tpu.pipeline_mode<synchronous>, transform_indices = @transform_5, window_bounds = array<i64: 256, 128>}, {pipeline_mode = #tpu.pipeline_mode<synchronous>, transform_indices = @transform_6, window_bounds = array<i64: 1, 128>}, {pipeline_mode = #tpu.pipeline_mode<synchronous>, transform_indices = @transform_7, window_bounds = array<i64: 128, 64>}, {pipeline_mode = #tpu.pipeline_mode<synchronous>, transform_indices = @transform_8, window_bounds = array<i64: 1, 64>}, {pipeline_mode = #tpu.pipeline_mode<synchronous>, transform_indices = @transform_9, window_bounds = array<i64: 1, 64>}, {pipeline_mode = #tpu.pipeline_mode<synchronous>, transform_indices = @transform_10, window_bounds = array<i64: 1, 1>}, {transform_indices = @transform_11, window_bounds = array<i64: 512, 1>}]} {
    %c0 = arith.constant 0 : index
    %c0_0 = arith.constant 0 : index
    %0 = vector.load %arg1[%c0, %c0_0] : memref<512x5xf32, #tpu.memory_space<vmem>>, vector<512x5xf32>
    %c0_1 = arith.constant 0 : index
    %c0_2 = arith.constant 0 : index
    %1 = vector.load %arg3[%c0_1, %c0_2] : memref<1x512xf32, #tpu.memory_space<vmem>>, vector<1x512xf32>
    %2 = vector.extract_strided_slice %0 {offsets = [0, 0], sizes = [512, 1], strides = [1, 1]} : vector<512x5xf32> to vector<512x1xf32>
    %c0_3 = arith.constant 0 : index
    %c0_4 = arith.constant 0 : index
    %3 = vector.load %arg2[%c0_3, %c0_4] : memref<5x512xf32, #tpu.memory_space<vmem>>, vector<1x512xf32>
    %4 = vector.broadcast %2 : vector<512x1xf32> to vector<512x512xf32>
    %5 = vector.broadcast %3 : vector<1x512xf32> to vector<512x512xf32>
    %6 = arith.mulf %4, %5 : vector<512x512xf32>
    %7 = vector.broadcast %1 : vector<1x512xf32> to vector<512x512xf32>
    %8 = arith.addf %7, %6 : vector<512x512xf32>
    %9 = vector.extract_strided_slice %0 {offsets = [0, 1], sizes = [512, 1], strides = [1, 1]} : vector<512x5xf32> to vector<512x1xf32>
    %c1 = arith.constant 1 : index
    %c0_5 = arith.constant 0 : index
    %10 = vector.load %arg2[%c1, %c0_5] : memref<5x512xf32, #tpu.memory_space<vmem>>, vector<1x512xf32>
    %11 = vector.broadcast %9 : vector<512x1xf32> to vector<512x512xf32>
    %12 = vector.broadcast %10 : vector<1x512xf32> to vector<512x512xf32>
    %13 = arith.mulf %11, %12 : vector<512x512xf32>
    %14 = arith.addf %8, %13 : vector<512x512xf32>
    %15 = vector.extract_strided_slice %0 {offsets = [0, 2], sizes = [512, 1], strides = [1, 1]} : vector<512x5xf32> to vector<512x1xf32>
    %c2 = arith.constant 2 : index
    %c0_6 = arith.constant 0 : index
    %16 = vector.load %arg2[%c2, %c0_6] : memref<5x512xf32, #tpu.memory_space<vmem>>, vector<1x512xf32>
    %17 = vector.broadcast %15 : vector<512x1xf32> to vector<512x512xf32>
    %18 = vector.broadcast %16 : vector<1x512xf32> to vector<512x512xf32>
    %19 = arith.mulf %17, %18 : vector<512x512xf32>
    %20 = arith.addf %14, %19 : vector<512x512xf32>
    %21 = vector.extract_strided_slice %0 {offsets = [0, 3], sizes = [512, 1], strides = [1, 1]} : vector<512x5xf32> to vector<512x1xf32>
    %c3 = arith.constant 3 : index
    %c0_7 = arith.constant 0 : index
    %22 = vector.load %arg2[%c3, %c0_7] : memref<5x512xf32, #tpu.memory_space<vmem>>, vector<1x512xf32>
    %23 = vector.broadcast %21 : vector<512x1xf32> to vector<512x512xf32>
    %24 = vector.broadcast %22 : vector<1x512xf32> to vector<512x512xf32>
    %25 = arith.mulf %23, %24 : vector<512x512xf32>
    %26 = arith.addf %20, %25 : vector<512x512xf32>
    %27 = vector.extract_strided_slice %0 {offsets = [0, 4], sizes = [512, 1], strides = [1, 1]} : vector<512x5xf32> to vector<512x1xf32>
    %c4 = arith.constant 4 : index
    %c0_8 = arith.constant 0 : index
    %28 = vector.load %arg2[%c4, %c0_8] : memref<5x512xf32, #tpu.memory_space<vmem>>, vector<1x512xf32>
    %29 = vector.broadcast %27 : vector<512x1xf32> to vector<512x512xf32>
    %30 = vector.broadcast %28 : vector<1x512xf32> to vector<512x512xf32>
    %31 = arith.mulf %29, %30 : vector<512x512xf32>
    %32 = arith.addf %26, %31 : vector<512x512xf32>
    %cst = arith.constant 0.000000e+00 : f32
    %33 = vector.broadcast %cst : f32 to vector<512x512xf32>
    %34 = arith.maximumf %32, %33 : vector<512x512xf32>
    %35 = arith.truncf %34 : vector<512x512xf32> to vector<512x512xbf16>
    %c0_9 = arith.constant 0 : index
    %c0_10 = arith.constant 0 : index
    %36 = vector.load %arg4[%c0_9, %c0_10] : memref<512x256xbf16, #tpu.memory_space<vmem>>, vector<512x256xbf16>
    %cst_11 = arith.constant dense<0.000000e+00> : vector<512x256xf32>
    %37 = tpu.matmul %35, %36, %cst_11 {dimension_numbers = #tpu.dot_dimension_numbers<[1], [0], [0], [1], [0, 0, 1, 1], [], []>} : vector<512x512xbf16>, vector<512x256xbf16>, vector<512x256xf32> -> vector<512x256xf32>
    %c0_12 = arith.constant 0 : index
    %c0_13 = arith.constant 0 : index
    %38 = vector.load %arg5[%c0_12, %c0_13] : memref<1x256xf32, #tpu.memory_space<vmem>>, vector<1x256xf32>
    %39 = vector.broadcast %38 : vector<1x256xf32> to vector<512x256xf32>
    %40 = arith.addf %37, %39 : vector<512x256xf32>
    %cst_14 = arith.constant 0.000000e+00 : f32
    %41 = vector.broadcast %cst_14 : f32 to vector<512x256xf32>
    %42 = arith.maximumf %40, %41 : vector<512x256xf32>
    %43 = arith.truncf %42 : vector<512x256xf32> to vector<512x256xbf16>
    %c0_15 = arith.constant 0 : index
    %c0_16 = arith.constant 0 : index
    %44 = vector.load %arg6[%c0_15, %c0_16] : memref<256x128xbf16, #tpu.memory_space<vmem>>, vector<256x128xbf16>
    %cst_17 = arith.constant dense<0.000000e+00> : vector<512x128xf32>
    %45 = tpu.matmul %43, %44, %cst_17 {dimension_numbers = #tpu.dot_dimension_numbers<[1], [0], [0], [1], [0, 0, 1, 1], [], []>} : vector<512x256xbf16>, vector<256x128xbf16>, vector<512x128xf32> -> vector<512x128xf32>
    %c0_18 = arith.constant 0 : index
    %c0_19 = arith.constant 0 : index
    %46 = vector.load %arg7[%c0_18, %c0_19] : memref<1x128xf32, #tpu.memory_space<vmem>>, vector<1x128xf32>
    %47 = vector.broadcast %46 : vector<1x128xf32> to vector<512x128xf32>
    %48 = arith.addf %45, %47 : vector<512x128xf32>
    %cst_20 = arith.constant 0.000000e+00 : f32
    %49 = vector.broadcast %cst_20 : f32 to vector<512x128xf32>
    %50 = arith.maximumf %48, %49 : vector<512x128xf32>
    %51 = arith.truncf %50 : vector<512x128xf32> to vector<512x128xbf16>
    %c0_21 = arith.constant 0 : index
    %c0_22 = arith.constant 0 : index
    %52 = vector.load %arg8[%c0_21, %c0_22] : memref<128x64xbf16, #tpu.memory_space<vmem>>, vector<128x64xbf16>
    %cst_23 = arith.constant dense<0.000000e+00> : vector<512x64xf32>
    %53 = tpu.matmul %51, %52, %cst_23 {dimension_numbers = #tpu.dot_dimension_numbers<[1], [0], [0], [1], [0, 0, 1, 1], [], []>} : vector<512x128xbf16>, vector<128x64xbf16>, vector<512x64xf32> -> vector<512x64xf32>
    %c0_24 = arith.constant 0 : index
    %c0_25 = arith.constant 0 : index
    %54 = vector.load %arg9[%c0_24, %c0_25] : memref<1x64xf32, #tpu.memory_space<vmem>>, vector<1x64xf32>
    %55 = vector.broadcast %54 : vector<1x64xf32> to vector<512x64xf32>
    %56 = arith.addf %53, %55 : vector<512x64xf32>
    %cst_26 = arith.constant 0.000000e+00 : f32
    %57 = vector.broadcast %cst_26 : f32 to vector<512x64xf32>
    %58 = arith.maximumf %56, %57 : vector<512x64xf32>
    %c0_27 = arith.constant 0 : index
    %c0_28 = arith.constant 0 : index
    %59 = vector.load %arg10[%c0_27, %c0_28] : memref<1x64xf32, #tpu.memory_space<vmem>>, vector<1x64xf32>
    %60 = vector.broadcast %59 : vector<1x64xf32> to vector<512x64xf32>
    %61 = arith.mulf %58, %60 : vector<512x64xf32>
    %cst_29 = arith.constant dense<0.000000e+00> : vector<512xf32>
    %62 = vector.multi_reduction <add>, %61, %cst_29 [1] : vector<512x64xf32> to vector<512xf32>
    %63 = vector.shape_cast %62 : vector<512xf32> to vector<512x1xf32>
    %c0_30 = arith.constant 0 : index
    %c0_31 = arith.constant 0 : index
    %64 = vector.load %arg11[%c0_30, %c0_31] : memref<1x1xf32, #tpu.memory_space<vmem>>, vector<1x1xf32>
    %65 = vector.broadcast %64 : vector<1x1xf32> to vector<512x1xf32>
    %66 = arith.addf %63, %65 : vector<512x1xf32>
    %c0_32 = arith.constant 0 : index
    %c0_33 = arith.constant 0 : index
    %67 = vector.load %arg12[%c0_32, %c0_33] : memref<512x1xf32, #tpu.memory_space<vmem>>, vector<512x1xf32>
    tpu.vector_store %arg12[%c0_32, %c0_33], %66 {strides = array<i32>} : memref<512x1xf32, #tpu.memory_space<vmem>>, vector<512x1xf32>,
    return
  }
  func.func @transform_0(%arg0: i32) -> (i32, i32) {
    %c0_i32 = arith.constant 0 : i32
    %c0_i32_0 = arith.constant 0 : i32
    return %arg0, %c0_i32 : i32, i32
  }
  func.func @transform_1(%arg0: i32) -> (i32, i32) {
    %c0_i32 = arith.constant 0 : i32
    %c0_i32_0 = arith.constant 0 : i32
    %c0_i32_1 = arith.constant 0 : i32
    return %c0_i32, %c0_i32_0 : i32, i32
  }
  func.func @transform_2(%arg0: i32) -> (i32, i32) {
    %c0_i32 = arith.constant 0 : i32
    %c0_i32_0 = arith.constant 0 : i32
    %c0_i32_1 = arith.constant 0 : i32
    return %c0_i32, %c0_i32_0 : i32, i32
  }
  func.func @transform_3(%arg0: i32) -> (i32, i32) {
    %c0_i32 = arith.constant 0 : i32
    %c0_i32_0 = arith.constant 0 : i32
    %c0_i32_1 = arith.constant 0 : i32
    return %c0_i32, %c0_i32_0 : i32, i32
  }
  func.func @transform_4(%arg0: i32) -> (i32, i32) {
    %c0_i32 = arith.constant 0 : i32
    %c0_i32_0 = arith.constant 0 : i32
    %c0_i32_1 = arith.constant 0 : i32
    return %c0_i32, %c0_i32_0 : i32, i32
  }
  func.func @transform_5(%arg0: i32) -> (i32, i32) {
    %c0_i32 = arith.constant 0 : i32
    %c0_i32_0 = arith.constant 0 : i32
    %c0_i32_1 = arith.constant 0 : i32
    return %c0_i32, %c0_i32_0 : i32, i32
  }
  func.func @transform_6(%arg0: i32) -> (i32, i32) {
    %c0_i32 = arith.constant 0 : i32
    %c0_i32_0 = arith.constant 0 : i32
    %c0_i32_1 = arith.constant 0 : i32
    return %c0_i32, %c0_i32_0 : i32, i32
  }
  func.func @transform_7(%arg0: i32) -> (i32, i32) {
    %c0_i32 = arith.constant 0 : i32
    %c0_i32_0 = arith.constant 0 : i32
    %c0_i32_1 = arith.constant 0 : i32
    return %c0_i32, %c0_i32_0 : i32, i32
  }
  func.func @transform_8(%arg0: i32) -> (i32, i32) {
    %c0_i32 = arith.constant 0 : i32
    %c0_i32_0 = arith.constant 0 : i32
    %c0_i32_1 = arith.constant 0 : i32
    return %c0_i32, %c0_i32_0 : i32, i32
  }
  func.func @transform_9(%arg0: i32) -> (i32, i32) {
    %c0_i32 = arith.constant 0 : i32
    %c0_i32_0 = arith.constant 0 : i32
    %c0_i32_1 = arith.constant 0 : i32
    return %c0_i32, %c0_i32_0 : i32, i32
  }
  func.func @transform_10(%arg0: i32) -> (i32, i32) {
    %c0_i32 = arith.constant 0 : i32
    %c0_i32_0 = arith.constant 0 : i32
    %c0_i32_1 = arith.constant 0 : i32
    return %c0_i32, %c0_i32_0 : i32, i32
  }
  func.func @transform_11(%arg0: i32) -> (i32, i32) {
    %c0_i32 = arith.constant 0 : i32
    %c0_i32_0 = arith.constant 0 : i32
    return %arg0, %c0_i32 : i32, i32
  }
}

</mosaic_0001>

<bundles_post_ra>
// kernel: tpu_custom_call.1
= control target key start
LH: loop header
LB: loop body
LE: loop exit
PB: predicated region body
PF: predicated region fallthrough
CT: control target
= control target key end

     0   :  { %s15313_s0 = inlined_call_operand.vmem [shape: f32[512,5], index: 0, kind: input, shape index: {}]   ;;  %s15314_s1 = inlined_call_operand.hbm [shape: f32[5,512], index: 1, kind: input, shape index: {}]   ;;  %s15315_s2 = inlined_call_operand.vmem [shape: f32[1,512], index: 2, kind: input, shape index: {}]   ;;  %s15316_s3 = inlined_call_operand.vmem [shape: bf16[512,256], index: 3, kind: input, shape index: {}]   ;;  %s15317_s4 = inlined_call_operand.vmem [shape: f32[1,256], index: 4, kind: input, shape index: {}]   ;;  %s15318_s5 = inlined_call_operand.vmem [shape: bf16[256,128], index: 5, kind: input, shape index: {}]   ;;  %s15319_s6 = inlined_call_operand.vmem [shape: f32[1,128], index: 6, kind: input, shape index: {}]   ;;  %s15320_s7 = inlined_call_operand.vmem [shape: bf16[128,64], index: 7, kind: input, shape index: {}]   ;;  %s15321_s8 = inlined_call_operand.vmem [shape: f32[1,64], index: 8, kind: input, shape index: {}]   ;;  %s15322_s9 = inlined_call_operand.vmem [shape: f32[1,64], index: 9, kind: input, shape index: {}]   ;;  %s15323_s10 = inlined_call_operand.<no memory space> [shape: f32[1,1], index: 10, kind: input, shape index: {}]   ;;  %s15324_s11 = inlined_call_operand.vmem [shape: f32[512,1], index: 11, kind: output, shape index: {}]  }
   0x1   :  { %v16_v0 = vstv %s15323_s10 }
   0x2   :  { %17 = vst [vmem:[#allocation2] sm:$0x1] %v16_v0 }
   0x3   :  { %18 = vsyncpa [#allocation4], 0  ;;  %s8048_s19 = smov [#allocation3]   ;;  %s8024_s23 = scalar_lea.hbm %s15314_s1, 512 }
   0x4   :  { %s27_s20 = sshll.u32 %s8048_s19, 4  ;;  %p8025_p0 = scmp.ne.s32.totalorder %s15314_s1, %s8024_s23  ;;  %s28_s20 = int_to_ptr.vmem [resolvable:$true] %s27_s20 }
   0x5   :  { %p8028_p1 = scmp.lt.u32.totalorder %s8024_s23, %s15314_s1 }
   0x7   :  { %p8030_p2 = pnand %p8028_p1, %p8025_p0 }
   0x9   :  { %8033 = shalt.err (!%p8030_p2)
}
   0xa   :  { %s8034_s10 = scalar_lea.vmem %s28_s20, 512  ;;  %p8039_p4 = scmp.lt.s32.totalorder %s28_s20, %s28_s20 }
   0xb   :  { %p8035_p3 = scmp.ne.s32.totalorder %s28_s20, %s8034_s10  ;;  %p8040_p5 = scmp.lt.s32.totalorder %s8034_s10, %s8034_s10 }
   0xd   :  { %p8041_p6 = por %p8040_p5, %p8039_p4 }
   0xf   :  { %p8042_p7 = pnand %p8041_p6, %p8035_p3 }
  0x11   :  { %8045 = shalt.err (!%p8042_p7)
}
  0x12   :  { %30 = dma.hbm_to_vmem [thread:$0]  %s15314_s1, 512, %s28_s20, [#allocation4]  }
  0x13   :  { %8046 = dma.done.wait [#allocation4], 512  }
  0x14   :  { %8047 = vsyncadd [#allocation4], 4294966784  ;;  %v15325_v1 = vmov 0   ;;  %v8134_v2 = vld [vmem:[%s15313_s0 + $0x10] sm:$0xff]  ;;  %v8139_v3 = vld [vmem:[%s15313_s0] sm:$0xff]  ;;  %v440_v6 = vlaneseq  ;;  %v15327_v49 = vmov 3  }
  0x15   :  { %7691 = vset.pattern.permute.xlu1 %v15325_v1  ;;  %7690 = vset.pattern.permute.xlu0 %v15325_v1  ;;  %v8146_v4 = vld [vmem:[%s15313_s0 + $0x18] sm:$0xff]  ;;  %v8151_v5 = vld [vmem:[%s15313_s0 + $0x8] sm:$0xff]  ;;  %v8163_v8 = vld [vmem:[%s15313_s0 + $0x20] sm:$0xff]  ;;  %v15331_v55 = vmov 1   ;;  %v15329_v61 = vmov 2   ;;  %v15334_v1 = vmov 4  }
  0x16   :  { %131 = vperm.xlu1 %7691, %v8134_v2   ;;  %121 = vperm.xlu0 %7690, %v8139_v3   ;;  %v8158_v7 = vld [vmem:[%s15313_s0 + $0x28] sm:$0xff]  ;;  %v8165_v9 = vshrl.u32 %v440_v6, 7  ;;  %v8172_v10 = vld [vmem:[%s15313_s0 + $0x38] sm:$0xff]  ;;  %v8177_v11 = vld [vmem:[%s15313_s0 + $0x30] sm:$0xff]  ;;  %vm6850_vm0 = vcmask 523264   ;;  %vm7114_vm1 = vcmask 7168  }
  0x17   :  { %v8188_v14 = vld [vmem:[%s15313_s0 + $0x48] sm:$0xff]  ;;  %v8193_v15 = vld [vmem:[%s15313_s0 + $0x40] sm:$0xff]  ;;  %v8223_v22 = vld [vmem:[%s15313_s0 + $0x58] sm:$0xff] }
  0x18   :  { %v8180_v12 = vsub.s32 2, %v8165_v9  ;;  %v8183_v13 = vsub.s32 3, %v8165_v9  ;;  %v8198_v16 = vld [vmem:[%s15315_s2] sm:$0xf]  ;;  %v8228_v23 = vld [vmem:[%s15313_s0 + $0x50] sm:$0xff]  ;;  %v8235_v24 = vld [vmem:[%s15313_s0 + $0x68] sm:$0xff] }
  0x19   :  { %v8202_v17 = vld [vmem:[#allocation3] ss:$8 sm:$0xf]  ;;  %v8391_v51 = vld [vmem:[#allocation3 + $0x3] ss:$8 sm:$0xf] }
  0x1a   :  { %136 = vperm.xlu1 %7691, %v8146_v4   ;;  %126 = vperm.xlu0 %7690, %v8151_v5   ;;  %v8206_v18 = vrot.slane %v8198_v16, %v8180_v12  ;;  %v8210_v19 = vrot.slane %v8202_v17, %v8180_v12  ;;  %v8214_v20 = vrot.slane %v8202_v17, %v8183_v13  ;;  %v8240_v25 = vld [vmem:[%s15313_s0 + $0x60] sm:$0xff]  ;;  %v8247_v26 = vld [vmem:[%s15313_s0 + $0x78] sm:$0xff]  ;;  %v8252_v27 = vld [vmem:[%s15313_s0 + $0x70] sm:$0xff] }
  0x1b   :  { %v8218_v21 = vrot.slane %v8198_v16, %v8183_v13  ;;  %v8259_v28 = vld [vmem:[%s15313_s0 + $0x88] sm:$0xff]  ;;  %v8264_v29 = vld [vmem:[%s15313_s0 + $0x80] sm:$0xff]  ;;  %v8271_v30 = vld [vmem:[%s15313_s0 + $0x98] sm:$0xff]  ;;  %v8395_v52 = vrot.slane %v8391_v51, %v8180_v12  ;;  %v8399_v53 = vrot.slane %v8391_v51, %v8183_v13 }
  0x1c   :  { %15926 = vst [vmem:[#allocation6_spill] sm:$0xff] %v8206_v18  ;;  %15927 = vst [vmem:[#allocation7_spill] sm:$0xff] %v8210_v19  ;;  %v8276_v31 = vld [vmem:[%s15313_s0 + $0x90] sm:$0xff]  ;;  %v8283_v32 = vld [vmem:[%s15313_s0 + $0xa8] sm:$0xff] }
  0x1d   :  { %15928 = vst [vmem:[#allocation8_spill] sm:$0xff] %v8214_v20  ;;  %15929 = vst [vmem:[#allocation9_spill] sm:$0xff] %v8218_v21  ;;  %v8288_v33 = vld [vmem:[%s15313_s0 + $0xa0] sm:$0xff]  ;;  %v8295_v34 = vld [vmem:[%s15313_s0 + $0xb8] sm:$0xff] }
  0x1e   :  { %146 = vperm.xlu1 %7691, %v8158_v7   ;;  %141 = vperm.xlu0 %7690, %v8163_v8   ;;  %v8300_v35 = vld [vmem:[%s15313_s0 + $0xb0] sm:$0xff]  ;;  %v8307_v36 = vld [vmem:[%s15313_s0 + $0xc8] sm:$0xff]  ;;  %v8312_v37 = vld [vmem:[%s15313_s0 + $0xc0] sm:$0xff]  ;;  %15930 = vst [vmem:[#allocation10_spill] sm:$0xff] %v8395_v52 }
  0x1f   :  { %v8319_v38 = vld [vmem:[%s15313_s0 + $0xd8] sm:$0xff]  ;;  %v8326_v39 = vld [vmem:[%s15313_s0 + $0xd0] sm:$0xff]  ;;  %v8333_v40 = vld [vmem:[%s15313_s0 + $0xe8] sm:$0xff]  ;;  %15931 = vst [vmem:[#allocation11_spill] sm:$0xff] %v8399_v53  ;;  %v15944_v53 = vmov 1  }
  0x20   :  { %v8338_v41 = vld [vmem:[%s15313_s0 + $0xe0] sm:$0xff]  ;;  %v8345_v42 = vld [vmem:[%s15313_s0 + $0xf8] sm:$0xff]  ;;  %v8350_v43 = vld [vmem:[%s15313_s0 + $0xf0] sm:$0xff] }
  0x21   :  { %v8357_v44 = vld [vmem:[%s15313_s0 + $0x108] sm:$0xff]  ;;  %v8362_v45 = vld [vmem:[%s15313_s0 + $0x100] sm:$0xff]  ;;  %v8369_v46 = vld [vmem:[%s15313_s0 + $0x118] sm:$0xff] }
  0x22   :  { %156 = vperm.xlu1 %7691, %v8172_v10   ;;  %151 = vperm.xlu0 %7690, %v8177_v11   ;;  %v8374_v47 = vld [vmem:[%s15313_s0 + $0x110] sm:$0xff]  ;;  %v8381_v48 = vld [vmem:[%s15313_s0 + $0x128] sm:$0xff]  ;;  %v8389_v50 = vld [vmem:[%s15313_s0 + $0x138] sm:$0xff] }
  0x23   :  { %v7851_v54 = vld [vmem:[%s15316_s3 + $0x4] ss:$8 sps:$4 sm:$0xff]   ;;  %v8407_v56 = vld [vmem:[#allocation3 + $0x1] ss:$8 sm:$0xf] }
  0x24   :  { %4937 = vmatprep.subr.bf16.mxu0 %v7851_v54  ;;  %v8413_v57 = vrot.slane %v8407_v56, %v8180_v12  ;;  %v7853_v58 = vld [vmem:[%s15316_s3] ss:$8 sps:$4 sm:$0xff]   ;;  %v8420_v59 = vrot.slane %v8407_v56, %v8183_v13  ;;  %7396 = vmatprep.subr.bf16.mxu1 %v7851_v54  ;;  %v7854_v60 = vld [vmem:[%s15316_s3 + $0x14] ss:$8 sps:$4 sm:$0xff]   ;;  %v7856_v62 = vld [vmem:[%s15316_s3 + $0x10] ss:$8 sps:$4 sm:$0xff]  }
  0x25   :  { %4938 = vmatpush1.bf16.msra.mxu0 %v7853_v58  ;;  %7412 = vmatpush1.bf16.msra.mxu1 %v7853_v58  ;;  %v8430_v63 = vld [vmem:[#allocation3 + $0x2] ss:$8 sm:$0xf]  ;;  %v7857_v54 = vld [vmem:[%s15316_s3 + $0x24] ss:$8 sps:$4 sm:$0xff]  }
  0x26   :  { %166 = vperm.xlu1 %7691, %v8188_v14   ;;  %161 = vperm.xlu0 %7690, %v8193_v15   ;;  %15932 = vst [vmem:[#allocation12_spill] sm:$0xff] %v8413_v57  ;;  %15933 = vst [vmem:[#allocation13_spill] sm:$0xff] %v8420_v59  ;;  %v8435_v0 = vrot.slane %v8430_v63, %v8180_v12  ;;  %v8439_v6 = vrot.slane %v8430_v63, %v8183_v13  ;;  %v7859_v58 = vld [vmem:[%s15316_s3 + $0x20] ss:$8 sps:$4 sm:$0xff]   ;;  %v7893_v59 = vld [vmem:[%s15316_s3 + $0xe4] ss:$8 sps:$4 sm:$0xff]  }
  0x27   :  { %4939 = vmatprep.subr.bf16.mxu0 %v7854_v60  ;;  %7397 = vmatprep.subr.bf16.mxu1 %v7854_v60  ;;  %v7860_v60 = vld [vmem:[%s15316_s3 + $0x34] ss:$8 sps:$4 sm:$0xff]   ;;  %v7895_v21 = vld [vmem:[%s15316_s3 + $0xe0] ss:$8 sps:$4 sm:$0xff]  }
  0x28   :  { %15934 = vst [vmem:[#allocation14_spill] sm:$0xff] %v8435_v0  ;;  %15935 = vst [vmem:[#allocation15_spill] sm:$0xff] %v8439_v6  ;;  %v7892_v0 = vld [vmem:[%s15316_s3 + $0xd0] ss:$8 sps:$4 sm:$0xff]   ;;  %v7896_v18 = vld [vmem:[%s15316_s3 + $0xf4] ss:$8 sps:$4 sm:$0xff]  }
  0x29   :  { %4940 = vmatpush1.bf16.msra.mxu0 %v7856_v62  ;;  %7413 = vmatpush1.bf16.msra.mxu1 %v7856_v62  ;;  %v7862_v62 = vld [vmem:[%s15316_s3 + $0x30] ss:$8 sps:$4 sm:$0xff]  }
  0x2a   :  { %176 = vperm.xlu1 %7691, %v8223_v22   ;;  %171 = vperm.xlu0 %7690, %v8228_v23  }
  0x2b   :  { %4941 = vmatprep.subr.bf16.mxu0 %v7857_v54  ;;  %7398 = vmatprep.subr.bf16.mxu1 %v7857_v54  ;;  %v7863_v54 = vld [vmem:[%s15316_s3 + $0x44] ss:$8 sps:$4 sm:$0xff]  }
  0x2d   :  { %4942 = vmatpush1.bf16.msra.mxu0 %v7859_v58  ;;  %7414 = vmatpush1.bf16.msra.mxu1 %v7859_v58  ;;  %v7865_v58 = vld [vmem:[%s15316_s3 + $0x40] ss:$8 sps:$4 sm:$0xff]  }
  0x2e   :  { %186 = vperm.xlu1 %7691, %v8235_v24   ;;  %181 = vperm.xlu0 %7690, %v8240_v25  }
  0x2f   :  { %4943 = vmatprep.subr.bf16.mxu0 %v7860_v60  ;;  %7399 = vmatprep.subr.bf16.mxu1 %v7860_v60 }
  0x31   :  { %4944 = vmatpush1.bf16.msra.mxu0 %v7862_v62  ;;  %7415 = vmatpush1.bf16.msra.mxu1 %v7862_v62  ;;  %v7868_v62 = vld [vmem:[%s15316_s3 + $0x50] ss:$8 sps:$4 sm:$0xff]  }
  0x32   :  { %196 = vperm.xlu1 %7691, %v8247_v26   ;;  %191 = vperm.xlu0 %7690, %v8252_v27  }
  0x33   :  { %4945 = vmatprep.subr.bf16.mxu0 %v7863_v54  ;;  %7400 = vmatprep.subr.bf16.mxu1 %v7863_v54  ;;  %v7874_v54 = vld [vmem:[%s15316_s3 + $0x70] ss:$8 sps:$4 sm:$0xff]  }
  0x35   :  { %4946 = vmatpush1.bf16.msra.mxu0 %v7865_v58  ;;  %7416 = vmatpush1.bf16.msra.mxu1 %v7865_v58  ;;  %v7875_v58 = vld [vmem:[%s15316_s3 + $0x84] ss:$8 sps:$4 sm:$0xff]  }
  0x36   :  { %206 = vperm.xlu1 %7691, %v8259_v28   ;;  %201 = vperm.xlu0 %7690, %v8264_v29  }
  0x3a   :  { %216 = vperm.xlu1 %7691, %v8271_v30   ;;  %211 = vperm.xlu0 %7690, %v8276_v31  }
  0x3e   :  { %226 = vperm.xlu1 %7691, %v8283_v32   ;;  %221 = vperm.xlu0 %7690, %v8288_v33  }
  0x42   :  { %236 = vperm.xlu1 %7691, %v8295_v34   ;;  %231 = vperm.xlu0 %7690, %v8300_v35  }
  0x46   :  { %246 = vperm.xlu1 %7691, %v8307_v36   ;;  %241 = vperm.xlu0 %7690, %v8312_v37  }
  0x4a   :  { %256 = vperm.xlu1 %7691, %v8319_v38   ;;  %251 = vperm.xlu0 %7690, %v8326_v39  }
  0x4e   :  { %266 = vperm.xlu1 %7691, %v8333_v40   ;;  %261 = vperm.xlu0 %7690, %v8338_v41  }
  0x52   :  { %276 = vperm.xlu1 %7691, %v8345_v42   ;;  %271 = vperm.xlu0 %7690, %v8350_v43  }
  0x56   :  { %286 = vperm.xlu1 %7691, %v8357_v44   ;;  %281 = vperm.xlu0 %7690, %v8362_v45  }
  0x5a   :  { %296 = vperm.xlu1 %7691, %v8369_v46   ;;  %291 = vperm.xlu0 %7690, %v8374_v47  }
  0x5e   :  { %306 = vperm.xlu1 %7691, %v8381_v48   ;;  %7694 = vset.pattern.permute.xlu0 %v15327_v49 }
  0x5f   :  { %2578 = vperm.xlu0 %7694, %v8139_v3  }
  0x62   :  { %316 = vperm.xlu1 %7691, %v8389_v50  }
  0x63   :  { %2590 = vperm.xlu0 %7694, %v8146_v4  }
  0x66   :  { %7692 = vset.pattern.permute.xlu1 %v15331_v55 }
  0x67   :  { %996 = vperm.xlu1 %7692, %v8139_v3   ;;  %2602 = vperm.xlu0 %7694, %v8177_v11  }
  0x6b   :  { %7693 = vset.pattern.permute.xlu1 %v15329_v61  ;;  %2614 = vperm.xlu0 %7694, %v8188_v14   ;;  %v7866_v61 = vld [vmem:[%s15316_s3 + $0x54] ss:$8 sps:$4 sm:$0xff]  }
  0x6c   :  { %1787 = vperm.xlu1 %7693, %v8139_v3   ;;  %4947 = vmatprep.subr.bf16.mxu0 %v7866_v61 }
  0x6d   :  { %4948 = vmatpush1.bf16.msra.mxu0 %v7868_v62  ;;  %7401 = vmatprep.subr.bf16.mxu1 %v7866_v61  ;;  %v7872_v61 = vld [vmem:[%s15316_s3 + $0x74] ss:$8 sps:$4 sm:$0xff]  }
  0x6e   :  { %7417 = vmatpush1.bf16.msra.mxu1 %v7868_v62  ;;  %v15937_v62 = vmov 2  }
  0x6f   :  { %2626 = vperm.xlu0 %7694, %v8240_v25  }
  0x70   :  { %1791 = vperm.xlu1 %7693, %v8151_v5  }
  0x73   :  { %2638 = vperm.xlu0 %7694, %v8247_v26  }
  0x74   :  { %7695 = vset.pattern.permute.xlu1 %v15327_v49  ;;  %v8467_v49 = vld [vmem:[#allocation3 + $0x4] ss:$8 sm:$0xf] }
  0x75   :  { %2582 = vperm.xlu1 %7695, %v8151_v5   ;;  %v8472_v60 = vrot.slane %v8467_v49, %v8180_v12  ;;  %v7871_v12 = vld [vmem:[%s15316_s3 + $0x60] ss:$8 sps:$4 sm:$0xff]  }
  0x77   :  { %7724 = vset.pattern.permute.xlu0 %v15331_v55  ;;  %15936 = vst [vmem:[#allocation16_spill] sm:$0xff] %v8472_v60  ;;  %v7889_v60 = vld [vmem:[%s15316_s3 + $0xc0] ss:$8 sps:$4 sm:$0xff]  }
  0x78   :  { %1000 = vperm.xlu0 %7724, %v8151_v5  }
  0x79   :  { %7696 = vset.pattern.permute.xlu1 %v15334_v1 }
  0x7a   :  { %3369 = vperm.xlu1 %7696, %v8139_v3   ;;  %v7869_v3 = vld [vmem:[%s15316_s3 + $0x64] ss:$8 sps:$4 sm:$0xff]  }
  0x7b   :  { %4949 = vmatprep.subr.bf16.mxu0 %v7869_v3  ;;  %7402 = vmatprep.subr.bf16.mxu1 %v7869_v3  ;;  %v7877_v3 = vld [vmem:[%s15316_s3 + $0x80] ss:$8 sps:$4 sm:$0xff]  }
  0x7c   :  { %1012 = vperm.xlu0 %7724, %v8163_v8   ;;  %4950 = vmatpush1.bf16.msra.mxu0 %v7871_v12 }
  0x7d   :  { %7418 = vmatpush1.bf16.msra.mxu1 %v7871_v12  ;;  %4951 = vmatprep.subr.bf16.mxu0 %v7872_v61  ;;  %v8509_v12 = vrot.slane %v8467_v49, %v8183_v13  ;;  %v7881_v13 = vld [vmem:[%s15316_s3 + $0xa4] ss:$8 sps:$4 sm:$0xff]  }
  0x7e   :  { %7697 = vset.pattern.permute.xlu1 %v15331_v55  ;;  %7403 = vmatprep.subr.bf16.mxu1 %v7872_v61  ;;  %v7878_v61 = vld [vmem:[%s15316_s3 + $0x94] ss:$8 sps:$4 sm:$0xff]   ;;  %v7880_v55 = vld [vmem:[%s15316_s3 + $0x90] ss:$8 sps:$4 sm:$0xff]  }
  0x7f   :  { %1004 = vperm.xlu1 %7697, %v8134_v2   ;;  %15938 = vst [vmem:[#allocation17_spill] sm:$0xff] %v8509_v12 }
  0x80   :  { %1024 = vperm.xlu0 %7724, %v8172_v10   ;;  %4952 = vmatpush1.bf16.msra.mxu0 %v7874_v54 }
  0x81   :  { %7419 = vmatpush1.bf16.msra.mxu1 %v7874_v54  ;;  %4953 = vmatprep.subr.bf16.mxu0 %v7875_v58  ;;  %v15939_v54 = vmov 3  }
  0x82   :  { %7404 = vmatprep.subr.bf16.mxu1 %v7875_v58  ;;  %v7883_v58 = vld [vmem:[%s15316_s3 + $0xa0] ss:$8 sps:$4 sm:$0xff]  }
  0x83   :  { %1008 = vperm.xlu1 %7697, %v8146_v4  }
  0x84   :  { %1036 = vperm.xlu0 %7724, %v8228_v23   ;;  %4954 = vmatpush1.bf16.msra.mxu0 %v7877_v3 }
  0x85   :  { %7420 = vmatpush1.bf16.msra.mxu1 %v7877_v3  ;;  %4955 = vmatprep.subr.bf16.mxu0 %v7878_v61  ;;  %v7884_v3 = vld [vmem:[%s15316_s3 + $0xb4] ss:$8 sps:$4 sm:$0xff]  }
  0x86   :  { %7405 = vmatprep.subr.bf16.mxu1 %v7878_v61  ;;  %v7886_v61 = vld [vmem:[%s15316_s3 + $0xb0] ss:$8 sps:$4 sm:$0xff]  }
  0x87   :  { %7698 = vset.pattern.permute.xlu1 %v15937_v62 }
  0x88   :  { %1799 = vperm.xlu1 %7698, %v8146_v4   ;;  %1048 = vperm.xlu0 %7724, %v8235_v24  }
  0x89   :  { %4956 = vmatpush1.bf16.msra.mxu0 %v7880_v55  ;;  %7421 = vmatpush1.bf16.msra.mxu1 %v7880_v55 }
  0x8a   :  { %4957 = vmatprep.subr.bf16.mxu0 %v7881_v13  ;;  %7406 = vmatprep.subr.bf16.mxu1 %v7881_v13  ;;  %v7887_v13 = vld [vmem:[%s15316_s3 + $0xc4] ss:$8 sps:$4 sm:$0xff]  }
  0x8c   :  { %7699 = vset.pattern.permute.xlu1 %v15939_v54  ;;  %1060 = vperm.xlu0 %7724, %v8264_v29  }
  0x8d   :  { %2586 = vperm.xlu1 %7699, %v8134_v2   ;;  %4958 = vmatpush1.bf16.msra.mxu0 %v7883_v58 }
  0x8e   :  { %7422 = vmatpush1.bf16.msra.mxu1 %v7883_v58  ;;  %4959 = vmatprep.subr.bf16.mxu0 %v7884_v3 }
  0x8f   :  { %7407 = vmatprep.subr.bf16.mxu1 %v7884_v3  ;;  %v15945_v3 = vmov 4  }
  0x90   :  { %1072 = vperm.xlu0 %7724, %v8271_v30  }
  0x91   :  { %7700 = vset.pattern.permute.xlu1 %v15334_v1  ;;  %4960 = vmatpush1.bf16.msra.mxu0 %v7886_v61 }
  0x92   :  { %3377 = vperm.xlu1 %7700, %v8134_v2   ;;  %4961 = vmatprep.subr.bf16.mxu0 %v7887_v13 }
  0x93   :  { %7423 = vmatpush1.bf16.msra.mxu1 %v7886_v61 }
  0x94   :  { %1084 = vperm.xlu0 %7724, %v8300_v35   ;;  %7408 = vmatprep.subr.bf16.mxu1 %v7887_v13 }
  0x95   :  { %v8536_v55 = vpop.permute.xlu1 %131  ;;  %v8538_v12 = vpop.permute.xlu0 %121  ;;  %4962 = vmatpush1.bf16.msra.mxu0 %v7889_v60 }
  0x96   :  { %15940 = vst [vmem:[#allocation18_spill] sm:$0xff] %v8536_v55  ;;  %15941 = vst [vmem:[#allocation19_spill] sm:$0xff] %v8538_v12  ;;  %3381 = vperm.xlu1 %7700, %v8146_v4   ;;  %v7890_v4 = vld [vmem:[%s15316_s3 + $0xd4] ss:$8 sps:$4 sm:$0xff]  }
  0x97   :  { %4963 = vmatprep.subr.bf16.mxu0 %v7890_v4  ;;  %7424 = vmatpush1.bf16.msra.mxu1 %v7889_v60 }
  0x98   :  { %1096 = vperm.xlu0 %7724, %v8307_v36   ;;  %7409 = vmatprep.subr.bf16.mxu1 %v7890_v4 }
  0x99   :  { %v8545_v1 = vpop.permute.xlu1 %136  ;;  %v8547_v58 = vpop.permute.xlu0 %126  ;;  %4964 = vmatpush1.bf16.msra.mxu0 %v7892_v0 }
  0x9a   :  { %15942 = vst [vmem:[#allocation20_spill] sm:$0xff] %v8545_v1  ;;  %15943 = vst [vmem:[#allocation21_spill] sm:$0xff] %v8547_v58  ;;  %7701 = vset.pattern.permute.xlu1 %v15944_v53  ;;  %4965 = vmatprep.subr.bf16.mxu0 %v7893_v59 }
  0x9b   :  { %1016 = vperm.xlu1 %7701, %v8158_v7   ;;  %7425 = vmatpush1.bf16.msra.mxu1 %v7892_v0 }
  0x9c   :  { %7743 = vset.pattern.permute.xlu0 %v15945_v3  ;;  %7410 = vmatprep.subr.bf16.mxu1 %v7893_v59 }
  0x9d   :  { %v8558_v52 = vpop.permute.xlu1 %146  ;;  %3373 = vperm.xlu0 %7743, %v8151_v5   ;;  %v8561_v6 = vpop.permute.xlu0 %141  ;;  %4966 = vmatpush1.bf16.msra.mxu0 %v7895_v21 }
  0x9e   :  { %15946 = vst [vmem:[#allocation22_spill] sm:$0xff] %v8558_v52  ;;  %15947 = vst [vmem:[#allocation23_spill] sm:$0xff] %v8561_v6  ;;  %4967 = vmatprep.subr.bf16.mxu0 %v7896_v18 }
  0x9f   :  { %7702 = vset.pattern.permute.xlu1 %v15937_v62  ;;  %7426 = vmatpush1.bf16.msra.mxu1 %v7895_v21  ;;  %v15966_v21 = vmov 0  }
  0xa0   :  { %1803 = vperm.xlu1 %7702, %v8163_v8   ;;  %7411 = vmatprep.subr.bf16.mxu1 %v7896_v18 }
  0xa1   :  { %v8571_v57 = vpop.permute.xlu1 %156  ;;  %3385 = vperm.xlu0 %7743, %v8163_v8   ;;  %v8574_v5 = vpop.permute.xlu0 %151 }
  0xa2   :  { %15948 = vst [vmem:[#allocation24_spill] sm:$0xff] %v8571_v57  ;;  %15949 = vst [vmem:[#allocation25_spill] sm:$0xff] %v8574_v5  ;;  %v7898_v5 = vld [vmem:[%s15316_s3 + $0xf0] ss:$8 sps:$4 sm:$0xff]  }
  0xa3   :  { %4968 = vmatpush1.bf16.msra.mxu0 %v7898_v5  ;;  %7427 = vmatpush1.bf16.msra.mxu1 %v7898_v5 }
  0xa4   :  { %7703 = vset.pattern.permute.xlu1 %v15939_v54  ;;  %5970 = vmatprep.subr.bf16.mxu1 %v15966_v21 }
  0xa5   :  { %v8583_v20 = vpop.permute.xlu1 %166  ;;  %2594 = vperm.xlu1 %7703, %v8163_v8   ;;  %v8586_v19 = vpop.permute.xlu0 %161  ;;  %3397 = vperm.xlu0 %7743, %v8172_v10  }
  0xa6   :  { %15950 = vst [vmem:[#allocation26_spill] sm:$0xff] %v8583_v20  ;;  %15951 = vst [vmem:[#allocation27_spill] sm:$0xff] %v8586_v19 }
  0xa9   :  { %v8592_v57 = vpop.permute.xlu1 %176  ;;  %2598 = vperm.xlu1 %7703, %v8158_v7   ;;  %v8595_v6 = vpop.permute.xlu0 %171  ;;  %3409 = vperm.xlu0 %7743, %v8228_v23  }
  0xaa   :  { %15952 = vst [vmem:[#allocation28_spill] sm:$0xff] %v8592_v57  ;;  %15953 = vst [vmem:[#allocation29_spill] sm:$0xff] %v8595_v6 }
  0xad   :  { %v8598_v8 = vpop.permute.xlu1 %186  ;;  %7704 = vset.pattern.permute.xlu1 %v15945_v3  ;;  %v8601_v19 = vpop.permute.xlu0 %181  ;;  %3421 = vperm.xlu0 %7743, %v8235_v24  }
  0xae   :  { %15954 = vst [vmem:[#allocation30_spill] sm:$0xff] %v8598_v8  ;;  %15955 = vst [vmem:[#allocation31_spill] sm:$0xff] %v8601_v19  ;;  %3389 = vperm.xlu1 %7704, %v8158_v7  }
  0xb1   :  { %v8605_v57 = vpop.permute.xlu1 %196  ;;  %v8607_v20 = vpop.permute.xlu0 %191  ;;  %3433 = vperm.xlu0 %7743, %v8264_v29  }
  0xb2   :  { %15956 = vst [vmem:[#allocation32_spill] sm:$0xff] %v8605_v57  ;;  %15957 = vst [vmem:[#allocation33_spill] sm:$0xff] %v8607_v20  ;;  %7705 = vset.pattern.permute.xlu1 %v15944_v53 }
  0xb3   :  { %1020 = vperm.xlu1 %7705, %v8177_v11  }
  0xb5   :  { %v8612_v61 = vpop.permute.xlu1 %206  ;;  %v8614_v8 = vpop.permute.xlu0 %201  ;;  %3445 = vperm.xlu0 %7743, %v8271_v30  }
  0xb6   :  { %15958 = vst [vmem:[#allocation34_spill] sm:$0xff] %v8612_v61  ;;  %15959 = vst [vmem:[#allocation35_spill] sm:$0xff] %v8614_v8 }
  0xb7   :  { %7706 = vset.pattern.permute.xlu1 %v15937_v62 }
  0xb8   :  { %1811 = vperm.xlu1 %7706, %v8177_v11  }
  0xb9   :  { %v8619_v13 = vpop.permute.xlu1 %216  ;;  %v8621_v60 = vpop.permute.xlu0 %211  ;;  %3457 = vperm.xlu0 %7743, %v8300_v35  }
  0xba   :  { %15960 = vst [vmem:[#allocation36_spill] sm:$0xff] %v8619_v13  ;;  %15961 = vst [vmem:[#allocation37_spill] sm:$0xff] %v8621_v60 }
  0xbc   :  { %1815 = vperm.xlu1 %7706, %v8172_v10  }
  0xbd   :  { %v8625_v61 = vpop.permute.xlu1 %226  ;;  %v8627_v4 = vpop.permute.xlu0 %221  ;;  %3469 = vperm.xlu0 %7743, %v8307_v36  }
  0xbe   :  { %15962 = vst [vmem:[#allocation38_spill] sm:$0xff] %v8625_v61  ;;  %15963 = vst [vmem:[#allocation39_spill] sm:$0xff] %v8627_v4  ;;  %v8753_v4 = vsub.s32 1, %v8165_v9 }
  0xc0   :  { %7707 = vset.pattern.permute.xlu1 %v15939_v54  ;;  %16001 = vst [vmem:[#allocation76_spill] sm:$0xff] %v8753_v4  ;;  %v8769_v8 = vrot.slane %v8202_v17, %v8753_v4 }
  0xc1   :  { %v8631_v30 = vpop.permute.xlu1 %236  ;;  %v8633_v0 = vpop.permute.xlu0 %231  ;;  %2606 = vperm.xlu1 %7707, %v8172_v10   ;;  %3481 = vperm.xlu0 %7743, %v8338_v41  }
  0xc2   :  { %15964 = vst [vmem:[#allocation40_spill] sm:$0xff] %v8631_v30  ;;  %15965 = vst [vmem:[#allocation41_spill] sm:$0xff] %v8633_v0 }
  0xc3   :  { %16005 = vst [vmem:[#allocation80_spill] sm:$0xff] %v8769_v8 }
  0xc5   :  { %v8638_v35 = vpop.permute.xlu1 %246  ;;  %v8640_v59 = vpop.permute.xlu0 %241  ;;  %7708 = vset.pattern.permute.xlu1 %v15945_v3  ;;  %3493 = vperm.xlu0 %7743, %v8345_v42  }
  0xc6   :  { %15967 = vst [vmem:[#allocation42_spill] sm:$0xff] %v8638_v35  ;;  %15968 = vst [vmem:[#allocation43_spill] sm:$0xff] %v8640_v59  ;;  %3393 = vperm.xlu1 %7708, %v8177_v11  }
  0xc9   :  { %v8645_v18 = vpop.permute.xlu1 %256  ;;  %v8647_v36 = vpop.permute.xlu0 %251  ;;  %3505 = vperm.xlu0 %7743, %v8374_v47  }
  0xca   :  { %15969 = vst [vmem:[#allocation44_spill] sm:$0xff] %v8645_v18  ;;  %15970 = vst [vmem:[#allocation45_spill] sm:$0xff] %v8647_v36  ;;  %7709 = vset.pattern.permute.xlu1 %v15944_v53 }
  0xcb   :  { %1028 = vperm.xlu1 %7709, %v8193_v15  }
  0xcd   :  { %v8652_v10 = vpop.permute.xlu1 %266  ;;  %v8654_v5 = vpop.permute.xlu0 %261  ;;  %3517 = vperm.xlu0 %7743, %v8381_v48  }
  0xce   :  { %15971 = vst [vmem:[#allocation46_spill] sm:$0xff] %v8652_v10  ;;  %15972 = vst [vmem:[#allocation47_spill] sm:$0xff] %v8654_v5 }
  0xcf   :  { %1032 = vperm.xlu1 %7709, %v8188_v14  }
  0xd1   :  { %v8658_v59 = vpop.permute.xlu1 %276  ;;  %v8660_v11 = vpop.permute.xlu0 %271  ;;  %3525 = vperm.xlu0 %7743, %v8389_v50  }
  0xd2   :  { %15973 = vst [vmem:[#allocation48_spill] sm:$0xff] %v8658_v59  ;;  %15974 = vst [vmem:[#allocation49_spill] sm:$0xff] %v8660_v11 }
  0xd3   :  { %7710 = vset.pattern.permute.xlu1 %v15937_v62 }
  0xd4   :  { %1823 = vperm.xlu1 %7710, %v8188_v14  }
  0xd5   :  { %v8665_v36 = vpop.permute.xlu1 %286  ;;  %v8667_v18 = vpop.permute.xlu0 %281  ;;  %7776 = vset.pattern.permute.xlu0 %v15937_v62 }
  0xd6   :  { %15975 = vst [vmem:[#allocation50_spill] sm:$0xff] %v8665_v36  ;;  %15976 = vst [vmem:[#allocation51_spill] sm:$0xff] %v8667_v18  ;;  %1795 = vperm.xlu0 %7776, %v8134_v2  }
  0xd8   :  { %7711 = vset.pattern.permute.xlu1 %v15939_v54 }
  0xd9   :  { %v8672_v5 = vpop.permute.xlu1 %296  ;;  %v8674_v59 = vpop.permute.xlu0 %291  ;;  %2610 = vperm.xlu1 %7711, %v8193_v15  }
  0xda   :  { %15977 = vst [vmem:[#allocation52_spill] sm:$0xff] %v8672_v5  ;;  %15978 = vst [vmem:[#allocation53_spill] sm:$0xff] %v8674_v59  ;;  %1807 = vperm.xlu0 %7776, %v8158_v7  }
  0xdd   :  { %v8678_v11 = vpop.permute.xlu1 %306  ;;  %7712 = vset.pattern.permute.xlu1 %v15945_v3 }
  0xde   :  { %15979 = vst [vmem:[#allocation54_spill] sm:$0xff] %v8678_v11  ;;  %v8681_v36 = vpop.permute.xlu0 %2578  ;;  %3401 = vperm.xlu1 %7712, %v8193_v15   ;;  %1819 = vperm.xlu0 %7776, %v8193_v15  }
  0xdf   :  { %15980 = vst [vmem:[#allocation55_spill] sm:$0xff] %v8681_v36 }
  0xe1   :  { %v8685_v2 = vpop.permute.xlu1 %316 }
  0xe2   :  { %15981 = vst [vmem:[#allocation56_spill] sm:$0xff] %v8685_v2  ;;  %v8687_v18 = vpop.permute.xlu0 %2590  ;;  %3405 = vperm.xlu1 %7712, %v8188_v14   ;;  %1831 = vperm.xlu0 %7776, %v8223_v22  }
  0xe3   :  { %15982 = vst [vmem:[#allocation57_spill] sm:$0xff] %v8687_v18 }
  0xe6   :  { %v8691_v59 = vpop.permute.xlu1 %996  ;;  %v8693_v7 = vpop.permute.xlu0 %2602  ;;  %7713 = vset.pattern.permute.xlu1 %v15944_v53  ;;  %1843 = vperm.xlu0 %7776, %v8252_v27  }
  0xe7   :  { %15983 = vst [vmem:[#allocation58_spill] sm:$0xff] %v8691_v59  ;;  %15984 = vst [vmem:[#allocation59_spill] sm:$0xff] %v8693_v7  ;;  %1040 = vperm.xlu1 %7713, %v8223_v22  }
  0xea   :  { %v8698_v11 = vpop.permute.xlu0 %2614  ;;  %1855 = vperm.xlu0 %7776, %v8259_v28  }
  0xeb   :  { %15985 = vst [vmem:[#allocation60_spill] sm:$0xff] %v8698_v11  ;;  %v8700_v15 = vpop.permute.xlu1 %1787  ;;  %7714 = vset.pattern.permute.xlu1 %v15937_v62 }
  0xec   :  { %15986 = vst [vmem:[#allocation61_spill] sm:$0xff] %v8700_v15  ;;  %1827 = vperm.xlu1 %7714, %v8228_v23  }
  0xee   :  { %v8705_v14 = vpop.permute.xlu0 %2626  ;;  %1867 = vperm.xlu0 %7776, %v8288_v33  }
  0xef   :  { %15987 = vst [vmem:[#allocation62_spill] sm:$0xff] %v8705_v14  ;;  %v8707_v2 = vpop.permute.xlu1 %1791 }
  0xf0   :  { %15988 = vst [vmem:[#allocation63_spill] sm:$0xff] %v8707_v2  ;;  %7715 = vset.pattern.permute.xlu1 %v15939_v54 }
  0xf1   :  { %2618 = vperm.xlu1 %7715, %v8228_v23  }
  0xf2   :  { %v8712_v5 = vpop.permute.xlu0 %2638  ;;  %1879 = vperm.xlu0 %7776, %v8295_v34  }
  0xf3   :  { %15989 = vst [vmem:[#allocation64_spill] sm:$0xff] %v8712_v5  ;;  %v461_v5 = vmul.f32 %v8769_v8, %v8538_v12 }
  0xf4   :  { %v8715_v10 = vpop.permute.xlu1 %2582 }
  0xf5   :  { %15990 = vst [vmem:[#allocation65_spill] sm:$0xff] %v8715_v10  ;;  %2622 = vperm.xlu1 %7715, %v8223_v22  }
  0xf6   :  { %1891 = vperm.xlu0 %7776, %v8326_v39  }
  0xf7   :  { %v8718_v35 = vpop.permute.xlu0 %1000 }
  0xf8   :  { %15991 = vst [vmem:[#allocation66_spill] sm:$0xff] %v8718_v35 }
  0xf9   :  { %v8721_v30 = vpop.permute.xlu1 %3369  ;;  %7716 = vset.pattern.permute.xlu1 %v15945_v3 }
  0xfa   :  { %15992 = vst [vmem:[#allocation67_spill] sm:$0xff] %v8721_v30  ;;  %3413 = vperm.xlu1 %7716, %v8223_v22   ;;  %1903 = vperm.xlu0 %7776, %v8333_v40   ;;  %v91_v22 = vld [vmem:[%s15313_s0 + $0x130] sm:$0xff] }
  0xfb   :  { %v8725_v33 = vpop.permute.xlu0 %1012 }
  0xfc   :  { %15993 = vst [vmem:[#allocation68_spill] sm:$0xff] %v8725_v33 }
  0xfe   :  { %v8728_v23 = vpop.permute.xlu1 %1004  ;;  %7717 = vset.pattern.permute.xlu1 %v15944_v53  ;;  %1915 = vperm.xlu0 %7776, %v8362_v45   ;;  %v8750_v45 = vsub.s32 0, %v8165_v9 }
  0xff   :  { %15994 = vst [vmem:[#allocation69_spill] sm:$0xff] %v8728_v23  ;;  %v8731_v34 = vpop.permute.xlu0 %1024  ;;  %1044 = vperm.xlu1 %7717, %v8240_v25  }
 0x100   :  { %15995 = vst [vmem:[#allocation70_spill] sm:$0xff] %v8731_v34  ;;  %16000 = vst [vmem:[#allocation75_spill] sm:$0xff] %v8750_v45  ;;  %v8805_v57 = vrot.slane %v8430_v63, %v8750_v45  ;;  %v8852_v11 = vrot.slane %v8467_v49, %v8750_v45 }
 0x102   :  { %v8735_v39 = vpop.permute.xlu1 %1008  ;;  %1927 = vperm.xlu0 %7776, %v8369_v46   ;;  %v93_v46 = vld [vmem:[%s15313_s0 + $0x140] sm:$0xff]  ;;  %16012 = vst [vmem:[#allocation87_spill] sm:$0xff] %v8805_v57  ;;  %16020 = vst [vmem:[#allocation95_spill] sm:$0xff] %v8852_v11 }
 0x103   :  { %15996 = vst [vmem:[#allocation71_spill] sm:$0xff] %v8735_v39  ;;  %v8737_v0 = vpop.permute.xlu0 %1036  ;;  %7718 = vset.pattern.permute.xlu1 %v15937_v62 }
 0x104   :  { %15997 = vst [vmem:[#allocation72_spill] sm:$0xff] %v8737_v0  ;;  %1835 = vperm.xlu1 %7718, %v8240_v25  }
 0x106   :  { %1939 = vperm.xlu0 %7776, %v91_v22   ;;  %v8765_v22 = vrot.slane %v8202_v17, %v8750_v45  ;;  %v8785_v17 = vrot.slane %v8407_v56, %v8750_v45 }
 0x107   :  { %v8745_v40 = vpop.permute.xlu1 %1799  ;;  %v8747_v61 = vpop.permute.xlu0 %1048 }
 0x108   :  { %15998 = vst [vmem:[#allocation73_spill] sm:$0xff] %v8745_v40  ;;  %15999 = vst [vmem:[#allocation74_spill] sm:$0xff] %v8747_v61  ;;  %1839 = vperm.xlu1 %7718, %v8235_v24   ;;  %v464_v9 = vmul.f32 %v8765_v22, %v8547_v58  ;;  %v460_v21 = vmul.f32 %v8765_v22, %v8538_v12 }
 0x109   :  { %16004 = vst [vmem:[#allocation79_spill] sm:$0xff] %v8765_v22  ;;  %16007 = vst [vmem:[#allocation82_spill] sm:$0xff] %v8785_v17 }
 0x10a   :  { %1947 = vperm.xlu0 %7776, %v93_v46   ;;  %v465_v46 = vmul.f32 %v8769_v8, %v8547_v58  ;;  %v8794_v58 = vrot.slane %v8198_v16, %v8750_v45 }
 0x10b   :  { %v8759_v13 = vpop.permute.xlu0 %1060 }
 0x10c   :  { %16002 = vst [vmem:[#allocation77_spill] sm:$0xff] %v8759_v13  ;;  %v8761_v60 = vpop.permute.xlu1 %2586  ;;  %7719 = vset.pattern.permute.xlu1 %v15939_v54  ;;  %16009 = vst [vmem:[#allocation84_spill] sm:$0xff] %v8794_v58  ;;  %v741_v20 = vadd.f32 %v8794_v58, %v464_v9  ;;  %v737_v19 = vadd.f32 %v8794_v58, %v460_v21  ;;  %v2063_v21 = vmul.f32 %v8805_v57, %v8700_v15 }
 0x10d   :  { %16003 = vst [vmem:[#allocation78_spill] sm:$0xff] %v8761_v60  ;;  %2630 = vperm.xlu1 %7719, %v8235_v24   ;;  %v8789_v24 = vrot.slane %v8407_v56, %v8753_v4  ;;  %v8809_v56 = vrot.slane %v8430_v63, %v8753_v4  ;;  %v1272_v63 = vmul.f32 %v8785_v17, %v8691_v59 }
 0x10e   :  { %7778 = vset.pattern.permute.xlu0 %v15939_v54 }
 0x10f   :  { %v8777_v13 = vpop.permute.xlu0 %1072  ;;  %16008 = vst [vmem:[#allocation83_spill] sm:$0xff] %v8789_v24  ;;  %2650 = vperm.xlu0 %7778, %v8276_v31   ;;  %16013 = vst [vmem:[#allocation88_spill] sm:$0xff] %v8809_v56  ;;  %v1277_v31 = vmul.f32 %v8789_v24, %v8718_v35  ;;  %v1273_v9 = vmul.f32 %v8789_v24, %v8691_v59 }
 0x110   :  { %16006 = vst [vmem:[#allocation81_spill] sm:$0xff] %v8777_v13  ;;  %v8798_v13 = vrot.slane %v8198_v16, %v8753_v4  ;;  %v1276_v16 = vmul.f32 %v8785_v17, %v8718_v35  ;;  %v2064_v35 = vmul.f32 %v8809_v56, %v8700_v15 }
 0x111   :  { %v8801_v12 = vpop.permute.xlu1 %3377  ;;  %7720 = vset.pattern.permute.xlu1 %v15945_v3 }
 0x112   :  { %16010 = vst [vmem:[#allocation85_spill] sm:$0xff] %v8798_v13  ;;  %16011 = vst [vmem:[#allocation86_spill] sm:$0xff] %v8801_v12  ;;  %3417 = vperm.xlu1 %7720, %v8240_v25   ;;  %v742_v61 = vadd.f32 %v8798_v13, %v465_v46  ;;  %v738_v0 = vadd.f32 %v8798_v13, %v461_v5  ;;  %v8832_v25 = vrot.slane %v8391_v51, %v8750_v45 }
 0x113   :  { %v8818_v14 = vpop.permute.xlu0 %1084  ;;  %2662 = vperm.xlu0 %7778, %v8283_v32   ;;  %v8836_v46 = vrot.slane %v8391_v51, %v8753_v4  ;;  %v1532_v59 = vadd.f32 %v1276_v16, %v741_v20  ;;  %v8848_v51 = vrot.slane %v8467_v49, %v8753_v4  ;;  %v2067_v20 = vmul.f32 %v8805_v57, %v8707_v2 }
 0x114   :  { %16014 = vst [vmem:[#allocation89_spill] sm:$0xff] %v8818_v14  ;;  %16016 = vst [vmem:[#allocation91_spill] sm:$0xff] %v8832_v25  ;;  %v1533_v5 = vadd.f32 %v1277_v31, %v742_v61  ;;  %v1528_v14 = vadd.f32 %v1272_v63, %v737_v19  ;;  %v1529_v60 = vadd.f32 %v1273_v9, %v738_v0 }
 0x115   :  { %v8828_v12 = vpop.permute.xlu1 %3381  ;;  %16017 = vst [vmem:[#allocation92_spill] sm:$0xff] %v8836_v46  ;;  %16019 = vst [vmem:[#allocation94_spill] sm:$0xff] %v8848_v51  ;;  %v2068_v61 = vmul.f32 %v8809_v56, %v8707_v2  ;;  %v2854_v19 = vmul.f32 %v8832_v25, %v8681_v36  ;;  %v2855_v31 = vmul.f32 %v8836_v46, %v8681_v36 }
 0x116   :  { %16015 = vst [vmem:[#allocation90_spill] sm:$0xff] %v8828_v12  ;;  %7721 = vset.pattern.permute.xlu1 %v15944_v53  ;;  %v2320_v16 = vadd.f32 %v2064_v35, %v1529_v60  ;;  %v2319_v63 = vadd.f32 %v2063_v21, %v1528_v14  ;;  %v2323_v9 = vadd.f32 %v2067_v20, %v1532_v59 }
 0x117   :  { %v8843_v32 = vpop.permute.xlu0 %1096  ;;  %1052 = vperm.xlu1 %7721, %v8252_v27   ;;  %2674 = vperm.xlu0 %7778, %v8312_v37   ;;  %v2324_v49 = vadd.f32 %v2068_v61, %v1533_v5  ;;  %v3646_v37 = vmul.f32 %v8848_v51, %v8721_v30  ;;  %v3645_v45 = vmul.f32 %v8852_v11, %v8721_v30 }
 0x118   :  { %16018 = vst [vmem:[#allocation93_spill] sm:$0xff] %v8843_v32  ;;  %v2858_v2 = vmul.f32 %v8832_v25, %v8715_v10  ;;  %v2859_v60 = vmul.f32 %v8836_v46, %v8715_v10  ;;  %v3111_v35 = vadd.f32 %v2855_v31, %v2320_v16  ;;  %v3110_v14 = vadd.f32 %v2854_v19, %v2319_v63 }
 0x11a   :  { %v8861_v0 = vpop.permute.xlu1 %1016  ;;  %v3115_v20 = vadd.f32 %v2859_v60, %v2324_v49  ;;  %v3114_v61 = vadd.f32 %v2858_v2, %v2323_v9  ;;  %v3901_v36 = vadd.f32 %v3645_v45, %v3110_v14  ;;  %v7971_v9 = vld [vmem:[%s15313_s0 + $0x78] sm:$0xff] }
 0x11b   :  { %16021 = vst [vmem:[#allocation96_spill] sm:$0xff] %v8861_v0  ;;  %1056 = vperm.xlu1 %7721, %v8247_v26   ;;  %2686 = vperm.xlu0 %7778, %v8319_v38   ;;  %v3902_v38 = vadd.f32 %v3646_v37, %v3111_v35 }
 0x11c   :  { %v8866_v4 = vpop.permute.xlu0 %3373  ;;  %v4157_v15 = vmax.f32 %v3901_v36, 0.0 }
 0x11d   :  { %16022 = vst [vmem:[#allocation97_spill] sm:$0xff] %v8866_v4  ;;  %v3650_v59 = vmul.f32 %v8848_v51, %v8866_v4  ;;  %v3649_v21 = vmul.f32 %v8852_v11, %v8866_v4  ;;  %v4158_v4 = vmax.f32 %v3902_v38, 0.0 }
 0x11f   :  { %v8881_v5 = vpop.permute.xlu1 %1803  ;;  %7722 = vset.pattern.permute.xlu1 %v15937_v62  ;;  %2698 = vperm.xlu0 %7778, %v8350_v43   ;;  %v3906_v16 = vadd.f32 %v3650_v59, %v3115_v20  ;;  %v3905_v31 = vadd.f32 %v3649_v21, %v3114_v61  ;;  %v468_v20 = vmul.f32 %v8765_v22, %v8536_v55 }
 0x120   :  { %16023 = vst [vmem:[#allocation98_spill] sm:$0xff] %v8881_v5  ;;  %v8884_v30 = vpop.permute.xlu0 %3385  ;;  %1847 = vperm.xlu1 %7722, %v8247_v26   ;;  %v8898_v26 = vld [vmem:[%s15313_s0 + $0x120] sm:$0xff]  ;;  %v473_v61 = vmul.f32 %v8769_v8, %v8545_v1 }
 0x121   :  { %16024 = vst [vmem:[#allocation99_spill] sm:$0xff] %v8884_v30  ;;  %v4162_v19 = vmax.f32 %v3906_v16, 0.0  ;;  %v4161_v63 = vmax.f32 %v3905_v31, 0.0  ;;  %16027 = vst [vmem:[#allocation102_spill] sm:$0xff] %v8898_v26  ;;  %v7973_v16 = vld [vmem:[%s15313_s0 + $0x88] sm:$0xff]  ;;  %v8963_v31 = vadd.f32 %v8794_v58, %v468_v20 }
 0x123   :  { %2710 = vperm.xlu0 %7778, %v8357_v44   ;;  %v4414_v45 = vpack.c.bf16 %v4162_v19, %v4158_v4  ;;  %v4413_v43 = vpack.c.bf16 %v4161_v63, %v4157_v15  ;;  %v94_v15 = vld [vmem:[%s15313_s0 + $0x148] sm:$0xff]  ;;  %v480_v63 = vmul.f32 %v8765_v22, %v8558_v52 }
 0x124   :  { %v8888_v10 = vpop.permute.xlu1 %2594  ;;  %7723 = vset.pattern.permute.xlu1 %v15939_v54  ;;  %v8892_v2 = vpop.permute.xlu0 %3397 }
 0x125   :  { %16025 = vst [vmem:[#allocation100_spill] sm:$0xff] %v8888_v10  ;;  %16026 = vst [vmem:[#allocation101_spill] sm:$0xff] %v8892_v2  ;;  %2634 = vperm.xlu1 %7723, %v8252_v27   ;;  %4969 = vmatprep.mubr.bf16.mxu0 %v4414_v45  ;;  %v481_v45 = vmul.f32 %v8769_v8, %v8558_v52 }
 0x126   :  { %4970 = vmatmul.mubr.bf16.vlgmr.msra.gmra.mrb[0].mxu0 %v4413_v43  ;;  %v750_v43 = vadd.f32 %v8798_v13, %v473_v61 }
 0x127   :  { %2722 = vperm.xlu0 %7778, %v8898_v26  }
 0x128   :  { %v8900_v49 = vpop.permute.xlu1 %2598  ;;  %v8903_v44 = vpop.permute.xlu0 %3409 }
 0x129   :  { %16028 = vst [vmem:[#allocation103_spill] sm:$0xff] %v8900_v49  ;;  %16029 = vst [vmem:[#allocation104_spill] sm:$0xff] %v8903_v44  ;;  %7725 = vset.pattern.permute.xlu1 %v15945_v3 }
 0x12a   :  { %3425 = vperm.xlu1 %7725, %v8252_v27   ;;  %v95_v27 = vld [vmem:[%s15313_s0 + $0x150] sm:$0xff] }
 0x12b   :  { %2734 = vperm.xlu0 %7778, %v8389_v50  }
 0x12c   :  { %v8908_v4 = vpop.permute.xlu0 %3421 }
 0x12d   :  { %16030 = vst [vmem:[#allocation105_spill] sm:$0xff] %v8908_v4  ;;  %v8910_v36 = vpop.permute.xlu1 %3389 }
 0x12e   :  { %16031 = vst [vmem:[#allocation106_spill] sm:$0xff] %v8910_v36  ;;  %3429 = vperm.xlu1 %7725, %v7971_v9  }
 0x12f   :  { %2742 = vperm.xlu0 %7778, %v94_v15   ;;  %v16041_v15 = vld [vmem:[#allocation23_spill] sm:$0xff] }
 0x130   :  { %v8918_v37 = vpop.permute.xlu0 %3433  ;;  %v476_v9 = vmul.f32 %v8765_v22, %v16041_v15 }
 0x131   :  { %16032 = vst [vmem:[#allocation107_spill] sm:$0xff] %v8918_v37 }
 0x132   :  { %7726 = vset.pattern.permute.xlu1 %v15944_v53  ;;  %v8924_v50 = vpop.permute.xlu1 %1020 }
 0x133   :  { %16033 = vst [vmem:[#allocation108_spill] sm:$0xff] %v8924_v50  ;;  %1064 = vperm.xlu1 %7726, %v8259_v28   ;;  %2746 = vperm.xlu0 %7778, %v95_v27   ;;  %v7972_v28 = vld [vmem:[%s15313_s0 + $0x80] sm:$0xff]  ;;  %v477_v27 = vmul.f32 %v8769_v8, %v16041_v15 }
 0x134   :  { %v8927_v60 = vpop.permute.xlu0 %3445 }
 0x135   :  { %16034 = vst [vmem:[#allocation109_spill] sm:$0xff] %v8927_v60  ;;  %v754_v37 = vadd.f32 %v8798_v13, %v477_v27 }
 0x137   :  { %7727 = vset.pattern.permute.xlu1 %v15937_v62  ;;  %v8930_v35 = vpop.permute.xlu1 %1811  ;;  %7785 = vset.pattern.permute.xlu0 %v15944_v53 }
 0x138   :  { %16035 = vst [vmem:[#allocation110_spill] sm:$0xff] %v8930_v35  ;;  %v8933_v59 = vpop.permute.xlu0 %3457  ;;  %1851 = vperm.xlu1 %7727, %v8264_v29   ;;  %1108 = vperm.xlu0 %7785, %v8338_v41   ;;  %v469_v29 = vmul.f32 %v8769_v8, %v8536_v55  ;;  %v472_v41 = vmul.f32 %v8765_v22, %v8545_v1 }
 0x139   :  { %16036 = vst [vmem:[#allocation111_spill] sm:$0xff] %v8933_v59  ;;  %v16046_v59 = vld [vmem:[#allocation26_spill] sm:$0xff]  ;;  %v1285_v1 = vmul.f32 %v8789_v24, %v8735_v39  ;;  %v753_v55 = vadd.f32 %v8794_v58, %v476_v9 }
 0x13a   :  { %v8966_v19 = vadd.f32 %v8798_v13, %v469_v29  ;;  %v496_v15 = vmul.f32 %v8765_v22, %v16046_v59  ;;  %v497_v52 = vmul.f32 %v8769_v8, %v16046_v59 }
 0x13b   :  { %v8937_v14 = vpop.permute.xlu1 %1815 }
 0x13c   :  { %16037 = vst [vmem:[#allocation112_spill] sm:$0xff] %v8937_v14  ;;  %v8939_v21 = vpop.permute.xlu0 %3469  ;;  %7728 = vset.pattern.permute.xlu1 %v15939_v54  ;;  %1120 = vperm.xlu0 %7785, %v8345_v42   ;;  %v9027_v9 = vadd.f32 %v8794_v58, %v496_v15  ;;  %v9030_v27 = vadd.f32 %v8798_v13, %v497_v52 }
 0x13d   :  { %16038 = vst [vmem:[#allocation113_spill] sm:$0xff] %v8939_v21  ;;  %2642 = vperm.xlu1 %7728, %v7972_v28   ;;  %v16042_v28 = vld [vmem:[#allocation24_spill] sm:$0xff]  ;;  %v1289_v15 = vmul.f32 %v8789_v24, %v8725_v33  ;;  %v2867_v52 = vmul.f32 %v8836_v46, %v8687_v18 }
 0x13e   :  { %v488_v20 = vmul.f32 %v8765_v22, %v16042_v28  ;;  %v489_v29 = vmul.f32 %v8769_v8, %v16042_v28  ;;  %v1284_v28 = vmul.f32 %v8785_v17, %v8735_v39  ;;  %v2075_v39 = vmul.f32 %v8805_v57, %v8745_v40  ;;  %16049 = vst [vmem:[#allocation119_spill] sm:$0xff] %v9027_v9 }
 0x13f   :  { %v2871_v9 = vmul.f32 %v8836_v46, %v8888_v10 }
 0x140   :  { %v8954_v38 = vpop.permute.xlu1 %2606  ;;  %1132 = vperm.xlu0 %7785, %v8374_v47   ;;  %v8957_v42 = vpop.permute.xlu0 %3481  ;;  %v749_v47 = vadd.f32 %v8794_v58, %v472_v41  ;;  %v766_v26 = vadd.f32 %v8798_v13, %v489_v29  ;;  %v16051_v29 = vld [vmem:[#allocation28_spill] sm:$0xff] }
 0x141   :  { %16039 = vst [vmem:[#allocation114_spill] sm:$0xff] %v8954_v38  ;;  %16040 = vst [vmem:[#allocation115_spill] sm:$0xff] %v8957_v42  ;;  %2646 = vperm.xlu1 %7728, %v7973_v16   ;;  %v16043_v42 = vld [vmem:[#allocation25_spill] sm:$0xff] }
 0x142   :  { %v484_v21 = vmul.f32 %v8765_v22, %v16043_v42  ;;  %v485_v41 = vmul.f32 %v8769_v8, %v16043_v42  ;;  %v9004_v42 = vadd.f32 %v8798_v13, %v481_v45  ;;  %v765_v45 = vadd.f32 %v8794_v58, %v488_v20 }
 0x143   :  { %v1540_v44 = vadd.f32 %v1284_v28, %v749_v47  ;;  %v9063_v28 = vmul.f32 %v8765_v22, %v8595_v6 }
 0x144   :  { %1144 = vperm.xlu0 %7785, %v8381_v48   ;;  %v8989_v32 = vpop.permute.xlu0 %3493  ;;  %v9001_v48 = vadd.f32 %v8794_v58, %v480_v63  ;;  %v2076_v63 = vmul.f32 %v8809_v56, %v8745_v40  ;;  %v9019_v4 = vadd.f32 %v8794_v58, %v484_v21  ;;  %v1541_v40 = vadd.f32 %v1285_v1, %v750_v43 }
 0x145   :  { %v8987_v61 = vpop.permute.xlu1 %3393  ;;  %16045 = vst [vmem:[#allocation117_spill] sm:$0xff] %v8989_v32  ;;  %7729 = vset.pattern.permute.xlu1 %v15945_v3  ;;  %v16047_v32 = vld [vmem:[#allocation27_spill] sm:$0xff]  ;;  %v2866_v1 = vmul.f32 %v8832_v25, %v8687_v18  ;;  %v2331_v47 = vadd.f32 %v2075_v39, %v1540_v44  ;;  %v9059_v43 = vmul.f32 %v8769_v8, %v16051_v29  ;;  %16054 = vst [vmem:[#allocation123_spill] sm:$0xff] %v9063_v28  ;;  %v16057_v28 = vld [vmem:[#allocation60_spill] sm:$0xff] }
 0x146   :  { %16044 = vst [vmem:[#allocation116_spill] sm:$0xff] %v8987_v61  ;;  %v492_v60 = vmul.f32 %v8765_v22, %v16047_v32  ;;  %v493_v59 = vmul.f32 %v8769_v8, %v16047_v32  ;;  %3437 = vperm.xlu1 %7729, %v7973_v16   ;;  %v9022_v32 = vadd.f32 %v8798_v13, %v485_v41 }
 0x147   :  { %v9042_v41 = vmul.f32 %v8765_v22, %v16051_v29  ;;  %16053 = vst [vmem:[#allocation122_spill] sm:$0xff] %v9059_v43  ;;  %v1280_v18 = vmul.f32 %v8785_v17, %v8728_v23  ;;  %v1281_v39 = vmul.f32 %v8789_v24, %v8728_v23  ;;  %v9085_v29 = vmul.f32 %v8832_v25, %v8693_v7 }
 0x148   :  { %v9024_v16 = vpop.permute.xlu0 %3505  ;;  %v9035_v20 = vadd.f32 %v8794_v58, %v492_v60  ;;  %v9038_v21 = vadd.f32 %v8798_v13, %v493_v59  ;;  %v9054_v60 = vld [vmem:[%s15313_s0 + $0x90] sm:$0xff]  ;;  %v2332_v59 = vadd.f32 %v2076_v63, %v1541_v40  ;;  %v9073_v40 = vmul.f32 %v8769_v8, %v8595_v6 }
 0x149   :  { %16048 = vst [vmem:[#allocation118_spill] sm:$0xff] %v9024_v16  ;;  %16052 = vst [vmem:[#allocation121_spill] sm:$0xff] %v9042_v41  ;;  %v1288_v16 = vmul.f32 %v8785_v17, %v8725_v33  ;;  %v3658_v63 = vmul.f32 %v8848_v51, %v8828_v12  ;;  %v3657_v33 = vmul.f32 %v8852_v11, %v8828_v12 }
 0x14a   :  { %v9032_v61 = vpop.permute.xlu1 %1028  ;;  %7730 = vset.pattern.permute.xlu1 %v15944_v53  ;;  %v1300_v6 = vmul.f32 %v8785_v17, %v8731_v34  ;;  %v2080_v8 = vmul.f32 %v8809_v56, %v8881_v5  ;;  %v9093_v23 = vmul.f32 %v8836_v46, %v8693_v7  ;;  %v1301_v22 = vmul.f32 %v8789_v24, %v8731_v34 }
 0x14b   :  { %16050 = vst [vmem:[#allocation120_spill] sm:$0xff] %v9032_v61  ;;  %1068 = vperm.xlu1 %7730, %v9054_v60   ;;  %v3123_v12 = vadd.f32 %v2867_v52, %v2332_v59  ;;  %v3122_v43 = vadd.f32 %v2866_v1, %v2331_v47  ;;  %v1536_v41 = vadd.f32 %v1280_v18, %v8963_v31 }
 0x14c   :  { %v9069_v58 = vpop.permute.xlu0 %3517  ;;  %v1537_v34 = vadd.f32 %v1281_v39, %v8966_v19  ;;  %v2079_v52 = vmul.f32 %v8805_v57, %v8881_v5  ;;  %v9115_v47 = vadd.f32 %v1300_v6, %v765_v45  ;;  %v1293_v18 = vmul.f32 %v8789_v24, %v8861_v0  ;;  %v16061_v19 = vld [vmem:[#allocation78_spill] sm:$0xff] }
 0x14d   :  { %16055 = vst [vmem:[#allocation124_spill] sm:$0xff] %v9069_v58  ;;  %v1545_v58 = vadd.f32 %v1289_v15, %v754_v37  ;;  %v9100_v37 = vmul.f32 %v8836_v46, %v16057_v28  ;;  %v1544_v15 = vadd.f32 %v1288_v16, %v753_v55  ;;  %v9111_v1 = vadd.f32 %v3658_v63, %v3123_v12  ;;  %v16062_v45 = vld [vmem:[#allocation86_spill] sm:$0xff] }
 0x14e   :  { %v9077_v44 = vpop.permute.xlu1 %1032  ;;  %v9113_v59 = vadd.f32 %v3657_v33, %v3122_v43  ;;  %v1292_v55 = vmul.f32 %v8785_v17, %v8861_v0  ;;  %v2862_v39 = vmul.f32 %v8832_v25, %v16061_v19  ;;  %v2863_v12 = vmul.f32 %v8836_v46, %v16061_v19  ;;  %v7975_v33 = vld [vmem:[%s15313_s0 + $0x98] sm:$0xff] }
 0x14f   :  { %16056 = vst [vmem:[#allocation125_spill] sm:$0xff] %v9077_v44  ;;  %7731 = vset.pattern.permute.xlu1 %v15937_v62  ;;  %16058 = vst [vmem:[#allocation126_spill] sm:$0xff] %v9100_v37  ;;  %v2336_v16 = vadd.f32 %v2080_v8, %v1545_v58  ;;  %v2870_v6 = vmul.f32 %v8832_v25, %v8888_v10  ;;  %v3654_v43 = vmul.f32 %v8848_v51, %v16062_v45 }
 0x150   :  { %1859 = vperm.xlu1 %7731, %v9054_v60   ;;  %v9106_v7 = vpop.permute.xlu0 %3525  ;;  %v3653_v58 = vmul.f32 %v8852_v11, %v16062_v45  ;;  %v4170_v0 = vmax.f32 %v9111_v1, 0.0  ;;  %v4169_v10 = vmax.f32 %v9113_v59, 0.0  ;;  %v2335_v5 = vadd.f32 %v2079_v52, %v1544_v15 }
 0x151   :  { %16059 = vst [vmem:[#allocation127_spill] sm:$0xff] %v9106_v7  ;;  %v1557_v7 = vadd.f32 %v1301_v22, %v766_v26  ;;  %v3127_v8 = vadd.f32 %v2871_v9, %v2336_v16  ;;  %v3662_v22 = vmul.f32 %v8848_v51, %v8884_v30  ;;  %v1297_v26 = vmul.f32 %v8789_v24, %v8924_v50 }
 0x152   :  { %v1548_v19 = vadd.f32 %v1292_v55, %v9001_v48  ;;  %v1549_v62 = vadd.f32 %v1293_v18, %v9004_v42  ;;  %v2088_v45 = vmul.f32 %v8809_v56, %v8930_v35  ;;  %v9154_v37 = vadd.f32 %v2870_v6, %v2335_v5 }
 0x153   :  { %v9121_v31 = vpop.permute.xlu1 %1823  ;;  %v9158_v15 = vmul.f32 %v8852_v11, %v8884_v30  ;;  %v9162_v42 = vmul.f32 %v8848_v51, %v8892_v2  ;;  %v2874_v48 = vmul.f32 %v8832_v25, %v8900_v49  ;;  %v2875_v52 = vmul.f32 %v8836_v46, %v8900_v49 }
 0x154   :  { %16060 = vst [vmem:[#allocation128_spill] sm:$0xff] %v9121_v31  ;;  %1863 = vperm.xlu1 %7731, %v7975_v33   ;;  %v9169_v1 = vadd.f32 %v3662_v22, %v3127_v8  ;;  %v9173_v5 = vmul.f32 %v8852_v11, %v8892_v2  ;;  %v1296_v59 = vmul.f32 %v8785_v17, %v8924_v50 }
 0x155   :  { %v9140_v63 = vpop.permute.xlu0 %1795  ;;  %v1553_v55 = vadd.f32 %v1297_v26, %v9022_v32  ;;  %v2092_v49 = vmul.f32 %v8809_v56, %v8937_v14  ;;  %v3666_v2 = vmul.f32 %v8848_v51, %v8910_v36  ;;  %v3665_v32 = vmul.f32 %v8852_v11, %v8910_v36 }
 0x156   :  { %16063 = vst [vmem:[#allocation129_spill] sm:$0xff] %v9140_v63  ;;  %v2071_v9 = vmul.f32 %v8805_v57, %v9140_v63  ;;  %v2072_v16 = vmul.f32 %v8809_v56, %v9140_v63 }
 0x158   :  { %v9152_v28 = vpop.permute.xlu1 %2610  ;;  %7732 = vset.pattern.permute.xlu1 %v15939_v54  ;;  %v2328_v6 = vadd.f32 %v2072_v16, %v1537_v34  ;;  %v2327_v63 = vadd.f32 %v2071_v9, %v1536_v41  ;;  %v2883_v34 = vmul.f32 %v8836_v46, %v8954_v38  ;;  %v1305_v41 = vmul.f32 %v8789_v24, %v9032_v61 }
 0x159   :  { %16064 = vst [vmem:[#allocation130_spill] sm:$0xff] %v9152_v28  ;;  %2654 = vperm.xlu1 %7732, %v7975_v33   ;;  %v9178_v18 = vpop.permute.xlu0 %1807  ;;  %v2344_v33 = vadd.f32 %v2088_v45, %v1553_v55  ;;  %v1309_v55 = vmul.f32 %v8789_v24, %v9077_v44 }
 0x15a   :  { %16065 = vst [vmem:[#allocation131_spill] sm:$0xff] %v9178_v18  ;;  %v2083_v8 = vmul.f32 %v8805_v57, %v9178_v18  ;;  %v2084_v22 = vmul.f32 %v8809_v56, %v9178_v18  ;;  %v3119_v30 = vadd.f32 %v2863_v12, %v2328_v6  ;;  %v3118_v50 = vadd.f32 %v2862_v39, %v2327_v63 }
 0x15b   :  { %v1552_v18 = vadd.f32 %v1296_v59, %v9019_v4  ;;  %v2087_v12 = vmul.f32 %v8805_v57, %v8930_v35 }
 0x15c   :  { %v2340_v9 = vadd.f32 %v2084_v22, %v1549_v62  ;;  %v2339_v16 = vadd.f32 %v2083_v8, %v1548_v19  ;;  %v3910_v45 = vadd.f32 %v3654_v43, %v3119_v30  ;;  %v3909_v63 = vadd.f32 %v3653_v58, %v3118_v50  ;;  %v16068_v19 = vld [vmem:[#allocation116_spill] sm:$0xff] }
 0x15d   :  { %v9194_v26 = vpop.permute.xlu1 %3401  ;;  %7733 = vset.pattern.permute.xlu1 %v15945_v3  ;;  %v9200_v39 = vpop.permute.xlu0 %1819  ;;  %v2348_v62 = vadd.f32 %v2092_v49, %v1557_v7  ;;  %v3670_v4 = vmul.f32 %v8848_v51, %v16068_v19  ;;  %v2091_v30 = vmul.f32 %v8805_v57, %v8937_v14  ;;  %v1561_v50 = vadd.f32 %v1305_v41, %v9038_v21 }
 0x15e   :  { %16066 = vst [vmem:[#allocation132_spill] sm:$0xff] %v9194_v26  ;;  %16067 = vst [vmem:[#allocation133_spill] sm:$0xff] %v9200_v39  ;;  %v2096_v6 = vmul.f32 %v8809_v56, %v9200_v39  ;;  %3441 = vperm.xlu1 %7733, %v9054_v60   ;;  %v4166_v59 = vmax.f32 %v3910_v45, 0.0  ;;  %v4165_v8 = vmax.f32 %v3909_v63, 0.0  ;;  %v3131_v22 = vadd.f32 %v2875_v52, %v2340_v9 }
 0x15f   :  { %v3130_v36 = vadd.f32 %v2874_v48, %v2339_v16  ;;  %v3135_v58 = vadd.f32 %v9093_v23, %v2344_v33  ;;  %v3139_v35 = vadd.f32 %v2883_v34, %v2348_v62  ;;  %v2100_v7 = vmul.f32 %v8809_v56, %v9121_v31  ;;  %v9225_v23 = vld [vmem:[%s15313_s0 + $0xa0] sm:$0xff] }
 0x160   :  { %v4418_v49 = vpack.c.bf16 %v4170_v0, %v4166_v59  ;;  %v4417_v60 = vpack.c.bf16 %v4169_v10, %v4165_v8  ;;  %v3922_v3 = vadd.f32 %v3666_v2, %v3131_v22  ;;  %v2882_v52 = vmul.f32 %v8832_v25, %v8954_v38  ;;  %v16071_v22 = vld [vmem:[#allocation126_spill] sm:$0xff] }
 0x161   :  { %v9212_v43 = vpop.permute.xlu1 %3405  ;;  %v4174_v48 = vmax.f32 %v9169_v1, 0.0  ;;  %v3921_v9 = vadd.f32 %v3665_v32, %v3130_v36  ;;  %v2343_v21 = vadd.f32 %v2087_v12, %v1552_v18  ;;  %v1565_v41 = vadd.f32 %v1309_v55, %v9030_v27 }
 0x162   :  { %16069 = vst [vmem:[#allocation134_spill] sm:$0xff] %v9212_v43  ;;  %7734 = vset.pattern.permute.xlu1 %v15944_v53  ;;  %4979 = vmatprep.mubr.bf16.mxu0 %v4418_v49  ;;  %v4178_v10 = vmax.f32 %v3922_v3, 0.0  ;;  %v3926_v0 = vadd.f32 %v3670_v4, %v3135_v58  ;;  %v2352_v2 = vadd.f32 %v2096_v6, %v1561_v50  ;;  %v16072_v58 = vld [vmem:[#allocation60_spill] sm:$0xff]  ;;  %v16073_v49 = vld [vmem:[#allocation119_spill] sm:$0xff] }
 0x163   :  { %1076 = vperm.xlu1 %7734, %v9225_v23   ;;  %v1304_v33 = vmul.f32 %v8785_v17, %v9032_v61  ;;  %4980 = vmatmul.mubr.bf16.gmra.mrb[4].mxu0 %v4417_v60  ;;  %v3917_v36 = vadd.f32 %v9158_v15, %v9154_v37  ;;  %v3930_v27 = vadd.f32 %v9162_v42, %v3139_v35  ;;  %v4177_v15 = vmax.f32 %v3921_v9, 0.0 }
 0x164   :  { %v2347_v1 = vadd.f32 %v2091_v30, %v9115_v47  ;;  %v2887_v18 = vmul.f32 %v8836_v46, %v9152_v28  ;;  %v4422_v34 = vpack.c.bf16 %v4178_v10, %v4174_v48  ;;  %v3669_v3 = vmul.f32 %v8852_v11, %v16068_v19  ;;  %v9248_v47 = vld [vmem:[%s15313_s0 + $0xa8] sm:$0xff] }
 0x165   :  { %v2356_v16 = vadd.f32 %v2100_v7, %v1565_v41  ;;  %v1308_v12 = vmul.f32 %v8785_v17, %v9077_v44  ;;  %v2095_v37 = vmul.f32 %v8805_v57, %v9200_v39  ;;  %v3134_v35 = vadd.f32 %v9085_v29, %v2343_v21  ;;  %v7983_v39 = vld [vmem:[%s15313_s0 + $0xd8] sm:$0xff] }
 0x166   :  { %v9236_v32 = vpop.permute.xlu1 %1040  ;;  %4989 = vmatprep.mubr.bf16.mxu0 %v4422_v34  ;;  %v4182_v42 = vmax.f32 %v3926_v0, 0.0  ;;  %v3138_v45 = vadd.f32 %v2882_v52, %v2347_v1  ;;  %v3143_v63 = vadd.f32 %v2887_v18, %v2352_v2  ;;  %v3682_v55 = vmul.f32 %v8848_v51, %v9212_v43  ;;  %v16076_v0 = vld [vmem:[#allocation72_spill] sm:$0xff]  ;;  %v16079_v34 = vld [vmem:[#allocation123_spill] sm:$0xff] }
 0x167   :  { %16070 = vst [vmem:[#allocation135_spill] sm:$0xff] %v9236_v32  ;;  %1080 = vperm.xlu1 %7734, %v9248_v47   ;;  %v778_v6 = vadd.f32 %v8798_v13, %v9073_v40  ;;  %v1560_v62 = vadd.f32 %v1304_v33, %v9035_v20  ;;  %v2099_v29 = vmul.f32 %v8805_v57, %v9121_v31  ;;  %v4173_v4 = vmax.f32 %v3917_v36, 0.0  ;;  %v16078_v1 = vld [vmem:[#allocation84_spill] sm:$0xff]  ;;  %v16124_v31 = vld [vmem:[#allocation107_spill] sm:$0xff] }
 0x168   :  { %v4186_v59 = vmax.f32 %v3930_v27, 0.0  ;;  %v3925_v8 = vadd.f32 %v3669_v3, %v3134_v35  ;;  %v3147_v30 = vadd.f32 %v16071_v22, %v2356_v16  ;;  %v3678_v50 = vmul.f32 %v8848_v51, %v9194_v26  ;;  %v16077_v27 = vld [vmem:[#allocation121_spill] sm:$0xff] }
 0x169   :  { %v2890_v7 = vmul.f32 %v8832_v25, %v16072_v58  ;;  %v1564_v60 = vadd.f32 %v1308_v12, %v16073_v49  ;;  %v4421_v40 = vpack.c.bf16 %v4177_v15, %v4173_v4  ;;  %v2351_v20 = vadd.f32 %v2095_v37, %v1560_v62  ;;  %v16080_v12 = vld [vmem:[#allocation122_spill] sm:$0xff] }
 0x16a   :  { %v16075_v48 = vmov 2   ;;  %v4426_v9 = vpack.c.bf16 %v4186_v59, %v4182_v42  ;;  %v3929_v21 = vadd.f32 %v9173_v5, %v3138_v45  ;;  %v3934_v41 = vadd.f32 %v3678_v50, %v3143_v63  ;;  %v9289_v59 = vpop.permute.xlu0 %1831 }
 0x16b   :  { %v9264_v52 = vpop.permute.xlu1 %1827  ;;  %7735 = vset.pattern.permute.xlu1 %v16075_v48  ;;  %v3938_v10 = vadd.f32 %v3682_v55, %v3147_v30  ;;  %v1313_v2 = vmul.f32 %v8789_v24, %v16076_v0  ;;  %v2886_v33 = vmul.f32 %v8832_v25, %v9152_v28  ;;  %4990 = vmatmul.mubr.bf16.gmra.mrb[8].mxu0 %v4421_v40  ;;  %v4181_v16 = vmax.f32 %v3925_v8, 0.0  ;;  %v16116_v28 = vld [vmem:[#allocation35_spill] sm:$0xff] }
 0x16c   :  { %16074 = vst [vmem:[#allocation126_spill] sm:$0xff] %v9264_v52  ;;  %1871 = vperm.xlu1 %7735, %v9248_v47   ;;  %v2355_v36 = vadd.f32 %v2099_v29, %v1564_v60  ;;  %v781_v18 = vadd.f32 %v16078_v1, %v16077_v27  ;;  %v777_v3 = vadd.f32 %v16078_v1, %v16079_v34  ;;  %v4185_v55 = vmax.f32 %v3929_v21, 0.0 }
 0x16d   :  { %v1312_v5 = vmul.f32 %v8785_v17, %v16076_v0  ;;  %4999 = vmatprep.mubr.bf16.mxu0 %v4426_v9  ;;  %v782_v37 = vadd.f32 %v8798_v13, %v16080_v12  ;;  %v1316_v15 = vmul.f32 %v8785_v17, %v9236_v32  ;;  %v3142_v35 = vadd.f32 %v2886_v33, %v2351_v20  ;;  %v16085_v12 = vld [vmem:[#allocation104_spill] sm:$0xff]  ;;  %v16179_v0 = vld [vmem:[#allocation38_spill] sm:$0xff] }
 0x16e   :  { %v3681_v42 = vmul.f32 %v8852_v11, %v9212_v43  ;;  %v1317_v45 = vmul.f32 %v8789_v24, %v9236_v32  ;;  %v4190_v62 = vmax.f32 %v3934_v41, 0.0  ;;  %v4194_v29 = vmax.f32 %v3938_v10, 0.0  ;;  %16082 = vst [vmem:[#allocation119_spill] sm:$0xff] %v9289_v59  ;;  %v16109_v43 = vld [vmem:[#allocation64_spill] sm:$0xff] }
 0x16f   :  { %v1569_v4 = vadd.f32 %v1313_v2, %v778_v6  ;;  %v2104_v8 = vmul.f32 %v8809_v56, %v9264_v52  ;;  %v3146_v22 = vadd.f32 %v2890_v7, %v2355_v36  ;;  %v3677_v30 = vmul.f32 %v8852_v11, %v9194_v26 }
 0x170   :  { %v9287_v63 = vpop.permute.xlu1 %2618  ;;  %7736 = vset.pattern.permute.xlu1 %v15939_v54  ;;  %v1568_v50 = vadd.f32 %v1312_v5, %v777_v3  ;;  %v2107_v49 = vmul.f32 %v8805_v57, %v9289_v59  ;;  %v2103_v60 = vmul.f32 %v8805_v57, %v9264_v52  ;;  %v4425_v6 = vpack.c.bf16 %v4185_v55, %v4181_v16 }
 0x171   :  { %16081 = vst [vmem:[#allocation60_spill] sm:$0xff] %v9287_v63  ;;  %2658 = vperm.xlu1 %7736, %v9225_v23   ;;  %v2108_v40 = vmul.f32 %v8809_v56, %v9289_v59  ;;  %v1572_v20 = vadd.f32 %v1316_v15, %v781_v18  ;;  %v3933_v9 = vadd.f32 %v3677_v30, %v3142_v35  ;;  %v16084_v34 = vmov 4  }
 0x172   :  { %v3937_v21 = vadd.f32 %v3681_v42, %v3146_v22  ;;  %v1573_v7 = vadd.f32 %v1317_v45, %v782_v37  ;;  %v2894_v41 = vmul.f32 %v8832_v25, %v9287_v63  ;;  %v2895_v10 = vmul.f32 %v8836_v46, %v9287_v63 }
 0x173   :  { %v4430_v33 = vpack.c.bf16 %v4194_v29, %v4190_v62  ;;  %5000 = vmatmul.mubr.bf16.gmra.mrb[12].mxu0 %v4425_v6  ;;  %v2360_v36 = vadd.f32 %v2104_v8, %v1569_v4  ;;  %v2359_v3 = vadd.f32 %v2103_v60, %v1568_v50  ;;  %v4189_v5 = vmax.f32 %v3933_v9, 0.0  ;;  %v7978_v9 = vld [vmem:[%s15313_s0 + $0xb8] sm:$0xff] }
 0x174   :  { %v9307_v2 = vpop.permute.xlu1 %2622  ;;  %v4193_v16 = vmax.f32 %v3937_v21, 0.0  ;;  %v3686_v37 = vmul.f32 %v8848_v51, %v16085_v12  ;;  %v3685_v15 = vmul.f32 %v8852_v11, %v16085_v12  ;;  %v2364_v35 = vadd.f32 %v2108_v40, %v1573_v7 }
 0x175   :  { %16083 = vst [vmem:[#allocation121_spill] sm:$0xff] %v9307_v2  ;;  %v2898_v27 = vmul.f32 %v8832_v25, %v9307_v2  ;;  %v2899_v18 = vmul.f32 %v8836_v46, %v9307_v2  ;;  %5009 = vmatprep.mubr.bf16.mxu0 %v4430_v33  ;;  %7737 = vset.pattern.permute.xlu1 %v16084_v34  ;;  %v7979_v33 = vld [vmem:[%s15313_s0 + $0xb0] sm:$0xff] }
 0x176   :  { %3449 = vperm.xlu1 %7737, %v9225_v23   ;;  %v3151_v42 = vadd.f32 %v2895_v10, %v2360_v36  ;;  %v2363_v45 = vadd.f32 %v2107_v49, %v1572_v20  ;;  %v3150_v55 = vadd.f32 %v2894_v41, %v2359_v3  ;;  %v4429_v22 = vpack.c.bf16 %v4193_v16, %v4189_v5  ;;  %v16089_v36 = vld [vmem:[#allocation31_spill] sm:$0xff]  ;;  %v16091_v3 = vld [vmem:[#allocation80_spill] sm:$0xff]  ;;  %v16092_v16 = vld [vmem:[#allocation30_spill] sm:$0xff] }
 0x177   :  { %v3155_v29 = vadd.f32 %v2899_v18, %v2364_v35  ;;  %v509_v5 = vmul.f32 %v16091_v3, %v16089_v36  ;;  %v2915_v26 = vmul.f32 %v8836_v46, %v16109_v43  ;;  %v3710_v61 = vmul.f32 %v8848_v51, %v16124_v31 }
 0x178   :  { %v3154_v8 = vadd.f32 %v2898_v27, %v2363_v45  ;;  %v3942_v30 = vadd.f32 %v3686_v37, %v3151_v42  ;;  %v3941_v60 = vadd.f32 %v3685_v15, %v3150_v55  ;;  %v16090_v27 = vld [vmem:[#allocation79_spill] sm:$0xff]  ;;  %v513_v15 = vmul.f32 %v16091_v3, %v16092_v16  ;;  %v16094_v42 = vld [vmem:[#allocation74_spill] sm:$0xff] }
 0x179   :  { %v9319_v62 = vpop.permute.xlu1 %3413  ;;  %v508_v18 = vmul.f32 %v16090_v27, %v16089_v36  ;;  %v512_v37 = vmul.f32 %v16090_v27, %v16092_v16  ;;  %v1324_v45 = vmul.f32 %v8785_v17, %v16094_v42  ;;  %v1325_v55 = vmul.f32 %v8789_v24, %v16094_v42 }
 0x17a   :  { %16086 = vst [vmem:[#allocation123_spill] sm:$0xff] %v9319_v62  ;;  %v3690_v4 = vmul.f32 %v8848_v51, %v9319_v62  ;;  %v3689_v23 = vmul.f32 %v8852_v11, %v9319_v62  ;;  %3453 = vperm.xlu1 %7737, %v9248_v47   ;;  %v4198_v21 = vmax.f32 %v3942_v30, 0.0  ;;  %v4197_v7 = vmax.f32 %v3941_v60, 0.0 }
 0x17b   :  { %5010 = vmatmul.mubr.bf16.gmra.mrb[16].mxu0 %v4429_v22  ;;  %v789_v22 = vadd.f32 %v16078_v1, %v512_v37  ;;  %v790_v30 = vadd.f32 %v8798_v13, %v513_v15 }
 0x17c   :  { %v3946_v50 = vadd.f32 %v3690_v4, %v3155_v29  ;;  %v3945_v6 = vadd.f32 %v3689_v23, %v3154_v8  ;;  %v785_v29 = vadd.f32 %v16078_v1, %v508_v18  ;;  %v786_v4 = vadd.f32 %v8798_v13, %v509_v5  ;;  %v16096_v5 = vld [vmem:[#allocation62_spill] sm:$0xff] }
 0x17d   :  { %v2902_v37 = vmul.f32 %v8832_v25, %v16096_v5  ;;  %v2903_v15 = vmul.f32 %v8836_v46, %v16096_v5 }
 0x17e   :  { %v9326_v49 = vpop.permute.xlu1 %1044  ;;  %v4202_v40 = vmax.f32 %v3946_v50, 0.0  ;;  %v4201_v20 = vmax.f32 %v3945_v6, 0.0  ;;  %7738 = vset.pattern.permute.xlu1 %v15944_v53 }
 0x17f   :  { %16087 = vst [vmem:[#allocation122_spill] sm:$0xff] %v9326_v49  ;;  %1088 = vperm.xlu1 %7738, %v7978_v9   ;;  %v1320_v8 = vmul.f32 %v8785_v17, %v9326_v49  ;;  %v1321_v23 = vmul.f32 %v8789_v24, %v9326_v49 }
 0x180   :  { %v4434_v47 = vpack.c.bf16 %v4202_v40, %v4198_v21  ;;  %v4433_v41 = vpack.c.bf16 %v4201_v20, %v4197_v7  ;;  %v1580_v21 = vadd.f32 %v1324_v45, %v789_v22  ;;  %v1581_v7 = vadd.f32 %v1325_v55, %v790_v30 }
 0x182   :  { %5019 = vmatprep.mubr.bf16.mxu0 %v4434_v47  ;;  %v1576_v47 = vadd.f32 %v1320_v8, %v785_v29  ;;  %v16098_v29 = vld [vmem:[#allocation105_spill] sm:$0xff] }
 0x183   :  { %v9332_v10 = vpop.permute.xlu1 %1835  ;;  %7739 = vset.pattern.permute.xlu1 %v16075_v48  ;;  %5020 = vmatmul.mubr.bf16.gmra.mrb[20].mxu0 %v4433_v41  ;;  %v1577_v41 = vadd.f32 %v1321_v23, %v786_v4  ;;  %v3698_v4 = vmul.f32 %v8848_v51, %v16098_v29  ;;  %v3697_v8 = vmul.f32 %v8852_v11, %v16098_v29 }
 0x184   :  { %16088 = vst [vmem:[#allocation136_spill] sm:$0xff] %v9332_v10  ;;  %1875 = vperm.xlu1 %7739, %v7979_v33   ;;  %v2111_v50 = vmul.f32 %v8805_v57, %v9332_v10  ;;  %v2112_v60 = vmul.f32 %v8809_v56, %v9332_v10 }
 0x186   :  { %v2367_v10 = vadd.f32 %v2111_v50, %v1576_v47 }
 0x187   :  { %v9346_v35 = vpop.permute.xlu1 %1839 }
 0x188   :  { %16093 = vst [vmem:[#allocation31_spill] sm:$0xff] %v9346_v35  ;;  %7740 = vset.pattern.permute.xlu1 %v15939_v54  ;;  %v2115_v6 = vmul.f32 %v8805_v57, %v9346_v35  ;;  %v2116_v40 = vmul.f32 %v8809_v56, %v9346_v35  ;;  %v2368_v35 = vadd.f32 %v2112_v60, %v1577_v41 }
 0x189   :  { %2666 = vperm.xlu1 %7740, %v7979_v33  }
 0x18a   :  { %v2372_v62 = vadd.f32 %v2116_v40, %v1581_v7  ;;  %v2371_v45 = vadd.f32 %v2115_v6, %v1580_v21  ;;  %v3159_v50 = vadd.f32 %v2903_v15, %v2368_v35  ;;  %v3158_v6 = vadd.f32 %v2902_v37, %v2367_v10  ;;  %v9398_v10 = vpop.permute.xlu0 %1843 }
 0x18b   :  { %16101 = vst [vmem:[#allocation139_spill] sm:$0xff] %v9398_v10 }
 0x18c   :  { %v9369_v20 = vpop.permute.xlu1 %2630 }
 0x18d   :  { %16095 = vst [vmem:[#allocation30_spill] sm:$0xff] %v9369_v20  ;;  %v2906_v33 = vmul.f32 %v8832_v25, %v9369_v20  ;;  %v2907_v18 = vmul.f32 %v8836_v46, %v9369_v20  ;;  %2670 = vperm.xlu1 %7740, %v7978_v9  }
 0x18f   :  { %v3163_v23 = vadd.f32 %v2907_v18, %v2372_v62  ;;  %v3162_v30 = vadd.f32 %v2906_v33, %v2371_v45  ;;  %v7980_v62 = vld [vmem:[%s15313_s0 + $0xc0] sm:$0xff] }
 0x191   :  { %v9379_v55 = vpop.permute.xlu1 %3417  ;;  %7741 = vset.pattern.permute.xlu1 %v16084_v34  ;;  %v3954_v7 = vadd.f32 %v3698_v4, %v3163_v23  ;;  %v3953_v41 = vadd.f32 %v3697_v8, %v3162_v30  ;;  %v16103_v8 = vld [vmem:[#allocation33_spill] sm:$0xff]  ;;  %v7981_v30 = vld [vmem:[%s15313_s0 + $0xc8] sm:$0xff] }
 0x192   :  { %16097 = vst [vmem:[#allocation62_spill] sm:$0xff] %v9379_v55  ;;  %v3694_v22 = vmul.f32 %v8848_v51, %v9379_v55  ;;  %v3693_v60 = vmul.f32 %v8852_v11, %v9379_v55  ;;  %3461 = vperm.xlu1 %7741, %v7978_v9   ;;  %v516_v23 = vmul.f32 %v16090_v27, %v16103_v8 }
 0x193   :  { %v4210_v45 = vmax.f32 %v3954_v7, 0.0  ;;  %v4209_v35 = vmax.f32 %v3953_v41, 0.0 }
 0x194   :  { %v3950_v21 = vadd.f32 %v3694_v22, %v3159_v50  ;;  %v3949_v47 = vadd.f32 %v3693_v60, %v3158_v6  ;;  %v517_v22 = vmul.f32 %v16091_v3, %v16103_v8  ;;  %v9410_v60 = vpop.permute.xlu0 %1855  ;;  %v16105_v50 = vld [vmem:[#allocation32_spill] sm:$0xff] }
 0x195   :  { %16104 = vst [vmem:[#allocation33_spill] sm:$0xff] %v9410_v60  ;;  %v520_v6 = vmul.f32 %v16090_v27, %v16105_v50 }
 0x196   :  { %v9390_v40 = vpop.permute.xlu1 %1052  ;;  %7742 = vset.pattern.permute.xlu1 %v15944_v53  ;;  %v4206_v18 = vmax.f32 %v3950_v21, 0.0  ;;  %v4205_v9 = vmax.f32 %v3949_v47, 0.0  ;;  %v521_v21 = vmul.f32 %v16091_v3, %v16105_v50  ;;  %v793_v47 = vadd.f32 %v16078_v1, %v516_v23 }
 0x197   :  { %16099 = vst [vmem:[#allocation137_spill] sm:$0xff] %v9390_v40  ;;  %1092 = vperm.xlu1 %7742, %v7980_v62   ;;  %v794_v41 = vadd.f32 %v8798_v13, %v517_v22 }
 0x198   :  { %v4438_v37 = vpack.c.bf16 %v4210_v45, %v4206_v18  ;;  %v4437_v15 = vpack.c.bf16 %v4209_v35, %v4205_v9  ;;  %v1328_v18 = vmul.f32 %v8785_v17, %v9390_v40  ;;  %v1329_v45 = vmul.f32 %v8789_v24, %v9390_v40  ;;  %v9434_v22 = vpop.permute.xlu0 %1867 }
 0x199   :  { %v798_v23 = vadd.f32 %v8798_v13, %v521_v21  ;;  %16107 = vst [vmem:[#allocation141_spill] sm:$0xff] %v9434_v22 }
 0x19a   :  { %v9396_v33 = vpop.permute.xlu1 %1056  ;;  %5029 = vmatprep.mubr.bf16.mxu0 %v4438_v37  ;;  %v96_v37 = vld [vmem:[%s15313_s0 + $0x158] sm:$0xff]  ;;  %v1585_v21 = vadd.f32 %v1329_v45, %v794_v41 }
 0x19b   :  { %16100 = vst [vmem:[#allocation138_spill] sm:$0xff] %v9396_v33  ;;  %7744 = vset.pattern.permute.xlu1 %v16075_v48  ;;  %5030 = vmatmul.mubr.bf16.gmra.mrb[24].mxu0 %v4437_v15  ;;  %v1332_v9 = vmul.f32 %v8785_v17, %v9396_v33  ;;  %v1333_v35 = vmul.f32 %v8789_v24, %v9396_v33 }
 0x19c   :  { %1883 = vperm.xlu1 %7744, %v7980_v62   ;;  %1168 = vperm.xlu0 %7785, %v96_v37   ;;  %v797_v15 = vadd.f32 %v16078_v1, %v520_v6  ;;  %v2119_v33 = vmul.f32 %v8805_v57, %v9398_v10  ;;  %v2120_v6 = vmul.f32 %v8809_v56, %v9398_v10 }
 0x19d   :  { %v1584_v37 = vadd.f32 %v1328_v18, %v793_v47  ;;  %v1589_v2 = vadd.f32 %v1333_v35, %v798_v23 }
 0x19e   :  { %v1588_v49 = vadd.f32 %v1332_v9, %v797_v15  ;;  %v2376_v9 = vadd.f32 %v2120_v6, %v1585_v21  ;;  %v9460_v15 = vpop.permute.xlu0 %1879 }
 0x19f   :  { %v9401_v4 = vpop.permute.xlu1 %1847  ;;  %v2375_v35 = vadd.f32 %v2119_v33, %v1584_v37  ;;  %16111 = vst [vmem:[#allocation143_spill] sm:$0xff] %v9460_v15  ;;  %v16113_v37 = vld [vmem:[#allocation102_spill] sm:$0xff] }
 0x1a0   :  { %16102 = vst [vmem:[#allocation140_spill] sm:$0xff] %v9401_v4  ;;  %1887 = vperm.xlu1 %7744, %v7981_v30   ;;  %v2123_v40 = vmul.f32 %v8805_v57, %v9401_v4  ;;  %v2124_v55 = vmul.f32 %v8809_v56, %v9401_v4  ;;  %v2914_v4 = vmul.f32 %v8832_v25, %v16109_v43 }
 0x1a2   :  { %v2380_v41 = vadd.f32 %v2124_v55, %v1589_v2  ;;  %v2379_v18 = vadd.f32 %v2123_v40, %v1588_v49  ;;  %v16112_v2 = vmov 0   ;;  %v7982_v49 = vld [vmem:[%s15313_s0 + $0xd0] sm:$0xff]  ;;  %v9478_v59 = vpop.permute.xlu0 %1891 }
 0x1a3   :  { %16115 = vst [vmem:[#allocation144_spill] sm:$0xff] %v9478_v59 }
 0x1a4   :  { %v9416_v7 = vpop.permute.xlu1 %2634  ;;  %7745 = vset.pattern.permute.xlu1 %v15939_v54  ;;  %v3171_v40 = vadd.f32 %v2915_v26, %v2380_v41  ;;  %v3170_v6 = vadd.f32 %v2914_v4, %v2379_v18  ;;  %v524_v26 = vmul.f32 %v16090_v27, %v16116_v28 }
 0x1a5   :  { %16106 = vst [vmem:[#allocation32_spill] sm:$0xff] %v9416_v7  ;;  %2678 = vperm.xlu1 %7745, %v7981_v30   ;;  %v97_v30 = vld [vmem:[%s15313_s0 + $0x160] sm:$0xff]  ;;  %v2910_v63 = vmul.f32 %v8832_v25, %v9416_v7  ;;  %v2911_v47 = vmul.f32 %v8836_v46, %v9416_v7 }
 0x1a6   :  { %1172 = vperm.xlu0 %7785, %v97_v30  }
 0x1a7   :  { %v3167_v55 = vadd.f32 %v2911_v47, %v2376_v9  ;;  %v3166_v33 = vadd.f32 %v2910_v63, %v2375_v35  ;;  %v7984_v63 = vld [vmem:[%s15313_s0 + $0x130] sm:$0xff] }
 0x1a9   :  { %v9447_v20 = vpop.permute.xlu1 %3425  ;;  %7746 = vset.pattern.permute.xlu1 %v16084_v34 }
 0x1aa   :  { %16108 = vst [vmem:[#allocation142_spill] sm:$0xff] %v9447_v20  ;;  %3465 = vperm.xlu1 %7746, %v7980_v62   ;;  %v3702_v23 = vmul.f32 %v8848_v51, %v9447_v20  ;;  %v3701_v30 = vmul.f32 %v8852_v11, %v9447_v20  ;;  %7789 = vset.pattern.permute.xlu0 %v16112_v2 }
 0x1ab   :  { %301 = vperm.xlu0 %7789, %v16113_v37  }
 0x1ac   :  { %v3958_v20 = vadd.f32 %v3702_v23, %v3167_v55  ;;  %v9504_v55 = vld [vmem:[%s15313_s0 + $0x140] sm:$0xff] }
 0x1ad   :  { %v9458_v45 = vpop.permute.xlu1 %3429 }
 0x1ae   :  { %16110 = vst [vmem:[#allocation64_spill] sm:$0xff] %v9458_v45  ;;  %v3706_v62 = vmul.f32 %v8848_v51, %v9458_v45  ;;  %v3705_v7 = vmul.f32 %v8852_v11, %v9458_v45  ;;  %7747 = vset.pattern.permute.xlu1 %v15944_v53  ;;  %v3957_v45 = vadd.f32 %v3701_v30, %v3166_v33  ;;  %v4214_v4 = vmax.f32 %v3958_v20, 0.0  ;;  %v9494_v30 = vpop.permute.xlu0 %1903 }
 0x1af   :  { %1100 = vperm.xlu1 %7747, %v7982_v49   ;;  %311 = vperm.xlu0 %7789, %v7984_v63   ;;  %16118 = vst [vmem:[#allocation145_spill] sm:$0xff] %v9494_v30 }
 0x1b0   :  { %v3962_v52 = vadd.f32 %v3706_v62, %v3171_v40  ;;  %v3961_v10 = vadd.f32 %v3705_v7, %v3170_v6  ;;  %v4213_v41 = vmax.f32 %v3957_v45, 0.0  ;;  %v525_v7 = vmul.f32 %v16091_v3, %v16116_v28  ;;  %v16120_v40 = vld [vmem:[#allocation34_spill] sm:$0xff] }
 0x1b1   :  { %v801_v62 = vadd.f32 %v16078_v1, %v524_v26  ;;  %v528_v33 = vmul.f32 %v16090_v27, %v16120_v40  ;;  %v529_v6 = vmul.f32 %v16091_v3, %v16120_v40 }
 0x1b2   :  { %v9476_v21 = vpop.permute.xlu1 %1064  ;;  %v4218_v47 = vmax.f32 %v3962_v52, 0.0  ;;  %v4217_v18 = vmax.f32 %v3961_v10, 0.0  ;;  %v802_v20 = vadd.f32 %v8798_v13, %v525_v7  ;;  %v16119_v52 = vld [vmem:[#allocation77_spill] sm:$0xff] }
 0x1b3   :  { %16114 = vst [vmem:[#allocation102_spill] sm:$0xff] %v9476_v21  ;;  %1104 = vperm.xlu1 %7747, %v7983_v39   ;;  %v1336_v10 = vmul.f32 %v8785_v17, %v16119_v52  ;;  %v1337_v45 = vmul.f32 %v8789_v24, %v16119_v52  ;;  %321 = vperm.xlu0 %7789, %v9504_v55  }
 0x1b4   :  { %v4442_v9 = vpack.c.bf16 %v4218_v47, %v4214_v4  ;;  %v4441_v23 = vpack.c.bf16 %v4217_v18, %v4213_v41  ;;  %v1340_v26 = vmul.f32 %v8785_v17, %v9476_v21  ;;  %v1341_v63 = vmul.f32 %v8789_v24, %v9476_v21 }
 0x1b5   :  { %v1592_v4 = vadd.f32 %v1336_v10, %v801_v62  ;;  %v1593_v47 = vadd.f32 %v1337_v45, %v802_v20  ;;  %v805_v7 = vadd.f32 %v16078_v1, %v528_v33  ;;  %v2131_v20 = vmul.f32 %v8805_v57, %v9410_v60 }
 0x1b6   :  { %5039 = vmatprep.mubr.bf16.mxu0 %v4442_v9  ;;  %v806_v9 = vadd.f32 %v8798_v13, %v529_v6  ;;  %v2132_v10 = vmul.f32 %v8809_v56, %v9410_v60 }
 0x1b7   :  { %7748 = vset.pattern.permute.xlu1 %v16075_v48  ;;  %v9491_v35 = vpop.permute.xlu1 %1851  ;;  %5040 = vmatmul.mubr.bf16.gmra.mrb[28].mxu0 %v4441_v23  ;;  %v9524_v23 = vpop.permute.xlu0 %1915  ;;  %v1596_v45 = vadd.f32 %v1340_v26, %v805_v7  ;;  %v3709_v26 = vmul.f32 %v8852_v11, %v16124_v31 }
 0x1b8   :  { %16117 = vst [vmem:[#allocation35_spill] sm:$0xff] %v9491_v35  ;;  %1895 = vperm.xlu1 %7748, %v7983_v39   ;;  %v2127_v41 = vmul.f32 %v8805_v57, %v9491_v35  ;;  %v2128_v18 = vmul.f32 %v8809_v56, %v9491_v35  ;;  %16122 = vst [vmem:[#allocation146_spill] sm:$0xff] %v9524_v23  ;;  %v1597_v33 = vadd.f32 %v1341_v63, %v806_v9 }
 0x1ba   :  { %v2384_v6 = vadd.f32 %v2128_v18, %v1593_v47  ;;  %v2383_v35 = vadd.f32 %v2127_v41, %v1592_v4  ;;  %v2387_v4 = vadd.f32 %v2131_v20, %v1596_v45 }
 0x1bb   :  { %v9545_v63 = vpop.permute.xlu0 %1927 }
 0x1bc   :  { %7749 = vset.pattern.permute.xlu1 %v15939_v54  ;;  %v9512_v37 = vpop.permute.xlu1 %2642  ;;  %16125 = vst [vmem:[#allocation148_spill] sm:$0xff] %v9545_v63 }
 0x1bd   :  { %16121 = vst [vmem:[#allocation34_spill] sm:$0xff] %v9512_v37  ;;  %2682 = vperm.xlu1 %7749, %v7982_v49   ;;  %v2918_v32 = vmul.f32 %v8832_v25, %v9512_v37  ;;  %v2919_v21 = vmul.f32 %v8836_v46, %v9512_v37 }
 0x1bf   :  { %v3175_v29 = vadd.f32 %v2919_v21, %v2384_v6  ;;  %v3174_v44 = vadd.f32 %v2918_v32, %v2383_v35  ;;  %v9556_v31 = vpop.permute.xlu0 %1939 }
 0x1c0   :  { %v9530_v62 = vpop.permute.xlu1 %2646  ;;  %16128 = vst [vmem:[#allocation151_spill] sm:$0xff] %v9556_v31 }
 0x1c1   :  { %16123 = vst [vmem:[#allocation147_spill] sm:$0xff] %v9530_v62  ;;  %7750 = vset.pattern.permute.xlu1 %v16084_v34  ;;  %v2922_v23 = vmul.f32 %v8832_v25, %v9530_v62  ;;  %v2923_v37 = vmul.f32 %v8836_v46, %v9530_v62  ;;  %v3966_v9 = vadd.f32 %v3710_v61, %v3175_v29 }
 0x1c2   :  { %3473 = vperm.xlu1 %7750, %v7982_v49   ;;  %v2388_v49 = vadd.f32 %v2132_v10, %v1597_v33  ;;  %v3965_v32 = vadd.f32 %v3709_v26, %v3174_v44  ;;  %v16129_v44 = vld [vmem:[#allocation37_spill] sm:$0xff] }
 0x1c3   :  { %v3178_v18 = vadd.f32 %v2922_v23, %v2387_v4  ;;  %v532_v29 = vmul.f32 %v16090_v27, %v16129_v44  ;;  %v533_v10 = vmul.f32 %v16091_v3, %v16129_v44 }
 0x1c4   :  { %v3179_v47 = vadd.f32 %v2923_v37, %v2388_v49  ;;  %v4222_v37 = vmax.f32 %v3966_v9, 0.0  ;;  %v4221_v20 = vmax.f32 %v3965_v32, 0.0  ;;  %v16131_v49 = vld [vmem:[#allocation36_spill] sm:$0xff] }
 0x1c5   :  { %v9547_v7 = vpop.permute.xlu1 %3437  ;;  %v536_v4 = vmul.f32 %v16090_v27, %v16131_v49  ;;  %v810_v9 = vadd.f32 %v8798_v13, %v533_v10 }
 0x1c6   :  { %16126 = vst [vmem:[#allocation149_spill] sm:$0xff] %v9547_v7  ;;  %3477 = vperm.xlu1 %7750, %v7983_v39   ;;  %v3714_v41 = vmul.f32 %v8848_v51, %v9547_v7  ;;  %v3713_v21 = vmul.f32 %v8852_v11, %v9547_v7  ;;  %v9561_v39 = vld [vmem:[%s15313_s0 + $0xe8] sm:$0xff] }
 0x1c7   :  { %v813_v10 = vadd.f32 %v16078_v1, %v536_v4  ;;  %v16138_v4 = vld [vmem:[#allocation19_spill] sm:$0xff] }
 0x1c8   :  { %v3970_v35 = vadd.f32 %v3714_v41, %v3179_v47  ;;  %v3969_v6 = vadd.f32 %v3713_v21, %v3178_v18  ;;  %v537_v47 = vmul.f32 %v16091_v3, %v16131_v49  ;;  %v9575_v41 = vpop.permute.xlu0 %1947  ;;  %v7987_v18 = vld [vmem:[%s15313_s0 + $0xe0] sm:$0xff]  ;;  %v809_v21 = vadd.f32 %v16078_v1, %v532_v29 }
 0x1c9   :  { %16132 = vst [vmem:[#allocation36_spill] sm:$0xff] %v9575_v41  ;;  %v16136_v41 = vld [vmem:[#allocation7_spill] sm:$0xff] }
 0x1ca   :  { %7751 = vset.pattern.permute.xlu1 %v15944_v53  ;;  %v9554_v62 = vpop.permute.xlu1 %1068  ;;  %v4226_v23 = vmax.f32 %v3970_v35, 0.0  ;;  %v4225_v61 = vmax.f32 %v3969_v6, 0.0  ;;  %v16133_v6 = vld [vmem:[#allocation81_spill] sm:$0xff] }
 0x1cb   :  { %16127 = vst [vmem:[#allocation150_spill] sm:$0xff] %v9554_v62  ;;  %1112 = vperm.xlu1 %7751, %v9561_v39   ;;  %v1344_v32 = vmul.f32 %v8785_v17, %v9554_v62  ;;  %v1345_v35 = vmul.f32 %v8789_v24, %v9554_v62  ;;  %v16135_v62 = vld [vmem:[#allocation18_spill] sm:$0xff] }
 0x1cc   :  { %v4446_v45 = vpack.c.bf16 %v4226_v23, %v4222_v37  ;;  %v4445_v33 = vpack.c.bf16 %v4225_v61, %v4221_v20  ;;  %v1348_v37 = vmul.f32 %v8785_v17, %v16133_v6  ;;  %v1349_v23 = vmul.f32 %v8789_v24, %v16133_v6  ;;  %v9609_v14 = vpop.permute.xlu0 %2650 }
 0x1cd   :  { %v470_v31 = vmul.f32 %v16136_v41, %v16135_v62  ;;  %v1600_v63 = vadd.f32 %v1344_v32, %v809_v21  ;;  %v1601_v60 = vadd.f32 %v1345_v35, %v810_v9  ;;  %16139 = vst [vmem:[#allocation18_spill] sm:$0xff] %v9609_v14  ;;  %v2927_v30 = vmul.f32 %v8836_v46, %v9609_v14 }
 0x1ce   :  { %5049 = vmatprep.mubr.bf16.mxu0 %v4446_v45  ;;  %v814_v45 = vadd.f32 %v8798_v13, %v537_v47  ;;  %v462_v47 = vmul.f32 %v16136_v41, %v16138_v4  ;;  %v1604_v12 = vadd.f32 %v1348_v37, %v813_v10  ;;  %v16141_v37 = vld [vmem:[#allocation109_spill] sm:$0xff] }
 0x1cf   :  { %7752 = vset.pattern.permute.xlu1 %v16075_v48  ;;  %v9569_v26 = vpop.permute.xlu1 %1859  ;;  %5050 = vmatmul.mubr.bf16.gmra.mrb[32].mxu0 %v4445_v33  ;;  %v3721_v10 = vmul.f32 %v8852_v11, %v16141_v37 }
 0x1d0   :  { %16130 = vst [vmem:[#allocation37_spill] sm:$0xff] %v9569_v26  ;;  %1899 = vperm.xlu1 %7752, %v7987_v18   ;;  %v2135_v61 = vmul.f32 %v8805_v57, %v9569_v26  ;;  %v2136_v29 = vmul.f32 %v8809_v56, %v9569_v26  ;;  %v16137_v26 = vld [vmem:[#allocation8_spill] sm:$0xff]  ;;  %v1605_v38 = vadd.f32 %v1349_v23, %v814_v45 }
 0x1d1   :  { %v471_v19 = vmul.f32 %v16137_v26, %v16135_v62  ;;  %v3722_v23 = vmul.f32 %v8848_v51, %v16141_v37  ;;  %v16151_v37 = vld [vmem:[#allocation24_spill] sm:$0xff] }
 0x1d2   :  { %v2392_v21 = vadd.f32 %v2136_v29, %v1601_v60  ;;  %v463_v60 = vmul.f32 %v16137_v26, %v16138_v4  ;;  %v16142_v29 = vld [vmem:[#allocation6_spill] sm:$0xff] }
 0x1d3   :  { %v9590_v20 = vpop.permute.xlu1 %1863  ;;  %v9629_v45 = vadd.f32 %v16142_v29, %v470_v31 }
 0x1d4   :  { %16134 = vst [vmem:[#allocation152_spill] sm:$0xff] %v9590_v20  ;;  %v2139_v33 = vmul.f32 %v8805_v57, %v9590_v20  ;;  %v2140_v7 = vmul.f32 %v8809_v56, %v9590_v20  ;;  %7753 = vset.pattern.permute.xlu1 %v15939_v54  ;;  %v2926_v20 = vmul.f32 %v8832_v25, %v9609_v14  ;;  %v16144_v14 = vld [vmem:[#allocation9_spill] sm:$0xff] }
 0x1d5   :  { %2690 = vperm.xlu1 %7753, %v7987_v18   ;;  %v2391_v18 = vadd.f32 %v2135_v61, %v1600_v63  ;;  %16143 = vst [vmem:[#allocation153_spill] sm:$0xff] %v9629_v45 }
 0x1d6   :  { %v2396_v32 = vadd.f32 %v2140_v7, %v1605_v38  ;;  %v2395_v35 = vadd.f32 %v2139_v33, %v1604_v12  ;;  %v9635_v38 = vadd.f32 %v16142_v29, %v462_v47  ;;  %v3183_v7 = vadd.f32 %v2927_v30, %v2392_v21 }
 0x1d7   :  { %v3182_v33 = vadd.f32 %v2926_v20, %v2391_v18  ;;  %v16148_v20 = vld [vmem:[#allocation21_spill] sm:$0xff] }
 0x1d8   :  { %v9615_v6 = vpop.permute.xlu1 %2654  ;;  %v466_v21 = vmul.f32 %v16136_v41, %v16148_v20  ;;  %v467_v18 = vmul.f32 %v16137_v26, %v16148_v20 }
 0x1d9   :  { %16140 = vst [vmem:[#allocation19_spill] sm:$0xff] %v9615_v6  ;;  %v2930_v62 = vmul.f32 %v8832_v25, %v9615_v6  ;;  %v2931_v9 = vmul.f32 %v8836_v46, %v9615_v6  ;;  %2694 = vperm.xlu1 %7753, %v9561_v39   ;;  %v9632_v6 = vadd.f32 %v16144_v14, %v471_v19 }
 0x1da   :  { %v9645_v19 = vadd.f32 %v16144_v14, %v463_v60 }
 0x1db   :  { %v3187_v63 = vadd.f32 %v2931_v9, %v2396_v32  ;;  %v3186_v61 = vadd.f32 %v2930_v62, %v2395_v35  ;;  %16145 = vst [vmem:[#allocation154_spill] sm:$0xff] %v9632_v6  ;;  %v16147_v32 = vld [vmem:[#allocation20_spill] sm:$0xff]  ;;  %v16149_v35 = vld [vmem:[#allocation22_spill] sm:$0xff] }
 0x1dc   :  { %v474_v47 = vmul.f32 %v16136_v41, %v16147_v32  ;;  %v475_v30 = vmul.f32 %v16137_v26, %v16147_v32 }
 0x1dd   :  { %v9637_v12 = vpop.permute.xlu1 %3441  ;;  %7754 = vset.pattern.permute.xlu1 %v16084_v34  ;;  %v3978_v9 = vadd.f32 %v3722_v23, %v3187_v63  ;;  %v3977_v62 = vadd.f32 %v3721_v10, %v3186_v61  ;;  %v482_v23 = vmul.f32 %v16136_v41, %v16149_v35  ;;  %v483_v63 = vmul.f32 %v16137_v26, %v16149_v35  ;;  %v16150_v61 = vld [vmem:[#allocation23_spill] sm:$0xff]  ;;  %v16155_v35 = vld [vmem:[#allocation25_spill] sm:$0xff] }
 0x1de   :  { %16146 = vst [vmem:[#allocation155_spill] sm:$0xff] %v9637_v12  ;;  %v3718_v4 = vmul.f32 %v8848_v51, %v9637_v12  ;;  %v3717_v31 = vmul.f32 %v8852_v11, %v9637_v12  ;;  %3485 = vperm.xlu1 %7754, %v9561_v39   ;;  %v478_v12 = vmul.f32 %v16136_v41, %v16150_v61 }
 0x1df   :  { %v479_v32 = vmul.f32 %v16137_v26, %v16150_v61  ;;  %v490_v39 = vmul.f32 %v16136_v41, %v16151_v37  ;;  %v4234_v42 = vmax.f32 %v3978_v9, 0.0  ;;  %v4233_v45 = vmax.f32 %v3977_v62, 0.0  ;;  %v9687_v62 = vld [vmem:[%s15313_s0 + $0xf0] sm:$0xff]  ;;  %v16159_v61 = vld [vmem:[#allocation26_spill] sm:$0xff] }
 0x1e0   :  { %v3974_v10 = vadd.f32 %v3718_v4, %v3183_v7  ;;  %v3973_v60 = vadd.f32 %v3717_v31, %v3182_v33  ;;  %v9669_v7 = vadd.f32 %v16142_v29, %v474_v47  ;;  %v9672_v33 = vadd.f32 %v16144_v14, %v475_v30 }
 0x1e1   :  { %v9675_v4 = vadd.f32 %v16142_v29, %v466_v21  ;;  %v491_v31 = vmul.f32 %v16137_v26, %v16151_v37  ;;  %v487_v9 = vmul.f32 %v16137_v26, %v16155_v35  ;;  %v9691_v21 = vadd.f32 %v16144_v14, %v467_v18  ;;  %v16164_v18 = vld [vmem:[#allocation27_spill] sm:$0xff] }
 0x1e2   :  { %v9666_v52 = vpop.permute.xlu1 %1076  ;;  %v4230_v20 = vmax.f32 %v3974_v10, 0.0  ;;  %v4229_v6 = vmax.f32 %v3973_v60, 0.0  ;;  %16153 = vst [vmem:[#allocation21_spill] sm:$0xff] %v9669_v7  ;;  %16154 = vst [vmem:[#allocation22_spill] sm:$0xff] %v9672_v33  ;;  %7755 = vset.pattern.permute.xlu1 %v15944_v53  ;;  %v486_v10 = vmul.f32 %v16136_v41, %v16155_v35  ;;  %v9694_v37 = vadd.f32 %v16142_v29, %v482_v23 }
 0x1e3   :  { %16152 = vst [vmem:[#allocation20_spill] sm:$0xff] %v9666_v52  ;;  %1116 = vperm.xlu1 %7755, %v9687_v62   ;;  %16156 = vst [vmem:[#allocation23_spill] sm:$0xff] %v9691_v21  ;;  %v9697_v60 = vadd.f32 %v16144_v14, %v483_v63  ;;  %v498_v35 = vmul.f32 %v16136_v41, %v16159_v61  ;;  %v9702_v33 = vadd.f32 %v16142_v29, %v478_v12  ;;  %v16165_v12 = vld [vmem:[#allocation28_spill] sm:$0xff] }
 0x1e4   :  { %v4450_v47 = vpack.c.bf16 %v4234_v42, %v4230_v20  ;;  %v4449_v30 = vpack.c.bf16 %v4233_v45, %v4229_v6  ;;  %16157 = vst [vmem:[#allocation24_spill] sm:$0xff] %v9694_v37  ;;  %v9705_v7 = vadd.f32 %v16144_v14, %v479_v32  ;;  %v9708_v42 = vadd.f32 %v16142_v29, %v490_v39 }
 0x1e5   :  { %16158 = vst [vmem:[#allocation25_spill] sm:$0xff] %v9697_v60  ;;  %16160 = vst [vmem:[#allocation26_spill] sm:$0xff] %v9702_v33  ;;  %v499_v6 = vmul.f32 %v16137_v26, %v16159_v61  ;;  %v494_v23 = vmul.f32 %v16136_v41, %v16164_v18  ;;  %v495_v63 = vmul.f32 %v16137_v26, %v16164_v18  ;;  %v16169_v60 = vld [vmem:[#allocation29_spill] sm:$0xff]  ;;  %v9843_v33 = vpop.permute.xlu0 %2662 }
 0x1e6   :  { %16161 = vst [vmem:[#allocation156_spill] sm:$0xff] %v9705_v7  ;;  %16162 = vst [vmem:[#allocation157_spill] sm:$0xff] %v9708_v42  ;;  %v9712_v45 = vpop.permute.xlu1 %1080  ;;  %5059 = vmatprep.mubr.bf16.mxu0 %v4450_v47  ;;  %v506_v20 = vmul.f32 %v16136_v41, %v16165_v12  ;;  %v507_v32 = vmul.f32 %v16137_v26, %v16165_v12  ;;  %v9723_v39 = vadd.f32 %v16144_v14, %v491_v31  ;;  %v16171_v12 = vld [vmem:[#allocation39_spill] sm:$0xff] }
 0x1e7   :  { %16163 = vst [vmem:[#allocation158_spill] sm:$0xff] %v9712_v45  ;;  %5060 = vmatmul.mubr.bf16.gmra.mrb[36].mxu0 %v4449_v30  ;;  %v9726_v61 = vadd.f32 %v16142_v29, %v486_v10  ;;  %v9729_v47 = vadd.f32 %v16144_v14, %v487_v9  ;;  %v502_v37 = vmul.f32 %v16136_v41, %v16169_v60  ;;  %16188 = vst [vmem:[#allocation173_spill] sm:$0xff] %v9843_v33 }
 0x1e8   :  { %16166 = vst [vmem:[#allocation27_spill] sm:$0xff] %v9723_v39  ;;  %7756 = vset.pattern.permute.xlu1 %v16075_v48  ;;  %v9735_v18 = vadd.f32 %v16142_v29, %v498_v35  ;;  %v503_v30 = vmul.f32 %v16137_v26, %v16169_v60  ;;  %v514_v31 = vmul.f32 %v16136_v41, %v16092_v16 }
 0x1e9   :  { %16167 = vst [vmem:[#allocation28_spill] sm:$0xff] %v9726_v61  ;;  %16168 = vst [vmem:[#allocation159_spill] sm:$0xff] %v9729_v47  ;;  %v541_v10 = vmul.f32 %v16091_v3, %v16171_v12  ;;  %1907 = vperm.xlu1 %7756, %v9687_v62   ;;  %v9745_v9 = vadd.f32 %v16144_v14, %v499_v6  ;;  %v515_v61 = vmul.f32 %v16137_v26, %v16092_v16 }
 0x1ea   :  { %16170 = vst [vmem:[#allocation29_spill] sm:$0xff] %v9735_v18  ;;  %v510_v35 = vmul.f32 %v16136_v41, %v16089_v36  ;;  %v540_v60 = vmul.f32 %v16090_v27, %v16171_v12  ;;  %v9754_v18 = vadd.f32 %v16142_v29, %v494_v23  ;;  %v9757_v47 = vadd.f32 %v16144_v14, %v495_v63 }
 0x1eb   :  { %16172 = vst [vmem:[#allocation39_spill] sm:$0xff] %v9745_v9  ;;  %v9760_v39 = vadd.f32 %v16142_v29, %v506_v20  ;;  %v9763_v6 = vadd.f32 %v16144_v14, %v507_v32  ;;  %v9765_v9 = vpop.permute.xlu1 %1871  ;;  %v9768_v16 = vadd.f32 %v16142_v29, %v502_v37  ;;  %v511_v42 = vmul.f32 %v16137_v26, %v16089_v36  ;;  %v7989_v36 = vld [vmem:[%s15313_s0 + $0xf8] sm:$0xff] }
 0x1ec   :  { %16173 = vst [vmem:[#allocation160_spill] sm:$0xff] %v9754_v18  ;;  %16174 = vst [vmem:[#allocation161_spill] sm:$0xff] %v9757_v47  ;;  %v544_v23 = vmul.f32 %v16090_v27, %v16179_v0  ;;  %v545_v63 = vmul.f32 %v16091_v3, %v16179_v0  ;;  %v9777_v20 = vadd.f32 %v16144_v14, %v503_v30 }
 0x1ed   :  { %16175 = vst [vmem:[#allocation162_spill] sm:$0xff] %v9760_v39  ;;  %16176 = vst [vmem:[#allocation163_spill] sm:$0xff] %v9763_v6  ;;  %v9780_v32 = vadd.f32 %v16142_v29, %v514_v31  ;;  %v818_v6 = vadd.f32 %v8798_v13, %v541_v10  ;;  %v1353_v37 = vmul.f32 %v8789_v24, %v9666_v52  ;;  %1911 = vperm.xlu1 %7756, %v7989_v36   ;;  %v9791_v39 = vld [vmem:[%s15313_s0 + $0x168] sm:$0xff] }
 0x1ee   :  { %16177 = vst [vmem:[#allocation164_spill] sm:$0xff] %v9765_v9  ;;  %16178 = vst [vmem:[#allocation165_spill] sm:$0xff] %v9768_v16  ;;  %v9794_v30 = vadd.f32 %v16144_v14, %v515_v61  ;;  %v9797_v31 = vadd.f32 %v16142_v29, %v510_v35  ;;  %v817_v10 = vadd.f32 %v16078_v1, %v540_v60  ;;  %346 = vperm.xlu0 %7789, %v9791_v39   ;;  %v9814_v60 = vld [vmem:[%s15313_s0 + $0x170] sm:$0xff] }
 0x1ef   :  { %16180 = vst [vmem:[#allocation38_spill] sm:$0xff] %v9777_v20  ;;  %16181 = vst [vmem:[#allocation166_spill] sm:$0xff] %v9780_v32  ;;  %v1352_v47 = vmul.f32 %v8785_v17, %v9666_v52  ;;  %v522_v18 = vmul.f32 %v16136_v41, %v16105_v50  ;;  %v523_v32 = vmul.f32 %v16137_v26, %v16105_v50 }
 0x1f0   :  { %16182 = vst [vmem:[#allocation167_spill] sm:$0xff] %v9794_v30  ;;  %16183 = vst [vmem:[#allocation168_spill] sm:$0xff] %v9797_v31  ;;  %v1356_v61 = vmul.f32 %v8785_v17, %v9712_v45  ;;  %v1357_v35 = vmul.f32 %v8789_v24, %v9712_v45  ;;  %v9817_v52 = vadd.f32 %v16144_v14, %v511_v42  ;;  %v9823_v20 = vpop.permute.xlu1 %2658 }
 0x1f1   :  { %v518_v31 = vmul.f32 %v16136_v41, %v16103_v8  ;;  %v821_v30 = vadd.f32 %v16078_v1, %v544_v23  ;;  %v822_v50 = vadd.f32 %v8798_v13, %v545_v63  ;;  %16185 = vst [vmem:[#allocation170_spill] sm:$0xff] %v9823_v20  ;;  %v2144_v45 = vmul.f32 %v8809_v56, %v9434_v22 }
 0x1f2   :  { %16184 = vst [vmem:[#allocation169_spill] sm:$0xff] %v9817_v52  ;;  %v1609_v16 = vadd.f32 %v1353_v37, %v818_v6  ;;  %v2147_v7 = vmul.f32 %v8805_v57, %v9765_v9  ;;  %v2148_v42 = vmul.f32 %v8809_v56, %v9765_v9  ;;  %7757 = vset.pattern.permute.xlu1 %v15939_v54 }
 0x1f3   :  { %v519_v52 = vmul.f32 %v16137_v26, %v16103_v8  ;;  %v2143_v23 = vmul.f32 %v8805_v57, %v9434_v22  ;;  %v1608_v63 = vadd.f32 %v1352_v47, %v817_v10  ;;  %2702 = vperm.xlu1 %7757, %v7989_v36   ;;  %351 = vperm.xlu0 %7789, %v9814_v60  }
 0x1f4   :  { %v9838_v6 = vadd.f32 %v16142_v29, %v522_v18  ;;  %v9841_v37 = vadd.f32 %v16144_v14, %v523_v32  ;;  %v1612_v9 = vadd.f32 %v1356_v61, %v821_v30  ;;  %v1613_v21 = vadd.f32 %v1357_v35, %v822_v50 }
 0x1f5   :  { %v530_v8 = vmul.f32 %v16136_v41, %v16120_v40  ;;  %v2938_v22 = vmul.f32 %v8832_v25, %v9843_v33  ;;  %v2934_v47 = vmul.f32 %v8832_v25, %v9823_v20  ;;  %v2935_v18 = vmul.f32 %v8836_v46, %v9823_v20  ;;  %v9855_v36 = vpop.permute.xlu1 %3449 }
 0x1f6   :  { %16186 = vst [vmem:[#allocation171_spill] sm:$0xff] %v9838_v6  ;;  %16187 = vst [vmem:[#allocation172_spill] sm:$0xff] %v9841_v37  ;;  %v2939_v32 = vmul.f32 %v8836_v46, %v9843_v33  ;;  %v2400_v10 = vadd.f32 %v2144_v45, %v1609_v16  ;;  %v2404_v30 = vadd.f32 %v2148_v42, %v1613_v21 }
 0x1f7   :  { %16189 = vst [vmem:[#allocation174_spill] sm:$0xff] %v9855_v36  ;;  %v2403_v61 = vadd.f32 %v2147_v7, %v1612_v9  ;;  %7758 = vset.pattern.permute.xlu1 %v16084_v34  ;;  %v3726_v35 = vmul.f32 %v8848_v51, %v9855_v36  ;;  %v2399_v50 = vadd.f32 %v2143_v23, %v1608_v63 }
 0x1f8   :  { %v3725_v37 = vmul.f32 %v8852_v11, %v9855_v36  ;;  %7793 = vset.pattern.permute.xlu0 %v16084_v34  ;;  %v9864_v20 = vadd.f32 %v16142_v29, %v518_v31  ;;  %v531_v6 = vmul.f32 %v16137_v26, %v16120_v40  ;;  %v526_v7 = vmul.f32 %v16136_v41, %v16116_v28 }
 0x1f9   :  { %3489 = vperm.xlu1 %7758, %v9687_v62   ;;  %3529 = vperm.xlu0 %7793, %v9504_v55   ;;  %v9873_v21 = vadd.f32 %v16144_v14, %v519_v52  ;;  %v527_v45 = vmul.f32 %v16137_v26, %v16116_v28  ;;  %v3191_v9 = vadd.f32 %v2935_v18, %v2400_v10  ;;  %v9882_v42 = vpop.permute.xlu1 %3453 }
 0x1fa   :  { %16190 = vst [vmem:[#allocation175_spill] sm:$0xff] %v9864_v20  ;;  %v3190_v16 = vadd.f32 %v2934_v47, %v2399_v50  ;;  %v9878_v31 = vadd.f32 %v16142_v29, %v530_v8  ;;  %v538_v40 = vmul.f32 %v16136_v41, %v16131_v49  ;;  %16193 = vst [vmem:[#allocation178_spill] sm:$0xff] %v9882_v42 }
 0x1fb   :  { %16191 = vst [vmem:[#allocation176_spill] sm:$0xff] %v9873_v21  ;;  %v3195_v23 = vadd.f32 %v2939_v32, %v2404_v30  ;;  %v3194_v62 = vadd.f32 %v2938_v22, %v2403_v61  ;;  %v3730_v55 = vmul.f32 %v8848_v51, %v9882_v42  ;;  %v3982_v52 = vadd.f32 %v3726_v35, %v3191_v9 }
 0x1fc   :  { %16192 = vst [vmem:[#allocation177_spill] sm:$0xff] %v9878_v31  ;;  %v3729_v63 = vmul.f32 %v8852_v11, %v9882_v42  ;;  %v3981_v28 = vadd.f32 %v3725_v37, %v3190_v16  ;;  %v9889_v47 = vadd.f32 %v16144_v14, %v531_v6  ;;  %v9892_v8 = vadd.f32 %v16142_v29, %v526_v7  ;;  %v9906_v6 = vld [vmem:[%s15313_s0 + $0x100] sm:$0xff] }
 0x1fd   :  { %v539_v18 = vmul.f32 %v16137_v26, %v16131_v49  ;;  %7759 = vset.pattern.permute.xlu1 %v15944_v53  ;;  %3549 = vperm.xlu0 %7793, %v9791_v39   ;;  %v9899_v22 = vadd.f32 %v16144_v14, %v527_v45  ;;  %v534_v32 = vmul.f32 %v16136_v41, %v16129_v44  ;;  %v4238_v7 = vmax.f32 %v3982_v52, 0.0  ;;  %v9935_v52 = vld [vmem:[%s15313_s0 + $0x108] sm:$0xff] }
 0x1fe   :  { %16194 = vst [vmem:[#allocation179_spill] sm:$0xff] %v9889_v47  ;;  %1124 = vperm.xlu1 %7759, %v9906_v6   ;;  %v3986_v37 = vadd.f32 %v3730_v55, %v3195_v23  ;;  %v3985_v10 = vadd.f32 %v3729_v63, %v3194_v62  ;;  %v9910_v49 = vadd.f32 %v16142_v29, %v538_v40  ;;  %v9918_v50 = vpop.permute.xlu1 %1088  ;;  %v4237_v9 = vmax.f32 %v3981_v28, 0.0  ;;  %v16199_v62 = vld [vmem:[#allocation41_spill] sm:$0xff] }
 0x1ff   :  { %16195 = vst [vmem:[#allocation180_spill] sm:$0xff] %v9899_v22  ;;  %v535_v30 = vmul.f32 %v16137_v26, %v16129_v44  ;;  %v546_v61 = vmul.f32 %v16136_v41, %v16179_v0  ;;  %v547_v35 = vmul.f32 %v16137_v26, %v16179_v0  ;;  %16197 = vst [vmem:[#allocation182_spill] sm:$0xff] %v9918_v50 }
 0x200   :  { %16196 = vst [vmem:[#allocation181_spill] sm:$0xff] %v9910_v49  ;;  %v4242_v45 = vmax.f32 %v3986_v37, 0.0  ;;  %v4241_v16 = vmax.f32 %v3985_v10, 0.0  ;;  %v9921_v23 = vadd.f32 %v16144_v14, %v539_v18  ;;  %v542_v40 = vmul.f32 %v16136_v41, %v16171_v12  ;;  %v16201_v37 = vld [vmem:[#allocation40_spill] sm:$0xff] }
 0x201   :  { %v548_v44 = vmul.f32 %v16090_v27, %v16199_v62  ;;  %v549_v55 = vmul.f32 %v16091_v3, %v16199_v62  ;;  %7796 = vset.pattern.permute.xlu0 %v16075_v48  ;;  %v543_v0 = vmul.f32 %v16137_v26, %v16171_v12  ;;  %v9940_v18 = vadd.f32 %v16142_v29, %v534_v32 }
 0x202   :  { %16198 = vst [vmem:[#allocation183_spill] sm:$0xff] %v9921_v23  ;;  %1128 = vperm.xlu1 %7759, %v9935_v52   ;;  %v4454_v63 = vpack.c.bf16 %v4242_v45, %v4238_v7  ;;  %v4453_v28 = vpack.c.bf16 %v4241_v16, %v4237_v9  ;;  %1967 = vperm.xlu0 %7796, %v9791_v39   ;;  %v16205_v16 = vld [vmem:[#allocation89_spill] sm:$0xff] }
 0x203   :  { %16200 = vst [vmem:[#allocation41_spill] sm:$0xff] %v9940_v18  ;;  %v552_v10 = vmul.f32 %v16090_v27, %v16201_v37  ;;  %v553_v12 = vmul.f32 %v16091_v3, %v16201_v37  ;;  %v554_v42 = vmul.f32 %v16136_v41, %v16201_v37  ;;  %v9949_v36 = vadd.f32 %v16144_v14, %v535_v30 }
 0x204   :  { %v9952_v7 = vadd.f32 %v16142_v29, %v546_v61  ;;  %v9955_v39 = vadd.f32 %v16144_v14, %v547_v35  ;;  %v555_v32 = vmul.f32 %v16137_v26, %v16201_v37  ;;  %5069 = vmatprep.mubr.bf16.mxu0 %v4454_v63  ;;  %v825_v45 = vadd.f32 %v16078_v1, %v548_v44 }
 0x205   :  { %16202 = vst [vmem:[#allocation40_spill] sm:$0xff] %v9949_v36  ;;  %v826_v9 = vadd.f32 %v8798_v13, %v549_v55  ;;  %v1360_v18 = vmul.f32 %v8785_v17, %v16205_v16  ;;  %v1361_v30 = vmul.f32 %v8789_v24, %v16205_v16  ;;  %v9965_v36 = vpop.permute.xlu1 %1875  ;;  %5070 = vmatmul.mubr.bf16.gmra.mrb[40].mxu0 %v4453_v28  ;;  %v16218_v16 = vld [vmem:[#allocation111_spill] sm:$0xff] }
 0x206   :  { %16203 = vst [vmem:[#allocation184_spill] sm:$0xff] %v9952_v7  ;;  %16204 = vst [vmem:[#allocation185_spill] sm:$0xff] %v9955_v39  ;;  %v9968_v61 = vadd.f32 %v16142_v29, %v542_v40  ;;  %v9971_v35 = vadd.f32 %v16144_v14, %v543_v0  ;;  %v550_v44 = vmul.f32 %v16136_v41, %v16199_v62  ;;  %7760 = vset.pattern.permute.xlu1 %v16075_v48  ;;  %v16211_v0 = vld [vmem:[#allocation42_spill] sm:$0xff] }
 0x207   :  { %16206 = vst [vmem:[#allocation186_spill] sm:$0xff] %v9965_v36  ;;  %v551_v55 = vmul.f32 %v16137_v26, %v16199_v62  ;;  %v829_v63 = vadd.f32 %v16078_v1, %v552_v10  ;;  %v830_v37 = vadd.f32 %v8798_v13, %v553_v12  ;;  %v9981_v28 = vadd.f32 %v16142_v29, %v554_v42 }
 0x208   :  { %16207 = vst [vmem:[#allocation187_spill] sm:$0xff] %v9968_v61  ;;  %16208 = vst [vmem:[#allocation188_spill] sm:$0xff] %v9971_v35  ;;  %1919 = vperm.xlu1 %7760, %v9935_v52   ;;  %1971 = vperm.xlu0 %7796, %v9814_v60   ;;  %v9986_v40 = vadd.f32 %v16144_v14, %v555_v32  ;;  %v560_v39 = vmul.f32 %v16090_v27, %v16211_v0 }
 0x209   :  { %16209 = vst [vmem:[#allocation189_spill] sm:$0xff] %v9981_v28  ;;  %v561_v62 = vmul.f32 %v16091_v3, %v16211_v0  ;;  %v562_v10 = vmul.f32 %v16136_v41, %v16211_v0  ;;  %v1616_v12 = vadd.f32 %v1360_v18, %v825_v45  ;;  %v1617_v7 = vadd.f32 %v1361_v30, %v826_v9  ;;  %v10008_v18 = vpop.permute.xlu1 %2666  ;;  %v16215_v9 = vld [vmem:[#allocation43_spill] sm:$0xff] }
 0x20a   :  { %16210 = vst [vmem:[#allocation190_spill] sm:$0xff] %v9986_v40  ;;  %v2151_v42 = vmul.f32 %v8805_v57, %v9965_v36  ;;  %v2152_v60 = vmul.f32 %v8809_v56, %v9965_v36  ;;  %v9999_v32 = vadd.f32 %v16142_v29, %v550_v44  ;;  %v10002_v40 = vadd.f32 %v16144_v14, %v551_v55 }
 0x20b   :  { %v1364_v28 = vmul.f32 %v8785_v17, %v9918_v50  ;;  %v1365_v61 = vmul.f32 %v8789_v24, %v9918_v50  ;;  %16214 = vst [vmem:[#allocation192_spill] sm:$0xff] %v10008_v18  ;;  %v563_v45 = vmul.f32 %v16137_v26, %v16211_v0  ;;  %v556_v30 = vmul.f32 %v16090_v27, %v16215_v9 }
 0x20c   :  { %16212 = vst [vmem:[#allocation42_spill] sm:$0xff] %v9999_v32  ;;  %16213 = vst [vmem:[#allocation191_spill] sm:$0xff] %v10002_v40  ;;  %7761 = vset.pattern.permute.xlu1 %v15939_v54  ;;  %v2942_v44 = vmul.f32 %v8832_v25, %v10008_v18  ;;  %v2943_v55 = vmul.f32 %v8836_v46, %v10008_v18  ;;  %v10020_v36 = vadd.f32 %v16078_v1, %v560_v39 }
 0x20d   :  { %v557_v50 = vmul.f32 %v16091_v3, %v16215_v9  ;;  %v558_v0 = vmul.f32 %v16136_v41, %v16215_v9  ;;  %2706 = vperm.xlu1 %7761, %v9906_v6   ;;  %7800 = vset.pattern.permute.xlu0 %v15939_v54  ;;  %v10029_v35 = vadd.f32 %v8798_v13, %v561_v62  ;;  %v10038_v40 = vpop.permute.xlu1 %2670 }
 0x20e   :  { %v10032_v47 = vadd.f32 %v16142_v29, %v562_v10  ;;  %v2408_v18 = vadd.f32 %v2152_v60, %v1617_v7  ;;  %v2407_v31 = vadd.f32 %v2151_v42, %v1616_v12  ;;  %v2155_v39 = vmul.f32 %v8805_v57, %v9460_v15  ;;  %16217 = vst [vmem:[#allocation193_spill] sm:$0xff] %v10038_v40 }
 0x20f   :  { %v2156_v21 = vmul.f32 %v8809_v56, %v9460_v15  ;;  %v1620_v20 = vadd.f32 %v1364_v28, %v829_v63  ;;  %v1621_v33 = vadd.f32 %v1365_v61, %v830_v37  ;;  %v3734_v62 = vmul.f32 %v8848_v51, %v16218_v16  ;;  %v16220_v28 = vld [vmem:[#allocation44_spill] sm:$0xff] }
 0x210   :  { %16216 = vst [vmem:[#allocation43_spill] sm:$0xff] %v10032_v47  ;;  %v3199_v32 = vadd.f32 %v2943_v55, %v2408_v18  ;;  %v3198_v23 = vadd.f32 %v2942_v44, %v2407_v31  ;;  %v3733_v10 = vmul.f32 %v8852_v11, %v16218_v16  ;;  %v10045_v7 = vadd.f32 %v16144_v14, %v563_v45  ;;  %v16221_v44 = vld [vmem:[#allocation45_spill] sm:$0xff] }
 0x211   :  { %v559_v12 = vmul.f32 %v16137_v26, %v16215_v9  ;;  %v2946_v63 = vmul.f32 %v8832_v25, %v10038_v40  ;;  %v2947_v61 = vmul.f32 %v8836_v46, %v10038_v40  ;;  %7762 = vset.pattern.permute.xlu1 %v16084_v34  ;;  %v10055_v37 = vadd.f32 %v16078_v1, %v556_v30  ;;  %v10073_v40 = vpop.permute.xlu1 %3461 }
 0x212   :  { %16219 = vst [vmem:[#allocation194_spill] sm:$0xff] %v10045_v7  ;;  %v10058_v31 = vadd.f32 %v8798_v13, %v557_v50  ;;  %v568_v42 = vmul.f32 %v16090_v27, %v16220_v28  ;;  %v569_v60 = vmul.f32 %v16091_v3, %v16220_v28  ;;  %3497 = vperm.xlu1 %7762, %v9906_v6   ;;  %16222 = vst [vmem:[#allocation44_spill] sm:$0xff] %v10073_v40 }
 0x213   :  { %v570_v18 = vmul.f32 %v16136_v41, %v16220_v28  ;;  %v571_v45 = vmul.f32 %v16137_v26, %v16220_v28  ;;  %v2412_v9 = vadd.f32 %v2156_v21, %v1621_v33  ;;  %v2411_v30 = vadd.f32 %v2155_v39, %v1620_v20 }
 0x214   :  { %v564_v50 = vmul.f32 %v16090_v27, %v16221_v44  ;;  %v565_v55 = vmul.f32 %v16091_v3, %v16221_v44  ;;  %v3990_v16 = vadd.f32 %v3734_v62, %v3199_v32  ;;  %v3989_v15 = vadd.f32 %v3733_v10, %v3198_v23 }
 0x215   :  { %v3203_v7 = vadd.f32 %v2947_v61, %v2412_v9  ;;  %v3738_v6 = vmul.f32 %v8848_v51, %v10073_v40  ;;  %v3202_v47 = vadd.f32 %v2946_v63, %v2411_v30  ;;  %v3737_v28 = vmul.f32 %v8852_v11, %v10073_v40 }
 0x216   :  { %v10080_v33 = vadd.f32 %v16142_v29, %v558_v0  ;;  %v10083_v20 = vadd.f32 %v16144_v14, %v559_v12  ;;  %v10086_v21 = vadd.f32 %v16078_v1, %v568_v42  ;;  %v10089_v32 = vadd.f32 %v8798_v13, %v569_v60  ;;  %3501 = vperm.xlu1 %7762, %v9935_v52   ;;  %v10108_v52 = vpop.permute.xlu1 %1092 }
 0x217   :  { %v10093_v23 = vadd.f32 %v16142_v29, %v570_v18  ;;  %v10096_v39 = vadd.f32 %v16144_v14, %v571_v45  ;;  %v3994_v62 = vadd.f32 %v3738_v6, %v3203_v7  ;;  %v3993_v0 = vadd.f32 %v3737_v28, %v3202_v47  ;;  %16227 = vst [vmem:[#allocation198_spill] sm:$0xff] %v10108_v52  ;;  %v16228_v7 = vld [vmem:[#allocation46_spill] sm:$0xff] }
 0x218   :  { %16223 = vst [vmem:[#allocation45_spill] sm:$0xff] %v10080_v33  ;;  %16224 = vst [vmem:[#allocation195_spill] sm:$0xff] %v10083_v20  ;;  %v566_v10 = vmul.f32 %v16136_v41, %v16221_v44  ;;  %v567_v12 = vmul.f32 %v16137_v26, %v16221_v44  ;;  %v10103_v63 = vadd.f32 %v16078_v1, %v564_v50  ;;  %v4246_v42 = vmax.f32 %v3990_v16, 0.0  ;;  %v16229_v50 = vld [vmem:[#allocation47_spill] sm:$0xff] }
 0x219   :  { %16225 = vst [vmem:[#allocation196_spill] sm:$0xff] %v10093_v23  ;;  %16226 = vst [vmem:[#allocation197_spill] sm:$0xff] %v10096_v39  ;;  %v10106_v61 = vadd.f32 %v8798_v13, %v565_v55  ;;  %v4250_v60 = vmax.f32 %v3994_v62, 0.0  ;;  %v4245_v18 = vmax.f32 %v3989_v15, 0.0  ;;  %v4249_v45 = vmax.f32 %v3993_v0, 0.0  ;;  %v10126_v55 = vld [vmem:[%s15313_s0 + $0x118] sm:$0xff] }
 0x21a   :  { %v576_v47 = vmul.f32 %v16090_v27, %v16228_v7  ;;  %v577_v9 = vmul.f32 %v16091_v3, %v16228_v7  ;;  %v578_v30 = vmul.f32 %v16136_v41, %v16228_v7  ;;  %v579_v44 = vmul.f32 %v16137_v26, %v16228_v7  ;;  %7763 = vset.pattern.permute.xlu1 %v15944_v53  ;;  %v16230_v7 = vld [vmem:[#allocation48_spill] sm:$0xff] }
 0x21b   :  { %v572_v16 = vmul.f32 %v16090_v27, %v16229_v50  ;;  %v573_v15 = vmul.f32 %v16091_v3, %v16229_v50  ;;  %1136 = vperm.xlu1 %7763, %v10126_v55   ;;  %v4458_v6 = vpack.c.bf16 %v4250_v60, %v4246_v42  ;;  %v4457_v28 = vpack.c.bf16 %v4249_v45, %v4245_v18 }
 0x21c   :  { %v574_v62 = vmul.f32 %v16136_v41, %v16229_v50  ;;  %v575_v0 = vmul.f32 %v16137_v26, %v16229_v50  ;;  %v584_v39 = vmul.f32 %v16090_v27, %v16230_v7  ;;  %v585_v23 = vmul.f32 %v16091_v3, %v16230_v7 }
 0x21d   :  { %v10138_v20 = vadd.f32 %v16142_v29, %v566_v10  ;;  %v10141_v33 = vadd.f32 %v16144_v14, %v567_v12  ;;  %v586_v42 = vmul.f32 %v16136_v41, %v16230_v7  ;;  %v587_v60 = vmul.f32 %v16137_v26, %v16230_v7  ;;  %5079 = vmatprep.mubr.bf16.mxu0 %v4458_v6  ;;  %v10159_v12 = vpop.permute.xlu1 %1883 }
 0x21e   :  { %v10148_v18 = vadd.f32 %v16078_v1, %v576_v47  ;;  %v10151_v45 = vadd.f32 %v8798_v13, %v577_v9  ;;  %v10154_v50 = vadd.f32 %v16142_v29, %v578_v30  ;;  %v10157_v10 = vadd.f32 %v16144_v14, %v579_v44  ;;  %16237 = vst [vmem:[#allocation202_spill] sm:$0xff] %v10159_v12  ;;  %v16240_v47 = vld [vmem:[#allocation49_spill] sm:$0xff] }
 0x21f   :  { %16231 = vst [vmem:[#allocation46_spill] sm:$0xff] %v10138_v20  ;;  %16232 = vst [vmem:[#allocation47_spill] sm:$0xff] %v10141_v33  ;;  %5080 = vmatmul.mubr.bf16.gmra.mrb[44].mxu0 %v4457_v28  ;;  %v10162_v33 = vadd.f32 %v16078_v1, %v572_v16  ;;  %v10165_v6 = vadd.f32 %v8798_v13, %v573_v15  ;;  %v580_v7 = vmul.f32 %v16090_v27, %v16240_v47  ;;  %v7993_v28 = vld [vmem:[%s15313_s0 + $0x110] sm:$0xff]  ;;  %v16247_v20 = vld [vmem:[#allocation93_spill] sm:$0xff] }
 0x220   :  { %16233 = vst [vmem:[#allocation48_spill] sm:$0xff] %v10148_v18  ;;  %16234 = vst [vmem:[#allocation199_spill] sm:$0xff] %v10151_v45  ;;  %v581_v9 = vmul.f32 %v16091_v3, %v16240_v47  ;;  %7764 = vset.pattern.permute.xlu1 %v16075_v48  ;;  %v10173_v30 = vadd.f32 %v16142_v29, %v574_v62  ;;  %v10176_v44 = vadd.f32 %v16144_v14, %v575_v0  ;;  %v16253_v18 = vld [vmem:[#allocation51_spill] sm:$0xff] }
 0x221   :  { %16235 = vst [vmem:[#allocation200_spill] sm:$0xff] %v10154_v50  ;;  %16236 = vst [vmem:[#allocation201_spill] sm:$0xff] %v10157_v10  ;;  %v10179_v16 = vadd.f32 %v16078_v1, %v584_v39  ;;  %v10182_v15 = vadd.f32 %v8798_v13, %v585_v23  ;;  %1923 = vperm.xlu1 %7764, %v7993_v28   ;;  %v10188_v50 = vadd.f32 %v16142_v29, %v586_v42 }
 0x222   :  { %16238 = vst [vmem:[#allocation203_spill] sm:$0xff] %v10162_v33  ;;  %16239 = vst [vmem:[#allocation204_spill] sm:$0xff] %v10165_v6  ;;  %v10191_v62 = vadd.f32 %v16144_v14, %v587_v60  ;;  %v1368_v0 = vmul.f32 %v8785_v17, %v10108_v52  ;;  %v1369_v39 = vmul.f32 %v8789_v24, %v10108_v52  ;;  %v10205_v60 = vpop.permute.xlu1 %1887 }
 0x223   :  { %16241 = vst [vmem:[#allocation49_spill] sm:$0xff] %v10173_v30  ;;  %16242 = vst [vmem:[#allocation205_spill] sm:$0xff] %v10176_v44  ;;  %v582_v23 = vmul.f32 %v16136_v41, %v16240_v47  ;;  %v583_v10 = vmul.f32 %v16137_v26, %v16240_v47  ;;  %v1372_v40 = vmul.f32 %v8785_v17, %v16247_v20  ;;  %v16251_v44 = vld [vmem:[#allocation50_spill] sm:$0xff] }
 0x224   :  { %16243 = vst [vmem:[#allocation206_spill] sm:$0xff] %v10179_v16  ;;  %16244 = vst [vmem:[#allocation207_spill] sm:$0xff] %v10182_v15  ;;  %v1373_v42 = vmul.f32 %v8789_v24, %v16247_v20  ;;  %v2159_v52 = vmul.f32 %v8805_v57, %v10159_v12  ;;  %v2160_v47 = vmul.f32 %v8809_v56, %v10159_v12  ;;  %v10221_v16 = vpop.permute.xlu0 %2674 }
 0x225   :  { %16245 = vst [vmem:[#allocation208_spill] sm:$0xff] %v10188_v50  ;;  %16246 = vst [vmem:[#allocation209_spill] sm:$0xff] %v10191_v62  ;;  %v10208_v62 = vadd.f32 %v16078_v1, %v580_v7  ;;  %v10211_v50 = vadd.f32 %v8798_v13, %v581_v9  ;;  %v592_v30 = vmul.f32 %v16090_v27, %v16251_v44  ;;  %7765 = vset.pattern.permute.xlu1 %v15939_v54 }
 0x226   :  { %16248 = vst [vmem:[#allocation210_spill] sm:$0xff] %v10205_v60  ;;  %v593_v15 = vmul.f32 %v16091_v3, %v16251_v44  ;;  %16252 = vst [vmem:[#allocation50_spill] sm:$0xff] %v10221_v16  ;;  %v2163_v7 = vmul.f32 %v8805_v57, %v10205_v60  ;;  %v2164_v9 = vmul.f32 %v8809_v56, %v10205_v60  ;;  %2714 = vperm.xlu1 %7765, %v7993_v28  }
 0x227   :  { %16249 = vst [vmem:[#allocation211_spill] sm:$0xff] %v10208_v62  ;;  %16250 = vst [vmem:[#allocation212_spill] sm:$0xff] %v10211_v50  ;;  %v594_v50 = vmul.f32 %v16136_v41, %v16251_v44  ;;  %v595_v12 = vmul.f32 %v16137_v26, %v16251_v44  ;;  %v1624_v62 = vadd.f32 %v1368_v0, %v10055_v37  ;;  %v10244_v37 = vpop.permute.xlu1 %2678 }
 0x228   :  { %v1625_v45 = vadd.f32 %v1369_v39, %v10058_v31  ;;  %v588_v20 = vmul.f32 %v16090_v27, %v16253_v18  ;;  %v589_v6 = vmul.f32 %v16091_v3, %v16253_v18  ;;  %v1628_v60 = vadd.f32 %v1372_v40, %v10020_v36  ;;  %16254 = vst [vmem:[#allocation51_spill] sm:$0xff] %v10244_v37 }
 0x229   :  { %v1629_v33 = vadd.f32 %v1373_v42, %v10029_v35  ;;  %v2950_v49 = vmul.f32 %v8832_v25, %v10221_v16  ;;  %v2951_v44 = vmul.f32 %v8836_v46, %v10221_v16  ;;  %v2415_v28 = vadd.f32 %v2159_v52, %v1624_v62  ;;  %v16257_v42 = vld [vmem:[#allocation113_spill] sm:$0xff] }
 0x22a   :  { %v2416_v31 = vadd.f32 %v2160_v47, %v1625_v45  ;;  %v2954_v0 = vmul.f32 %v8832_v25, %v10244_v37  ;;  %v2955_v39 = vmul.f32 %v8836_v46, %v10244_v37  ;;  %v2419_v36 = vadd.f32 %v2163_v7, %v1628_v60  ;;  %2718 = vperm.xlu1 %7765, %v10126_v55   ;;  %v10267_v60 = vpop.permute.xlu0 %2686 }
 0x22b   :  { %v2420_v22 = vadd.f32 %v2164_v9, %v1629_v33  ;;  %v10251_v35 = vadd.f32 %v16142_v29, %v582_v23  ;;  %v10254_v40 = vadd.f32 %v16144_v14, %v583_v10  ;;  %v3746_v45 = vmul.f32 %v8848_v51, %v16257_v42  ;;  %16260 = vst [vmem:[#allocation217_spill] sm:$0xff] %v10267_v60  ;;  %v100_v10 = vld [vmem:[%s15313_s0 + $0x178] sm:$0xff] }
 0x22c   :  { %v3745_v52 = vmul.f32 %v8852_v11, %v16257_v42  ;;  %v10262_v62 = vadd.f32 %v16078_v1, %v592_v30  ;;  %v10265_v33 = vadd.f32 %v8798_v13, %v593_v15  ;;  %v3210_v47 = vadd.f32 %v2954_v0, %v2419_v36  ;;  %2766 = vperm.xlu0 %7800, %v100_v10  }
 0x22d   :  { %16255 = vst [vmem:[#allocation213_spill] sm:$0xff] %v10251_v35  ;;  %16256 = vst [vmem:[#allocation214_spill] sm:$0xff] %v10254_v40  ;;  %v3211_v23 = vadd.f32 %v2955_v39, %v2420_v22  ;;  %v10273_v7 = vadd.f32 %v16142_v29, %v594_v50  ;;  %v10276_v9 = vadd.f32 %v16144_v14, %v595_v12  ;;  %v10288_v39 = vpop.permute.xlu1 %3465 }
 0x22e   :  { %16258 = vst [vmem:[#allocation215_spill] sm:$0xff] %v10262_v62  ;;  %16259 = vst [vmem:[#allocation216_spill] sm:$0xff] %v10265_v33  ;;  %v590_v30 = vmul.f32 %v16136_v41, %v16253_v18  ;;  %v591_v15 = vmul.f32 %v16137_v26, %v16253_v18  ;;  %v10283_v22 = vadd.f32 %v16078_v1, %v588_v20  ;;  %7766 = vset.pattern.permute.xlu1 %v16084_v34 }
 0x22f   :  { %16261 = vst [vmem:[#allocation218_spill] sm:$0xff] %v10273_v7  ;;  %16262 = vst [vmem:[#allocation219_spill] sm:$0xff] %v10276_v9  ;;  %v10286_v0 = vadd.f32 %v8798_v13, %v589_v6  ;;  %v3207_v50 = vadd.f32 %v2951_v44, %v2416_v31  ;;  %v3206_v36 = vadd.f32 %v2950_v49, %v2415_v28  ;;  %v16266_v9 = vld [vmem:[#allocation52_spill] sm:$0xff]  ;;  %3509 = vperm.xlu1 %7766, %v10126_v55   ;;  %v16268_v28 = vld [vmem:[#allocation53_spill] sm:$0xff] }
 0x230   :  { %16263 = vst [vmem:[#allocation220_spill] sm:$0xff] %v10283_v22  ;;  %16265 = vst [vmem:[#allocation222_spill] sm:$0xff] %v10288_v39  ;;  %v3742_v12 = vmul.f32 %v8848_v51, %v10288_v39  ;;  %v4002_v7 = vadd.f32 %v3746_v45, %v3211_v23  ;;  %v3741_v18 = vmul.f32 %v8852_v11, %v10288_v39  ;;  %7802 = vset.pattern.permute.xlu0 %v16112_v2 }
 0x231   :  { %16264 = vst [vmem:[#allocation221_spill] sm:$0xff] %v10286_v0  ;;  %v4001_v10 = vadd.f32 %v3745_v52, %v3210_v47  ;;  %v600_v20 = vmul.f32 %v16090_v27, %v16266_v9  ;;  %v601_v6 = vmul.f32 %v16091_v3, %v16266_v9  ;;  %v602_v44 = vmul.f32 %v16136_v41, %v16266_v9  ;;  %v10313_v47 = vld [vmem:[%s15313_s0 + $0x180] sm:$0xff]  ;;  %v103_v0 = vld [vmem:[%s15313_s0 + $0x190] sm:$0xff] }
 0x232   :  { %v603_v49 = vmul.f32 %v16137_v26, %v16266_v9  ;;  %v10305_v31 = vadd.f32 %v16142_v29, %v590_v30  ;;  %v596_v45 = vmul.f32 %v16090_v27, %v16268_v28  ;;  %v3998_v52 = vadd.f32 %v3742_v12, %v3207_v50  ;;  %16269 = vst [vmem:[#allocation53_spill] sm:$0xff] %v10313_v47  ;;  %v10324_v50 = vpop.permute.xlu0 %2698 }
 0x233   :  { %v3997_v23 = vadd.f32 %v3741_v18, %v3206_v36  ;;  %v10316_v35 = vadd.f32 %v16144_v14, %v591_v15  ;;  %v597_v55 = vmul.f32 %v16091_v3, %v16268_v28  ;;  %v598_v9 = vmul.f32 %v16136_v41, %v16268_v28  ;;  %16271 = vst [vmem:[#allocation224_spill] sm:$0xff] %v10324_v50  ;;  %v10327_v36 = vpop.permute.xlu1 %1100 }
 0x234   :  { %16267 = vst [vmem:[#allocation52_spill] sm:$0xff] %v10305_v31  ;;  %v599_v30 = vmul.f32 %v16137_v26, %v16268_v28  ;;  %361 = vperm.xlu0 %7802, %v10313_v47   ;;  %16272 = vst [vmem:[#allocation225_spill] sm:$0xff] %v10327_v36  ;;  %v4254_v12 = vmax.f32 %v3998_v52, 0.0  ;;  %v4258_v18 = vmax.f32 %v4002_v7, 0.0  ;;  %v4257_v15 = vmax.f32 %v4001_v10, 0.0  ;;  %7767 = vset.pattern.permute.xlu1 %v15944_v53  ;;  %v16278_v7 = vld [vmem:[#allocation54_spill] sm:$0xff] }
 0x235   :  { %16270 = vst [vmem:[#allocation223_spill] sm:$0xff] %v10316_v35  ;;  %v4253_v31 = vmax.f32 %v3997_v23, 0.0  ;;  %v10330_v35 = vadd.f32 %v16078_v1, %v600_v20  ;;  %v10333_v40 = vadd.f32 %v8798_v13, %v601_v6  ;;  %v10336_v39 = vadd.f32 %v16142_v29, %v602_v44  ;;  %v10350_v20 = vld [vmem:[%s15313_s0 + $0x120] sm:$0xff]  ;;  %v16280_v23 = vld [vmem:[#allocation12_spill] sm:$0xff] }
 0x236   :  { %v10339_v28 = vadd.f32 %v16144_v14, %v603_v49  ;;  %v10343_v37 = vadd.f32 %v16078_v1, %v596_v45  ;;  %v608_v10 = vmul.f32 %v16090_v27, %v16278_v7  ;;  %1140 = vperm.xlu1 %7767, %v10350_v20   ;;  %v4462_v6 = vpack.c.bf16 %v4258_v18, %v4254_v12  ;;  %v16279_v45 = vld [vmem:[#allocation58_spill] sm:$0xff]  ;;  %v16341_v47 = vld [vmem:[#allocation73_spill] sm:$0xff] }
 0x237   :  { %16273 = vst [vmem:[#allocation226_spill] sm:$0xff] %v10330_v35  ;;  %16274 = vst [vmem:[#allocation227_spill] sm:$0xff] %v10333_v40  ;;  %v4461_v44 = vpack.c.bf16 %v4257_v15, %v4253_v31  ;;  %v609_v49 = vmul.f32 %v16091_v3, %v16278_v7  ;;  %v610_v52 = vmul.f32 %v16136_v41, %v16278_v7  ;;  %v10372_v18 = vpop.permute.xlu1 %1104  ;;  %v16286_v15 = vld [vmem:[#allocation56_spill] sm:$0xff] }
 0x238   :  { %16275 = vst [vmem:[#allocation228_spill] sm:$0xff] %v10336_v39  ;;  %16276 = vst [vmem:[#allocation229_spill] sm:$0xff] %v10339_v28  ;;  %v1274_v39 = vmul.f32 %v16280_v23, %v16279_v45  ;;  %v16281_v28 = vld [vmem:[#allocation13_spill] sm:$0xff]  ;;  %v10362_v16 = vadd.f32 %v8798_v13, %v597_v55  ;;  %v10365_v35 = vadd.f32 %v16142_v29, %v598_v9  ;;  %5089 = vmatprep.mubr.bf16.mxu0 %v4462_v6  ;;  %v16289_v9 = vld [vmem:[#allocation15_spill] sm:$0xff] }
 0x239   :  { %16277 = vst [vmem:[#allocation230_spill] sm:$0xff] %v10343_v37  ;;  %v1275_v42 = vmul.f32 %v16281_v28, %v16279_v45  ;;  %v10368_v31 = vadd.f32 %v16144_v14, %v599_v30  ;;  %v611_v12 = vmul.f32 %v16137_v26, %v16278_v7  ;;  %16285 = vst [vmem:[#allocation13_spill] sm:$0xff] %v10372_v18  ;;  %v16287_v55 = vld [vmem:[#allocation61_spill] sm:$0xff]  ;;  %v10382_v30 = vpop.permute.xlu0 %2710  ;;  %5090 = vmatmul.mubr.bf16.gmra.mrb[48].mxu0 %v4461_v44 }
 0x23a   :  { %16282 = vst [vmem:[#allocation54_spill] sm:$0xff] %v10362_v16  ;;  %16283 = vst [vmem:[#allocation58_spill] sm:$0xff] %v10365_v35  ;;  %v616_v40 = vmul.f32 %v16090_v27, %v16286_v15  ;;  %v617_v45 = vmul.f32 %v16091_v3, %v16286_v15  ;;  %v16288_v16 = vld [vmem:[#allocation14_spill] sm:$0xff]  ;;  %v2066_v35 = vmul.f32 %v16289_v9, %v16287_v55  ;;  %v10387_v7 = vld [vmem:[%s15313_s0 + $0x198] sm:$0xff]  ;;  %7768 = vset.pattern.permute.xlu1 %v16075_v48 }
 0x23b   :  { %16284 = vst [vmem:[#allocation12_spill] sm:$0xff] %v10368_v31  ;;  %v2065_v37 = vmul.f32 %v16288_v16, %v16287_v55  ;;  %16290 = vst [vmem:[#allocation56_spill] sm:$0xff] %v10382_v30  ;;  %v10390_v6 = vadd.f32 %v16078_v1, %v608_v10  ;;  %v16292_v31 = vld [vmem:[#allocation55_spill] sm:$0xff]  ;;  %v16293_v27 = vld [vmem:[#allocation10_spill] sm:$0xff]  ;;  %v618_v33 = vmul.f32 %v16136_v41, %v16286_v15  ;;  %1931 = vperm.xlu1 %7768, %v10350_v20  }
 0x23c   :  { %v2856_v3 = vmul.f32 %v16293_v27, %v16292_v31  ;;  %v619_v55 = vmul.f32 %v16137_v26, %v16286_v15  ;;  %v10400_v44 = vadd.f32 %v8798_v13, %v609_v49  ;;  %v10403_v30 = vadd.f32 %v16142_v29, %v610_v52  ;;  %v16297_v41 = vld [vmem:[#allocation11_spill] sm:$0xff]  ;;  %v16298_v26 = vld [vmem:[#allocation57_spill] sm:$0xff]  ;;  %376 = vperm.xlu0 %7802, %v10387_v7  }
 0x23d   :  { %16291 = vst [vmem:[#allocation61_spill] sm:$0xff] %v10390_v6  ;;  %v1530_v10 = vadd.f32 %v1274_v39, %v9635_v38  ;;  %v1531_v6 = vadd.f32 %v1275_v42, %v9645_v19  ;;  %v10409_v62 = vadd.f32 %v16144_v14, %v611_v12  ;;  %v2857_v15 = vmul.f32 %v16297_v41, %v16292_v31  ;;  %v10428_v39 = vpop.permute.xlu1 %1895  ;;  %v10433_v52 = vld [vmem:[%s15313_s0 + $0x1a0] sm:$0xff] }
 0x23e   :  { %16294 = vst [vmem:[#allocation55_spill] sm:$0xff] %v10400_v44  ;;  %16295 = vst [vmem:[#allocation10_spill] sm:$0xff] %v10403_v30  ;;  %v10415_v22 = vmul.f32 %v16293_v27, %v16298_v26  ;;  %v10419_v49 = vmul.f32 %v16297_v41, %v16298_v26  ;;  %v10423_v38 = vadd.f32 %v16078_v1, %v616_v40  ;;  %v16304_v40 = vld [vmem:[#allocation59_spill] sm:$0xff] }
 0x23f   :  { %16296 = vst [vmem:[#allocation231_spill] sm:$0xff] %v10409_v62  ;;  %v10426_v19 = vadd.f32 %v8798_v13, %v617_v45  ;;  %v2321_v42 = vadd.f32 %v2065_v37, %v1530_v10  ;;  %16301 = vst [vmem:[#allocation232_spill] sm:$0xff] %v10428_v39  ;;  %v2322_v31 = vadd.f32 %v2066_v35, %v1531_v6  ;;  %v16306_v45 = vld [vmem:[#allocation66_spill] sm:$0xff] }
 0x240   :  { %16299 = vst [vmem:[#allocation11_spill] sm:$0xff] %v10423_v38  ;;  %v10436_v26 = vadd.f32 %v16142_v29, %v618_v33  ;;  %v10439_v12 = vadd.f32 %v16144_v14, %v619_v55  ;;  %v10443_v62 = vmul.f32 %v16293_v27, %v16304_v40  ;;  %v1278_v37 = vmul.f32 %v16280_v23, %v16306_v45  ;;  %v10455_v33 = vpop.permute.xlu0 %2722 }
 0x241   :  { %16300 = vst [vmem:[#allocation57_spill] sm:$0xff] %v10426_v19  ;;  %v10449_v10 = vmul.f32 %v16297_v41, %v16304_v40  ;;  %v10453_v35 = vmul.f32 %v16293_v27, %v16072_v58  ;;  %16309 = vst [vmem:[#allocation236_spill] sm:$0xff] %v10455_v33  ;;  %v1376_v6 = vmul.f32 %v8785_v17, %v10327_v36  ;;  %381 = vperm.xlu0 %7802, %v10433_v52  }
 0x242   :  { %16302 = vst [vmem:[#allocation233_spill] sm:$0xff] %v10436_v26  ;;  %16303 = vst [vmem:[#allocation234_spill] sm:$0xff] %v10439_v12  ;;  %v1377_v55 = vmul.f32 %v8789_v24, %v10327_v36  ;;  %v7995_v12 = vld [vmem:[%s15313_s0 + $0x128] sm:$0xff]  ;;  %v10466_v40 = vmul.f32 %v16297_v41, %v16072_v58  ;;  %v10472_v29 = vmul.f32 %v16293_v27, %v16096_v5 }
 0x243   :  { %16305 = vst [vmem:[#allocation59_spill] sm:$0xff] %v10443_v62  ;;  %16307 = vst [vmem:[#allocation66_spill] sm:$0xff] %v10449_v10  ;;  %1935 = vperm.xlu1 %7768, %v7995_v12   ;;  %v16311_v26 = vld [vmem:[#allocation63_spill] sm:$0xff]  ;;  %v10476_v30 = vmul.f32 %v16297_v41, %v16096_v5  ;;  %v10485_v58 = vmul.f32 %v16293_v27, %v16109_v43  ;;  %v3112_v19 = vadd.f32 %v2856_v3, %v2321_v42  ;;  %v16343_v62 = vld [vmem:[#allocation74_spill] sm:$0xff] }
 0x244   :  { %16308 = vst [vmem:[#allocation235_spill] sm:$0xff] %v10453_v35  ;;  %16310 = vst [vmem:[#allocation237_spill] sm:$0xff] %v10466_v40  ;;  %v2069_v14 = vmul.f32 %v16288_v16, %v16311_v26  ;;  %v10481_v36 = vmul.f32 %v16289_v9, %v16311_v26  ;;  %v10487_v38 = vadd.f32 %v2857_v15, %v2322_v31  ;;  %v102_v3 = vld [vmem:[%s15313_s0 + $0x188] sm:$0xff]  ;;  %v16317_v31 = vld [vmem:[#allocation65_spill] sm:$0xff] }
 0x245   :  { %16312 = vst [vmem:[#allocation63_spill] sm:$0xff] %v10472_v29  ;;  %16313 = vst [vmem:[#allocation238_spill] sm:$0xff] %v10476_v30  ;;  %v10491_v33 = vmul.f32 %v16297_v41, %v16109_v43  ;;  %v1534_v5 = vadd.f32 %v1278_v37, %v9675_v4  ;;  %v1380_v44 = vmul.f32 %v8785_v17, %v10372_v18  ;;  %v10498_v29 = vpop.permute.xlu1 %2682  ;;  %7812 = vset.pattern.permute.xlu0 %v15944_v53 }
 0x246   :  { %16314 = vst [vmem:[#allocation239_spill] sm:$0xff] %v10485_v58  ;;  %v1381_v26 = vmul.f32 %v8789_v24, %v10372_v18  ;;  %16316 = vst [vmem:[#allocation241_spill] sm:$0xff] %v10498_v29  ;;  %v2167_v15 = vmul.f32 %v8805_v57, %v9478_v59  ;;  %v2168_v43 = vmul.f32 %v8809_v56, %v9478_v59  ;;  %1192 = vperm.xlu0 %7812, %v102_v3  }
 0x247   :  { %16315 = vst [vmem:[#allocation240_spill] sm:$0xff] %v10491_v33  ;;  %v1632_v4 = vadd.f32 %v1376_v6, %v10103_v63  ;;  %v1633_v42 = vadd.f32 %v1377_v55, %v10106_v61  ;;  %7769 = vset.pattern.permute.xlu1 %v15939_v54  ;;  %v2860_v37 = vmul.f32 %v16293_v27, %v16317_v31  ;;  %v16318_v63 = vld [vmem:[#allocation67_spill] sm:$0xff]  ;;  %v16319_v6 = vld [vmem:[#allocation16_spill] sm:$0xff]  ;;  %v10521_v55 = vpop.permute.xlu0 %2734 }
 0x248   :  { %v2171_v18 = vmul.f32 %v8805_v57, %v10428_v39  ;;  %v2172_v58 = vmul.f32 %v8809_v56, %v10428_v39  ;;  %2726 = vperm.xlu1 %7769, %v7995_v12   ;;  %v1279_v33 = vmul.f32 %v16281_v28, %v16306_v45  ;;  %v3647_v61 = vmul.f32 %v16319_v6, %v16318_v63  ;;  %v16321_v39 = vld [vmem:[#allocation68_spill] sm:$0xff] }
 0x249   :  { %16320 = vst [vmem:[#allocation65_spill] sm:$0xff] %v10521_v55  ;;  %v2958_v13 = vmul.f32 %v8832_v25, %v10498_v29  ;;  %v2959_v1 = vmul.f32 %v8836_v46, %v10498_v29  ;;  %v2325_v30 = vadd.f32 %v2069_v14, %v1534_v5  ;;  %v1290_v12 = vmul.f32 %v16280_v23, %v16321_v39  ;;  %v10538_v29 = vpop.permute.xlu1 %3473 }
 0x24a   :  { %v1636_v59 = vadd.f32 %v1380_v44, %v10086_v21  ;;  %v1637_v45 = vadd.f32 %v1381_v26, %v10089_v32  ;;  %v2962_v55 = vmul.f32 %v8832_v25, %v10267_v60  ;;  %v2963_v35 = vmul.f32 %v8836_v46, %v10267_v60  ;;  %16322 = vst [vmem:[#allocation67_spill] sm:$0xff] %v10538_v29 }
 0x24b   :  { %v2424_v14 = vadd.f32 %v2168_v43, %v1633_v42  ;;  %v2423_v5 = vadd.f32 %v2167_v15, %v1632_v4  ;;  %v3750_v21 = vmul.f32 %v8848_v51, %v10538_v29  ;;  %v3749_v44 = vmul.f32 %v8852_v11, %v10538_v29  ;;  %1196 = vperm.xlu0 %7812, %v103_v0   ;;  %v16323_v15 = vld [vmem:[#allocation23_spill] sm:$0xff]  ;;  %v16324_v4 = vld [vmem:[#allocation17_spill] sm:$0xff]  ;;  %v10569_v0 = vpop.permute.xlu0 %2742 }
 0x24c   :  { %7770 = vset.pattern.permute.xlu1 %v16084_v34  ;;  %v2428_v3 = vadd.f32 %v2172_v58, %v1637_v45  ;;  %v2427_v32 = vadd.f32 %v2171_v18, %v1636_v59  ;;  %v10547_v26 = vmul.f32 %v16297_v41, %v16317_v31  ;;  %v10551_v43 = vadd.f32 %v1279_v33, %v16323_v15  ;;  %v108_v18 = vld [vmem:[%s15313_s0 + $0x1b8] sm:$0xff] }
 0x24d   :  { %3513 = vperm.xlu1 %7770, %v10350_v20   ;;  %v3215_v60 = vadd.f32 %v2959_v1, %v2424_v14  ;;  %v3214_v40 = vadd.f32 %v2958_v13, %v2423_v5  ;;  %v10553_v58 = vadd.f32 %v3647_v61, %v3112_v19  ;;  %v1291_v59 = vmul.f32 %v16281_v28, %v16321_v39  ;;  %v16325_v20 = vld [vmem:[#allocation26_spill] sm:$0xff]  ;;  %v10571_v19 = vpop.permute.xlu1 %3477  ;;  %v16329_v14 = vld [vmem:[#allocation69_spill] sm:$0xff] }
 0x24e   :  { %v10562_v42 = vmul.f32 %v16324_v4, %v16318_v63  ;;  %v10565_v1 = vadd.f32 %v1290_v12, %v16325_v20  ;;  %v10567_v13 = vadd.f32 %v2860_v37, %v2325_v30  ;;  %16327 = vst [vmem:[#allocation68_spill] sm:$0xff] %v10569_v0  ;;  %16328 = vst [vmem:[#allocation23_spill] sm:$0xff] %v10571_v19  ;;  %v16330_v37 = vld [vmem:[#allocation70_spill] sm:$0xff]  ;;  %v16339_v0 = vld [vmem:[#allocation157_spill] sm:$0xff] }
 0x24f   :  { %v4006_v33 = vadd.f32 %v3750_v21, %v3215_v60  ;;  %v4005_v31 = vadd.f32 %v3749_v44, %v3214_v40  ;;  %v3219_v39 = vadd.f32 %v2963_v35, %v2428_v3  ;;  %v3754_v61 = vmul.f32 %v8848_v51, %v10571_v19  ;;  %1216 = vperm.xlu0 %7812, %v108_v18   ;;  %v16331_v60 = vld [vmem:[#allocation156_spill] sm:$0xff]  ;;  %v16332_v44 = vld [vmem:[#allocation71_spill] sm:$0xff] }
 0x250   :  { %16326 = vst [vmem:[#allocation16_spill] sm:$0xff] %v10565_v1  ;;  %v3218_v45 = vadd.f32 %v2962_v55, %v2427_v32  ;;  %v3753_v63 = vmul.f32 %v8852_v11, %v10571_v19  ;;  %v1282_v12 = vmul.f32 %v16280_v23, %v16329_v14  ;;  %v1283_v30 = vmul.f32 %v16281_v28, %v16329_v14  ;;  %v10592_v55 = vld [vmem:[%s15313_s0 + $0x130] sm:$0xff]  ;;  %v109_v32 = vld [vmem:[%s15313_s0 + $0x1c0] sm:$0xff] }
 0x251   :  { %v1302_v5 = vmul.f32 %v16280_v23, %v16330_v37  ;;  %7771 = vset.pattern.permute.xlu1 %v15944_v53  ;;  %v10585_v35 = vadd.f32 %v1291_v59, %v16331_v60  ;;  %v1303_v40 = vmul.f32 %v16281_v28, %v16330_v37  ;;  %v4010_v3 = vadd.f32 %v3754_v61, %v3219_v39  ;;  %v16333_v14 = vld [vmem:[#allocation72_spill] sm:$0xff]  ;;  %v10606_v39 = vpop.permute.xlu1 %1112  ;;  %v16337_v19 = vld [vmem:[#allocation154_spill] sm:$0xff]  ;;  %v16348_v1 = vld [vmem:[#allocation165_spill] sm:$0xff] }
 0x252   :  { %1148 = vperm.xlu1 %7771, %v10592_v55   ;;  %v4009_v21 = vadd.f32 %v3753_v63, %v3218_v45  ;;  %v1286_v15 = vmul.f32 %v16280_v23, %v16332_v44  ;;  %v1287_v59 = vmul.f32 %v16281_v28, %v16332_v44  ;;  %v4262_v18 = vmax.f32 %v4006_v33, 0.0  ;;  %16334 = vst [vmem:[#allocation17_spill] sm:$0xff] %v10606_v39  ;;  %v7899_v63 = vld [vmem:[%s15316_s3 + $0x100] ss:$8 sps:$4 sm:$0xff]   ;;  %v7901_v44 = vld [vmem:[%s15316_s3 + $0x104] ss:$8 sps:$4 sm:$0xff]  }
 0x253   :  { %v4261_v20 = vmax.f32 %v4005_v31, 0.0  ;;  %v1314_v37 = vmul.f32 %v16280_v23, %v16333_v14  ;;  %v1315_v60 = vmul.f32 %v16281_v28, %v16333_v14  ;;  %v4266_v61 = vmax.f32 %v4010_v3, 0.0  ;;  %v16335_v33 = vld [vmem:[#allocation153_spill] sm:$0xff]  ;;  %1220 = vperm.xlu0 %7812, %v109_v32   ;;  %5290 = vmatprep.subr.bf16.mxu0 %v7901_v44  ;;  %v16356_v44 = vld [vmem:[#allocation167_spill] sm:$0xff] }
 0x254   :  { %v4265_v45 = vmax.f32 %v4009_v21, 0.0  ;;  %v10615_v31 = vadd.f32 %v1282_v12, %v16335_v33  ;;  %v10618_v29 = vadd.f32 %v1283_v30, %v16337_v19  ;;  %v10621_v14 = vadd.f32 %v1302_v5, %v16339_v0  ;;  %v10625_v21 = vpop.permute.xlu0 %2746  ;;  %v7997_v12 = vld [vmem:[%s15313_s0 + $0x138] sm:$0xff]  ;;  %v16344_v30 = vld [vmem:[#allocation27_spill] sm:$0xff]  ;;  %5291 = vmatpush1.bf16.msra.mxu0 %v7899_v63 }
 0x255   :  { %v2078_v3 = vmul.f32 %v16289_v9, %v16341_v47  ;;  %16342 = vst [vmem:[#allocation156_spill] sm:$0xff] %v10625_v21  ;;  %v1326_v50 = vmul.f32 %v16280_v23, %v16343_v62  ;;  %v4466_v33 = vpack.c.bf16 %v4266_v61, %v4262_v18  ;;  %v10633_v0 = vadd.f32 %v1303_v40, %v16344_v30  ;;  %v16345_v5 = vld [vmem:[#allocation21_spill] sm:$0xff]  ;;  %v16350_v18 = vld [vmem:[#allocation38_spill] sm:$0xff] }
 0x256   :  { %16336 = vst [vmem:[#allocation26_spill] sm:$0xff] %v10615_v31  ;;  %16338 = vst [vmem:[#allocation69_spill] sm:$0xff] %v10618_v29  ;;  %1152 = vperm.xlu1 %7771, %v7997_v12   ;;  %v4465_v19 = vpack.c.bf16 %v4265_v45, %v4261_v20  ;;  %v1542_v31 = vadd.f32 %v1286_v15, %v16345_v5  ;;  %v1327_v21 = vmul.f32 %v16281_v28, %v16343_v62  ;;  %v16346_v32 = vld [vmem:[#allocation77_spill] sm:$0xff]  ;;  %v10662_v45 = vpop.permute.xlu1 %1899  ;;  %v16366_v5 = vld [vmem:[#allocation183_spill] sm:$0xff] }
 0x257   :  { %16340 = vst [vmem:[#allocation70_spill] sm:$0xff] %v10621_v14  ;;  %v1338_v29 = vmul.f32 %v16280_v23, %v16346_v32  ;;  %v16347_v14 = vld [vmem:[#allocation22_spill] sm:$0xff]  ;;  %v10642_v53 = vadd.f32 %v1314_v37, %v16348_v1  ;;  %v10645_v20 = vadd.f32 %v1315_v60, %v16350_v18  ;;  %v1339_v40 = vmul.f32 %v16281_v28, %v16346_v32  ;;  %v16352_v15 = vld [vmem:[#allocation81_spill] sm:$0xff] }
 0x258   :  { %v1543_v10 = vadd.f32 %v1287_v59, %v16347_v14  ;;  %5099 = vmatprep.mubr.bf16.mxu0 %v4466_v33  ;;  %v1350_v61 = vmul.f32 %v16280_v23, %v16352_v15  ;;  %v1351_v62 = vmul.f32 %v16281_v28, %v16352_v15  ;;  %7825 = vset.pattern.permute.xlu0 %v16075_v48  ;;  %v16353_v37 = vld [vmem:[#allocation166_spill] sm:$0xff] }
 0x259   :  { %16349 = vst [vmem:[#allocation71_spill] sm:$0xff] %v10642_v53  ;;  %16351 = vst [vmem:[#allocation72_spill] sm:$0xff] %v10645_v20  ;;  %5100 = vmatmul.mubr.bf16.gmra.mrb[52].mxu0 %v4465_v19  ;;  %v2326_v1 = vadd.f32 %v10481_v36, %v10551_v43  ;;  %v2077_v59 = vmul.f32 %v16288_v16, %v16341_v47  ;;  %v10659_v60 = vadd.f32 %v1326_v50, %v16353_v37  ;;  %v16359_v36 = vld [vmem:[#allocation78_spill] sm:$0xff]  ;;  %v10679_v50 = vpop.permute.xlu0 %1108  ;;  %v16362_v19 = vld [vmem:[#allocation180_spill] sm:$0xff] }
 0x25a   :  { %7772 = vset.pattern.permute.xlu1 %v16075_v48  ;;  %16355 = vst [vmem:[#allocation154_spill] sm:$0xff] %v10662_v45  ;;  %1991 = vperm.xlu0 %7825, %v10387_v7   ;;  %v2334_v63 = vadd.f32 %v2078_v3, %v1543_v10  ;;  %v10666_v14 = vadd.f32 %v1327_v21, %v16356_v44  ;;  %16361 = vst [vmem:[#allocation27_spill] sm:$0xff] %v10679_v50  ;;  %v16364_v3 = vld [vmem:[#allocation181_spill] sm:$0xff]  ;;  %v16370_v44 = vld [vmem:[#allocation86_spill] sm:$0xff] }
 0x25b   :  { %16354 = vst [vmem:[#allocation153_spill] sm:$0xff] %v10659_v60  ;;  %v10669_v33 = vadd.f32 %v1338_v29, %v9892_v8  ;;  %v10673_v43 = vmul.f32 %v16293_v27, %v16359_v36  ;;  %v10677_v47 = vmul.f32 %v16297_v41, %v16359_v36  ;;  %1943 = vperm.xlu1 %7772, %v7997_v12   ;;  %v16368_v12 = vld [vmem:[#allocation89_spill] sm:$0xff]  ;;  %v16380_v20 = vld [vmem:[#allocation199_spill] sm:$0xff] }
 0x25c   :  { %16357 = vst [vmem:[#allocation157_spill] sm:$0xff] %v10666_v14  ;;  %v10682_v30 = vadd.f32 %v1339_v40, %v16362_v19  ;;  %v1384_v10 = vmul.f32 %v8785_v17, %v10679_v50  ;;  %v1385_v29 = vmul.f32 %v8789_v24, %v10679_v50  ;;  %v10690_v8 = vadd.f32 %v10562_v42, %v10487_v38  ;;  %v16378_v50 = vld [vmem:[#allocation145_spill] sm:$0xff]  ;;  %v16379_v14 = vld [vmem:[#allocation48_spill] sm:$0xff] }
 0x25d   :  { %16358 = vst [vmem:[#allocation73_spill] sm:$0xff] %v10669_v33  ;;  %16360 = vst [vmem:[#allocation74_spill] sm:$0xff] %v10673_v43  ;;  %v10693_v21 = vadd.f32 %v1350_v61, %v16364_v3  ;;  %v10696_v32 = vadd.f32 %v1351_v62, %v16366_v5  ;;  %v1362_v18 = vmul.f32 %v16280_v23, %v16368_v12  ;;  %v10716_v62 = vpop.permute.xlu1 %2690  ;;  %v16373_v3 = vld [vmem:[#allocation204_spill] sm:$0xff]  ;;  %v16391_v43 = vld [vmem:[#allocation98_spill] sm:$0xff] }
 0x25e   :  { %16363 = vst [vmem:[#allocation21_spill] sm:$0xff] %v10682_v30  ;;  %v10701_v40 = vadd.f32 %v10547_v26, %v2326_v1  ;;  %v1363_v15 = vmul.f32 %v16281_v28, %v16368_v12  ;;  %v2175_v37 = vmul.f32 %v8805_v57, %v10662_v45  ;;  %v2176_v38 = vmul.f32 %v8809_v56, %v10662_v45  ;;  %v10721_v1 = vld [vmem:[%s15313_s0 + $0x1c8] sm:$0xff] }
 0x25f   :  { %16365 = vst [vmem:[#allocation77_spill] sm:$0xff] %v10693_v21  ;;  %16367 = vst [vmem:[#allocation22_spill] sm:$0xff] %v10696_v32  ;;  %1995 = vperm.xlu0 %7825, %v10433_v52   ;;  %v3125_v42 = vadd.f32 %v10419_v49, %v2334_v63  ;;  %v1388_v61 = vmul.f32 %v8785_v17, %v10606_v39  ;;  %v1389_v26 = vmul.f32 %v8789_v24, %v10606_v39  ;;  %v16372_v63 = vld [vmem:[#allocation203_spill] sm:$0xff]  ;;  %v16377_v21 = vld [vmem:[#allocation97_spill] sm:$0xff] }
 0x260   :  { %7773 = vset.pattern.permute.xlu1 %v15939_v54  ;;  %16369 = vst [vmem:[#allocation165_spill] sm:$0xff] %v10716_v62  ;;  %v10725_v36 = vmul.f32 %v16324_v4, %v16370_v44  ;;  %v2333_v49 = vadd.f32 %v2077_v59, %v1542_v31  ;;  %v1640_v19 = vadd.f32 %v1384_v10, %v16372_v63  ;;  %v7902_v39 = vld [vmem:[%s15316_s3 + $0x110] ss:$8 sps:$4 sm:$0xff]   ;;  %v7904_v31 = vld [vmem:[%s15316_s3 + $0x114] ss:$8 sps:$4 sm:$0xff]   ;;  %v16375_v63 = vld [vmem:[#allocation90_spill] sm:$0xff] }
 0x261   :  { %v1641_v5 = vadd.f32 %v1385_v29, %v16373_v3  ;;  %v2966_v12 = vmul.f32 %v8832_v25, %v10716_v62  ;;  %v2967_v45 = vmul.f32 %v8836_v46, %v10716_v62  ;;  %2730 = vperm.xlu1 %7773, %v10592_v55   ;;  %v16374_v59 = vld [vmem:[#allocation93_spill] sm:$0xff]  ;;  %v3660_v3 = vmul.f32 %v16324_v4, %v16375_v63 }
 0x262   :  { %16371 = vst [vmem:[#allocation38_spill] sm:$0xff] %v10725_v36  ;;  %v1374_v10 = vmul.f32 %v16280_v23, %v16374_v59  ;;  %v1375_v29 = vmul.f32 %v16281_v28, %v16374_v59  ;;  %v10748_v62 = vmul.f32 %v16319_v6, %v16370_v44  ;;  %v3651_v32 = vmul.f32 %v16319_v6, %v16377_v21  ;;  %v10759_v44 = vpop.permute.xlu1 %2694 }
 0x263   :  { %v2432_v33 = vadd.f32 %v2176_v38, %v1641_v5  ;;  %v2431_v30 = vadd.f32 %v2175_v37, %v1640_v19  ;;  %2015 = vperm.xlu0 %7825, %v10721_v1   ;;  %5292 = vmatprep.subr.bf16.mxu0 %v7904_v31  ;;  %v2179_v60 = vmul.f32 %v8805_v57, %v16378_v50  ;;  %v10764_v37 = vld [vmem:[%s15313_s0 + $0x1d0] sm:$0xff] }
 0x264   :  { %16376 = vst [vmem:[#allocation81_spill] sm:$0xff] %v10748_v62  ;;  %v2180_v59 = vmul.f32 %v8809_v56, %v16378_v50  ;;  %v1644_v53 = vadd.f32 %v1388_v61, %v16379_v14  ;;  %v1645_v36 = vadd.f32 %v1389_v26, %v16380_v20  ;;  %16381 = vst [vmem:[#allocation166_spill] sm:$0xff] %v10759_v44  ;;  %5293 = vmatpush1.bf16.msra.mxu0 %v7902_v39  ;;  %v16382_v19 = vld [vmem:[#allocation115_spill] sm:$0xff]  ;;  %v16383_v61 = vld [vmem:[#allocation42_spill] sm:$0xff] }
 0x265   :  { %7774 = vset.pattern.permute.xlu1 %v16112_v2  ;;  %v3223_v38 = vadd.f32 %v2967_v45, %v2432_v33  ;;  %v3758_v5 = vmul.f32 %v8848_v51, %v16382_v19  ;;  %v3222_v31 = vadd.f32 %v2966_v12, %v2431_v30  ;;  %v3757_v14 = vmul.f32 %v8852_v11, %v16382_v19  ;;  %v16385_v26 = vld [vmem:[#allocation191_spill] sm:$0xff] }
 0x266   :  { %v10772_v20 = vadd.f32 %v1362_v18, %v16383_v61  ;;  %v10775_v39 = vadd.f32 %v1363_v15, %v16385_v26  ;;  %v2970_v50 = vmul.f32 %v8832_v25, %v10759_v44  ;;  %v2971_v62 = vmul.f32 %v8836_v46, %v10759_v44  ;;  %v10784_v45 = vld [vmem:[%s15313_s0 + $0x148] sm:$0xff] }
 0x267   :  { %326 = vperm.xlu1 %7774, %v10784_v45   ;;  %2019 = vperm.xlu0 %7825, %v10764_v37   ;;  %v3652_v33 = vmul.f32 %v16324_v4, %v16377_v21  ;;  %v10790_v30 = vadd.f32 %v3660_v3, %v3125_v42  ;;  %v3124_v18 = vadd.f32 %v10415_v22, %v2333_v49  ;;  %v16387_v12 = vld [vmem:[#allocation43_spill] sm:$0xff]  ;;  %v16389_v26 = vld [vmem:[#allocation194_spill] sm:$0xff]  ;;  %v10804_v42 = vpop.permute.xlu1 %3485 }
 0x268   :  { %16384 = vst [vmem:[#allocation167_spill] sm:$0xff] %v10772_v20  ;;  %16386 = vst [vmem:[#allocation78_spill] sm:$0xff] %v10775_v39  ;;  %v3659_v15 = vmul.f32 %v16319_v6, %v16375_v63  ;;  %v10796_v61 = vadd.f32 %v1374_v10, %v16387_v12  ;;  %v10799_v44 = vadd.f32 %v1375_v29, %v16389_v26  ;;  %v16394_v29 = vld [vmem:[#allocation96_spill] sm:$0xff] }
 0x269   :  { %v2436_v19 = vadd.f32 %v2180_v59, %v1645_v36  ;;  %v2435_v20 = vadd.f32 %v2179_v60, %v1644_v53  ;;  %v3907_v39 = vadd.f32 %v3651_v32, %v10567_v13  ;;  %v2082_v21 = vmul.f32 %v16289_v9, %v16391_v43  ;;  %16392 = vst [vmem:[#allocation183_spill] sm:$0xff] %v10804_v42  ;;  %v16393_v60 = vld [vmem:[#allocation100_spill] sm:$0xff] }
 0x26a   :  { %16388 = vst [vmem:[#allocation180_spill] sm:$0xff] %v10796_v61  ;;  %16390 = vst [vmem:[#allocation181_spill] sm:$0xff] %v10799_v44  ;;  %v4014_v3 = vadd.f32 %v3758_v5, %v3223_v38  ;;  %v4013_v22 = vadd.f32 %v3757_v14, %v3222_v31  ;;  %v3762_v10 = vmul.f32 %v8848_v51, %v10804_v42  ;;  %v4159_v53 = vmax.f32 %v10553_v58, 0.0  ;;  %v16395_v31 = vld [vmem:[#allocation108_spill] sm:$0xff]  ;;  %v16422_v61 = vld [vmem:[#allocation206_spill] sm:$0xff] }
 0x26b   :  { %7775 = vset.pattern.permute.xlu1 %v16084_v34  ;;  %v3227_v49 = vadd.f32 %v2971_v62, %v2436_v19  ;;  %v3226_v63 = vadd.f32 %v2970_v50, %v2435_v20  ;;  %v3761_v36 = vmul.f32 %v8852_v11, %v10804_v42  ;;  %v2081_v13 = vmul.f32 %v16288_v16, %v16391_v43  ;;  %v7905_v62 = vld [vmem:[%s15316_s3 + $0x120] ss:$8 sps:$4 sm:$0xff]   ;;  %v7907_v50 = vld [vmem:[%s15316_s3 + $0x124] ss:$8 sps:$4 sm:$0xff]   ;;  %v10835_v20 = vpop.permute.xlu1 %1116 }
 0x26c   :  { %v2873_v32 = vmul.f32 %v16297_v41, %v16393_v60  ;;  %3521 = vperm.xlu1 %7775, %v10592_v55   ;;  %7832 = vset.pattern.permute.xlu0 %v16084_v34  ;;  %v3908_v58 = vadd.f32 %v3652_v33, %v10701_v40  ;;  %v1294_v43 = vmul.f32 %v16280_v23, %v16394_v29  ;;  %v4163_v19 = vmax.f32 %v3907_v39, 0.0  ;;  %v16400_v42 = vld [vmem:[#allocation110_spill] sm:$0xff]  ;;  %v16423_v44 = vld [vmem:[#allocation207_spill] sm:$0xff] }
 0x26d   :  { %v1295_v59 = vmul.f32 %v16281_v28, %v16394_v29  ;;  %v4018_v38 = vadd.f32 %v3762_v10, %v3227_v49  ;;  %v4017_v55 = vadd.f32 %v3761_v36, %v3226_v63  ;;  %3573 = vperm.xlu0 %7832, %v10387_v7   ;;  %v2872_v5 = vmul.f32 %v16293_v27, %v16393_v60  ;;  %v16398_v10 = vld [vmem:[#allocation99_spill] sm:$0xff]  ;;  %v16399_v36 = vld [vmem:[#allocation16_spill] sm:$0xff] }
 0x26e   :  { %v1299_v14 = vmul.f32 %v16281_v28, %v16395_v31  ;;  %5294 = vmatprep.subr.bf16.mxu0 %v7907_v50  ;;  %v2338_v40 = vadd.f32 %v2082_v21, %v10585_v35  ;;  %16396 = vst [vmem:[#allocation89_spill] sm:$0xff] %v10835_v20  ;;  %v4270_v33 = vmax.f32 %v4014_v3, 0.0  ;;  %v4269_v26 = vmax.f32 %v4013_v22, 0.0  ;;  %v10846_v35 = vld [vmem:[%s15313_s0 + $0x140] sm:$0xff] }
 0x26f   :  { %v4274_v12 = vmax.f32 %v4018_v38, 0.0  ;;  %v4273_v29 = vmax.f32 %v4017_v55, 0.0  ;;  %5295 = vmatpush1.bf16.msra.mxu0 %v7905_v62  ;;  %v16397_v49 = vmov 1   ;;  %v4164_v7 = vmax.f32 %v3908_v58, 0.0  ;;  %v16401_v38 = vld [vmem:[#allocation24_spill] sm:$0xff] }
 0x270   :  { %7777 = vset.pattern.permute.xlu1 %v16397_v49  ;;  %v3129_v39 = vadd.f32 %v2873_v32, %v2338_v40  ;;  %v3664_v63 = vmul.f32 %v16324_v4, %v16398_v10  ;;  %v2337_v60 = vadd.f32 %v2081_v13, %v16399_v36  ;;  %v2090_v50 = vmul.f32 %v16289_v9, %v16400_v42  ;;  %v16402_v40 = vld [vmem:[#allocation25_spill] sm:$0xff] }
 0x271   :  { %1156 = vperm.xlu1 %7777, %v10846_v35   ;;  %v4470_v21 = vpack.c.bf16 %v4274_v12, %v4270_v33  ;;  %v4469_v3 = vpack.c.bf16 %v4273_v29, %v4269_v26  ;;  %3577 = vperm.xlu0 %7832, %v10433_v52   ;;  %v4160_v22 = vmax.f32 %v10690_v8, 0.0  ;;  %v1298_v32 = vmul.f32 %v16280_v23, %v16395_v31  ;;  %v16403_v33 = vld [vmem:[#allocation159_spill] sm:$0xff]  ;;  %v10886_v26 = vpop.permute.xlu0 %1120 }
 0x272   :  { %v10853_v13 = vadd.f32 %v3659_v15, %v3124_v18  ;;  %v3128_v62 = vadd.f32 %v2872_v5, %v2337_v60  ;;  %v3663_v58 = vmul.f32 %v16319_v6, %v16398_v10  ;;  %v10858_v55 = vadd.f32 %v1294_v43, %v16401_v38  ;;  %v16405_v8 = vld [vmem:[#allocation103_spill] sm:$0xff]  ;;  %v10872_v15 = vpop.permute.xlu1 %1907  ;;  %v16408_v5 = vld [vmem:[#allocation101_spill] sm:$0xff]  ;;  %16410 = vst [vmem:[#allocation93_spill] sm:$0xff] %v10886_v26 }
 0x273   :  { %v10861_v36 = vadd.f32 %v1295_v59, %v16402_v40  ;;  %v1555_v12 = vadd.f32 %v1299_v14, %v16403_v33  ;;  %5109 = vmatprep.mubr.bf16.mxu0 %v4470_v21  ;;  %v10864_v52 = vpack.c.bf16 %v4163_v19, %v4159_v53  ;;  %v10868_v31 = vmul.f32 %v16293_v27, %v16405_v8  ;;  %v16409_v19 = vld [vmem:[#allocation112_spill] sm:$0xff] }
 0x274   :  { %v2089_v18 = vmul.f32 %v16288_v16, %v16400_v42  ;;  %16406 = vst [vmem:[#allocation203_spill] sm:$0xff] %v10872_v15  ;;  %5110 = vmatmul.mubr.bf16.gmra.mrb[56].mxu0 %v4469_v3  ;;  %v10874_v43 = vpack.c.bf16 %v4164_v7, %v4160_v22  ;;  %v10878_v59 = vmul.f32 %v16324_v4, %v16408_v5  ;;  %v16411_v7 = vld [vmem:[#allocation28_spill] sm:$0xff]  ;;  %v16413_v22 = vld [vmem:[#allocation114_spill] sm:$0xff] }
 0x275   :  { %16404 = vst [vmem:[#allocation86_spill] sm:$0xff] %v10864_v52  ;;  %v10882_v53 = vmul.f32 %v16297_v41, %v16405_v8  ;;  %v2094_v14 = vmul.f32 %v16289_v9, %v16409_v19  ;;  %1160 = vperm.xlu1 %7777, %v10784_v45   ;;  %v10889_v42 = vadd.f32 %v3664_v63, %v3129_v39 }
 0x276   :  { %16407 = vst [vmem:[#allocation204_spill] sm:$0xff] %v10874_v43  ;;  %v2346_v29 = vadd.f32 %v2090_v50, %v1555_v12  ;;  %v1554_v10 = vadd.f32 %v1298_v32, %v16411_v7  ;;  %v2093_v60 = vmul.f32 %v16288_v16, %v16409_v19  ;;  %3597 = vperm.xlu0 %7832, %v10721_v1   ;;  %v16414_v50 = vld [vmem:[#allocation104_spill] sm:$0xff]  ;;  %v16418_v19 = vld [vmem:[#allocation66_spill] sm:$0xff] }
 0x277   :  { %v10895_v21 = vadd.f32 %v3663_v58, %v3128_v62  ;;  %v10899_v3 = vmul.f32 %v16319_v6, %v16408_v5  ;;  %v2885_v38 = vmul.f32 %v16297_v41, %v16413_v22  ;;  %v1392_v39 = vmul.f32 %v8785_v17, %v10835_v20  ;;  %v10915_v58 = vpop.permute.xlu1 %1911 }
 0x278   :  { %v1393_v63 = vmul.f32 %v8789_v24, %v10835_v20  ;;  %v10909_v32 = vmul.f32 %v16324_v4, %v16414_v50  ;;  %v1396_v1 = vmul.f32 %v8785_v17, %v10886_v26  ;;  %v1397_v62 = vmul.f32 %v8789_v24, %v10886_v26  ;;  %16416 = vst [vmem:[#allocation48_spill] sm:$0xff] %v10915_v58 }
 0x279   :  { %16412 = vst [vmem:[#allocation90_spill] sm:$0xff] %v10895_v21  ;;  %v2345_v40 = vadd.f32 %v2089_v18, %v1554_v10  ;;  %v10919_v33 = vmul.f32 %v16319_v6, %v16414_v50  ;;  %v2183_v12 = vmul.f32 %v8805_v57, %v10872_v15  ;;  %v2184_v8 = vmul.f32 %v8809_v56, %v10872_v15  ;;  %v7908_v10 = vld [vmem:[%s15316_s3 + $0x130] ss:$8 sps:$4 sm:$0xff]  }
 0x27a   :  { %16415 = vst [vmem:[#allocation97_spill] sm:$0xff] %v10909_v32  ;;  %7779 = vset.pattern.permute.xlu1 %v16075_v48  ;;  %v2350_v5 = vadd.f32 %v2094_v14, %v10633_v0  ;;  %v3137_v7 = vadd.f32 %v16418_v19, %v2346_v29  ;;  %v2187_v52 = vmul.f32 %v8805_v57, %v10915_v58  ;;  %v7910_v0 = vld [vmem:[%s15316_s3 + $0x134] ss:$8 sps:$4 sm:$0xff]   ;;  %v16419_v14 = vld [vmem:[#allocation70_spill] sm:$0xff]  ;;  %v16420_v19 = vld [vmem:[#allocation211_spill] sm:$0xff] }
 0x27b   :  { %16417 = vst [vmem:[#allocation199_spill] sm:$0xff] %v10919_v33  ;;  %v2188_v18 = vmul.f32 %v8809_v56, %v10915_v58  ;;  %1951 = vperm.xlu1 %7779, %v10784_v45   ;;  %3601 = vperm.xlu0 %7832, %v10764_v37   ;;  %v2349_v29 = vadd.f32 %v2093_v60, %v16419_v14  ;;  %v16421_v58 = vld [vmem:[#allocation212_spill] sm:$0xff] }
 0x27c   :  { %v2884_v50 = vmul.f32 %v16293_v27, %v16413_v22  ;;  %v1648_v43 = vadd.f32 %v1392_v39, %v16420_v19  ;;  %v1649_v15 = vadd.f32 %v1393_v63, %v16421_v58  ;;  %v3141_v20 = vadd.f32 %v2885_v38, %v2350_v5  ;;  %5296 = vmatprep.subr.bf16.mxu0 %v7910_v0  ;;  %v16424_v33 = vld [vmem:[#allocation116_spill] sm:$0xff]  ;;  %v10955_v39 = vpop.permute.xlu1 %2702  ;;  %v16427_v58 = vld [vmem:[#allocation117_spill] sm:$0xff]  ;;  %v16431_v0 = vld [vmem:[#allocation106_spill] sm:$0xff] }
 0x27d   :  { %v1652_v37 = vadd.f32 %v1396_v1, %v16422_v61  ;;  %v1653_v26 = vadd.f32 %v1397_v62, %v16423_v44  ;;  %v3672_v32 = vmul.f32 %v16324_v4, %v16424_v33  ;;  %v3671_v21 = vmul.f32 %v16319_v6, %v16424_v33  ;;  %v16425_v60 = vld [vmem:[#allocation224_spill] sm:$0xff]  ;;  %16426 = vst [vmem:[#allocation42_spill] sm:$0xff] %v10955_v39  ;;  %v16429_v5 = vld [vmem:[#allocation129_spill] sm:$0xff] }
 0x27e   :  { %v2974_v14 = vmul.f32 %v8832_v25, %v16425_v60  ;;  %v2975_v22 = vmul.f32 %v8836_v46, %v16425_v60  ;;  %v2440_v38 = vadd.f32 %v2184_v8, %v1649_v15  ;;  %v2439_v63 = vadd.f32 %v2183_v12, %v1648_v43  ;;  %5297 = vmatpush1.bf16.msra.mxu0 %v7908_v10  ;;  %v16428_v12 = vld [vmem:[#allocation59_spill] sm:$0xff] }
 0x27f   :  { %v2978_v44 = vmul.f32 %v8832_v25, %v10955_v39  ;;  %v2979_v61 = vmul.f32 %v8836_v46, %v10955_v39  ;;  %7780 = vset.pattern.permute.xlu1 %v15939_v54  ;;  %v2444_v1 = vadd.f32 %v2188_v18, %v1653_v26  ;;  %v2443_v62 = vadd.f32 %v2187_v52, %v1652_v37  ;;  %v16430_v18 = vld [vmem:[#allocation53_spill] sm:$0xff] }
 0x280   :  { %2738 = vperm.xlu1 %7780, %v10846_v35   ;;  %v3770_v33 = vmul.f32 %v8848_v51, %v16427_v58  ;;  %v3769_v15 = vmul.f32 %v8852_v11, %v16427_v58  ;;  %7836 = vset.pattern.permute.xlu0 %v15939_v54  ;;  %v3136_v8 = vadd.f32 %v16428_v12, %v2345_v40  ;;  %v10983_v12 = vpop.permute.xlu1 %3489  ;;  %v16444_v54 = vld [vmem:[#allocation131_spill] sm:$0xff] }
 0x281   :  { %v2073_v10 = vmul.f32 %v16288_v16, %v16429_v5  ;;  %v2074_v52 = vmul.f32 %v16289_v9, %v16429_v5  ;;  %v3235_v26 = vadd.f32 %v2979_v61, %v2444_v1  ;;  %v3234_v35 = vadd.f32 %v2978_v44, %v2443_v62  ;;  %2770 = vperm.xlu0 %7836, %v16430_v18  }
 0x282   :  { %v10977_v19 = vmul.f32 %v16324_v4, %v16431_v0  ;;  %v10981_v37 = vmul.f32 %v16319_v6, %v16431_v0  ;;  %v3928_v43 = vadd.f32 %v3672_v32, %v3137_v7  ;;  %v3140_v40 = vadd.f32 %v2884_v50, %v2349_v29  ;;  %16432 = vst [vmem:[#allocation191_spill] sm:$0xff] %v10983_v12  ;;  %v16433_v0 = vld [vmem:[#allocation125_spill] sm:$0xff]  ;;  %v16435_v29 = vld [vmem:[#allocation26_spill] sm:$0xff] }
 0x283   :  { %v3231_v39 = vadd.f32 %v2975_v22, %v2440_v38  ;;  %v3230_v58 = vadd.f32 %v2974_v14, %v2439_v63  ;;  %v3932_v5 = vadd.f32 %v10878_v59, %v3141_v20  ;;  %v3927_v61 = vadd.f32 %v3671_v21, %v3136_v8  ;;  %v10998_v20 = vld [vmem:[%s15313_s0 + $0x150] sm:$0xff]  ;;  %v16434_v59 = vld [vmem:[#allocation69_spill] sm:$0xff] }
 0x284   :  { %7781 = vset.pattern.permute.xlu1 %v16112_v2  ;;  %v3766_v44 = vmul.f32 %v8848_v51, %v10983_v12  ;;  %v4026_v1 = vadd.f32 %v3770_v33, %v3235_v26  ;;  %v3765_v62 = vmul.f32 %v8852_v11, %v10983_v12  ;;  %v4025_v18 = vadd.f32 %v3769_v15, %v3234_v35  ;;  %v16436_v33 = vld [vmem:[#allocation120_spill] sm:$0xff] }
 0x285   :  { %v1310_v32 = vmul.f32 %v16280_v23, %v16433_v0  ;;  %v1311_v7 = vmul.f32 %v16281_v28, %v16433_v0  ;;  %331 = vperm.xlu1 %7781, %v10998_v20   ;;  %v2330_v21 = vadd.f32 %v2074_v52, %v16434_v59  ;;  %v2329_v50 = vadd.f32 %v2073_v10, %v16435_v29  ;;  %v16437_v8 = vld [vmem:[#allocation128_spill] sm:$0xff]  ;;  %v7911_v52 = vld [vmem:[%s15316_s3 + $0x140] ss:$8 sps:$4 sm:$0xff]  }
 0x286   :  { %v4022_v14 = vadd.f32 %v3766_v44, %v3231_v39  ;;  %v4021_v22 = vadd.f32 %v3765_v62, %v3230_v58  ;;  %v4184_v38 = vmax.f32 %v3928_v43, 0.0  ;;  %v3931_v63 = vadd.f32 %v10899_v3, %v3140_v40  ;;  %v7913_v39 = vld [vmem:[%s15316_s3 + $0x144] ss:$8 sps:$4 sm:$0xff]   ;;  %v11016_v43 = vpop.permute.xlu1 %1124  ;;  %v16439_v62 = vld [vmem:[#allocation29_spill] sm:$0xff] }
 0x287   :  { %v1306_v15 = vmul.f32 %v16280_v23, %v16436_v33  ;;  %v2101_v26 = vmul.f32 %v16288_v16, %v16437_v8  ;;  %v2102_v35 = vmul.f32 %v16289_v9, %v16437_v8  ;;  %v4183_v58 = vmax.f32 %v3927_v61, 0.0  ;;  %16438 = vst [vmem:[#allocation43_spill] sm:$0xff] %v11016_v43  ;;  %v16440_v59 = vld [vmem:[#allocation39_spill] sm:$0xff]  ;;  %v11023_v8 = vld [vmem:[%s15313_s0 + $0x158] sm:$0xff]  ;;  %v16441_v61 = vld [vmem:[#allocation74_spill] sm:$0xff]  ;;  %5298 = vmatprep.subr.bf16.mxu0 %v7913_v39 }
 0x288   :  { %v4278_v3 = vmax.f32 %v4022_v14, 0.0  ;;  %v4282_v10 = vmax.f32 %v4026_v1, 0.0  ;;  %v4277_v40 = vmax.f32 %v4021_v22, 0.0  ;;  %v4281_v44 = vmax.f32 %v4025_v18, 0.0  ;;  %5299 = vmatpush1.bf16.msra.mxu0 %v7911_v52  ;;  %v16450_v39 = vld [vmem:[#allocation81_spill] sm:$0xff] }
 0x289   :  { %v1566_v0 = vadd.f32 %v1310_v32, %v16439_v62  ;;  %v1567_v29 = vadd.f32 %v1311_v7, %v16440_v59  ;;  %336 = vperm.xlu1 %7781, %v11023_v8   ;;  %v3121_v12 = vadd.f32 %v10677_v47, %v2330_v21  ;;  %v3120_v60 = vadd.f32 %v16441_v61, %v2329_v50  ;;  %v16442_v59 = vld [vmem:[#allocation105_spill] sm:$0xff] }
 0x28a   :  { %v1307_v1 = vmul.f32 %v16281_v28, %v16436_v33  ;;  %v4474_v14 = vpack.c.bf16 %v4282_v10, %v4278_v3  ;;  %v4473_v18 = vpack.c.bf16 %v4281_v44, %v4277_v40  ;;  %v4188_v32 = vmax.f32 %v3932_v5, 0.0  ;;  %v11038_v50 = vpop.permute.xlu1 %1128  ;;  %v16453_v44 = vld [vmem:[#allocation135_spill] sm:$0xff] }
 0x28b   :  { %v4187_v7 = vmax.f32 %v3931_v63, 0.0  ;;  %v2358_v22 = vadd.f32 %v2102_v35, %v1567_v29  ;;  %v2357_v62 = vadd.f32 %v2101_v26, %v1566_v0  ;;  %v11032_v2 = vmul.f32 %v16324_v4, %v16442_v59  ;;  %16445 = vst [vmem:[#allocation98_spill] sm:$0xff] %v11038_v50  ;;  %v16448_v63 = vld [vmem:[#allocation160_spill] sm:$0xff]  ;;  %v16449_v35 = vld [vmem:[#allocation38_spill] sm:$0xff] }
 0x28c   :  { %v2085_v47 = vmul.f32 %v16288_v16, %v16444_v54  ;;  %v2086_v21 = vmul.f32 %v16289_v9, %v16444_v54  ;;  %5119 = vmatprep.mubr.bf16.mxu0 %v4474_v14  ;;  %v11040_v33 = vpack.c.bf16 %v4188_v32, %v4184_v38  ;;  %v11044_v5 = vmul.f32 %v16319_v6, %v16442_v59  ;;  %v16452_v54 = vld [vmem:[#allocation161_spill] sm:$0xff]  ;;  %v16454_v29 = vld [vmem:[#allocation130_spill] sm:$0xff]  ;;  %v16458_v59 = vld [vmem:[#allocation119_spill] sm:$0xff] }
 0x28d   :  { %16443 = vst [vmem:[#allocation194_spill] sm:$0xff] %v11032_v2  ;;  %v11047_v26 = vadd.f32 %v1306_v15, %v16448_v63  ;;  %7782 = vset.pattern.permute.xlu1 %v16084_v34  ;;  %v3912_v52 = vadd.f32 %v16449_v35, %v3121_v12  ;;  %v3911_v3 = vadd.f32 %v16450_v39, %v3120_v60  ;;  %v4171_v15 = vmax.f32 %v10853_v13, 0.0  ;;  %v16457_v32 = vld [vmem:[#allocation133_spill] sm:$0xff]  ;;  %v16484_v2 = vld [vmem:[#allocation132_spill] sm:$0xff] }
 0x28e   :  { %16446 = vst [vmem:[#allocation100_spill] sm:$0xff] %v11040_v33  ;;  %16447 = vst [vmem:[#allocation96_spill] sm:$0xff] %v11044_v5  ;;  %v11052_v10 = vpack.c.bf16 %v4187_v7, %v4183_v58  ;;  %v1563_v40 = vadd.f32 %v1307_v1, %v16452_v54  ;;  %v1318_v38 = vmul.f32 %v16280_v23, %v16453_v44  ;;  %5120 = vmatmul.mubr.bf16.gmra.mrb[60].mxu0 %v4473_v18  ;;  %v16455_v58 = vld [vmem:[#allocation237_spill] sm:$0xff]  ;;  %v16456_v1 = vld [vmem:[#allocation235_spill] sm:$0xff] }
 0x28f   :  { %v1319_v0 = vmul.f32 %v16281_v28, %v16453_v44  ;;  %3533 = vperm.xlu1 %7782, %v10784_v45   ;;  %v11063_v12 = vmul.f32 %v16293_v27, %v16454_v29  ;;  %v2889_v60 = vmul.f32 %v16297_v41, %v16454_v29  ;;  %v11068_v61 = vadd.f32 %v16455_v58, %v2358_v22  ;;  %v16461_v54 = vld [vmem:[#allocation162_spill] sm:$0xff]  ;;  %v16462_v29 = vld [vmem:[#allocation163_spill] sm:$0xff]  ;;  %v7916_v33 = vld [vmem:[%s15316_s3 + $0x154] ss:$8 sps:$4 sm:$0xff]  }
 0x290   :  { %16451 = vst [vmem:[#allocation108_spill] sm:$0xff] %v11052_v10  ;;  %v11071_v14 = vadd.f32 %v16456_v1, %v2357_v62  ;;  %v11075_v18 = vmul.f32 %v16288_v16, %v16457_v32  ;;  %v2098_v45 = vmul.f32 %v16289_v9, %v16457_v32  ;;  %v2342_v13 = vadd.f32 %v2086_v21, %v10861_v36  ;;  %v11089_v62 = vpop.permute.xlu1 %1919  ;;  %v16463_v36 = vld [vmem:[#allocation139_spill] sm:$0xff]  ;;  %v16466_v21 = vld [vmem:[#allocation126_spill] sm:$0xff] }
 0x291   :  { %v2341_v7 = vadd.f32 %v2085_v47, %v10858_v55  ;;  %v11083_v63 = vmul.f32 %v16288_v16, %v16458_v59  ;;  %v11087_v22 = vmul.f32 %v16289_v9, %v16458_v59  ;;  %16460 = vst [vmem:[#allocation16_spill] sm:$0xff] %v11089_v62  ;;  %v4168_v35 = vmax.f32 %v3912_v52, 0.0  ;;  %v16470_v59 = vld [vmem:[#allocation141_spill] sm:$0xff]  ;;  %5300 = vmatprep.subr.bf16.mxu0 %v7916_v33 }
 0x292   :  { %v4167_v39 = vmax.f32 %v3911_v3, 0.0  ;;  %v11092_v44 = vadd.f32 %v1318_v38, %v16461_v54  ;;  %v11095_v58 = vadd.f32 %v1319_v0, %v16462_v29  ;;  %v11099_v55 = vmul.f32 %v16288_v16, %v16463_v36  ;;  %v16467_v3 = vld [vmem:[#allocation33_spill] sm:$0xff] }
 0x293   :  { %16459 = vst [vmem:[#allocation99_spill] sm:$0xff] %v11083_v63  ;;  %v11103_v47 = vmul.f32 %v16289_v9, %v16463_v36  ;;  %7783 = vset.pattern.permute.xlu1 %v16397_v49  ;;  %v11108_v52 = vmul.f32 %v16288_v16, %v16466_v21  ;;  %v11112_v38 = vmul.f32 %v16288_v16, %v16467_v3 }
 0x294   :  { %16464 = vst [vmem:[#allocation110_spill] sm:$0xff] %v11099_v55  ;;  %v11116_v0 = vmul.f32 %v16289_v9, %v16467_v3  ;;  %v1401_v1 = vmul.f32 %v8789_v24, %v11016_v43  ;;  %1164 = vperm.xlu1 %7783, %v10998_v20   ;;  %v11123_v32 = vmul.f32 %v16289_v9, %v16466_v21  ;;  %v7914_v21 = vld [vmem:[%s15316_s3 + $0x150] ss:$8 sps:$4 sm:$0xff]  }
 0x295   :  { %16465 = vst [vmem:[#allocation24_spill] sm:$0xff] %v11103_v47  ;;  %16468 = vst [vmem:[#allocation25_spill] sm:$0xff] %v11112_v38  ;;  %v11127_v54 = vmul.f32 %v16288_v16, %v16470_v59  ;;  %v11131_v29 = vmul.f32 %v16289_v9, %v16470_v59  ;;  %v1400_v36 = vmul.f32 %v8785_v17, %v11016_v43  ;;  %v16473_v59 = vmax.f32 %v10790_v30, 0.0  ;;  %v16476_v43 = vld [vmem:[#allocation60_spill] sm:$0xff]  ;;  %v16479_v47 = vld [vmem:[#allocation146_spill] sm:$0xff] }
 0x296   :  { %16469 = vst [vmem:[#allocation159_spill] sm:$0xff] %v11116_v0  ;;  %v1404_v3 = vmul.f32 %v8785_v17, %v11038_v50  ;;  %v1405_v10 = vmul.f32 %v8789_v24, %v11038_v50  ;;  %v11153_v38 = vmul.f32 %v16293_v27, %v16476_v43  ;;  %v11157_v50 = vmul.f32 %v16297_v41, %v16476_v43  ;;  %v11159_v0 = vpop.permute.xlu1 %2706 }
 0x297   :  { %16471 = vst [vmem:[#allocation103_spill] sm:$0xff] %v11127_v54  ;;  %16472 = vst [vmem:[#allocation101_spill] sm:$0xff] %v11131_v29  ;;  %v11147_v54 = vpack.c.bf16 %v16473_v59, %v4168_v35  ;;  %v11149_v29 = vpack.c.bf16 %v4171_v15, %v4167_v39  ;;  %v3133_v5 = vadd.f32 %v10882_v53, %v2342_v13  ;;  %v16480_v35 = vld [vmem:[#allocation221_spill] sm:$0xff]  ;;  %5301 = vmatpush1.bf16.msra.mxu0 %v7914_v21  ;;  %v16486_v53 = vld [vmem:[#allocation134_spill] sm:$0xff] }
 0x298   :  { %16477 = vst [vmem:[#allocation114_spill] sm:$0xff] %v11153_v38  ;;  %16478 = vst [vmem:[#allocation104_spill] sm:$0xff] %v11159_v0  ;;  %v2354_v55 = vadd.f32 %v2098_v45, %v1563_v40  ;;  %v2192_v30 = vmul.f32 %v8809_v56, %v16479_v47  ;;  %v1657_v59 = vadd.f32 %v1401_v1, %v16480_v35  ;;  %7784 = vset.pattern.permute.xlu1 %v16075_v48  ;;  %v16482_v45 = vld [vmem:[#allocation215_spill] sm:$0xff]  ;;  %v16483_v1 = vld [vmem:[#allocation216_spill] sm:$0xff] }
 0x299   :  { %16474 = vst [vmem:[#allocation112_spill] sm:$0xff] %v11147_v54  ;;  %16475 = vst [vmem:[#allocation28_spill] sm:$0xff] %v11149_v29  ;;  %v2195_v15 = vmul.f32 %v8805_v57, %v11089_v62  ;;  %v2196_v39 = vmul.f32 %v8809_v56, %v11089_v62  ;;  %v2191_v43 = vmul.f32 %v8805_v57, %v16479_v47  ;;  %v16481_v29 = vld [vmem:[#allocation220_spill] sm:$0xff]  ;;  %1955 = vperm.xlu1 %7784, %v10998_v20  }
 0x29a   :  { %v1656_v54 = vadd.f32 %v1400_v36, %v16481_v29  ;;  %v3132_v40 = vadd.f32 %v10868_v31, %v2341_v7  ;;  %v1660_v13 = vadd.f32 %v1404_v3, %v16482_v45  ;;  %v1661_v35 = vadd.f32 %v1405_v10, %v16483_v1  ;;  %v16485_v38 = vld [vmem:[#allocation56_spill] sm:$0xff]  ;;  %v11190_v7 = vpop.permute.xlu1 %3497  ;;  %v16488_v1 = vld [vmem:[#allocation143_spill] sm:$0xff] }
 0x29b   :  { %v2983_v62 = vmul.f32 %v8836_v46, %v11159_v0  ;;  %v3680_v48 = vmul.f32 %v16324_v4, %v16484_v2  ;;  %v2986_v29 = vmul.f32 %v8832_v25, %v16485_v38  ;;  %v2982_v33 = vmul.f32 %v8832_v25, %v11159_v0  ;;  %16487 = vst [vmem:[#allocation66_spill] sm:$0xff] %v11190_v7 }
 0x29c   :  { %v3145_v36 = vadd.f32 %v2889_v60, %v2354_v55  ;;  %v3684_v31 = vmul.f32 %v16324_v4, %v16486_v53  ;;  %v2987_v10 = vmul.f32 %v8836_v46, %v16485_v38  ;;  %v2448_v3 = vadd.f32 %v2192_v30, %v1657_v59  ;;  %v7917_v59 = vld [vmem:[%s15316_s3 + $0x160] ss:$8 sps:$4 sm:$0xff]  }
 0x29d   :  { %v2452_v21 = vadd.f32 %v2196_v39, %v1661_v35  ;;  %v2451_v45 = vadd.f32 %v2195_v15, %v1660_v13  ;;  %v11194_v49 = vmul.f32 %v16288_v16, %v16488_v1  ;;  %1959 = vperm.xlu1 %7784, %v11023_v8   ;;  %v3774_v60 = vmul.f32 %v8848_v51, %v11190_v7  ;;  %v7919_v15 = vld [vmem:[%s15316_s3 + $0x164] ss:$8 sps:$4 sm:$0xff]  }
 0x29e   :  { %v2447_v55 = vadd.f32 %v2191_v43, %v1656_v54  ;;  %v3773_v0 = vmul.f32 %v8852_v11, %v11190_v7  ;;  %v11203_v38 = vmul.f32 %v16289_v9, %v16488_v1  ;;  %v3239_v30 = vadd.f32 %v2983_v62, %v2448_v3  ;;  %v16491_v43 = vld [vmem:[#allocation121_spill] sm:$0xff]  ;;  %v11219_v3 = vpop.permute.xlu1 %3501  ;;  %5302 = vmatprep.subr.bf16.mxu0 %v7919_v15 }
 0x29f   :  { %16489 = vst [vmem:[#allocation70_spill] sm:$0xff] %v11194_v49  ;;  %v3924_v39 = vadd.f32 %v10977_v19, %v3133_v5  ;;  %v3923_v54 = vadd.f32 %v10981_v37, %v3132_v40  ;;  %v11215_v13 = vmul.f32 %v16293_v27, %v16491_v43  ;;  %v3936_v1 = vadd.f32 %v3680_v48, %v3145_v36  ;;  %v16494_v40 = vld [vmem:[#allocation90_spill] sm:$0xff] }
 0x2a0   :  { %16490 = vst [vmem:[#allocation211_spill] sm:$0xff] %v11203_v38  ;;  %v3238_v35 = vadd.f32 %v2982_v33, %v2447_v55  ;;  %v2353_v62 = vadd.f32 %v11075_v18, %v11047_v26  ;;  %16492 = vst [vmem:[#allocation212_spill] sm:$0xff] %v11219_v3  ;;  %v3243_v7 = vadd.f32 %v2987_v10, %v2452_v21  ;;  %v16493_v19 = vmov 3   ;;  %5303 = vmatpush1.bf16.msra.mxu0 %v7917_v59  ;;  %v16495_v33 = vld [vmem:[#allocation144_spill] sm:$0xff] }
 0x2a1   :  { %v4030_v49 = vadd.f32 %v3774_v60, %v3239_v30  ;;  %v3242_v38 = vadd.f32 %v2986_v29, %v2451_v45  ;;  %v3940_v63 = vadd.f32 %v3684_v31, %v11068_v61  ;;  %7786 = vset.pattern.permute.xlu1 %v16493_v19  ;;  %v3778_v37 = vmul.f32 %v8848_v51, %v11219_v3  ;;  %v16497_v45 = vld [vmem:[#allocation122_spill] sm:$0xff] }
 0x2a2   :  { %v3777_v5 = vmul.f32 %v8852_v11, %v11219_v3  ;;  %v4029_v48 = vadd.f32 %v3773_v0, %v3238_v35  ;;  %v4175_v26 = vmax.f32 %v16494_v40, 0.0  ;;  %v2901_v18 = vmul.f32 %v16297_v41, %v16491_v43  ;;  %2750 = vperm.xlu1 %7786, %v11023_v8   ;;  %v11242_v15 = vpop.permute.xlu1 %1136 }
 0x2a3   :  { %v11232_v29 = vmul.f32 %v16288_v16, %v16495_v33  ;;  %v4180_v61 = vmax.f32 %v3924_v39, 0.0  ;;  %v4179_v36 = vmax.f32 %v3923_v54, 0.0  ;;  %v4034_v31 = vadd.f32 %v3778_v37, %v3243_v7  ;;  %16498 = vst [vmem:[#allocation207_spill] sm:$0xff] %v11242_v15  ;;  %v11266_v37 = vld [vmem:[%s15313_s0 + $0x160] sm:$0xff] }
 0x2a4   :  { %v4033_v10 = vadd.f32 %v3777_v5, %v3242_v38  ;;  %v3144_v21 = vadd.f32 %v11063_v12, %v2353_v62  ;;  %v3679_v0 = vmul.f32 %v16319_v6, %v16484_v2  ;;  %v1322_v60 = vmul.f32 %v16280_v23, %v16497_v45  ;;  %v16500_v38 = vld [vmem:[#allocation145_spill] sm:$0xff] }
 0x2a5   :  { %16496 = vst [vmem:[#allocation206_spill] sm:$0xff] %v11232_v29  ;;  %v1323_v55 = vmul.f32 %v16281_v28, %v16497_v45  ;;  %v4192_v30 = vmax.f32 %v3936_v1, 0.0  ;;  %v4196_v59 = vmax.f32 %v3940_v63, 0.0  ;;  %v4286_v43 = vmax.f32 %v4030_v49, 0.0 }
 0x2a6   :  { %v4290_v39 = vmax.f32 %v4034_v31, 0.0  ;;  %v4285_v54 = vmax.f32 %v4029_v48, 0.0  ;;  %v4289_v7 = vmax.f32 %v4033_v10, 0.0  ;;  %v11246_v12 = vmul.f32 %v16289_v9, %v16495_v33  ;;  %v16509_v10 = vld [vmem:[#allocation168_spill] sm:$0xff] }
 0x2a7   :  { %v11250_v2 = vmul.f32 %v16288_v16, %v16500_v38  ;;  %v16502_v35 = vmov 0   ;;  %v16503_v62 = vmax.f32 %v10889_v42, 0.0  ;;  %v11257_v63 = vpack.c.bf16 %v4179_v36, %v4175_v26  ;;  %v11275_v26 = vpop.permute.xlu0 %1132 }
 0x2a8   :  { %16499 = vst [vmem:[#allocation116_spill] sm:$0xff] %v11246_v12  ;;  %7787 = vset.pattern.permute.xlu1 %v16502_v35  ;;  %v11261_v49 = vmul.f32 %v16289_v9, %v16500_v38  ;;  %v4478_v5 = vpack.c.bf16 %v4290_v39, %v4286_v43  ;;  %v4477_v48 = vpack.c.bf16 %v4289_v7, %v4285_v54  ;;  %v7920_v7 = vld [vmem:[%s15316_s3 + $0x170] ss:$8 sps:$4 sm:$0xff]   ;;  %v7922_v38 = vld [vmem:[%s15316_s3 + $0x174] ss:$8 sps:$4 sm:$0xff]  }
 0x2a9   :  { %16501 = vst [vmem:[#allocation59_spill] sm:$0xff] %v11250_v2  ;;  %v11255_v1 = vpack.c.bf16 %v4180_v61, %v16503_v62  ;;  %16505 = vst [vmem:[#allocation53_spill] sm:$0xff] %v11257_v63  ;;  %341 = vperm.xlu1 %7787, %v11266_v37   ;;  %v11269_v40 = vadd.f32 %v3679_v0, %v3144_v21  ;;  %v11273_v42 = vmul.f32 %v16288_v16, %v16479_v47  ;;  %v16508_v61 = vld [vmem:[#allocation72_spill] sm:$0xff]  ;;  %v16510_v21 = vld [vmem:[#allocation169_spill] sm:$0xff] }
 0x2aa   :  { %16506 = vst [vmem:[#allocation106_spill] sm:$0xff] %v11261_v49  ;;  %v3683_v33 = vmul.f32 %v16319_v6, %v16486_v53  ;;  %v2362_v36 = vadd.f32 %v11123_v32, %v16508_v61  ;;  %v2366_v31 = vadd.f32 %v11087_v22, %v11095_v58  ;;  %v11284_v45 = vadd.f32 %v1322_v60, %v16509_v10  ;;  %v106_v53 = vld [vmem:[%s15313_s0 + $0x1a8] sm:$0xff]  ;;  %v16513_v32 = vld [vmem:[#allocation148_spill] sm:$0xff] }
 0x2ab   :  { %16504 = vst [vmem:[#allocation129_spill] sm:$0xff] %v11255_v1  ;;  %16507 = vst [vmem:[#allocation125_spill] sm:$0xff] %v11273_v42  ;;  %v11287_v0 = vadd.f32 %v1323_v55, %v16510_v21  ;;  %v11291_v43 = vmul.f32 %v16289_v9, %v16479_v47  ;;  %5129 = vmatprep.mubr.bf16.mxu0 %v4478_v5  ;;  %v11296_v39 = vpack.c.bf16 %v4196_v59, %v4192_v30  ;;  %v11310_v47 = vpop.permute.xlu1 %1923  ;;  %v16516_v55 = vld [vmem:[#allocation136_spill] sm:$0xff]  ;;  %v16518_v21 = vld [vmem:[#allocation151_spill] sm:$0xff] }
 0x2ac   :  { %v11300_v22 = vmul.f32 %v8805_v57, %v16513_v32  ;;  %v11304_v58 = vmul.f32 %v8809_v56, %v16513_v32  ;;  %v11308_v60 = vmul.f32 %v16288_v16, %v16513_v32  ;;  %16515 = vst [vmem:[#allocation128_spill] sm:$0xff] %v11310_v47  ;;  %5130 = vmatmul.mubr.bf16.gmra.mrb[64].mxu0 %v4477_v48  ;;  %v4191_v62 = vmax.f32 %v11269_v40, 0.0  ;;  %v16529_v2 = vld [vmem:[#allocation71_spill] sm:$0xff]  ;;  %v16530_v49 = vld [vmem:[#allocation36_spill] sm:$0xff] }
 0x2ad   :  { %16511 = vst [vmem:[#allocation69_spill] sm:$0xff] %v11291_v43  ;;  %16512 = vst [vmem:[#allocation26_spill] sm:$0xff] %v11296_v39  ;;  %2790 = vperm.xlu0 %7836, %v106_v53   ;;  %v11314_v30 = vmul.f32 %v16288_v16, %v16516_v55  ;;  %v11318_v59 = vmul.f32 %v16289_v9, %v16516_v55  ;;  %v11322_v54 = vmul.f32 %v16289_v9, %v16513_v32  ;;  %v16521_v55 = vld [vmem:[#allocation123_spill] sm:$0xff] }
 0x2ae   :  { %16514 = vst [vmem:[#allocation120_spill] sm:$0xff] %v11308_v60  ;;  %7788 = vset.pattern.permute.xlu1 %v16084_v34  ;;  %v1408_v5 = vmul.f32 %v8785_v17, %v11275_v26  ;;  %v1409_v48 = vmul.f32 %v8789_v24, %v11275_v26  ;;  %v3939_v61 = vadd.f32 %v3683_v33, %v11071_v14  ;;  %v11353_v14 = vpop.permute.xlu0 %1144  ;;  %v16526_v60 = vld [vmem:[#allocation230_spill] sm:$0xff] }
 0x2af   :  { %16517 = vst [vmem:[#allocation29_spill] sm:$0xff] %v11322_v54  ;;  %3537 = vperm.xlu1 %7788, %v10998_v20   ;;  %v3153_v10 = vadd.f32 %v11157_v50, %v2362_v36  ;;  %v11341_v53 = vmul.f32 %v8805_v57, %v16518_v21  ;;  %v11345_v32 = vmul.f32 %v8809_v56, %v16518_v21  ;;  %v11373_v1 = vpop.permute.xlu1 %2714 }
 0x2b0   :  { %5304 = vmatprep.subr.bf16.mxu0 %v7922_v38  ;;  %v3157_v40 = vadd.f32 %v2901_v18, %v2366_v31  ;;  %v3692_v39 = vmul.f32 %v16324_v4, %v16521_v55  ;;  %v11351_v20 = vmul.f32 %v16288_v16, %v16518_v21  ;;  %v1413_v50 = vmul.f32 %v8789_v24, %v11242_v15  ;;  %v16523_v18 = vld [vmem:[#allocation31_spill] sm:$0xff] }
 0x2b1   :  { %16519 = vst [vmem:[#allocation39_spill] sm:$0xff] %v11341_v53  ;;  %16520 = vst [vmem:[#allocation74_spill] sm:$0xff] %v11345_v32  ;;  %v2199_v33 = vmul.f32 %v8805_v57, %v11310_v47  ;;  %v2200_v36 = vmul.f32 %v8809_v56, %v11310_v47  ;;  %5305 = vmatpush1.bf16.msra.mxu0 %v7920_v7  ;;  %v11363_v31 = vmul.f32 %v16288_v16, %v16523_v18  ;;  %v16527_v47 = vld [vmem:[#allocation54_spill] sm:$0xff]  ;;  %v16591_v53 = vld [vmem:[#allocation236_spill] sm:$0xff] }
 0x2b2   :  { %16522 = vst [vmem:[#allocation105_spill] sm:$0xff] %v11351_v20  ;;  %v2118_v38 = vmul.f32 %v16289_v9, %v16523_v18  ;;  %v11369_v20 = vmul.f32 %v16289_v9, %v16518_v21  ;;  %v1412_v63 = vmul.f32 %v8785_v17, %v11242_v15  ;;  %16525 = vst [vmem:[#allocation160_spill] sm:$0xff] %v11373_v1  ;;  %v4195_v18 = vmax.f32 %v3939_v61, 0.0  ;;  %v16528_v21 = vld [vmem:[#allocation97_spill] sm:$0xff]  ;;  %v16536_v61 = vld [vmem:[#allocation226_spill] sm:$0xff] }
 0x2b3   :  { %v1664_v54 = vadd.f32 %v1408_v5, %v16526_v60  ;;  %v1665_v7 = vadd.f32 %v1409_v48, %v16527_v47  ;;  %v2990_v42 = vmul.f32 %v8832_v25, %v11373_v1  ;;  %v2991_v3 = vmul.f32 %v8836_v46, %v11373_v1  ;;  %3541 = vperm.xlu1 %7788, %v11023_v8   ;;  %v16532_v47 = vld [vmem:[#allocation227_spill] sm:$0xff]  ;;  %v11390_v48 = vpop.permute.xlu0 %1168 }
 0x2b4   :  { %16524 = vst [vmem:[#allocation131_spill] sm:$0xff] %v11369_v20  ;;  %v3944_v20 = vadd.f32 %v16528_v21, %v3153_v10  ;;  %v3948_v43 = vadd.f32 %v3692_v39, %v3157_v40  ;;  %v2361_v15 = vadd.f32 %v11108_v52, %v16529_v2  ;;  %v11387_v60 = vmul.f32 %v8805_v57, %v16530_v49  ;;  %v11401_v2 = vpop.permute.xlu1 %2718  ;;  %v16538_v10 = vld [vmem:[#allocation99_spill] sm:$0xff] }
 0x2b5   :  { %v1669_v5 = vadd.f32 %v1413_v50, %v16532_v47  ;;  %16533 = vst [vmem:[#allocation81_spill] sm:$0xff] %v11390_v48  ;;  %v2456_v29 = vadd.f32 %v2200_v36, %v1665_v7  ;;  %v2455_v12 = vadd.f32 %v2199_v33, %v1664_v54  ;;  %v11394_v8 = vmul.f32 %v8809_v56, %v16530_v49 }
 0x2b6   :  { %16531 = vst [vmem:[#allocation38_spill] sm:$0xff] %v11387_v60  ;;  %v11398_v39 = vmul.f32 %v16288_v16, %v16530_v49  ;;  %v1668_v52 = vadd.f32 %v1412_v63, %v16536_v61  ;;  %16537 = vst [vmem:[#allocation130_spill] sm:$0xff] %v11401_v2  ;;  %v2365_v40 = vadd.f32 %v16538_v10, %v11092_v44  ;;  %v16539_v36 = vmov 1   ;;  %v11419_v44 = vld [vmem:[%s15313_s0 + $0x168] sm:$0xff] }
 0x2b7   :  { %16534 = vst [vmem:[#allocation161_spill] sm:$0xff] %v11394_v8  ;;  %v2995_v50 = vmul.f32 %v8836_v46, %v11401_v2  ;;  %7790 = vset.pattern.permute.xlu1 %v16539_v36  ;;  %v3247_v54 = vadd.f32 %v2991_v3, %v2456_v29  ;;  %v3246_v33 = vadd.f32 %v2990_v42, %v2455_v12  ;;  %v16542_v3 = vld [vmem:[#allocation114_spill] sm:$0xff]  ;;  %v16588_v8 = vld [vmem:[#allocation32_spill] sm:$0xff] }
 0x2b8   :  { %16535 = vst [vmem:[#allocation135_spill] sm:$0xff] %v11398_v39  ;;  %v3691_v7 = vmul.f32 %v16319_v6, %v16521_v55  ;;  %v11412_v21 = vmul.f32 %v16289_v9, %v16530_v49  ;;  %v2994_v63 = vmul.f32 %v8832_v25, %v11401_v2  ;;  %1176 = vperm.xlu1 %7790, %v11419_v44   ;;  %v16543_v42 = vld [vmem:[#allocation118_spill] sm:$0xff] }
 0x2b9   :  { %v11422_v47 = vpack.c.bf16 %v4195_v18, %v4191_v62  ;;  %v3152_v29 = vadd.f32 %v16542_v3, %v2361_v15  ;;  %v2460_v12 = vadd.f32 %v11304_v58, %v1669_v5  ;;  %v3782_v49 = vmul.f32 %v8848_v51, %v16543_v42  ;;  %v16544_v10 = vld [vmem:[#allocation30_spill] sm:$0xff]  ;;  %v11444_v3 = vpop.permute.xlu0 %1172 }
 0x2ba   :  { %16540 = vst [vmem:[#allocation237_spill] sm:$0xff] %v11412_v21  ;;  %v3781_v55 = vmul.f32 %v8852_v11, %v16543_v42  ;;  %v3156_v61 = vadd.f32 %v11215_v13, %v2365_v40  ;;  %v11433_v39 = vmul.f32 %v16293_v27, %v16544_v10  ;;  %v2909_v62 = vmul.f32 %v16297_v41, %v16544_v10  ;;  %v7923_v15 = vld [vmem:[%s15316_s3 + $0x180] ss:$8 sps:$4 sm:$0xff]   ;;  %v7925_v58 = vld [vmem:[%s15316_s3 + $0x184] ss:$8 sps:$4 sm:$0xff]   ;;  %v11446_v13 = vpop.permute.xlu1 %3509 }
 0x2bb   :  { %16541 = vst [vmem:[#allocation235_spill] sm:$0xff] %v11422_v47  ;;  %v2459_v18 = vadd.f32 %v11300_v22, %v1668_v52  ;;  %v4204_v5 = vmax.f32 %v3948_v43, 0.0  ;;  %16545 = vst [vmem:[#allocation133_spill] sm:$0xff] %v11444_v3  ;;  %v3251_v40 = vadd.f32 %v2995_v50, %v2460_v12  ;;  %v4038_v21 = vadd.f32 %v3782_v49, %v3247_v54  ;;  %v16548_v43 = vld [vmem:[#allocation199_spill] sm:$0xff]  ;;  %v16549_v54 = vld [vmem:[#allocation157_spill] sm:$0xff] }
 0x2bc   :  { %16546 = vst [vmem:[#allocation119_spill] sm:$0xff] %v11446_v13  ;;  %v4037_v47 = vadd.f32 %v3781_v55, %v3246_v33  ;;  %v3947_v1 = vadd.f32 %v3691_v7, %v3156_v61  ;;  %v16547_v10 = vmov 2   ;;  %v3786_v22 = vmul.f32 %v8848_v51, %v11446_v13  ;;  %5306 = vmatprep.subr.bf16.mxu0 %v7925_v58  ;;  %v16550_v7 = vld [vmem:[#allocation18_spill] sm:$0xff] }
 0x2bd   :  { %7791 = vset.pattern.permute.xlu1 %v16547_v10  ;;  %v3250_v52 = vadd.f32 %v2994_v63, %v2459_v18  ;;  %v3785_v2 = vmul.f32 %v8852_v11, %v11446_v13  ;;  %v4200_v42 = vmax.f32 %v3944_v20, 0.0  ;;  %5307 = vmatpush1.bf16.msra.mxu0 %v7923_v15  ;;  %v3943_v3 = vadd.f32 %v16548_v43, %v3152_v29  ;;  %v16554_v29 = vld [vmem:[#allocation62_spill] sm:$0xff] }
 0x2be   :  { %1963 = vperm.xlu1 %7791, %v11266_v37   ;;  %v2370_v50 = vadd.f32 %v11318_v59, %v11287_v0  ;;  %v2374_v33 = vadd.f32 %v2118_v38, %v16549_v54  ;;  %v11460_v12 = vmul.f32 %v16293_v27, %v16550_v7  ;;  %v4042_v63 = vadd.f32 %v3786_v22, %v3251_v40  ;;  %v11470_v0 = vpop.permute.xlu1 %1140  ;;  %v16556_v54 = vld [vmem:[#allocation137_spill] sm:$0xff]  ;;  %v16559_v22 = vld [vmem:[#allocation138_spill] sm:$0xff] }
 0x2bf   :  { %v4041_v49 = vadd.f32 %v3785_v2, %v3250_v52  ;;  %v11462_v55 = vpack.c.bf16 %v4204_v5, %v4200_v42  ;;  %v11466_v20 = vmul.f32 %v16297_v41, %v16550_v7  ;;  %v4203_v61 = vmax.f32 %v3947_v1, 0.0  ;;  %16555 = vst [vmem:[#allocation126_spill] sm:$0xff] %v11470_v0  ;;  %v11476_v5 = vpop.permute.xlu0 %301  ;;  %v16560_v7 = vld [vmem:[#allocation173_spill] sm:$0xff] }
 0x2c0   :  { %16551 = vst [vmem:[#allocation162_spill] sm:$0xff] %v11460_v12  ;;  %v3165_v18 = vadd.f32 %v2909_v62, %v2374_v33  ;;  %v3696_v15 = vmul.f32 %v16324_v4, %v16554_v29  ;;  %v4294_v59 = vmax.f32 %v4038_v21, 0.0  ;;  %v4298_v38 = vmax.f32 %v4042_v63, 0.0  ;;  %16557 = vst [vmem:[#allocation33_spill] sm:$0xff] %v11476_v5  ;;  %v16558_v62 = vld [vmem:[#allocation238_spill] sm:$0xff] }
 0x2c1   :  { %16552 = vst [vmem:[#allocation163_spill] sm:$0xff] %v11462_v55  ;;  %16553 = vst [vmem:[#allocation139_spill] sm:$0xff] %v11466_v20  ;;  %v4293_v58 = vmax.f32 %v4037_v47, 0.0  ;;  %v4297_v43 = vmax.f32 %v4041_v49, 0.0  ;;  %v1330_v2 = vmul.f32 %v16280_v23, %v16556_v54  ;;  %v1331_v42 = vmul.f32 %v16281_v28, %v16556_v54 }
 0x2c2   :  { %7792 = vset.pattern.permute.xlu1 %v16493_v19  ;;  %v4199_v1 = vmax.f32 %v3943_v3, 0.0  ;;  %v3161_v40 = vadd.f32 %v16558_v62, %v2370_v50  ;;  %v1334_v52 = vmul.f32 %v16280_v23, %v16559_v22  ;;  %v1335_v21 = vmul.f32 %v16281_v28, %v16559_v22  ;;  %v16563_v50 = vld [vmem:[#allocation194_spill] sm:$0xff]  ;;  %v16564_v62 = vld [vmem:[#allocation79_spill] sm:$0xff]  ;;  %v16565_v22 = vld [vmem:[#allocation80_spill] sm:$0xff] }
 0x2c3   :  { %2754 = vperm.xlu1 %7792, %v11266_v37   ;;  %v4482_v47 = vpack.c.bf16 %v4298_v38, %v4294_v59  ;;  %v4481_v33 = vpack.c.bf16 %v4297_v43, %v4293_v58  ;;  %v11487_v63 = vmul.f32 %v16293_v27, %v16560_v7  ;;  %v11491_v49 = vmul.f32 %v16297_v41, %v16560_v7  ;;  %v16567_v58 = vld [vmem:[#allocation50_spill] sm:$0xff] }
 0x2c4   :  { %v3952_v3 = vadd.f32 %v3696_v15, %v3161_v40  ;;  %v3956_v54 = vadd.f32 %v16563_v50, %v3165_v18  ;;  %v604_v55 = vmul.f32 %v16564_v62, %v11476_v5  ;;  %v605_v13 = vmul.f32 %v16565_v22, %v11476_v5  ;;  %v11510_v18 = vpop.permute.xlu1 %1931  ;;  %v16571_v40 = vld [vmem:[#allocation153_spill] sm:$0xff]  ;;  %v16574_v50 = vld [vmem:[#allocation171_spill] sm:$0xff]  ;;  %v16575_v5 = vld [vmem:[#allocation172_spill] sm:$0xff] }
 0x2c5   :  { %16561 = vst [vmem:[#allocation141_spill] sm:$0xff] %v11487_v63  ;;  %16562 = vst [vmem:[#allocation60_spill] sm:$0xff] %v11491_v49  ;;  %5139 = vmatprep.mubr.bf16.mxu0 %v4482_v47  ;;  %v11498_v59 = vpack.c.bf16 %v4203_v61, %v4199_v1  ;;  %v2369_v38 = vadd.f32 %v11314_v30, %v11284_v45  ;;  %v11504_v43 = vmul.f32 %v16293_v27, %v16567_v58  ;;  %v16572_v1 = vld [vmem:[#allocation175_spill] sm:$0xff]  ;;  %v16573_v45 = vld [vmem:[#allocation176_spill] sm:$0xff] }
 0x2c6   :  { %v11508_v15 = vmul.f32 %v16297_v41, %v16567_v58  ;;  %16570 = vst [vmem:[#allocation215_spill] sm:$0xff] %v11510_v18  ;;  %5140 = vmatmul.mubr.bf16.gmra.mrb[68].mxu0 %v4481_v33  ;;  %v2373_v7 = vadd.f32 %v11363_v31, %v16571_v40  ;;  %v3695_v61 = vmul.f32 %v16319_v6, %v16554_v29  ;;  %v7926_v33 = vld [vmem:[%s15316_s3 + $0x190] ss:$8 sps:$4 sm:$0xff]   ;;  %v7928_v31 = vld [vmem:[%s15316_s3 + $0x194] ss:$8 sps:$4 sm:$0xff]  }
 0x2c7   :  { %16566 = vst [vmem:[#allocation146_spill] sm:$0xff] %v11498_v59  ;;  %16568 = vst [vmem:[#allocation221_spill] sm:$0xff] %v11504_v43  ;;  %v1586_v47 = vadd.f32 %v1330_v2, %v16572_v1  ;;  %v1587_v30 = vadd.f32 %v1331_v42, %v16573_v45  ;;  %v11519_v59 = vadd.f32 %v1334_v52, %v16574_v50  ;;  %2758 = vperm.xlu1 %7792, %v11419_v44   ;;  %v107_v29 = vld [vmem:[%s15313_s0 + $0x1b0] sm:$0xff]  ;;  %v16576_v2 = vld [vmem:[#allocation217_spill] sm:$0xff] }
 0x2c8   :  { %16569 = vst [vmem:[#allocation220_spill] sm:$0xff] %v11508_v15  ;;  %v1591_v48 = vadd.f32 %v1335_v21, %v16575_v5  ;;  %v11534_v42 = vmul.f32 %v16293_v27, %v16576_v2  ;;  %v11538_v5 = vmul.f32 %v16297_v41, %v16576_v2  ;;  %2794 = vperm.xlu0 %7836, %v107_v29   ;;  %v4208_v44 = vmax.f32 %v3952_v3, 0.0  ;;  %v16579_v21 = vld [vmem:[#allocation84_spill] sm:$0xff]  ;;  %v16580_v40 = vld [vmem:[#allocation85_spill] sm:$0xff] }
 0x2c9   :  { %v4212_v52 = vmax.f32 %v3956_v54, 0.0  ;;  %v881_v58 = vadd.f32 %v16579_v21, %v604_v55  ;;  %v882_v1 = vadd.f32 %v16580_v40, %v605_v13  ;;  %v1416_v45 = vmul.f32 %v8785_v17, %v11470_v0  ;;  %5308 = vmatprep.subr.bf16.mxu0 %v7928_v31  ;;  %v16581_v43 = vld [vmem:[#allocation140_spill] sm:$0xff]  ;;  %v11552_v54 = vpop.permute.xlu1 %1935  ;;  %v16583_v13 = vld [vmem:[#allocation63_spill] sm:$0xff]  ;;  %v16589_v49 = vld [vmem:[#allocation61_spill] sm:$0xff] }
 0x2ca   :  { %16577 = vst [vmem:[#allocation216_spill] sm:$0xff] %v11534_v42  ;;  %16578 = vst [vmem:[#allocation132_spill] sm:$0xff] %v11538_v5  ;;  %v1417_v50 = vmul.f32 %v8789_v24, %v11470_v0  ;;  %v2126_v42 = vmul.f32 %v16289_v9, %v16581_v43  ;;  %v1420_v2 = vmul.f32 %v8785_v17, %v11353_v14  ;;  %5309 = vmatpush1.bf16.msra.mxu0 %v7926_v33  ;;  %v16584_v5 = vld [vmem:[#allocation224_spill] sm:$0xff] }
 0x2cb   :  { %v1421_v3 = vmul.f32 %v8789_v24, %v11353_v14  ;;  %16582 = vst [vmem:[#allocation134_spill] sm:$0xff] %v11552_v54  ;;  %v3160_v55 = vadd.f32 %v16583_v13, %v2369_v38  ;;  %v2125_v29 = vmul.f32 %v16288_v16, %v16581_v43  ;;  %v11559_v31 = vmul.f32 %v16293_v27, %v16584_v5  ;;  %v11577_v13 = vld [vmem:[%s15313_s0 + $0x178] sm:$0xff] }
 0x2cc   :  { %v2207_v0 = vmul.f32 %v8805_v57, %v11510_v18  ;;  %v2208_v15 = vmul.f32 %v8809_v56, %v11510_v18  ;;  %7794 = vset.pattern.permute.xlu1 %v16502_v35  ;;  %v11568_v33 = vmul.f32 %v16297_v41, %v16584_v5  ;;  %v2211_v38 = vmul.f32 %v8805_v57, %v11552_v54 }
 0x2cd   :  { %16585 = vst [vmem:[#allocation143_spill] sm:$0xff] %v11559_v31  ;;  %v2212_v43 = vmul.f32 %v8809_v56, %v11552_v54  ;;  %356 = vperm.xlu1 %7794, %v11577_v13   ;;  %v11580_v18 = vpack.c.bf16 %v4212_v52, %v4208_v44  ;;  %v1672_v31 = vadd.f32 %v1416_v45, %v881_v58  ;;  %v16590_v54 = vld [vmem:[#allocation55_spill] sm:$0xff]  ;;  %v11591_v52 = vpop.permute.xlu1 %2726 }
 0x2ce   :  { %16586 = vst [vmem:[#allocation121_spill] sm:$0xff] %v11568_v33  ;;  %v1673_v60 = vadd.f32 %v1417_v50, %v882_v1  ;;  %v3164_v5 = vadd.f32 %v11433_v39, %v2373_v7  ;;  %v3951_v33 = vadd.f32 %v3695_v61, %v3160_v55  ;;  %v2913_v63 = vmul.f32 %v16297_v41, %v16588_v8  ;;  %v16593_v61 = vld [vmem:[#allocation56_spill] sm:$0xff] }
 0x2cf   :  { %16587 = vst [vmem:[#allocation90_spill] sm:$0xff] %v11580_v18  ;;  %v1676_v12 = vadd.f32 %v1420_v2, %v16589_v49  ;;  %v1677_v20 = vadd.f32 %v1421_v3, %v16590_v54  ;;  %v2382_v35 = vadd.f32 %v2126_v42, %v1591_v48  ;;  %v2998_v32 = vmul.f32 %v8832_v25, %v16591_v53  ;;  %v16598_v55 = vld [vmem:[#allocation96_spill] sm:$0xff] }
 0x2d0   :  { %v2999_v44 = vmul.f32 %v8836_v46, %v16591_v53  ;;  %16592 = vst [vmem:[#allocation144_spill] sm:$0xff] %v11591_v52  ;;  %v2464_v58 = vadd.f32 %v2208_v15, %v1673_v60  ;;  %v2463_v1 = vadd.f32 %v2207_v0, %v1672_v31  ;;  %v3002_v39 = vmul.f32 %v8832_v25, %v11591_v52  ;;  %v7929_v60 = vld [vmem:[%s15316_s3 + $0x1a0] ss:$8 sps:$4 sm:$0xff]   ;;  %v7931_v0 = vld [vmem:[%s15316_s3 + $0x1a4] ss:$8 sps:$4 sm:$0xff]  }
 0x2d1   :  { %v3003_v7 = vmul.f32 %v8836_v46, %v11591_v52  ;;  %7795 = vset.pattern.permute.xlu1 %v16084_v34  ;;  %v2468_v49 = vadd.f32 %v2212_v43, %v1677_v20  ;;  %v2467_v48 = vadd.f32 %v2211_v38, %v1676_v12  ;;  %v11600_v42 = vmul.f32 %v16293_v27, %v16593_v61  ;;  %v16596_v20 = vld [vmem:[#allocation24_spill] sm:$0xff]  ;;  %v16597_v15 = vld [vmem:[#allocation110_spill] sm:$0xff]  ;;  %v11622_v52 = vpop.permute.xlu1 %3513 }
 0x2d2   :  { %v11604_v45 = vmul.f32 %v16297_v41, %v16593_v61  ;;  %3545 = vperm.xlu1 %7795, %v11266_v37   ;;  %v2378_v12 = vadd.f32 %v16596_v20, %v1587_v30  ;;  %v2377_v50 = vadd.f32 %v16597_v15, %v1586_v47  ;;  %v2912_v2 = vmul.f32 %v16293_v27, %v16588_v8  ;;  %v16599_v37 = vld [vmem:[#allocation124_spill] sm:$0xff] }
 0x2d3   :  { %16594 = vst [vmem:[#allocation122_spill] sm:$0xff] %v11600_v42  ;;  %v3259_v3 = vadd.f32 %v3003_v7, %v2468_v49  ;;  %v3258_v54 = vadd.f32 %v3002_v39, %v2467_v48  ;;  %v3955_v31 = vadd.f32 %v16598_v55, %v3164_v5  ;;  %v3794_v38 = vmul.f32 %v8848_v51, %v16599_v37  ;;  %v16601_v20 = vld [vmem:[#allocation240_spill] sm:$0xff]  ;;  %v16602_v7 = vld [vmem:[#allocation142_spill] sm:$0xff]  ;;  %v16607_v55 = vld [vmem:[#allocation107_spill] sm:$0xff] }
 0x2d4   :  { %16595 = vst [vmem:[#allocation145_spill] sm:$0xff] %v11604_v45  ;;  %v3793_v43 = vmul.f32 %v8852_v11, %v16599_v37  ;;  %5310 = vmatprep.subr.bf16.mxu0 %v7931_v0  ;;  %v4207_v61 = vmax.f32 %v3951_v33, 0.0  ;;  %v3169_v18 = vadd.f32 %v2913_v63, %v2378_v12  ;;  %16600 = vst [vmem:[#allocation72_spill] sm:$0xff] %v11622_v52  ;;  %v16636_v45 = vld [vmem:[#allocation25_spill] sm:$0xff]  ;;  %v16643_v37 = vld [vmem:[#allocation11_spill] sm:$0xff] }
 0x2d5   :  { %v3255_v30 = vadd.f32 %v2999_v44, %v2464_v58  ;;  %v3254_v47 = vadd.f32 %v2998_v32, %v2463_v1  ;;  %5311 = vmatpush1.bf16.msra.mxu0 %v7929_v60  ;;  %v3173_v8 = vadd.f32 %v16601_v20, %v2382_v35  ;;  %v3704_v39 = vmul.f32 %v16324_v4, %v16602_v7  ;;  %v11643_v32 = vld [vmem:[%s15313_s0 + $0x170] sm:$0xff] }
 0x2d6   :  { %7797 = vset.pattern.permute.xlu1 %v16539_v36  ;;  %v3790_v5 = vmul.f32 %v8848_v51, %v11622_v52  ;;  %v4050_v49 = vadd.f32 %v3794_v38, %v3259_v3  ;;  %v3789_v33 = vmul.f32 %v8852_v11, %v11622_v52  ;;  %v4049_v63 = vadd.f32 %v3793_v43, %v3258_v54 }
 0x2d7   :  { %v11634_v44 = vmul.f32 %v16293_v27, %v16591_v53  ;;  %v11638_v35 = vmul.f32 %v16297_v41, %v16591_v53  ;;  %1180 = vperm.xlu1 %7797, %v11643_v32   ;;  %v4211_v58 = vmax.f32 %v3955_v31, 0.0  ;;  %v2381_v1 = vadd.f32 %v2125_v29, %v11519_v59  ;;  %v16606_v53 = vld [vmem:[#allocation64_spill] sm:$0xff]  ;;  %v11659_v31 = vpop.permute.xlu1 %1148 }
 0x2d8   :  { %v4046_v48 = vadd.f32 %v3790_v5, %v3255_v30  ;;  %v4045_v60 = vadd.f32 %v3789_v33, %v3254_v47  ;;  %v3168_v0 = vadd.f32 %v2912_v2, %v2377_v50  ;;  %v3703_v12 = vmul.f32 %v16319_v6, %v16602_v7  ;;  %16608 = vst [vmem:[#allocation136_spill] sm:$0xff] %v11659_v31  ;;  %v16609_v2 = vld [vmem:[#allocation102_spill] sm:$0xff]  ;;  %v16611_v33 = vld [vmem:[#allocation65_spill] sm:$0xff] }
 0x2d9   :  { %16603 = vst [vmem:[#allocation168_spill] sm:$0xff] %v11634_v44  ;;  %16604 = vst [vmem:[#allocation169_spill] sm:$0xff] %v11638_v35  ;;  %v11649_v15 = vpack.c.bf16 %v4211_v58, %v4207_v61  ;;  %v3708_v3 = vmul.f32 %v16324_v4, %v16606_v53  ;;  %v11653_v54 = vadd.f32 %v3704_v39, %v3169_v18  ;;  %v4306_v29 = vmax.f32 %v4050_v49, 0.0  ;;  %v16610_v18 = vld [vmem:[#allocation239_spill] sm:$0xff] }
 0x2da   :  { %v11657_v38 = vmul.f32 %v16324_v4, %v16607_v55  ;;  %v4302_v59 = vmax.f32 %v4046_v48, 0.0  ;;  %v4301_v43 = vmax.f32 %v4045_v60, 0.0  ;;  %v4305_v50 = vmax.f32 %v4049_v63, 0.0  ;;  %v16635_v35 = vld [vmem:[#allocation159_spill] sm:$0xff] }
 0x2db   :  { %16605 = vst [vmem:[#allocation148_spill] sm:$0xff] %v11649_v15  ;;  %v1342_v30 = vmul.f32 %v16280_v23, %v16609_v2  ;;  %v1343_v61 = vmul.f32 %v16281_v28, %v16609_v2  ;;  %1184 = vperm.xlu1 %7797, %v11577_v13   ;;  %v3172_v47 = vadd.f32 %v16610_v18, %v2381_v1 }
 0x2dc   :  { %v3707_v20 = vmul.f32 %v16319_v6, %v16606_v53  ;;  %v4486_v7 = vpack.c.bf16 %v4306_v29, %v4302_v59  ;;  %v4485_v39 = vpack.c.bf16 %v4305_v50, %v4301_v43  ;;  %v11669_v5 = vadd.f32 %v3703_v12, %v3168_v0  ;;  %v16614_v0 = vld [vmem:[#allocation68_spill] sm:$0xff]  ;;  %v16620_v43 = vld [vmem:[#allocation179_spill] sm:$0xff] }
 0x2dd   :  { %v11673_v49 = vmul.f32 %v16319_v6, %v16607_v55  ;;  %v11677_v63 = vmul.f32 %v8832_v25, %v16611_v33  ;;  %v11681_v58 = vmul.f32 %v8836_v46, %v16611_v33  ;;  %v11685_v1 = vmul.f32 %v16293_v27, %v16611_v33  ;;  %v11699_v55 = vpop.permute.xlu1 %1152 }
 0x2de   :  { %v3964_v48 = vadd.f32 %v3708_v3, %v3173_v8  ;;  %v11689_v60 = vmul.f32 %v16297_v41, %v16611_v33  ;;  %v11693_v12 = vmul.f32 %v8832_v25, %v16614_v0  ;;  %v11697_v53 = vmul.f32 %v8836_v46, %v16614_v0  ;;  %16617 = vst [vmem:[#allocation54_spill] sm:$0xff] %v11699_v55  ;;  %v16619_v3 = vld [vmem:[#allocation177_spill] sm:$0xff] }
 0x2df   :  { %16612 = vst [vmem:[#allocation151_spill] sm:$0xff] %v11685_v1  ;;  %5149 = vmatprep.mubr.bf16.mxu0 %v4486_v7  ;;  %v4216_v59 = vmax.f32 %v11653_v54, 0.0  ;;  %v11704_v8 = vmul.f32 %v16293_v27, %v16614_v0  ;;  %v1598_v29 = vadd.f32 %v1342_v30, %v16619_v3  ;;  %v1599_v50 = vadd.f32 %v1343_v61, %v16620_v43  ;;  %v7932_v54 = vld [vmem:[%s15316_s3 + $0x1b0] ss:$8 sps:$4 sm:$0xff]   ;;  %v7934_v30 = vld [vmem:[%s15316_s3 + $0x1b4] ss:$8 sps:$4 sm:$0xff]  }
 0x2e0   :  { %16613 = vst [vmem:[#allocation123_spill] sm:$0xff] %v11689_v60  ;;  %16615 = vst [vmem:[#allocation31_spill] sm:$0xff] %v11693_v12  ;;  %7798 = vset.pattern.permute.xlu1 %v16547_v10  ;;  %v11709_v2 = vadd.f32 %v3707_v20, %v3172_v47  ;;  %v11713_v18 = vmul.f32 %v16297_v41, %v16614_v0  ;;  %5150 = vmatmul.mubr.bf16.gmra.mrb[72].mxu0 %v4485_v39  ;;  %v4215_v61 = vmax.f32 %v11669_v5, 0.0  ;;  %v16622_v7 = vld [vmem:[#allocation109_spill] sm:$0xff]  ;;  %v16623_v39 = vld [vmem:[#allocation27_spill] sm:$0xff]  ;;  %v11733_v0 = vpop.permute.xlu0 %311 }
 0x2e1   :  { %16616 = vst [vmem:[#allocation230_spill] sm:$0xff] %v11697_v53  ;;  %16618 = vst [vmem:[#allocation97_spill] sm:$0xff] %v11704_v8  ;;  %1975 = vperm.xlu1 %7798, %v11577_v13   ;;  %v11725_v47 = vmul.f32 %v16324_v4, %v16622_v7  ;;  %v11729_v20 = vmul.f32 %v16319_v6, %v16622_v7  ;;  %v1386_v33 = vmul.f32 %v16280_v23, %v16623_v39  ;;  %v16625_v43 = vld [vmem:[#allocation111_spill] sm:$0xff]  ;;  %v16628_v8 = vld [vmem:[#allocation156_spill] sm:$0xff]  ;;  %v11761_v52 = vpop.permute.xlu1 %1943 }
 0x2e2   :  { %16621 = vst [vmem:[#allocation71_spill] sm:$0xff] %v11713_v18  ;;  %16624 = vst [vmem:[#allocation36_spill] sm:$0xff] %v11733_v0  ;;  %v4220_v3 = vmax.f32 %v3964_v48, 0.0  ;;  %v11737_v15 = vmul.f32 %v16324_v4, %v16625_v43  ;;  %v11741_v5 = vmul.f32 %v16319_v6, %v16625_v43  ;;  %v11745_v18 = vmul.f32 %v8832_v25, %v16628_v8  ;;  %v16633_v60 = vld [vmem:[#allocation35_spill] sm:$0xff] }
 0x2e3   :  { %v11749_v7 = vmul.f32 %v8836_v46, %v16628_v8  ;;  %v11753_v1 = vmul.f32 %v16293_v27, %v16628_v8  ;;  %v11757_v48 = vmul.f32 %v16297_v41, %v16628_v8  ;;  %5312 = vmatprep.subr.bf16.mxu0 %v7934_v30  ;;  %v2130_v43 = vmul.f32 %v16289_v9, %v16633_v60  ;;  %v16646_v53 = vld [vmem:[#allocation147_spill] sm:$0xff] }
 0x2e4   :  { %16626 = vst [vmem:[#allocation227_spill] sm:$0xff] %v11737_v15  ;;  %16627 = vst [vmem:[#allocation226_spill] sm:$0xff] %v11741_v5  ;;  %5313 = vmatpush1.bf16.msra.mxu0 %v7932_v54  ;;  %v4219_v44 = vmax.f32 %v11709_v2, 0.0  ;;  %v2390_v42 = vadd.f32 %v16635_v35, %v1599_v50  ;;  %v613_v8 = vmul.f32 %v16565_v22, %v11733_v0  ;;  %v16640_v2 = vld [vmem:[#allocation93_spill] sm:$0xff] }
 0x2e5   :  { %16629 = vst [vmem:[#allocation99_spill] sm:$0xff] %v11745_v18  ;;  %16630 = vst [vmem:[#allocation114_spill] sm:$0xff] %v11749_v7  ;;  %v11766_v18 = vadd.f32 %v16636_v45, %v1598_v29  ;;  %v1428_v30 = vmul.f32 %v8785_v17, %v11699_v55  ;;  %v1429_v54 = vmul.f32 %v8789_v24, %v11699_v55  ;;  %7799 = vset.pattern.permute.xlu1 %v16493_v19  ;;  %v16637_v45 = vld [vmem:[#allocation49_spill] sm:$0xff]  ;;  %v11809_v12 = vpop.permute.xlu1 %2730 }
 0x2e6   :  { %16631 = vst [vmem:[#allocation30_spill] sm:$0xff] %v11753_v1  ;;  %16632 = vst [vmem:[#allocation199_spill] sm:$0xff] %v11757_v48  ;;  %v11770_v1 = vmul.f32 %v16288_v16, %v16633_v60  ;;  %v1387_v35 = vmul.f32 %v16281_v28, %v16623_v39  ;;  %v11782_v29 = vadd.f32 %v1386_v33, %v16637_v45  ;;  %2762 = vperm.xlu1 %7799, %v11643_v32   ;;  %v16641_v33 = vld [vmem:[#allocation34_spill] sm:$0xff]  ;;  %v16644_v15 = vld [vmem:[#allocation57_spill] sm:$0xff] }
 0x2e7   :  { %16634 = vst [vmem:[#allocation157_spill] sm:$0xff] %v11761_v52  ;;  %v612_v60 = vmul.f32 %v16564_v62, %v11733_v0  ;;  %v11787_v50 = vpack.c.bf16 %v4220_v3, %v4216_v59  ;;  %v1398_v48 = vmul.f32 %v16280_v23, %v16640_v2  ;;  %v1399_v55 = vmul.f32 %v16281_v28, %v16640_v2  ;;  %v16642_v3 = vld [vmem:[#allocation21_spill] sm:$0xff] }
 0x2e8   :  { %16638 = vst [vmem:[#allocation18_spill] sm:$0xff] %v11782_v29  ;;  %v2219_v7 = vmul.f32 %v8805_v57, %v11761_v52  ;;  %v2220_v39 = vmul.f32 %v8809_v56, %v11761_v52  ;;  %v2921_v45 = vmul.f32 %v16297_v41, %v16641_v33  ;;  %v1410_v29 = vmul.f32 %v16280_v23, %v11275_v26 }
 0x2e9   :  { %16639 = vst [vmem:[#allocation62_spill] sm:$0xff] %v11787_v50  ;;  %v1411_v59 = vmul.f32 %v16281_v28, %v11275_v26  ;;  %v2386_v50 = vadd.f32 %v2130_v43, %v16642_v3  ;;  %v890_v0 = vadd.f32 %v16580_v40, %v613_v8  ;;  %v1425_v2 = vmul.f32 %v8789_v24, %v11659_v31  ;;  %v16647_v8 = vld [vmem:[#allocation205_spill] sm:$0xff]  ;;  %v16656_v24 = vld [vmem:[#allocation12_spill] sm:$0xff] }
 0x2ea   :  { %v1684_v5 = vadd.f32 %v1428_v30, %v16643_v37  ;;  %v1685_v52 = vadd.f32 %v1429_v54, %v16644_v15  ;;  %16645 = vst [vmem:[#allocation137_spill] sm:$0xff] %v11809_v12  ;;  %v2925_v56 = vmul.f32 %v16297_v41, %v16646_v53  ;;  %v1422_v57 = vmul.f32 %v16280_v23, %v11353_v14  ;;  %v7935_v54 = vld [vmem:[%s15316_s3 + $0x1c0] ss:$8 sps:$4 sm:$0xff]  }
 0x2eb   :  { %v889_v26 = vadd.f32 %v16579_v21, %v612_v60  ;;  %v1424_v43 = vmul.f32 %v8785_v17, %v11659_v31  ;;  %7801 = vset.pattern.permute.xlu1 %v16084_v34  ;;  %v11820_v3 = vadd.f32 %v1387_v35, %v16647_v8  ;;  %v1423_v37 = vmul.f32 %v16281_v28, %v11353_v14  ;;  %v7937_v60 = vld [vmem:[%s15316_s3 + $0x1c4] ss:$8 sps:$4 sm:$0xff]   ;;  %v16649_v31 = vld [vmem:[#allocation208_spill] sm:$0xff]  ;;  %v16651_v35 = vld [vmem:[#allocation209_spill] sm:$0xff] }
 0x2ec   :  { %3553 = vperm.xlu1 %7801, %v11643_v32   ;;  %v2476_v15 = vadd.f32 %v2220_v39, %v1685_v52  ;;  %v2475_v30 = vadd.f32 %v2219_v7, %v1684_v5  ;;  %v11832_v34 = vadd.f32 %v1398_v48, %v16649_v31  ;;  %v11835_v8 = vadd.f32 %v1399_v55, %v16651_v35  ;;  %v16653_v52 = vld [vmem:[#allocation58_spill] sm:$0xff] }
 0x2ed   :  { %16648 = vst [vmem:[#allocation238_spill] sm:$0xff] %v11820_v3  ;;  %v2920_v14 = vmul.f32 %v16293_v27, %v16641_v33  ;;  %v3177_v32 = vadd.f32 %v2921_v45, %v2386_v50  ;;  %v11840_v5 = vadd.f32 %v1410_v29, %v16653_v52  ;;  %v2924_v7 = vmul.f32 %v16293_v27, %v16646_v53  ;;  %v16658_v48 = vld [vmem:[#allocation10_spill] sm:$0xff]  ;;  %v112_v29 = vld [vmem:[%s15313_s0 + $0x1d8] sm:$0xff]  ;;  %v16661_v53 = vld [vmem:[#allocation231_spill] sm:$0xff] }
 0x2ee   :  { %16650 = vst [vmem:[#allocation138_spill] sm:$0xff] %v11832_v34  ;;  %16652 = vst [vmem:[#allocation173_spill] sm:$0xff] %v11835_v8  ;;  %v1681_v39 = vadd.f32 %v1425_v2, %v890_v0  ;;  %5314 = vmatprep.subr.bf16.mxu0 %v7937_v60  ;;  %v11844_v3 = vpack.c.bf16 %v4219_v44, %v4215_v61  ;;  %v11847_v31 = vadd.f32 %v1411_v59, %v16656_v24  ;;  %v11852_v34 = vpop.permute.xlu1 %326  ;;  %v16663_v61 = vld [vmem:[#allocation150_spill] sm:$0xff]  ;;  %v16669_v60 = vld [vmem:[#allocation73_spill] sm:$0xff] }
 0x2ef   :  { %16654 = vst [vmem:[#allocation194_spill] sm:$0xff] %v11840_v5  ;;  %v11850_v55 = vadd.f32 %v1422_v57, %v16658_v48  ;;  %v1680_v35 = vadd.f32 %v1424_v43, %v889_v26  ;;  %16660 = vst [vmem:[#allocation176_spill] sm:$0xff] %v11852_v34  ;;  %5315 = vmatpush1.bf16.msra.mxu0 %v7935_v54  ;;  %v3181_v50 = vadd.f32 %v2925_v56, %v2390_v42  ;;  %v16664_v56 = vld [vmem:[#allocation149_spill] sm:$0xff]  ;;  %v16665_v2 = vld [vmem:[#allocation74_spill] sm:$0xff]  ;;  %v16670_v48 = vmov 0  }
 0x2f0   :  { %16655 = vst [vmem:[#allocation50_spill] sm:$0xff] %v11844_v3  ;;  %16657 = vst [vmem:[#allocation153_spill] sm:$0xff] %v11847_v31  ;;  %v11858_v0 = vadd.f32 %v1423_v37, %v16661_v53  ;;  %v3007_v44 = vmul.f32 %v8836_v46, %v11809_v12  ;;  %3557 = vperm.xlu1 %7801, %v11577_v13   ;;  %v3267_v57 = vadd.f32 %v11681_v58, %v2476_v15  ;;  %v16666_v26 = vld [vmem:[#allocation127_spill] sm:$0xff]  ;;  %v113_v37 = vld [vmem:[%s15313_s0 + $0x1e0] sm:$0xff] }
 0x2f1   :  { %16659 = vst [vmem:[#allocation175_spill] sm:$0xff] %v11850_v55  ;;  %v3266_v24 = vadd.f32 %v11677_v63, %v2475_v30  ;;  %v1346_v33 = vmul.f32 %v16280_v23, %v16663_v61  ;;  %v3006_v45 = vmul.f32 %v8832_v25, %v11809_v12  ;;  %2814 = vperm.xlu0 %7836, %v112_v29   ;;  %v16667_v15 = vld [vmem:[#allocation37_spill] sm:$0xff]  ;;  %v11898_v3 = vld [vmem:[%s15313_s0 + $0x188] sm:$0xff] }
 0x2f2   :  { %16662 = vst [vmem:[#allocation171_spill] sm:$0xff] %v11858_v0  ;;  %v3716_v42 = vmul.f32 %v16324_v4, %v16664_v56  ;;  %v11872_v59 = vadd.f32 %v11657_v38, %v3177_v32  ;;  %v1347_v13 = vmul.f32 %v16281_v28, %v16663_v61  ;;  %v2472_v58 = vadd.f32 %v16665_v2, %v1681_v39  ;;  %v16668_v38 = vld [vmem:[#allocation39_spill] sm:$0xff]  ;;  %v11893_v29 = vpop.permute.xlu1 %3521 }
 0x2f3   :  { %v3802_v63 = vmul.f32 %v8848_v51, %v16666_v26  ;;  %v3801_v43 = vmul.f32 %v8852_v11, %v16666_v26  ;;  %v2137_v30 = vmul.f32 %v16288_v16, %v16667_v15  ;;  %v2471_v54 = vadd.f32 %v16668_v38, %v1680_v35  ;;  %16671 = vst [vmem:[#allocation172_spill] sm:$0xff] %v11893_v29  ;;  %v16672_v35 = vld [vmem:[#allocation41_spill] sm:$0xff]  ;;  %v7943_v12 = vld [vmem:[%s15316_s3 + $0x1e4] ss:$8 sps:$4 sm:$0xff]  }
 0x2f4   :  { %v2385_v32 = vadd.f32 %v11770_v1, %v16669_v60  ;;  %v3180_v52 = vadd.f32 %v2924_v7, %v11766_v18  ;;  %v2138_v39 = vmul.f32 %v16289_v9, %v16667_v15  ;;  %7803 = vset.pattern.permute.xlu1 %v16670_v48  ;;  %v3263_v53 = vadd.f32 %v3007_v44, %v2472_v58  ;;  %v16673_v44 = vld [vmem:[#allocation40_spill] sm:$0xff] }
 0x2f5   :  { %v4058_v61 = vadd.f32 %v3802_v63, %v3267_v57  ;;  %v4057_v2 = vadd.f32 %v3801_v43, %v3266_v24  ;;  %366 = vperm.xlu1 %7803, %v11898_v3   ;;  %v3798_v1 = vmul.f32 %v8848_v51, %v11893_v29  ;;  %v3262_v18 = vadd.f32 %v3006_v45, %v2471_v54  ;;  %v16674_v24 = vld [vmem:[#allocation152_spill] sm:$0xff] }
 0x2f6   :  { %v3797_v7 = vmul.f32 %v8852_v11, %v11893_v29  ;;  %2818 = vperm.xlu0 %7836, %v113_v37   ;;  %v1602_v15 = vadd.f32 %v1346_v33, %v16672_v35  ;;  %v1603_v57 = vadd.f32 %v1347_v13, %v16673_v44  ;;  %v2141_v58 = vmul.f32 %v16288_v16, %v16674_v24  ;;  %v7938_v45 = vld [vmem:[%s15316_s3 + $0x1d0] ss:$8 sps:$4 sm:$0xff]   ;;  %v7940_v37 = vld [vmem:[%s15316_s3 + $0x1d4] ss:$8 sps:$4 sm:$0xff]  }
 0x2f7   :  { %v2142_v63 = vmul.f32 %v16289_v9, %v16674_v24  ;;  %v4054_v43 = vadd.f32 %v3798_v1, %v3263_v53  ;;  %v3176_v54 = vadd.f32 %v2920_v14, %v2385_v32  ;;  %v3715_v33 = vmul.f32 %v16319_v6, %v16664_v56  ;;  %v16675_v13 = vld [vmem:[#allocation19_spill] sm:$0xff]  ;;  %5316 = vmatprep.subr.bf16.mxu0 %v7940_v37  ;;  %v16677_v14 = vld [vmem:[#allocation20_spill] sm:$0xff]  ;;  %v11931_v32 = vld [vmem:[%s15313_s0 + $0x180] sm:$0xff] }
 0x2f8   :  { %v4053_v38 = vadd.f32 %v3797_v7, %v3262_v18  ;;  %v2932_v60 = vmul.f32 %v16293_v27, %v16675_v13  ;;  %v2933_v35 = vmul.f32 %v16297_v41, %v16675_v13  ;;  %v2394_v53 = vadd.f32 %v2138_v39, %v1603_v57  ;;  %v11924_v18 = vpop.permute.xlu1 %1156  ;;  %5317 = vmatpush1.bf16.msra.mxu0 %v7938_v45  ;;  %v16683_v45 = vld [vmem:[#allocation162_spill] sm:$0xff] }
 0x2f9   :  { %v2393_v1 = vadd.f32 %v2137_v30, %v1602_v15  ;;  %7804 = vset.pattern.permute.xlu1 %v16539_v36  ;;  %16676 = vst [vmem:[#allocation217_spill] sm:$0xff] %v11924_v18  ;;  %v4310_v7 = vmax.f32 %v4054_v43, 0.0  ;;  %v4314_v44 = vmax.f32 %v4058_v61, 0.0  ;;  %v4313_v29 = vmax.f32 %v4057_v2, 0.0  ;;  %v16678_v30 = vld [vmem:[#allocation22_spill] sm:$0xff]  ;;  %v16679_v15 = vld [vmem:[#allocation155_spill] sm:$0xff]  ;;  %5318 = vmatprep.subr.bf16.mxu0 %v7943_v12 }
 0x2fa   :  { %v4309_v24 = vmax.f32 %v4053_v38, 0.0  ;;  %v1355_v56 = vmul.f32 %v16281_v28, %v16677_v14  ;;  %1188 = vperm.xlu1 %7804, %v11931_v32   ;;  %v2398_v39 = vadd.f32 %v2142_v63, %v16678_v30  ;;  %v3720_v57 = vmul.f32 %v16324_v4, %v16679_v15  ;;  %v16680_v43 = vld [vmem:[#allocation77_spill] sm:$0xff]  ;;  %7840 = vset.pattern.permute.xlu0 %v16670_v48  ;;  %v16681_v30 = vld [vmem:[#allocation139_spill] sm:$0xff] }
 0x2fb   :  { %v2397_v61 = vadd.f32 %v2141_v58, %v16680_v43  ;;  %v4490_v38 = vpack.c.bf16 %v4314_v44, %v4310_v7  ;;  %v11938_v37 = vadd.f32 %v3716_v42, %v3181_v50  ;;  %v3719_v13 = vmul.f32 %v16319_v6, %v16679_v15  ;;  %v8008_v50 = vld [vmem:[%s15313_s0 + $0x1c8] sm:$0xff]  ;;  %v16685_v44 = vld [vmem:[#allocation113_spill] sm:$0xff]  ;;  %v8009_v12 = vld [vmem:[%s15313_s0 + $0x1d0] sm:$0xff] }
 0x2fc   :  { %v4489_v2 = vpack.c.bf16 %v4313_v29, %v4309_v24  ;;  %v3971_v63 = vadd.f32 %v3715_v33, %v3180_v52  ;;  %v3185_v55 = vadd.f32 %v16681_v30, %v2394_v53  ;;  %v3189_v0 = vadd.f32 %v2933_v35, %v2398_v39  ;;  %v11949_v58 = vpop.permute.xlu1 %1160  ;;  %406 = vperm.xlu0 %7840, %v8008_v50   ;;  %v7941_v42 = vld [vmem:[%s15316_s3 + $0x1e0] ss:$8 sps:$4 sm:$0xff]   ;;  %v7946_v53 = vld [vmem:[%s15316_s3 + $0x1f4] ss:$8 sps:$4 sm:$0xff]  }
 0x2fd   :  { %v3188_v5 = vadd.f32 %v2932_v60, %v2397_v61  ;;  %v1354_v29 = vmul.f32 %v16280_v23, %v16677_v14  ;;  %16682 = vst [vmem:[#allocation140_spill] sm:$0xff] %v11949_v58  ;;  %5159 = vmatprep.mubr.bf16.mxu0 %v4490_v38  ;;  %v3967_v52 = vadd.f32 %v11673_v49, %v3176_v54  ;;  %v16684_v60 = vld [vmem:[#allocation188_spill] sm:$0xff]  ;;  %v16686_v49 = vld [vmem:[#allocation158_spill] sm:$0xff]  ;;  %v4228_v43 = vmax.f32 %v11938_v37, 0.0  ;;  %v16689_v30 = vld [vmem:[#allocation187_spill] sm:$0xff] }
 0x2fe   :  { %v3184_v33 = vadd.f32 %v16683_v45, %v2393_v1  ;;  %v1611_v35 = vadd.f32 %v1355_v56, %v16684_v60  ;;  %7805 = vset.pattern.permute.xlu1 %v16547_v10  ;;  %v3976_v7 = vadd.f32 %v3720_v57, %v3185_v55  ;;  %v11966_v24 = vmul.f32 %v16324_v4, %v16685_v44  ;;  %v11976_v56 = vpop.permute.xlu0 %321  ;;  %v16688_v15 = vld [vmem:[#allocation170_spill] sm:$0xff]  ;;  %v16690_v45 = vld [vmem:[#allocation164_spill] sm:$0xff]  ;;  %v16692_v37 = vld [vmem:[#allocation101_spill] sm:$0xff] }
 0x2ff   :  { %v11970_v14 = vmul.f32 %v16319_v6, %v16685_v44  ;;  %v1358_v54 = vmul.f32 %v16280_v23, %v16686_v49  ;;  %v1359_v1 = vmul.f32 %v16281_v28, %v16686_v49  ;;  %16687 = vst [vmem:[#allocation63_spill] sm:$0xff] %v11976_v56  ;;  %5160 = vmatmul.mubr.bf16.gmra.mrb[76].mxu0 %v4489_v2  ;;  %v4224_v55 = vmax.f32 %v11872_v59, 0.0  ;;  %v7944_v59 = vld [vmem:[%s15316_s3 + $0x1f0] ss:$8 sps:$4 sm:$0xff]  }
 0x300   :  { %1979 = vperm.xlu1 %7805, %v11931_v32   ;;  %v3975_v39 = vadd.f32 %v3719_v13, %v3184_v33  ;;  %v2937_v57 = vmul.f32 %v16297_v41, %v16688_v15  ;;  %v3980_v61 = vadd.f32 %v11725_v47, %v3189_v0  ;;  %v3979_v38 = vadd.f32 %v11729_v20, %v3188_v5  ;;  %v11996_v20 = vpop.permute.xlu1 %1951  ;;  %v16694_v33 = vld [vmem:[#allocation184_spill] sm:$0xff]  ;;  %v16695_v49 = vld [vmem:[#allocation185_spill] sm:$0xff] }
 0x301   :  { %v1610_v50 = vadd.f32 %v1354_v29, %v16689_v30  ;;  %v2149_v2 = vmul.f32 %v16288_v16, %v16690_v45  ;;  %v2150_v60 = vmul.f32 %v16289_v9, %v16690_v45  ;;  %5319 = vmatpush1.bf16.msra.mxu0 %v7941_v42  ;;  %411 = vperm.xlu0 %7840, %v8009_v12   ;;  %v4223_v47 = vmax.f32 %v3967_v52, 0.0  ;;  %v16693_v29 = vld [vmem:[#allocation174_spill] sm:$0xff] }
 0x302   :  { %16691 = vst [vmem:[#allocation224_spill] sm:$0xff] %v11996_v20  ;;  %5320 = vmatprep.subr.bf16.mxu0 %v7946_v53  ;;  %v4227_v5 = vmax.f32 %v3971_v63, 0.0  ;;  %v4232_v0 = vmax.f32 %v3976_v7, 0.0  ;;  %v2402_v13 = vadd.f32 %v16692_v37, %v1611_v35  ;;  %v3728_v42 = vmul.f32 %v16324_v4, %v16693_v29  ;;  %v12005_v31 = vpop.permute.xlu0 %346 }
 0x303   :  { %v1614_v44 = vadd.f32 %v1358_v54, %v16694_v33  ;;  %v1615_v30 = vadd.f32 %v1359_v1, %v16695_v49  ;;  %v2936_v45 = vmul.f32 %v16293_v27, %v16688_v15  ;;  %16696 = vst [vmem:[#allocation32_spill] sm:$0xff] %v12005_v31  ;;  %v4231_v52 = vmax.f32 %v3975_v39, 0.0  ;;  %v16697_v1 = vld [vmem:[#allocation103_spill] sm:$0xff] }
 0x304   :  { %1983 = vperm.xlu1 %7805, %v11898_v3   ;;  %v620_v63 = vmul.f32 %v16564_v62, %v11976_v56  ;;  %v621_v35 = vmul.f32 %v16565_v22, %v11976_v56  ;;  %v4236_v53 = vmax.f32 %v3980_v61, 0.0  ;;  %v3193_v7 = vadd.f32 %v2937_v57, %v2402_v13  ;;  %v12022_v56 = vpop.permute.xlu1 %2738 }
 0x305   :  { %5321 = vmatpush1.bf16.msra.mxu0 %v7944_v59  ;;  %v4235_v54 = vmax.f32 %v3979_v38, 0.0  ;;  %v2406_v12 = vadd.f32 %v2150_v60, %v1615_v30  ;;  %v2401_v37 = vadd.f32 %v16697_v1, %v1610_v50  ;;  %v2405_v33 = vadd.f32 %v2149_v2, %v1614_v44  ;;  %16700 = vst [vmem:[#allocation236_spill] sm:$0xff] %v12022_v56  ;;  %v16703_v38 = vld [vmem:[#allocation178_spill] sm:$0xff]  ;;  %v16704_v59 = vld [vmem:[#allocation83_spill] sm:$0xff]  ;;  %v16707_v44 = vld [vmem:[#allocation141_spill] sm:$0xff] }
 0x306   :  { %v12013_v15 = vpack.c.bf16 %v4228_v43, %v4224_v55  ;;  %v12015_v49 = vpack.c.bf16 %v4227_v5, %v4223_v47  ;;  %v12017_v8 = vadd.f32 %v3728_v42, %v3193_v7  ;;  %v3727_v39 = vmul.f32 %v16319_v6, %v16693_v29  ;;  %v12041_v13 = vpop.permute.xlu0 %351  ;;  %v16706_v29 = vld [vmem:[#allocation60_spill] sm:$0xff]  ;;  %v16709_v7 = vld [vmem:[#allocation186_spill] sm:$0xff] }
 0x307   :  { %v12024_v57 = vpack.c.bf16 %v4236_v53, %v4232_v0  ;;  %v12026_v61 = vpack.c.bf16 %v4235_v54, %v4231_v52  ;;  %v3732_v50 = vmul.f32 %v16324_v4, %v16703_v38  ;;  %v3192_v55 = vadd.f32 %v2936_v45, %v2401_v37  ;;  %16705 = vst [vmem:[#allocation110_spill] sm:$0xff] %v12041_v13  ;;  %v16708_v45 = vld [vmem:[#allocation182_spill] sm:$0xff] }
 0x308   :  { %16698 = vst [vmem:[#allocation61_spill] sm:$0xff] %v12013_v15  ;;  %16699 = vst [vmem:[#allocation55_spill] sm:$0xff] %v12015_v49  ;;  %7806 = vset.pattern.permute.xlu1 %v16493_v19  ;;  %v897_v43 = vadd.f32 %v16579_v21, %v620_v63  ;;  %v898_v2 = vadd.f32 %v16580_v40, %v621_v35  ;;  %v1432_v60 = vmul.f32 %v8785_v17, %v11924_v18  ;;  %v16720_v13 = vld [vmem:[#allocation38_spill] sm:$0xff] }
 0x309   :  { %16701 = vst [vmem:[#allocation56_spill] sm:$0xff] %v12024_v57  ;;  %16702 = vst [vmem:[#allocation24_spill] sm:$0xff] %v12026_v61  ;;  %v1433_v47 = vmul.f32 %v16704_v59, %v11924_v18  ;;  %2774 = vperm.xlu1 %7806, %v11898_v3   ;;  %v624_v5 = vmul.f32 %v16564_v62, %v11852_v34  ;;  %v625_v0 = vmul.f32 %v16565_v22, %v11852_v34  ;;  %v16711_v61 = vld [vmem:[#allocation87_spill] sm:$0xff]  ;;  %v16717_v18 = vld [vmem:[#allocation78_spill] sm:$0xff] }
 0x30a   :  { %v3197_v42 = vadd.f32 %v16706_v29, %v2406_v12  ;;  %v3196_v30 = vadd.f32 %v16707_v44, %v2405_v33  ;;  %v1366_v52 = vmul.f32 %v16280_v23, %v16708_v45  ;;  %v1367_v63 = vmul.f32 %v16281_v28, %v16708_v45 }
 0x30b   :  { %v12050_v53 = vadd.f32 %v3727_v39, %v3192_v55  ;;  %v2154_v54 = vmul.f32 %v16289_v9, %v16709_v7  ;;  %v1436_v1 = vmul.f32 %v8785_v17, %v11949_v58  ;;  %v1437_v12 = vmul.f32 %v16704_v59, %v11949_v58  ;;  %v12063_v39 = vpop.permute.xlu1 %331  ;;  %v12087_v58 = vpop.permute.xlu0 %3529 }
 0x30c   :  { %v3731_v37 = vmul.f32 %v16319_v6, %v16703_v38  ;;  %v2153_v33 = vmul.f32 %v16288_v16, %v16709_v7  ;;  %v1688_v29 = vadd.f32 %v1432_v60, %v897_v43  ;;  %v1689_v44 = vadd.f32 %v1433_v47, %v898_v2  ;;  %16710 = vst [vmem:[#allocation96_spill] sm:$0xff] %v12063_v39  ;;  %v16712_v38 = vld [vmem:[#allocation88_spill] sm:$0xff]  ;;  %v16713_v2 = vld [vmem:[#allocation189_spill] sm:$0xff]  ;;  %v16714_v60 = vld [vmem:[#allocation190_spill] sm:$0xff] }
 0x30d   :  { %7807 = vset.pattern.permute.xlu1 %v16670_v48  ;;  %v12065_v55 = vadd.f32 %v3732_v50, %v3197_v42  ;;  %v901_v45 = vadd.f32 %v16579_v21, %v624_v5  ;;  %v902_v35 = vadd.f32 %v16580_v40, %v625_v0  ;;  %v2227_v57 = vmul.f32 %v16711_v61, %v11996_v20  ;;  %v12076_v43 = vld [vmem:[%s15313_s0 + $0x190] sm:$0xff] }
 0x30e   :  { %v2228_v49 = vmul.f32 %v16712_v38, %v11996_v20  ;;  %371 = vperm.xlu1 %7807, %v12076_v43   ;;  %v1622_v50 = vadd.f32 %v1366_v52, %v16713_v2  ;;  %v1623_v47 = vadd.f32 %v1367_v63, %v16714_v60  ;;  %v3014_v5 = vmul.f32 %v8832_v25, %v12022_v56  ;;  %v16715_v42 = vld [vmem:[#allocation192_spill] sm:$0xff]  ;;  %v16719_v63 = vld [vmem:[#allocation161_spill] sm:$0xff]  ;;  %v16721_v25 = vld [vmem:[#allocation167_spill] sm:$0xff] }
 0x30f   :  { %v3015_v0 = vmul.f32 %v8836_v46, %v12022_v56  ;;  %v2945_v7 = vmul.f32 %v16297_v41, %v16715_v42  ;;  %v1692_v15 = vadd.f32 %v1436_v1, %v901_v45  ;;  %v1693_v20 = vadd.f32 %v1437_v12, %v902_v35  ;;  %16716 = vst [vmem:[#allocation240_spill] sm:$0xff] %v12087_v58  ;;  %v12092_v2 = vpop.permute.xlu1 %336  ;;  %v16722_v46 = vld [vmem:[#allocation193_spill] sm:$0xff] }
 0x310   :  { %v2410_v34 = vadd.f32 %v2154_v54, %v16717_v18  ;;  %v2944_v52 = vmul.f32 %v16293_v27, %v16715_v42  ;;  %16718 = vst [vmem:[#allocation142_spill] sm:$0xff] %v12092_v2  ;;  %v2480_v60 = vadd.f32 %v16719_v63, %v1689_v44  ;;  %v2479_v31 = vadd.f32 %v16720_v13, %v1688_v29  ;;  %v16724_v13 = vld [vmem:[#allocation211_spill] sm:$0xff]  ;;  %v16725_v42 = vld [vmem:[#allocation44_spill] sm:$0xff]  ;;  %v16726_v63 = vld [vmem:[#allocation70_spill] sm:$0xff] }
 0x311   :  { %v2409_v56 = vadd.f32 %v2153_v33, %v16721_v25  ;;  %v2948_v26 = vmul.f32 %v16293_v27, %v16722_v46  ;;  %v2949_v35 = vmul.f32 %v16297_v41, %v16722_v46  ;;  %v16723_v1 = vmov 4  }
 0x312   :  { %7808 = vset.pattern.permute.xlu1 %v16723_v1  ;;  %v2484_v18 = vadd.f32 %v2228_v49, %v1693_v20  ;;  %v2483_v54 = vadd.f32 %v2227_v57, %v1692_v15  ;;  %v3271_v12 = vadd.f32 %v3015_v0, %v2480_v60  ;;  %v3806_v44 = vmul.f32 %v8848_v51, %v12087_v58  ;;  %v16729_v0 = vld [vmem:[#allocation31_spill] sm:$0xff] }
 0x313   :  { %3561 = vperm.xlu1 %7808, %v11931_v32   ;;  %v3270_v45 = vadd.f32 %v3014_v5, %v2479_v31  ;;  %v3805_v25 = vmul.f32 %v8852_v11, %v12087_v58  ;;  %v2414_v33 = vadd.f32 %v16724_v13, %v1623_v47  ;;  %v3201_v29 = vadd.f32 %v2945_v7, %v2410_v34  ;;  %v12114_v57 = vpop.permute.xlu1 %3533  ;;  %v16728_v31 = vld [vmem:[#allocation230_spill] sm:$0xff] }
 0x314   :  { %v3740_v46 = vmul.f32 %v16324_v4, %v16725_v42  ;;  %v2413_v1 = vadd.f32 %v16726_v63, %v1622_v50  ;;  %v4244_v20 = vmax.f32 %v12065_v55, 0.0  ;;  %v3987_v15 = vadd.f32 %v3731_v37, %v3196_v30  ;;  %16727 = vst [vmem:[#allocation64_spill] sm:$0xff] %v12114_v57  ;;  %v16730_v37 = vld [vmem:[#allocation198_spill] sm:$0xff] }
 0x315   :  { %v3200_v32 = vadd.f32 %v2944_v52, %v2409_v56  ;;  %v3739_v49 = vmul.f32 %v16319_v6, %v16725_v42  ;;  %v3275_v5 = vadd.f32 %v16728_v31, %v2484_v18  ;;  %v3274_v60 = vadd.f32 %v16729_v0, %v2483_v54  ;;  %v16731_v18 = vld [vmem:[#allocation227_spill] sm:$0xff]  ;;  %v16735_v63 = vld [vmem:[#allocation226_spill] sm:$0xff] }
 0x316   :  { %v3205_v47 = vadd.f32 %v2949_v35, %v2414_v33  ;;  %v3204_v34 = vadd.f32 %v2948_v26, %v2413_v1  ;;  %v3810_v50 = vmul.f32 %v8848_v51, %v12114_v57  ;;  %v4062_v7 = vadd.f32 %v3806_v44, %v3271_v12  ;;  %v16732_v26 = vld [vmem:[#allocation210_spill] sm:$0xff] }
 0x317   :  { %3565 = vperm.xlu1 %7808, %v11898_v3   ;;  %v3809_v56 = vmul.f32 %v8852_v11, %v12114_v57  ;;  %v4061_v30 = vadd.f32 %v3805_v25, %v3270_v45  ;;  %v1370_v55 = vmul.f32 %v16280_v23, %v16730_v37  ;;  %v1371_v52 = vmul.f32 %v16281_v28, %v16730_v37  ;;  %v16733_v12 = vld [vmem:[#allocation202_spill] sm:$0xff]  ;;  %v16734_v25 = vld [vmem:[#allocation51_spill] sm:$0xff]  ;;  %v12147_v37 = vld [vmem:[%s15313_s0 + $0x198] sm:$0xff] }
 0x318   :  { %v3992_v54 = vadd.f32 %v16731_v18, %v3201_v29  ;;  %v3996_v35 = vadd.f32 %v3740_v46, %v3205_v47  ;;  %v2166_v3 = vmul.f32 %v16289_v9, %v16732_v26  ;;  %v4066_v1 = vadd.f32 %v3810_v50, %v3275_v5  ;;  %v12138_v29 = vpop.permute.xlu1 %1164  ;;  %v16738_v47 = vld [vmem:[#allocation45_spill] sm:$0xff]  ;;  %v16739_v50 = vld [vmem:[#allocation195_spill] sm:$0xff] }
 0x319   :  { %v4065_v13 = vadd.f32 %v3809_v56, %v3274_v60  ;;  %v3995_v33 = vadd.f32 %v3739_v49, %v3204_v34  ;;  %v2161_v44 = vmul.f32 %v16288_v16, %v16733_v12  ;;  %v2162_v45 = vmul.f32 %v16289_v9, %v16733_v12  ;;  %16736 = vst [vmem:[#allocation107_spill] sm:$0xff] %v12138_v29  ;;  %v12140_v49 = vpop.permute.xlu0 %3549 }
 0x31a   :  { %v2957_v42 = vmul.f32 %v16297_v41, %v16734_v25  ;;  %v3991_v31 = vadd.f32 %v16735_v63, %v3200_v32  ;;  %v4318_v46 = vmax.f32 %v4062_v7, 0.0  ;;  %v4322_v0 = vmax.f32 %v4066_v1, 0.0  ;;  %16737 = vst [vmem:[#allocation102_spill] sm:$0xff] %v12140_v49  ;;  %v16741_v49 = vld [vmem:[#allocation115_spill] sm:$0xff] }
 0x31b   :  { %7809 = vset.pattern.permute.xlu1 %v16539_v36  ;;  %v4317_v5 = vmax.f32 %v4061_v30, 0.0  ;;  %v4321_v60 = vmax.f32 %v4065_v13, 0.0  ;;  %v1626_v34 = vadd.f32 %v1370_v55, %v16738_v47  ;;  %v1627_v56 = vadd.f32 %v1371_v52, %v16739_v50  ;;  %v16740_v30 = vld [vmem:[#allocation181_spill] sm:$0xff] }
 0x31c   :  { %1200 = vperm.xlu1 %7809, %v12147_v37   ;;  %v4243_v32 = vmax.f32 %v3987_v15, 0.0  ;;  %v4252_v18 = vmax.f32 %v3996_v35, 0.0  ;;  %v4494_v12 = vpack.c.bf16 %v4322_v0, %v4318_v46  ;;  %v4251_v1 = vmax.f32 %v3995_v33, 0.0  ;;  %v16752_v46 = vld [vmem:[#allocation180_spill] sm:$0xff] }
 0x31d   :  { %v4493_v7 = vpack.c.bf16 %v4321_v60, %v4317_v5  ;;  %v2422_v13 = vadd.f32 %v2166_v3, %v16740_v30  ;;  %v2165_v63 = vmul.f32 %v16288_v16, %v16732_v26  ;;  %v4239_v55 = vmax.f32 %v12050_v53, 0.0  ;;  %v12161_v3 = vpop.permute.xlu1 %1955  ;;  %v12172_v33 = vpop.permute.xlu0 %1967  ;;  %v16753_v5 = vld [vmem:[#allocation221_spill] sm:$0xff] }
 0x31e   :  { %v2418_v52 = vadd.f32 %v2162_v45, %v1627_v56  ;;  %v2417_v47 = vadd.f32 %v2161_v44, %v1626_v34  ;;  %5169 = vmatprep.mubr.bf16.mxu0 %v4494_v12  ;;  %v4248_v50 = vmax.f32 %v3992_v54, 0.0  ;;  %v4247_v57 = vmax.f32 %v3991_v31, 0.0  ;;  %16742 = vst [vmem:[#allocation239_spill] sm:$0xff] %v12161_v3  ;;  %16745 = vst [vmem:[#allocation68_spill] sm:$0xff] %v12172_v33  ;;  %v16755_v34 = vld [vmem:[#allocation81_spill] sm:$0xff] }
 0x31f   :  { %v3213_v58 = vadd.f32 %v2957_v42, %v2422_v13  ;;  %v12156_v15 = vmul.f32 %v16324_v4, %v16741_v49  ;;  %v2956_v35 = vmul.f32 %v16293_v27, %v16734_v25  ;;  %5170 = vmatmul.mubr.bf16.gmra.mrb[80].mxu0 %v4493_v7  ;;  %v16743_v53 = vmax.f32 %v12017_v8, 0.0  ;;  %v16749_v42 = vld [vmem:[#allocation117_spill] sm:$0xff]  ;;  %v16751_v8 = vld [vmem:[#allocation220_spill] sm:$0xff] }
 0x320   :  { %7810 = vset.pattern.permute.xlu1 %v16547_v10  ;;  %v12169_v54 = vmul.f32 %v16319_v6, %v16741_v49  ;;  %v12174_v44 = vpack.c.bf16 %v4243_v32, %v4239_v55  ;;  %v12176_v45 = vpack.c.bf16 %v4252_v18, %v4248_v50  ;;  %v12178_v25 = vpack.c.bf16 %v4251_v1, %v4247_v57  ;;  %v16756_v32 = vld [vmem:[#allocation222_spill] sm:$0xff]  ;;  %v16757_v7 = vld [vmem:[#allocation225_spill] sm:$0xff]  ;;  %v16764_v50 = vld [vmem:[#allocation7_spill] sm:$0xff] }
 0x321   :  { %v12165_v26 = vpack.c.bf16 %v4244_v20, %v16743_v53  ;;  %1987 = vperm.xlu1 %7810, %v12076_v43   ;;  %v12182_v31 = vmul.f32 %v16324_v4, %v16749_v42  ;;  %v3209_v20 = vadd.f32 %v16751_v8, %v2418_v52  ;;  %v2421_v0 = vadd.f32 %v2165_v63, %v16752_v46  ;;  %v12214_v63 = vpop.permute.xlu1 %1959  ;;  %v16766_v46 = vld [vmem:[#allocation13_spill] sm:$0xff] }
 0x322   :  { %16746 = vst [vmem:[#allocation177_spill] sm:$0xff] %v12174_v44  ;;  %16747 = vst [vmem:[#allocation179_spill] sm:$0xff] %v12176_v45  ;;  %v3208_v60 = vadd.f32 %v16753_v5, %v2417_v47  ;;  %v12189_v49 = vmul.f32 %v16319_v6, %v16749_v42  ;;  %v12193_v56 = vmul.f32 %v8785_v17, %v16755_v34  ;;  %v16761_v47 = vld [vmem:[#allocation133_spill] sm:$0xff]  ;;  %v16765_v42 = vld [vmem:[#allocation8_spill] sm:$0xff] }
 0x323   :  { %16744 = vst [vmem:[#allocation65_spill] sm:$0xff] %v12165_v26  ;;  %16748 = vst [vmem:[#allocation109_spill] sm:$0xff] %v12178_v25  ;;  %v12197_v57 = vmul.f32 %v16704_v59, %v16755_v34  ;;  %v3744_v18 = vmul.f32 %v16324_v4, %v16756_v32  ;;  %v12202_v12 = vadd.f32 %v11966_v24, %v3213_v58  ;;  %v16763_v24 = vld [vmem:[#allocation33_spill] sm:$0xff]  ;;  %v16771_v44 = vld [vmem:[#allocation46_spill] sm:$0xff] }
 0x324   :  { %16750 = vst [vmem:[#allocation27_spill] sm:$0xff] %v12182_v31  ;;  %16754 = vst [vmem:[#allocation111_spill] sm:$0xff] %v12189_v49  ;;  %v1378_v1 = vmul.f32 %v16280_v23, %v16757_v7  ;;  %v12208_v30 = vmul.f32 %v16280_v23, %v16755_v34  ;;  %v12212_v13 = vmul.f32 %v16281_v28, %v16755_v34 }
 0x325   :  { %16760 = vst [vmem:[#allocation159_spill] sm:$0xff] %v12214_v63  ;;  %v3212_v55 = vadd.f32 %v2956_v35, %v2421_v0  ;;  %v1379_v52 = vmul.f32 %v16281_v28, %v16757_v7  ;;  %v12220_v58 = vmul.f32 %v8785_v17, %v16761_v47  ;;  %v606_v53 = vmul.f32 %v16764_v50, %v16763_v24 }
 0x326   :  { %16758 = vst [vmem:[#allocation156_spill] sm:$0xff] %v12208_v30  ;;  %16759 = vst [vmem:[#allocation35_spill] sm:$0xff] %v12212_v13  ;;  %v607_v8 = vmul.f32 %v16765_v42, %v16763_v24  ;;  %7811 = vset.pattern.permute.xlu1 %v16493_v19  ;;  %v1382_v5 = vmul.f32 %v16280_v23, %v16766_v46  ;;  %v1383_v35 = vmul.f32 %v16281_v28, %v16766_v46  ;;  %v12244_v24 = vpop.permute.xlu0 %1971 }
 0x327   :  { %16762 = vst [vmem:[#allocation25_spill] sm:$0xff] %v12220_v58  ;;  %v12233_v0 = vmul.f32 %v16704_v59, %v16761_v47  ;;  %v12237_v34 = vmul.f32 %v16280_v23, %v16761_v47  ;;  %2778 = vperm.xlu1 %7811, %v12076_v43   ;;  %v12242_v7 = vmul.f32 %v16281_v28, %v16761_v47  ;;  %16770 = vst [vmem:[#allocation21_spill] sm:$0xff] %v12244_v24  ;;  %v16777_v24 = vld [vmem:[#allocation6_spill] sm:$0xff] }
 0x328   :  { %v4000_v25 = vadd.f32 %v3744_v18, %v3209_v20  ;;  %v4260_v45 = vmax.f32 %v12202_v12, 0.0  ;;  %v3743_v46 = vmul.f32 %v16319_v6, %v16756_v32  ;;  %v1634_v26 = vadd.f32 %v1378_v1, %v16771_v44  ;;  %v16776_v18 = vld [vmem:[#allocation232_spill] sm:$0xff]  ;;  %v16779_v44 = vld [vmem:[#allocation9_spill] sm:$0xff] }
 0x329   :  { %16767 = vst [vmem:[#allocation49_spill] sm:$0xff] %v12233_v0  ;;  %16768 = vst [vmem:[#allocation93_spill] sm:$0xff] %v12237_v34  ;;  %v12251_v30 = vadd.f32 %v11970_v14, %v3212_v55  ;;  %v16772_v34 = vld [vmem:[#allocation118_spill] sm:$0xff]  ;;  %v2174_v12 = vmul.f32 %v16289_v9, %v16776_v18  ;;  %v12265_v32 = vadd.f32 %v16777_v24, %v606_v53  ;;  %v12270_v14 = vpop.permute.xlu1 %2750  ;;  %v16782_v55 = vld [vmem:[#allocation196_spill] sm:$0xff] }
 0x32a   :  { %16769 = vst [vmem:[#allocation34_spill] sm:$0xff] %v12242_v7  ;;  %v12255_v13 = vmul.f32 %v16324_v4, %v16772_v34  ;;  %v12259_v47 = vmul.f32 %v16319_v6, %v16772_v34  ;;  %v16775_v7 = vld [vmem:[#allocation47_spill] sm:$0xff]  ;;  %v12268_v1 = vadd.f32 %v16779_v44, %v607_v8  ;;  %16781 = vst [vmem:[#allocation208_spill] sm:$0xff] %v12270_v14 }
 0x32b   :  { %v1635_v20 = vadd.f32 %v1379_v52, %v16775_v7  ;;  %16778 = vst [vmem:[#allocation147_spill] sm:$0xff] %v12265_v32  ;;  %v1638_v49 = vadd.f32 %v1382_v5, %v16782_v55  ;;  %v628_v34 = vmul.f32 %v16564_v62, %v12063_v39  ;;  %v629_v52 = vmul.f32 %v16565_v22, %v12063_v39  ;;  %v16788_v32 = vld [vmem:[#allocation124_spill] sm:$0xff] }
 0x32c   :  { %16773 = vst [vmem:[#allocation11_spill] sm:$0xff] %v12255_v13  ;;  %16774 = vst [vmem:[#allocation57_spill] sm:$0xff] %v12259_v47  ;;  %v16783_v13 = vld [vmem:[#allocation197_spill] sm:$0xff]  ;;  %2782 = vperm.xlu1 %7811, %v12147_v37   ;;  %v632_v53 = vmul.f32 %v16564_v62, %v12092_v2  ;;  %v633_v8 = vmul.f32 %v16565_v22, %v12092_v2  ;;  %v4256_v7 = vmax.f32 %v4000_v25, 0.0  ;;  %v12297_v2 = vpop.permute.xlu0 %2766  ;;  %v16786_v25 = vld [vmem:[#allocation116_spill] sm:$0xff] }
 0x32d   :  { %16780 = vst [vmem:[#allocation205_spill] sm:$0xff] %v12268_v1  ;;  %v1639_v31 = vadd.f32 %v1383_v35, %v16783_v13  ;;  %v12283_v1 = vadd.f32 %v3743_v46, %v3208_v60  ;;  %v2173_v13 = vmul.f32 %v16288_v16, %v16776_v18  ;;  %v1440_v5 = vmul.f32 %v8785_v17, %v12138_v29  ;;  %v12294_v37 = vld [vmem:[%s15313_s0 + $0x1f8] sm:$0xff]  ;;  %v16787_v18 = vld [vmem:[#allocation206_spill] sm:$0xff] }
 0x32e   :  { %v1441_v35 = vmul.f32 %v16704_v59, %v12138_v29  ;;  %16784 = vst [vmem:[#allocation209_spill] sm:$0xff] %v12294_v37  ;;  %16785 = vst [vmem:[#allocation58_spill] sm:$0xff] %v12297_v2  ;;  %436 = vperm.xlu0 %7840, %v12294_v37   ;;  %v2426_v60 = vadd.f32 %v16786_v25, %v1635_v20  ;;  %v2425_v39 = vadd.f32 %v16787_v18, %v1634_v26  ;;  %v12313_v20 = vpop.permute.xlu1 %341  ;;  %v16794_v18 = vld [vmem:[#allocation241_spill] sm:$0xff] }
 0x32f   :  { %v2430_v46 = vadd.f32 %v2174_v12, %v1639_v31  ;;  %v12304_v47 = vmul.f32 %v16324_v4, %v16788_v32  ;;  %v905_v29 = vadd.f32 %v16579_v21, %v628_v34  ;;  %v906_v58 = vadd.f32 %v16580_v40, %v629_v52  ;;  %16790 = vst [vmem:[#allocation10_spill] sm:$0xff] %v12313_v20  ;;  %v12320_v12 = vld [vmem:[%s15313_s0 + $0x1a8] sm:$0xff] }
 0x330   :  { %v2231_v55 = vmul.f32 %v16711_v61, %v12161_v3  ;;  %v2232_v2 = vmul.f32 %v16712_v38, %v12161_v3  ;;  %7813 = vset.pattern.permute.xlu1 %v16670_v48  ;;  %v909_v26 = vadd.f32 %v16579_v21, %v632_v53  ;;  %v910_v31 = vadd.f32 %v16580_v40, %v633_v8  ;;  %v16792_v52 = vld [vmem:[#allocation127_spill] sm:$0xff] }
 0x331   :  { %16789 = vst [vmem:[#allocation12_spill] sm:$0xff] %v12304_v47  ;;  %386 = vperm.xlu1 %7813, %v12320_v12   ;;  %v12325_v34 = vmul.f32 %v16319_v6, %v16788_v32  ;;  %v12329_v25 = vmul.f32 %v16324_v4, %v16792_v52  ;;  %v2961_v53 = vmul.f32 %v16297_v41, %v16794_v18 }
 0x332   :  { %v1696_v3 = vadd.f32 %v1440_v5, %v905_v29  ;;  %v1697_v8 = vadd.f32 %v1441_v35, %v906_v58  ;;  %v2429_v47 = vadd.f32 %v2173_v13, %v1638_v49  ;;  %v2960_v37 = vmul.f32 %v16293_v27, %v16794_v18  ;;  %7843 = vset.pattern.permute.xlu0 %v16539_v36  ;;  %v16796_v13 = vld [vmem:[#allocation132_spill] sm:$0xff]  ;;  %v16797_v35 = vld [vmem:[#allocation91_spill] sm:$0xff] }
 0x333   :  { %16791 = vst [vmem:[#allocation231_spill] sm:$0xff] %v12325_v34  ;;  %16793 = vst [vmem:[#allocation150_spill] sm:$0xff] %v12329_v25  ;;  %v2235_v0 = vmul.f32 %v16711_v61, %v12214_v63  ;;  %v2236_v32 = vmul.f32 %v16712_v38, %v12214_v63  ;;  %v114_v34 = vld [vmem:[%s15313_s0 + $0x1e8] sm:$0xff]  ;;  %v12343_v25 = vpack.c.bf16 %v4260_v45, %v4256_v7  ;;  %v16798_v63 = vld [vmem:[#allocation92_spill] sm:$0xff]  ;;  %v16799_v38 = vmov 4   ;;  %v12352_v61 = vpop.permute.xlu1 %3537 }
 0x334   :  { %v2488_v29 = vadd.f32 %v2232_v2, %v1697_v8  ;;  %v2487_v58 = vadd.f32 %v2231_v55, %v1696_v3  ;;  %1240 = vperm.xlu0 %7843, %v114_v34   ;;  %v3221_v5 = vadd.f32 %v16796_v13, %v2430_v46  ;;  %v3026_v18 = vmul.f32 %v16797_v35, %v12270_v14  ;;  %v12356_v3 = vpop.permute.xlu0 %361  ;;  %v16802_v34 = vld [vmem:[#allocation216_spill] sm:$0xff]  ;;  %v16803_v13 = vld [vmem:[#allocation17_spill] sm:$0xff] }
 0x335   :  { %16795 = vst [vmem:[#allocation149_spill] sm:$0xff] %v12343_v25  ;;  %v3027_v48 = vmul.f32 %v16798_v63, %v12270_v14  ;;  %7814 = vset.pattern.permute.xlu1 %v16799_v38  ;;  %16800 = vst [vmem:[#allocation74_spill] sm:$0xff] %v12352_v61  ;;  %v1701_v45 = vadd.f32 %v12197_v57, %v910_v31  ;;  %v1700_v2 = vadd.f32 %v12193_v56, %v909_v26  ;;  %v16804_v56 = vld [vmem:[#allocation114_spill] sm:$0xff]  ;;  %v16805_v14 = vld [vmem:[#allocation99_spill] sm:$0xff] }
 0x336   :  { %16801 = vst [vmem:[#allocation37_spill] sm:$0xff] %v12356_v3  ;;  %3569 = vperm.xlu1 %7814, %v12076_v43   ;;  %v3814_v7 = vmul.f32 %v8848_v51, %v12352_v61  ;;  %v3813_v55 = vmul.f32 %v8852_v11, %v12352_v61  ;;  %v3217_v46 = vadd.f32 %v2961_v53, %v2426_v60  ;;  %v16806_v43 = vld [vmem:[#allocation67_spill] sm:$0xff] }
 0x337   :  { %v3220_v8 = vadd.f32 %v16802_v34, %v2429_v47  ;;  %v1391_v49 = vmul.f32 %v16281_v28, %v16803_v13  ;;  %v2492_v25 = vadd.f32 %v2236_v32, %v1701_v45  ;;  %v2491_v57 = vadd.f32 %v2235_v0, %v1700_v2  ;;  %v16807_v63 = vld [vmem:[#allocation23_spill] sm:$0xff]  ;;  %v16808_v47 = vld [vmem:[#allocation154_spill] sm:$0xff]  ;;  %v12376_v34 = vpop.permute.xlu1 %3541  ;;  %v16811_v2 = vld [vmem:[#allocation165_spill] sm:$0xff] }
 0x338   :  { %v3216_v31 = vadd.f32 %v2960_v37, %v2425_v39  ;;  %v3279_v26 = vadd.f32 %v16804_v56, %v2488_v29  ;;  %v3278_v3 = vadd.f32 %v16805_v14, %v2487_v58  ;;  %v3752_v38 = vmul.f32 %v16324_v4, %v16806_v43  ;;  %16809 = vst [vmem:[#allocation39_spill] sm:$0xff] %v12376_v34  ;;  %v16810_v58 = vld [vmem:[#allocation201_spill] sm:$0xff]  ;;  %v16813_v56 = vld [vmem:[#allocation200_spill] sm:$0xff] }
 0x339   :  { %v3756_v35 = vmul.f32 %v16324_v4, %v16807_v63  ;;  %v1390_v60 = vmul.f32 %v16280_v23, %v16803_v13  ;;  %v2178_v53 = vmul.f32 %v16289_v9, %v16808_v47  ;;  %v3283_v0 = vadd.f32 %v3027_v48, %v2492_v25  ;;  %v12389_v48 = vld [vmem:[%s15313_s0 + $0x1a0] sm:$0xff]  ;;  %v12392_v25 = vpop.permute.xlu0 %376 }
 0x33a   :  { %v3282_v39 = vadd.f32 %v3026_v18, %v2491_v57  ;;  %7815 = vset.pattern.permute.xlu1 %v16539_v36  ;;  %v3818_v14 = vmul.f32 %v8848_v51, %v12376_v34  ;;  %v4070_v37 = vadd.f32 %v3814_v7, %v3279_v26  ;;  %v3817_v32 = vmul.f32 %v8852_v11, %v12376_v34  ;;  %v16814_v34 = vld [vmem:[#allocation166_spill] sm:$0xff] }
 0x33b   :  { %v4069_v29 = vadd.f32 %v3813_v55, %v3278_v3  ;;  %v1647_v45 = vadd.f32 %v1391_v49, %v16810_v58  ;;  %v2969_v13 = vmul.f32 %v16297_v41, %v16811_v2  ;;  %1204 = vperm.xlu1 %7815, %v12389_v48   ;;  %16812 = vst [vmem:[#allocation73_spill] sm:$0xff] %v12392_v25  ;;  %v16815_v36 = vld [vmem:[#allocation238_spill] sm:$0xff]  ;;  %v12404_v11 = vpop.permute.xlu1 %1176 }
 0x33c   :  { %v3751_v18 = vmul.f32 %v16319_v6, %v16806_v43  ;;  %v3755_v3 = vmul.f32 %v16319_v6, %v16807_v63  ;;  %v4074_v7 = vadd.f32 %v3818_v14, %v3283_v0  ;;  %v4073_v49 = vadd.f32 %v3817_v32, %v3282_v39  ;;  %16816 = vst [vmem:[#allocation41_spill] sm:$0xff] %v12404_v11  ;;  %v16819_v14 = vld [vmem:[#allocation36_spill] sm:$0xff] }
 0x33d   :  { %v4008_v55 = vadd.f32 %v3752_v38, %v3217_v46  ;;  %v4012_v57 = vadd.f32 %v3756_v35, %v3221_v5  ;;  %v1646_v26 = vadd.f32 %v1390_v60, %v16813_v56  ;;  %v2177_v58 = vmul.f32 %v16288_v16, %v16808_v47  ;;  %v16817_v35 = vld [vmem:[#allocation106_spill] sm:$0xff] }
 0x33e   :  { %v2973_v61 = vmul.f32 %v16297_v41, %v16814_v34  ;;  %v2434_v25 = vadd.f32 %v2178_v53, %v16815_v36  ;;  %v4326_v43 = vmax.f32 %v4070_v37, 0.0  ;;  %v4330_v51 = vmax.f32 %v4074_v7, 0.0  ;;  %v16818_v53 = vld [vmem:[#allocation183_spill] sm:$0xff] }
 0x33f   :  { %v4325_v33 = vmax.f32 %v4069_v29, 0.0  ;;  %v4329_v63 = vmax.f32 %v4073_v49, 0.0  ;;  %v2968_v38 = vmul.f32 %v16293_v27, %v16811_v2  ;;  %1208 = vperm.xlu1 %7815, %v12320_v12   ;;  %v4011_v5 = vadd.f32 %v3755_v3, %v3220_v8  ;;  %v12418_v29 = vpop.permute.xlu0 %381  ;;  %v16821_v2 = vld [vmem:[#allocation18_spill] sm:$0xff]  ;;  %v12425_v3 = vpop.permute.xlu1 %1963 }
 0x340   :  { %v2438_v46 = vadd.f32 %v16817_v35, %v1647_v45  ;;  %v3225_v60 = vadd.f32 %v2969_v13, %v2434_v25  ;;  %v2972_v47 = vmul.f32 %v16293_v27, %v16814_v34  ;;  %v4498_v0 = vpack.c.bf16 %v4330_v51, %v4326_v43  ;;  %16820 = vst [vmem:[#allocation40_spill] sm:$0xff] %v12418_v29  ;;  %v16822_v34 = vld [vmem:[#allocation59_spill] sm:$0xff]  ;;  %v16830_v35 = vld [vmem:[#allocation89_spill] sm:$0xff] }
 0x341   :  { %v4497_v36 = vpack.c.bf16 %v4329_v63, %v4325_v33  ;;  %v3764_v39 = vmul.f32 %v16324_v4, %v16818_v53  ;;  %v614_v37 = vmul.f32 %v16764_v50, %v16819_v14  ;;  %v615_v32 = vmul.f32 %v16765_v42, %v16819_v14  ;;  %16823 = vst [vmem:[#allocation152_spill] sm:$0xff] %v12425_v3  ;;  %v16836_v14 = vld [vmem:[#allocation203_spill] sm:$0xff] }
 0x342   :  { %v4007_v8 = vadd.f32 %v3751_v18, %v3216_v31  ;;  %v2433_v45 = vadd.f32 %v2177_v58, %v16821_v2  ;;  %5179 = vmatprep.mubr.bf16.mxu0 %v4498_v0  ;;  %v4268_v13 = vmax.f32 %v4012_v57, 0.0  ;;  %v3229_v25 = vadd.f32 %v2973_v61, %v2438_v46 }
 0x343   :  { %v2437_v51 = vadd.f32 %v16822_v34, %v1646_v26  ;;  %v3763_v33 = vmul.f32 %v16319_v6, %v16818_v53  ;;  %7816 = vset.pattern.permute.xlu1 %v16547_v10  ;;  %5180 = vmatmul.mubr.bf16.gmra.mrb[84].mxu0 %v4497_v36  ;;  %v16824_v7 = vmax.f32 %v12283_v1, 0.0  ;;  %v16825_v49 = vmax.f32 %v12251_v30, 0.0  ;;  %v16829_v1 = vld [vmem:[#allocation32_spill] sm:$0xff]  ;;  %v12457_v36 = vpop.permute.xlu0 %1192 }
 0x344   :  { %v4267_v18 = vmax.f32 %v4011_v5, 0.0  ;;  %v3224_v56 = vadd.f32 %v2968_v38, %v2433_v45  ;;  %v12435_v61 = vmul.f32 %v16319_v6, %v16792_v52  ;;  %1999 = vperm.xlu1 %7816, %v12320_v12   ;;  %v4264_v57 = vmax.f32 %v4008_v55, 0.0  ;;  %16834 = vst [vmem:[#allocation139_spill] sm:$0xff] %v12457_v36  ;;  %v16864_v36 = vld [vmem:[#allocation143_spill] sm:$0xff] }
 0x345   :  { %v12431_v31 = vpack.c.bf16 %v16825_v49, %v16824_v7  ;;  %v4016_v26 = vadd.f32 %v12156_v15, %v3225_v60  ;;  %v4020_v58 = vadd.f32 %v3764_v39, %v3229_v25  ;;  %v3228_v43 = vadd.f32 %v2972_v47, %v2437_v51  ;;  %v16833_v47 = vld [vmem:[#allocation63_spill] sm:$0xff]  ;;  %v16838_v51 = vld [vmem:[#allocation214_spill] sm:$0xff] }
 0x346   :  { %16827 = vst [vmem:[#allocation20_spill] sm:$0xff] %v12435_v61  ;;  %v12440_v63 = vadd.f32 %v16777_v24, %v614_v37  ;;  %v640_v30 = vmul.f32 %v16564_v62, %v16829_v1  ;;  %v641_v38 = vmul.f32 %v16565_v22, %v16829_v1  ;;  %v4263_v5 = vmax.f32 %v4007_v8, 0.0  ;;  %v12467_v8 = vpop.permute.xlu1 %2754 }
 0x347   :  { %16826 = vst [vmem:[#allocation19_spill] sm:$0xff] %v12431_v31  ;;  %v1395_v52 = vmul.f32 %v16281_v28, %v16830_v35  ;;  %v12449_v46 = vadd.f32 %v16779_v44, %v615_v32  ;;  %v12451_v55 = vpack.c.bf16 %v4268_v13, %v4264_v57  ;;  %v4019_v15 = vadd.f32 %v3763_v33, %v3228_v43 }
 0x348   :  { %16828 = vst [vmem:[#allocation22_spill] sm:$0xff] %v12440_v63  ;;  %v1394_v60 = vmul.f32 %v16280_v23, %v16830_v35  ;;  %v622_v0 = vmul.f32 %v16764_v50, %v16833_v47  ;;  %v12459_v53 = vpack.c.bf16 %v4267_v18, %v4263_v5  ;;  %v4015_v39 = vadd.f32 %v12169_v54, %v3224_v56  ;;  %v16839_v56 = vld [vmem:[#allocation213_spill] sm:$0xff]  ;;  %v16863_v63 = vld [vmem:[#allocation138_spill] sm:$0xff] }
 0x349   :  { %16831 = vst [vmem:[#allocation155_spill] sm:$0xff] %v12449_v46  ;;  %16832 = vst [vmem:[#allocation77_spill] sm:$0xff] %v12451_v55  ;;  %v2186_v37 = vmul.f32 %v16289_v9, %v16836_v14  ;;  %v623_v32 = vmul.f32 %v16765_v42, %v16833_v47  ;;  %7817 = vset.pattern.permute.xlu1 %v16493_v19  ;;  %v4272_v2 = vmax.f32 %v4016_v26, 0.0  ;;  %v4276_v45 = vmax.f32 %v4020_v58, 0.0 }
 0x34a   :  { %16835 = vst [vmem:[#allocation162_spill] sm:$0xff] %v12459_v53  ;;  %16837 = vst [vmem:[#allocation188_spill] sm:$0xff] %v12467_v8  ;;  %v917_v13 = vadd.f32 %v16579_v21, %v640_v30  ;;  %v918_v25 = vadd.f32 %v16580_v40, %v641_v38  ;;  %v1452_v34 = vmul.f32 %v8785_v17, %v12404_v11  ;;  %2786 = vperm.xlu1 %7817, %v12389_v48   ;;  %v16841_v30 = vld [vmem:[#allocation48_spill] sm:$0xff]  ;;  %v12494_v35 = vpop.permute.xlu1 %2758  ;;  %v12501_v53 = vpop.permute.xlu0 %1196 }
 0x34b   :  { %v1453_v54 = vmul.f32 %v16704_v59, %v12404_v11  ;;  %v1651_v33 = vadd.f32 %v1395_v52, %v16838_v51  ;;  %v636_v7 = vmul.f32 %v16564_v62, %v12313_v20  ;;  %v637_v49 = vmul.f32 %v16565_v22, %v12313_v20  ;;  %16843 = vst [vmem:[#allocation170_spill] sm:$0xff] %v12494_v35 }
 0x34c   :  { %v4275_v18 = vmax.f32 %v4019_v15, 0.0  ;;  %v1650_v57 = vadd.f32 %v1394_v60, %v16839_v56  ;;  %v2185_v26 = vmul.f32 %v16288_v16, %v16836_v14  ;;  %v12485_v58 = vadd.f32 %v16777_v24, %v622_v0  ;;  %v16844_v15 = vld [vmem:[#allocation68_spill] sm:$0xff]  ;;  %v16845_v60 = vld [vmem:[#allocation87_spill] sm:$0xff]  ;;  %16848 = vst [vmem:[#allocation187_spill] sm:$0xff] %v12501_v53 }
 0x34d   :  { %v4271_v43 = vmax.f32 %v4015_v39, 0.0  ;;  %v2190_v48 = vmul.f32 %v16289_v9, %v16841_v30  ;;  %v12490_v38 = vadd.f32 %v16779_v44, %v623_v32  ;;  %v642_v5 = vmul.f32 %v16764_v50, %v16829_v1  ;;  %v16846_v14 = vld [vmem:[#allocation88_spill] sm:$0xff] }
 0x34e   :  { %16840 = vst [vmem:[#allocation113_spill] sm:$0xff] %v12485_v58  ;;  %v2442_v52 = vadd.f32 %v2186_v37, %v1651_v33  ;;  %v2243_v47 = vmul.f32 %v16845_v60, %v16844_v15  ;;  %v2244_v0 = vmul.f32 %v16846_v14, %v16844_v15  ;;  %v1708_v51 = vadd.f32 %v1452_v34, %v917_v13  ;;  %v12508_v37 = vld [vmem:[%s15313_s0 + $0x1b0] sm:$0xff]  ;;  %v16865_v15 = vld [vmem:[#allocation42_spill] sm:$0xff] }
 0x34f   :  { %16842 = vst [vmem:[#allocation158_spill] sm:$0xff] %v12490_v38  ;;  %v1709_v39 = vadd.f32 %v1453_v54, %v918_v25  ;;  %v16847_v56 = vmov 0   ;;  %v913_v32 = vadd.f32 %v16579_v21, %v636_v7  ;;  %v914_v55 = vadd.f32 %v16580_v40, %v637_v49  ;;  %v16851_v25 = vld [vmem:[#allocation91_spill] sm:$0xff]  ;;  %v16852_v54 = vld [vmem:[#allocation92_spill] sm:$0xff] }
 0x350   :  { %7818 = vset.pattern.permute.xlu1 %v16847_v56  ;;  %v12511_v33 = vpack.c.bf16 %v4276_v45, %v4272_v2  ;;  %v12513_v31 = vpack.c.bf16 %v4275_v18, %v4271_v43  ;;  %v2189_v13 = vmul.f32 %v16288_v16, %v16841_v30  ;;  %v3034_v34 = vmul.f32 %v16851_v25, %v12494_v35  ;;  %v115_v45 = vld [vmem:[%s15313_s0 + $0x1f0] sm:$0xff]  ;;  %v16853_v18 = vld [vmem:[#allocation173_spill] sm:$0xff] }
 0x351   :  { %391 = vperm.xlu1 %7818, %v12508_v37   ;;  %v3035_v7 = vmul.f32 %v16852_v54, %v12494_v35  ;;  %v2441_v49 = vadd.f32 %v2185_v26, %v1650_v57  ;;  %v643_v11 = vmul.f32 %v16765_v42, %v16829_v1  ;;  %v2239_v20 = vmul.f32 %v16845_v60, %v12425_v3  ;;  %v16856_v1 = vld [vmem:[#allocation121_spill] sm:$0xff] }
 0x352   :  { %16849 = vst [vmem:[#allocation164_spill] sm:$0xff] %v12511_v33  ;;  %16850 = vst [vmem:[#allocation101_spill] sm:$0xff] %v12513_v31  ;;  %v2240_v2 = vmul.f32 %v16846_v14, %v12425_v3  ;;  %v2446_v43 = vadd.f32 %v2190_v48, %v16853_v18  ;;  %v12532_v30 = vadd.f32 %v16777_v24, %v642_v5  ;;  %v12534_v31 = vpop.permute.xlu1 %356  ;;  %1244 = vperm.xlu0 %7843, %v115_v45   ;;  %v12544_v48 = vld [vmem:[%s15313_s0 + $0x1b8] sm:$0xff] }
 0x353   :  { %16855 = vst [vmem:[#allocation184_spill] sm:$0xff] %v12534_v31  ;;  %v2500_v57 = vadd.f32 %v2244_v0, %v1709_v39  ;;  %v2499_v26 = vadd.f32 %v2243_v47, %v1708_v51  ;;  %v3233_v33 = vadd.f32 %v16856_v1, %v2442_v52  ;;  %v3030_v35 = vmul.f32 %v16851_v25, %v12467_v8  ;;  %v16857_v5 = vld [vmem:[#allocation49_spill] sm:$0xff]  ;;  %v12549_v51 = vpop.permute.xlu0 %1216  ;;  %v16860_v39 = vld [vmem:[#allocation102_spill] sm:$0xff] }
 0x354   :  { %16854 = vst [vmem:[#allocation174_spill] sm:$0xff] %v12532_v30  ;;  %v3031_v3 = vmul.f32 %v16852_v54, %v12467_v8  ;;  %v1705_v18 = vadd.f32 %v16857_v5, %v914_v55  ;;  %v16858_v0 = vld [vmem:[#allocation25_spill] sm:$0xff]  ;;  %16859 = vst [vmem:[#allocation185_spill] sm:$0xff] %v12549_v51  ;;  %v16861_v1 = vld [vmem:[#allocation94_spill] sm:$0xff]  ;;  %v2445_v53 = vadd.f32 %v2189_v13, %v16863_v63  ;;  %v16869_v63 = vmov 4  }
 0x355   :  { %396 = vperm.xlu1 %7818, %v12544_v48   ;;  %v1704_v47 = vadd.f32 %v16858_v0, %v913_v32  ;;  %v3291_v52 = vadd.f32 %v3035_v7, %v2500_v57  ;;  %v3826_v30 = vmul.f32 %v16861_v1, %v16860_v39  ;;  %v3290_v38 = vadd.f32 %v3034_v34, %v2499_v26  ;;  %v16862_v8 = vld [vmem:[#allocation95_spill] sm:$0xff]  ;;  %v16867_v57 = vld [vmem:[#allocation110_spill] sm:$0xff]  ;;  %v16871_v26 = vld [vmem:[#allocation209_spill] sm:$0xff] }
 0x356   :  { %v3825_v58 = vmul.f32 %v16862_v8, %v16860_v39  ;;  %v2496_v61 = vadd.f32 %v2240_v2, %v1705_v18  ;;  %v3232_v29 = vadd.f32 %v16864_v36, %v2441_v49  ;;  %v2980_v55 = vmul.f32 %v16293_v27, %v16865_v15  ;;  %7847 = vset.pattern.permute.xlu0 %v16547_v10  ;;  %v16868_v2 = vld [vmem:[#allocation43_spill] sm:$0xff]  ;;  %v12570_v36 = vpop.permute.xlu1 %3545  ;;  %v16876_v39 = vld [vmem:[#allocation16_spill] sm:$0xff] }
 0x357   :  { %v2495_v46 = vadd.f32 %v2239_v20, %v1704_v47  ;;  %v2981_v32 = vmul.f32 %v16297_v41, %v16865_v15  ;;  %v12562_v7 = vadd.f32 %v16779_v44, %v643_v11  ;;  %v644_v34 = vmul.f32 %v16564_v62, %v16867_v57  ;;  %16870 = vst [vmem:[#allocation178_spill] sm:$0xff] %v12570_v36 }
 0x358   :  { %v1403_v20 = vmul.f32 %v16281_v28, %v16868_v2  ;;  %v3287_v13 = vadd.f32 %v3031_v3, %v2496_v61  ;;  %2039 = vperm.xlu0 %7847, %v16871_v26   ;;  %v3822_v11 = vmul.f32 %v16861_v1, %v12570_v36  ;;  %v4082_v15 = vadd.f32 %v3826_v30, %v3291_v52  ;;  %v16872_v61 = vld [vmem:[#allocation191_spill] sm:$0xff]  ;;  %v12588_v52 = vpop.permute.xlu0 %1220 }
 0x359   :  { %16866 = vst [vmem:[#allocation103_spill] sm:$0xff] %v12562_v7  ;;  %7819 = vset.pattern.permute.xlu1 %v16869_v63  ;;  %v3286_v49 = vadd.f32 %v3030_v35, %v2495_v46  ;;  %v3821_v5 = vmul.f32 %v16862_v8, %v12570_v36  ;;  %v4081_v18 = vadd.f32 %v3825_v58, %v3290_v38  ;;  %v16873_v46 = vld [vmem:[#allocation98_spill] sm:$0xff]  ;;  %16874 = vst [vmem:[#allocation60_spill] sm:$0xff] %v12588_v52  ;;  %v16875_v36 = vld [vmem:[#allocation223_spill] sm:$0xff] }
 0x35a   :  { %3581 = vperm.xlu1 %7819, %v12320_v12   ;;  %v645_v0 = vmul.f32 %v16565_v22, %v16867_v57  ;;  %v646_v47 = vmul.f32 %v16764_v50, %v16867_v57  ;;  %v647_v3 = vmul.f32 %v16765_v42, %v16867_v57  ;;  %v3768_v12 = vmul.f32 %v16324_v4, %v16872_v61  ;;  %v16880_v50 = vld [vmem:[#allocation104_spill] sm:$0xff] }
 0x35b   :  { %v1407_v35 = vmul.f32 %v16281_v28, %v16873_v46  ;;  %v4078_v30 = vadd.f32 %v3822_v11, %v3287_v13  ;;  %v4077_v26 = vadd.f32 %v3821_v5, %v3286_v49  ;;  %v3237_v58 = vadd.f32 %v2981_v32, %v2446_v43  ;;  %v12599_v13 = vpop.permute.xlu1 %1180 }
 0x35c   :  { %v1402_v38 = vmul.f32 %v16280_v23, %v16868_v2  ;;  %v1659_v7 = vadd.f32 %v1403_v20, %v16875_v36  ;;  %v2198_v51 = vmul.f32 %v16289_v9, %v16876_v39  ;;  %7849 = vset.pattern.permute.xlu0 %v16869_v63  ;;  %v3767_v57 = vmul.f32 %v16319_v6, %v16872_v61  ;;  %v16879_v61 = vld [vmem:[#allocation219_spill] sm:$0xff]  ;;  %v16882_v63 = vld [vmem:[#allocation52_spill] sm:$0xff] }
 0x35d   :  { %v16877_v42 = vmov 1   ;;  %16878 = vst [vmem:[#allocation141_spill] sm:$0xff] %v12599_v13  ;;  %v4334_v11 = vmax.f32 %v4078_v30, 0.0  ;;  %v4338_v49 = vmax.f32 %v4082_v15, 0.0  ;;  %v4333_v43 = vmax.f32 %v4077_v26, 0.0  ;;  %3617 = vperm.xlu0 %7849, %v115_v45  }
 0x35e   :  { %7820 = vset.pattern.permute.xlu1 %v16877_v42  ;;  %v4337_v32 = vmax.f32 %v4081_v18, 0.0  ;;  %v1406_v2 = vmul.f32 %v16280_v23, %v16873_v46  ;;  %v12604_v20 = vadd.f32 %v16579_v21, %v644_v34  ;;  %v4024_v36 = vadd.f32 %v3768_v12, %v3233_v33  ;;  %v16881_v46 = vld [vmem:[#allocation27_spill] sm:$0xff] }
 0x35f   :  { %1212 = vperm.xlu1 %7820, %v12508_v37   ;;  %v3236_v5 = vadd.f32 %v2980_v55, %v2445_v53  ;;  %v1663_v52 = vadd.f32 %v1407_v35, %v16879_v61  ;;  %v2985_v42 = vmul.f32 %v16297_v41, %v16880_v50  ;;  %v4502_v30 = vpack.c.bf16 %v4338_v49, %v4334_v11  ;;  %v12617_v33 = vpop.permute.xlu1 %1184  ;;  %v12619_v53 = vpop.permute.xlu0 %1991  ;;  %v16885_v55 = vld [vmem:[#allocation69_spill] sm:$0xff]  ;;  %v16886_v11 = vld [vmem:[#allocation66_spill] sm:$0xff] }
 0x360   :  { %v4501_v15 = vpack.c.bf16 %v4337_v32, %v4333_v43  ;;  %v2197_v45 = vmul.f32 %v16288_v16, %v16876_v39  ;;  %v12613_v18 = vadd.f32 %v16580_v40, %v645_v0  ;;  %v4028_v34 = vadd.f32 %v16881_v46, %v3237_v58  ;;  %16883 = vst [vmem:[#allocation182_spill] sm:$0xff] %v12617_v33  ;;  %v16887_v39 = vld [vmem:[#allocation218_spill] sm:$0xff] }
 0x361   :  { %v4023_v26 = vadd.f32 %v3767_v57, %v3232_v29  ;;  %v1658_v8 = vadd.f32 %v1402_v38, %v16882_v63  ;;  %5189 = vmatprep.mubr.bf16.mxu0 %v4502_v30  ;;  %16884 = vst [vmem:[#allocation186_spill] sm:$0xff] %v12619_v53  ;;  %v2450_v12 = vadd.f32 %v16885_v55, %v1659_v7  ;;  %v4280_v29 = vmax.f32 %v4024_v36, 0.0  ;;  %v16888_v63 = vld [vmem:[#allocation111_spill] sm:$0xff]  ;;  %v16890_v7 = vld [vmem:[#allocation212_spill] sm:$0xff]  ;;  %v16892_v30 = vld [vmem:[#allocation145_spill] sm:$0xff] }
 0x362   :  { %v2454_v35 = vadd.f32 %v2198_v51, %v1663_v52  ;;  %v3776_v49 = vmul.f32 %v16324_v4, %v16886_v11  ;;  %v1662_v43 = vadd.f32 %v1406_v2, %v16887_v39  ;;  %v2984_v0 = vmul.f32 %v16293_v27, %v16880_v50  ;;  %v16889_v38 = vld [vmem:[#allocation207_spill] sm:$0xff]  ;;  %5190 = vmatmul.mubr.bf16.gmra.mrb[88].mxu0 %v4501_v15 }
 0x363   :  { %7821 = vset.pattern.permute.xlu1 %v16547_v10  ;;  %v4027_v58 = vadd.f32 %v16888_v63, %v3236_v5  ;;  %v1415_v57 = vmul.f32 %v16281_v28, %v16889_v38  ;;  %v3241_v51 = vadd.f32 %v2985_v42, %v2450_v12  ;;  %v3780_v52 = vmul.f32 %v16324_v4, %v16890_v7  ;;  %v16893_v5 = vld [vmem:[#allocation125_spill] sm:$0xff]  ;;  %v12646_v12 = vpop.permute.xlu1 %1975  ;;  %v16900_v63 = vld [vmem:[#allocation122_spill] sm:$0xff] }
 0x364   :  { %2003 = vperm.xlu1 %7821, %v12508_v37   ;;  %v12635_v32 = vadd.f32 %v16777_v24, %v646_v47  ;;  %v4284_v2 = vmax.f32 %v4028_v34, 0.0  ;;  %v4279_v50 = vmax.f32 %v4023_v26, 0.0  ;;  %v2453_v61 = vadd.f32 %v2197_v45, %v1662_v43  ;;  %16895 = vst [vmem:[#allocation192_spill] sm:$0xff] %v12646_v12  ;;  %v16897_v26 = vld [vmem:[#allocation229_spill] sm:$0xff] }
 0x365   :  { %v3245_v36 = vadd.f32 %v16892_v30, %v2454_v35  ;;  %v12638_v46 = vadd.f32 %v3776_v49, %v3241_v51  ;;  %v2449_v55 = vadd.f32 %v16893_v5, %v1658_v8  ;;  %v3775_v15 = vmul.f32 %v16319_v6, %v16886_v11  ;;  %v12656_v8 = vpop.permute.xlu0 %1995  ;;  %v16902_v30 = vld [vmem:[#allocation228_spill] sm:$0xff] }
 0x366   :  { %16891 = vst [vmem:[#allocation189_spill] sm:$0xff] %v12635_v32  ;;  %v12644_v42 = vadd.f32 %v16779_v44, %v647_v3  ;;  %v12648_v39 = vpack.c.bf16 %v4284_v2, %v4280_v29  ;;  %v4283_v47 = vmax.f32 %v4027_v58, 0.0  ;;  %v3779_v45 = vmul.f32 %v16319_v6, %v16890_v7  ;;  %16898 = vst [vmem:[#allocation161_spill] sm:$0xff] %v12656_v8 }
 0x367   :  { %v1414_v34 = vmul.f32 %v16280_v23, %v16889_v38  ;;  %v1671_v35 = vadd.f32 %v1415_v57, %v16897_v26  ;;  %v12658_v11 = vadd.f32 %v3780_v52, %v3245_v36  ;;  %v3240_v3 = vadd.f32 %v2984_v0, %v2449_v55  ;;  %v16901_v0 = vld [vmem:[#allocation128_spill] sm:$0xff]  ;;  %v12686_v55 = vpop.permute.xlu1 %2762 }
 0x368   :  { %16894 = vst [vmem:[#allocation190_spill] sm:$0xff] %v12644_v42  ;;  %16896 = vst [vmem:[#allocation78_spill] sm:$0xff] %v12648_v39  ;;  %2007 = vperm.xlu1 %7821, %v12544_v48   ;;  %v648_v49 = vmul.f32 %v16564_v62, %v12534_v31  ;;  %v649_v43 = vmul.f32 %v16565_v22, %v12534_v31  ;;  %v12664_v29 = vpack.c.bf16 %v4283_v47, %v4279_v50  ;;  %v16904_v47 = vld [vmem:[#allocation29_spill] sm:$0xff] }
 0x369   :  { %v3244_v58 = vadd.f32 %v16900_v63, %v2453_v61  ;;  %v1456_v38 = vmul.f32 %v8785_v17, %v12599_v13  ;;  %v1457_v57 = vmul.f32 %v16704_v59, %v12599_v13  ;;  %v12672_v7 = vadd.f32 %v3775_v15, %v3240_v3  ;;  %16903 = vst [vmem:[#allocation167_spill] sm:$0xff] %v12686_v55  ;;  %v16908_v39 = vld [vmem:[#allocation153_spill] sm:$0xff] }
 0x36a   :  { %16899 = vst [vmem:[#allocation38_spill] sm:$0xff] %v12664_v29  ;;  %v2202_v52 = vmul.f32 %v16289_v9, %v16901_v0  ;;  %v1460_v2 = vmul.f32 %v8785_v17, %v12617_v33  ;;  %v1461_v50 = vmul.f32 %v16704_v59, %v12617_v33  ;;  %v1670_v36 = vadd.f32 %v1414_v34, %v16902_v30  ;;  %v12703_v30 = vpop.permute.xlu0 %2015 }
 0x36b   :  { %v12680_v61 = vadd.f32 %v3779_v45, %v3244_v58  ;;  %v2201_v5 = vmul.f32 %v16288_v16, %v16901_v0  ;;  %v4292_v15 = vmax.f32 %v12658_v11, 0.0  ;;  %v2462_v26 = vadd.f32 %v16904_v47, %v1671_v35  ;;  %v16905_v58 = vld [vmem:[#allocation21_spill] sm:$0xff]  ;;  %16906 = vst [vmem:[#allocation193_spill] sm:$0xff] %v12703_v30  ;;  %v16913_v30 = vld [vmem:[#allocation95_spill] sm:$0xff] }
 0x36c   :  { %7822 = vset.pattern.permute.xlu1 %v16493_v19  ;;  %v925_v3 = vadd.f32 %v16579_v21, %v648_v49  ;;  %v926_v63 = vadd.f32 %v16580_v40, %v649_v43  ;;  %v2251_v45 = vmul.f32 %v16845_v60, %v12646_v12  ;;  %v2252_v34 = vmul.f32 %v16846_v14, %v12646_v12  ;;  %v16907_v43 = vld [vmem:[#allocation130_spill] sm:$0xff]  ;;  %v16909_v12 = vld [vmem:[#allocation160_spill] sm:$0xff] }
 0x36d   :  { %2798 = vperm.xlu1 %7822, %v12544_v48   ;;  %v2247_v0 = vmul.f32 %v16845_v60, %v16905_v58  ;;  %v2248_v11 = vmul.f32 %v16846_v14, %v16905_v58  ;;  %v1712_v35 = vadd.f32 %v1456_v38, %v12604_v20  ;;  %v1713_v49 = vadd.f32 %v1457_v57, %v12613_v18  ;;  %v16910_v38 = vld [vmem:[#allocation119_spill] sm:$0xff]  ;;  %v16911_v57 = vld [vmem:[#allocation58_spill] sm:$0xff] }
 0x36e   :  { %v2997_v47 = vmul.f32 %v16297_v41, %v16907_v43  ;;  %v1716_v51 = vadd.f32 %v1460_v2, %v925_v3  ;;  %v1717_v29 = vadd.f32 %v1461_v50, %v926_v63  ;;  %v2458_v32 = vadd.f32 %v2202_v52, %v16908_v39  ;;  %v12721_v39 = vpop.permute.xlu1 %3553  ;;  %v12726_v3 = vld [vmem:[%s15313_s0 + $0x1c0] sm:$0xff] }
 0x36f   :  { %v2993_v42 = vmul.f32 %v16297_v41, %v16909_v12  ;;  %v3038_v33 = vmul.f32 %v16851_v25, %v12686_v55  ;;  %v3039_v20 = vmul.f32 %v16852_v54, %v12686_v55  ;;  %v3788_v18 = vmul.f32 %v16324_v4, %v16910_v38  ;;  %16912 = vst [vmem:[#allocation211_spill] sm:$0xff] %v12721_v39  ;;  %v16915_v14 = vld [vmem:[#allocation194_spill] sm:$0xff] }
 0x370   :  { %v3042_v13 = vmul.f32 %v16851_v25, %v16911_v57  ;;  %v3043_v2 = vmul.f32 %v16852_v54, %v16911_v57  ;;  %v2508_v52 = vadd.f32 %v2252_v34, %v1717_v29  ;;  %v2507_v50 = vadd.f32 %v2251_v45, %v1716_v51  ;;  %v16914_v45 = vld [vmem:[#allocation120_spill] sm:$0xff]  ;;  %v12738_v25 = vpop.permute.xlu0 %2019 }
 0x371   :  { %7823 = vset.pattern.permute.xlu1 %v16847_v56  ;;  %v2504_v63 = vadd.f32 %v2248_v11, %v1713_v49  ;;  %v3830_v55 = vmul.f32 %v16861_v1, %v12721_v39  ;;  %v2503_v31 = vadd.f32 %v2247_v0, %v1712_v35  ;;  %v3829_v8 = vmul.f32 %v16913_v30, %v12721_v39 }
 0x372   :  { %401 = vperm.xlu1 %7823, %v12726_v3   ;;  %v2992_v54 = vmul.f32 %v16293_v27, %v16909_v12  ;;  %v2996_v29 = vmul.f32 %v16293_v27, %v16907_v43  ;;  %v3253_v51 = vadd.f32 %v2997_v47, %v2462_v26  ;;  %v2461_v34 = vadd.f32 %v16914_v45, %v1670_v36  ;;  %v12741_v0 = vpop.permute.xlu1 %3557  ;;  %v16918_v47 = vld [vmem:[#allocation11_spill] sm:$0xff] }
 0x373   :  { %v3295_v53 = vadd.f32 %v3039_v20, %v2504_v63  ;;  %v3294_v11 = vadd.f32 %v3038_v33, %v2503_v31  ;;  %v3249_v49 = vadd.f32 %v2993_v42, %v2458_v32  ;;  %v2457_v56 = vadd.f32 %v2201_v5, %v16915_v14  ;;  %16916 = vst [vmem:[#allocation44_spill] sm:$0xff] %v12741_v0 }
 0x374   :  { %v3299_v35 = vadd.f32 %v3043_v2, %v2508_v52  ;;  %v3298_v39 = vadd.f32 %v3042_v13, %v2507_v50  ;;  %v4044_v60 = vadd.f32 %v3788_v18, %v3253_v51  ;;  %v3787_v12 = vmul.f32 %v16319_v6, %v16910_v38  ;;  %v16919_v38 = vld [vmem:[#allocation240_spill] sm:$0xff]  ;;  %v16925_v50 = vld [vmem:[#allocation126_spill] sm:$0xff] }
 0x375   :  { %v16917_v19 = vmov 4   ;;  %v3834_v36 = vmul.f32 %v16861_v1, %v12741_v0  ;;  %v4086_v26 = vadd.f32 %v3830_v55, %v3295_v53  ;;  %v3833_v31 = vmul.f32 %v16913_v30, %v12741_v0 }
 0x376   :  { %7824 = vset.pattern.permute.xlu1 %v16917_v19  ;;  %v4085_v33 = vadd.f32 %v3829_v8, %v3294_v11  ;;  %v4287_v14 = vmax.f32 %v12672_v7, 0.0  ;;  %v4291_v13 = vmax.f32 %v12680_v61, 0.0  ;;  %v3248_v32 = vadd.f32 %v2992_v54, %v2457_v56  ;;  %v12766_v56 = vpop.permute.xlu0 %3573  ;;  %v12768_v54 = vpop.permute.xlu1 %366 }
 0x377   :  { %3585 = vperm.xlu1 %7824, %v12508_v37   ;;  %v3252_v42 = vadd.f32 %v2996_v29, %v2461_v34  ;;  %v4090_v5 = vadd.f32 %v3834_v36, %v3299_v35  ;;  %v4089_v43 = vadd.f32 %v3833_v31, %v3298_v39  ;;  %v4040_v20 = vadd.f32 %v16918_v47, %v3249_v49  ;;  %v16929_v29 = vld [vmem:[#allocation57_spill] sm:$0xff] }
 0x378   :  { %v12756_v18 = vmul.f32 %v16324_v4, %v16919_v38  ;;  %v16921_v53 = vmax.f32 %v12638_v46, 0.0  ;;  %v4300_v8 = vmax.f32 %v4044_v60, 0.0  ;;  %v12764_v7 = vmul.f32 %v16319_v6, %v16919_v38  ;;  %16924 = vst [vmem:[#allocation198_spill] sm:$0xff] %v12768_v54  ;;  %v16926_v46 = vld [vmem:[#allocation68_spill] sm:$0xff]  ;;  %v16932_v36 = vld [vmem:[#allocation37_spill] sm:$0xff] }
 0x379   :  { %v4043_v37 = vadd.f32 %v3787_v12, %v3252_v42  ;;  %v4342_v61 = vmax.f32 %v4086_v26, 0.0  ;;  %v4346_v2 = vmax.f32 %v4090_v5, 0.0  ;;  %v4341_v39 = vmax.f32 %v4085_v33, 0.0  ;;  %v16938_v5 = vld [vmem:[#allocation215_spill] sm:$0xff] }
 0x37a   :  { %16920 = vst [vmem:[#allocation70_spill] sm:$0xff] %v12756_v18  ;;  %v12760_v55 = vpack.c.bf16 %v4292_v15, %v16921_v53  ;;  %16923 = vst [vmem:[#allocation31_spill] sm:$0xff] %v12764_v7  ;;  %v4345_v52 = vmax.f32 %v4089_v43, 0.0  ;;  %v1418_v63 = vmul.f32 %v16280_v23, %v16925_v50  ;;  %v12774_v15 = vmul.f32 %v16288_v16, %v16926_v46  ;;  %v16941_v53 = vld [vmem:[#allocation205_spill] sm:$0xff] }
 0x37b   :  { %3589 = vperm.xlu1 %7824, %v12544_v48   ;;  %v12777_v60 = vpack.c.bf16 %v4291_v13, %v4287_v14  ;;  %v4039_v51 = vadd.f32 %v16929_v29, %v3248_v32  ;;  %v1419_v45 = vmul.f32 %v16281_v28, %v16925_v50  ;;  %v4506_v34 = vpack.c.bf16 %v4346_v2, %v4342_v61  ;;  %v16937_v32 = vld [vmem:[#allocation147_spill] sm:$0xff]  ;;  %v16943_v2 = vld [vmem:[#allocation8_spill] sm:$0xff] }
 0x37c   :  { %16922 = vst [vmem:[#allocation230_spill] sm:$0xff] %v12760_v55  ;;  %16927 = vst [vmem:[#allocation227_spill] sm:$0xff] %v12774_v15  ;;  %v4505_v11 = vpack.c.bf16 %v4345_v52, %v4341_v39  ;;  %v4296_v49 = vmax.f32 %v4040_v20, 0.0  ;;  %v12784_v35 = vmul.f32 %v16289_v9, %v16926_v46  ;;  %v12788_v12 = vmul.f32 %v16288_v16, %v16905_v58  ;;  %v12812_v20 = vpop.permute.xlu1 %1188  ;;  %v12823_v52 = vpop.permute.xlu0 %3577  ;;  %v12828_v50 = vld [vmem:[%s15313_s0 + $0x1c8] sm:$0xff] }
 0x37d   :  { %16928 = vst [vmem:[#allocation210_spill] sm:$0xff] %v12777_v60  ;;  %v652_v48 = vmul.f32 %v16564_v62, %v16932_v36  ;;  %v4299_v26 = vmax.f32 %v4043_v37, 0.0  ;;  %v12794_v31 = vmul.f32 %v16289_v9, %v16905_v58  ;;  %v12798_v33 = vmul.f32 %v16293_v27, %v16911_v57  ;;  %5199 = vmatprep.mubr.bf16.mxu0 %v4506_v34  ;;  %v16942_v37 = vld [vmem:[#allocation7_spill] sm:$0xff]  ;;  %v16946_v34 = vld [vmem:[#allocation204_spill] sm:$0xff] }
 0x37e   :  { %16930 = vst [vmem:[#allocation202_spill] sm:$0xff] %v12784_v35  ;;  %16931 = vst [vmem:[#allocation51_spill] sm:$0xff] %v12788_v12  ;;  %v12802_v14 = vmul.f32 %v16297_v41, %v16911_v57  ;;  %v12804_v13 = vpack.c.bf16 %v4300_v8, %v4296_v49  ;;  %v1674_v42 = vadd.f32 %v1418_v63, %v16937_v32  ;;  %v16939_v47 = vmov 1   ;;  %5200 = vmatmul.mubr.bf16.gmra.mrb[92].mxu0 %v4505_v11  ;;  %v16944_v63 = vld [vmem:[#allocation134_spill] sm:$0xff] }
 0x37f   :  { %16933 = vst [vmem:[#allocation226_spill] sm:$0xff] %v12794_v31  ;;  %16934 = vst [vmem:[#allocation45_spill] sm:$0xff] %v12798_v33  ;;  %v2209_v43 = vmul.f32 %v16288_v16, %v16938_v5  ;;  %v2210_v58 = vmul.f32 %v16289_v9, %v16938_v5  ;;  %7826 = vset.pattern.permute.xlu1 %v16939_v47  ;;  %v4295_v38 = vmax.f32 %v4039_v51, 0.0  ;;  %v16945_v51 = vld [vmem:[#allocation73_spill] sm:$0xff]  ;;  %5322 = vmatprep.mubr.bf16.mxu0 %v16946_v34  ;;  %v16948_v5 = vld [vmem:[#allocation144_spill] sm:$0xff] }
 0x380   :  { %16935 = vst [vmem:[#allocation195_spill] sm:$0xff] %v12802_v14  ;;  %16936 = vst [vmem:[#allocation181_spill] sm:$0xff] %v12804_v13  ;;  %v1675_v57 = vadd.f32 %v1419_v45, %v16941_v53  ;;  %v12817_v8 = vmul.f32 %v16565_v22, %v16932_v36  ;;  %v654_v61 = vmul.f32 %v16942_v37, %v16932_v36  ;;  %1224 = vperm.xlu1 %7826, %v12828_v50   ;;  %v16949_v13 = vld [vmem:[#allocation40_spill] sm:$0xff]  ;;  %v12862_v55 = vpop.permute.xlu1 %1979  ;;  %v16962_v14 = vld [vmem:[#allocation169_spill] sm:$0xff] }
 0x381   :  { %16940 = vst [vmem:[#allocation115_spill] sm:$0xff] %v12812_v20  ;;  %v655_v39 = vmul.f32 %v16943_v2, %v16932_v36  ;;  %v2214_v46 = vmul.f32 %v16289_v9, %v16944_v63  ;;  %v12834_v29 = vadd.f32 %v16579_v21, %v652_v48  ;;  %v664_v45 = vmul.f32 %v16564_v62, %v16945_v51  ;;  %v16981_v31 = vld [vmem:[#allocation185_spill] sm:$0xff]  ;;  %v16989_v35 = vld [vmem:[#allocation22_spill] sm:$0xff] }
 0x382   :  { %v12839_v11 = vpack.c.bf16 %v4299_v26, %v4295_v38  ;;  %v2213_v49 = vmul.f32 %v16288_v16, %v16944_v63  ;;  %v665_v36 = vmul.f32 %v16565_v22, %v16945_v51  ;;  %v666_v32 = vmul.f32 %v16942_v37, %v16945_v51  ;;  %16950 = vst [vmem:[#allocation220_spill] sm:$0xff] %v12862_v55 }
 0x383   :  { %v667_v48 = vmul.f32 %v16943_v2, %v16945_v51  ;;  %v3005_v53 = vmul.f32 %v16297_v41, %v16948_v5  ;;  %v668_v34 = vmul.f32 %v16564_v62, %v16949_v13  ;;  %v2466_v26 = vadd.f32 %v2210_v58, %v1675_v57  ;;  %v16954_v58 = vld [vmem:[#allocation171_spill] sm:$0xff] }
 0x384   :  { %16947 = vst [vmem:[#allocation117_spill] sm:$0xff] %v12839_v11  ;;  %v2465_v38 = vadd.f32 %v2209_v43, %v1674_v42  ;;  %v3004_v63 = vmul.f32 %v16293_v27, %v16948_v5  ;;  %v669_v11 = vmul.f32 %v16565_v22, %v16949_v13  ;;  %v670_v60 = vmul.f32 %v16942_v37, %v16949_v13 }
 0x385   :  { %v671_v51 = vmul.f32 %v16943_v2, %v16949_v13  ;;  %7827 = vset.pattern.permute.xlu1 %v16547_v10  ;;  %v12865_v0 = vadd.f32 %v16777_v24, %v654_v61  ;;  %v12868_v42 = vadd.f32 %v16779_v44, %v655_v39  ;;  %v12871_v43 = vadd.f32 %v16579_v21, %v664_v45  ;;  %v12884_v61 = vpop.permute.xlu0 %3597  ;;  %v16959_v39 = vld [vmem:[#allocation175_spill] sm:$0xff] }
 0x386   :  { %2011 = vperm.xlu1 %7827, %v12726_v3   ;;  %v2470_v57 = vadd.f32 %v2214_v46, %v16954_v58  ;;  %v12876_v5 = vadd.f32 %v16580_v40, %v665_v36  ;;  %v12879_v13 = vadd.f32 %v16777_v24, %v666_v32  ;;  %v12882_v33 = vadd.f32 %v16779_v44, %v667_v48  ;;  %v16963_v36 = vld [vmem:[#allocation168_spill] sm:$0xff] }
 0x387   :  { %16951 = vst [vmem:[#allocation180_spill] sm:$0xff] %v12865_v0  ;;  %16952 = vst [vmem:[#allocation221_spill] sm:$0xff] %v12868_v42  ;;  %v2469_v42 = vadd.f32 %v2213_v49, %v16959_v39  ;;  %v12888_v45 = vadd.f32 %v16579_v21, %v668_v34  ;;  %v16961_v0 = vld [vmem:[#allocation86_spill] sm:$0xff]  ;;  %v3257_v46 = vadd.f32 %v16962_v14, %v2466_v26  ;;  %v12902_v49 = vpop.permute.xlu1 %1983  ;;  %v16968_v34 = vld [vmem:[#allocation112_spill] sm:$0xff] }
 0x388   :  { %16953 = vst [vmem:[#allocation81_spill] sm:$0xff] %v12871_v43  ;;  %16955 = vst [vmem:[#allocation222_spill] sm:$0xff] %v12876_v5  ;;  %5323 = vmatmul.mubr.bf16.vlgmr.msra.gmra.mrb[0].mxu0 %v16961_v0  ;;  %v3261_v58 = vadd.f32 %v3005_v53, %v2470_v57  ;;  %v3256_v12 = vadd.f32 %v16963_v36, %v2465_v38  ;;  %v12894_v32 = vadd.f32 %v16580_v40, %v669_v11  ;;  %v16969_v0 = vld [vmem:[#allocation139_spill] sm:$0xff]  ;;  %v16971_v11 = vmov 3   ;;  %v16972_v26 = vld [vmem:[#allocation72_spill] sm:$0xff] }
 0x389   :  { %16956 = vst [vmem:[#allocation225_spill] sm:$0xff] %v12879_v13  ;;  %16957 = vst [vmem:[#allocation133_spill] sm:$0xff] %v12882_v33  ;;  %v12897_v48 = vadd.f32 %v16777_v24, %v670_v60  ;;  %v12900_v33 = vadd.f32 %v16779_v44, %v671_v51  ;;  %5332 = vmatprep.mubr.bf16.mxu0 %v16968_v34  ;;  %v3260_v39 = vadd.f32 %v3004_v63, %v2469_v42  ;;  %v16973_v51 = vld [vmem:[#allocation136_spill] sm:$0xff]  ;;  %v16975_v36 = vld [vmem:[#allocation187_spill] sm:$0xff]  ;;  %v17004_v43 = vmov 0  }
 0x38a   :  { %16958 = vst [vmem:[#allocation33_spill] sm:$0xff] %v12884_v61  ;;  %16960 = vst [vmem:[#allocation13_spill] sm:$0xff] %v12888_v45  ;;  %v12907_v14 = vmul.f32 %v8785_v17, %v16969_v0  ;;  %v12911_v53 = vmul.f32 %v16704_v59, %v16969_v0  ;;  %v12915_v60 = vmul.f32 %v16280_v23, %v16969_v0  ;;  %7828 = vset.pattern.permute.xlu1 %v16971_v11  ;;  %v16985_v45 = vld [vmem:[#allocation231_spill] sm:$0xff] }
 0x38b   :  { %16964 = vst [vmem:[#allocation46_spill] sm:$0xff] %v12894_v32  ;;  %16965 = vst [vmem:[#allocation118_spill] sm:$0xff] %v12897_v48  ;;  %v3792_v38 = vmul.f32 %v16324_v4, %v16972_v26  ;;  %v1426_v63 = vmul.f32 %v16280_v23, %v16973_v51  ;;  %v1427_v42 = vmul.f32 %v16281_v28, %v16973_v51  ;;  %2802 = vperm.xlu1 %7828, %v12726_v3   ;;  %v12956_v48 = vpop.permute.xlu0 %3601 }
 0x38c   :  { %16966 = vst [vmem:[#allocation47_spill] sm:$0xff] %v12900_v33  ;;  %16967 = vst [vmem:[#allocation232_spill] sm:$0xff] %v12902_v49  ;;  %v12926_v57 = vmul.f32 %v16281_v28, %v16969_v0  ;;  %v12930_v34 = vmul.f32 %v8785_v17, %v16975_v36  ;;  %v12935_v13 = vmul.f32 %v16704_v59, %v16975_v36  ;;  %v16980_v0 = vld [vmem:[#allocation12_spill] sm:$0xff] }
 0x38d   :  { %16970 = vst [vmem:[#allocation6_spill] sm:$0xff] %v12915_v60  ;;  %v12939_v60 = vmul.f32 %v16280_v23, %v16975_v36  ;;  %v12943_v51 = vmul.f32 %v16281_v28, %v16975_v36  ;;  %v12950_v15 = vmul.f32 %v8785_v17, %v16981_v31  ;;  %v12954_v33 = vmul.f32 %v16704_v59, %v16981_v31  ;;  %v16986_v36 = vld [vmem:[#allocation54_spill] sm:$0xff] }
 0x38e   :  { %16974 = vst [vmem:[#allocation9_spill] sm:$0xff] %v12926_v57  ;;  %16976 = vst [vmem:[#allocation196_spill] sm:$0xff] %v12930_v34  ;;  %v12946_v57 = vadd.f32 %v16980_v0, %v3261_v58  ;;  %v12961_v32 = vadd.f32 %v16985_v45, %v3260_v39  ;;  %v1430_v58 = vmul.f32 %v16280_v23, %v16986_v36 }
 0x38f   :  { %16977 = vst [vmem:[#allocation197_spill] sm:$0xff] %v12935_v13  ;;  %16978 = vst [vmem:[#allocation116_spill] sm:$0xff] %v12939_v60  ;;  %v3791_v60 = vmul.f32 %v16319_v6, %v16972_v26  ;;  %v1431_v0 = vmul.f32 %v16281_v28, %v16986_v36  ;;  %v12974_v7 = vadd.f32 %v1426_v63, %v16989_v35  ;;  %v16990_v26 = vld [vmem:[#allocation155_spill] sm:$0xff]  ;;  %2806 = vperm.xlu1 %7828, %v12828_v50   ;;  %v16992_v36 = vld [vmem:[#allocation60_spill] sm:$0xff] }
 0x390   :  { %16979 = vst [vmem:[#allocation206_spill] sm:$0xff] %v12943_v51  ;;  %16982 = vst [vmem:[#allocation124_spill] sm:$0xff] %v12950_v15  ;;  %v12969_v51 = vmul.f32 %v16280_v23, %v16981_v31  ;;  %v12971_v15 = vpop.permute.xlu1 %2774  ;;  %v1683_v18 = vadd.f32 %v1427_v42, %v16990_v26  ;;  %v12979_v45 = vmul.f32 %v16281_v28, %v16981_v31  ;;  %v16998_v26 = vld [vmem:[#allocation129_spill] sm:$0xff] }
 0x391   :  { %16983 = vst [vmem:[#allocation127_spill] sm:$0xff] %v12954_v33  ;;  %16984 = vst [vmem:[#allocation241_spill] sm:$0xff] %v12956_v48  ;;  %v4048_v33 = vadd.f32 %v3792_v38, %v3257_v46  ;;  %v657_v39 = vmul.f32 %v16565_v22, %v12768_v54  ;;  %v12990_v46 = vmul.f32 %v16704_v59, %v16992_v36  ;;  %v16996_v38 = vld [vmem:[#allocation28_spill] sm:$0xff]  ;;  %v13016_v48 = vpop.permute.xlu0 %2770 }
 0x392   :  { %16987 = vst [vmem:[#allocation132_spill] sm:$0xff] %v12969_v51  ;;  %16988 = vst [vmem:[#allocation216_spill] sm:$0xff] %v12971_v15  ;;  %v12986_v51 = vmul.f32 %v8785_v17, %v16992_v36  ;;  %v12994_v35 = vmul.f32 %v16280_v23, %v16992_v36  ;;  %v656_v31 = vmul.f32 %v16564_v62, %v12768_v54  ;;  %5333 = vmatmul.mubr.bf16.gmra.mrb[4].mxu0 %v16996_v38  ;;  %v17001_v38 = vld [vmem:[#allocation157_spill] sm:$0xff] }
 0x393   :  { %16991 = vst [vmem:[#allocation17_spill] sm:$0xff] %v12979_v45  ;;  %16994 = vst [vmem:[#allocation99_spill] sm:$0xff] %v12990_v46  ;;  %v13001_v50 = vmul.f32 %v16281_v28, %v16992_v36  ;;  %v1464_v63 = vmul.f32 %v8785_v17, %v12812_v20  ;;  %v1465_v42 = vmul.f32 %v16704_v59, %v12812_v20  ;;  %5342 = vmatprep.mubr.bf16.mxu0 %v16998_v26  ;;  %v16999_v45 = vld [vmem:[#allocation233_spill] sm:$0xff]  ;;  %v17000_v46 = vld [vmem:[#allocation234_spill] sm:$0xff] }
 0x394   :  { %16993 = vst [vmem:[#allocation114_spill] sm:$0xff] %v12986_v51  ;;  %16995 = vst [vmem:[#allocation67_spill] sm:$0xff] %v12994_v35  ;;  %v930_v35 = vadd.f32 %v16580_v40, %v12817_v8  ;;  %v1686_v51 = vadd.f32 %v1430_v58, %v16999_v45  ;;  %v1687_v54 = vadd.f32 %v1431_v0, %v17000_v46  ;;  %v4304_v36 = vmax.f32 %v4048_v33, 0.0  ;;  %v13019_v20 = vpop.permute.xlu1 %371  ;;  %v17006_v8 = vld [vmem:[#allocation88_spill] sm:$0xff]  ;;  %v17007_v0 = vld [vmem:[#allocation186_spill] sm:$0xff] }
 0x395   :  { %16997 = vst [vmem:[#allocation23_spill] sm:$0xff] %v13001_v50  ;;  %v2222_v34 = vmul.f32 %v16289_v9, %v17001_v38  ;;  %v17002_v50 = vld [vmem:[#allocation87_spill] sm:$0xff]  ;;  %17003 = vst [vmem:[#allocation154_spill] sm:$0xff] %v13016_v48  ;;  %7829 = vset.pattern.permute.xlu1 %v17004_v43  ;;  %v934_v26 = vadd.f32 %v16580_v40, %v657_v39  ;;  %v2256_v58 = vmul.f32 %v17006_v8, %v12862_v55  ;;  %v13036_v43 = vld [vmem:[%s15313_s0 + $0x1d8] sm:$0xff] }
 0x396   :  { %v2255_v13 = vmul.f32 %v17002_v50, %v12862_v55  ;;  %17005 = vst [vmem:[#allocation201_spill] sm:$0xff] %v13019_v20  ;;  %v4047_v45 = vadd.f32 %v3791_v60, %v3256_v12  ;;  %v13026_v46 = vmul.f32 %v17002_v50, %v17007_v0  ;;  %v13030_v33 = vmul.f32 %v17006_v8, %v17007_v0  ;;  %v17010_v39 = vld [vmem:[#allocation131_spill] sm:$0xff] }
 0x397   :  { %v933_v5 = vadd.f32 %v16579_v21, %v656_v31  ;;  %416 = vperm.xlu1 %7829, %v13036_v43   ;;  %v13040_v55 = vadd.f32 %v17010_v39, %v1683_v18  ;;  %v2221_v12 = vmul.f32 %v16288_v16, %v17001_v38  ;;  %v13046_v60 = vmul.f32 %v16288_v16, %v17007_v0  ;;  %v17013_v38 = vld [vmem:[#allocation92_spill] sm:$0xff] }
 0x398   :  { %17008 = vst [vmem:[#allocation165_spill] sm:$0xff] %v13026_v46  ;;  %17009 = vst [vmem:[#allocation200_spill] sm:$0xff] %v13030_v33  ;;  %v1720_v46 = vadd.f32 %v1464_v63, %v12834_v29  ;;  %v1721_v31 = vadd.f32 %v1465_v42, %v930_v35  ;;  %v17012_v33 = vld [vmem:[#allocation91_spill] sm:$0xff]  ;;  %v2259_v40 = vmul.f32 %v17002_v50, %v12902_v49  ;;  %v13061_v35 = vpop.permute.xlu1 %3561  ;;  %v17015_v63 = vld [vmem:[#allocation53_spill] sm:$0xff] }
 0x399   :  { %17011 = vst [vmem:[#allocation166_spill] sm:$0xff] %v13046_v60  ;;  %v3046_v21 = vmul.f32 %v17012_v33, %v13016_v48  ;;  %v2260_v18 = vmul.f32 %v17006_v8, %v12902_v49  ;;  %v2478_v39 = vadd.f32 %v2222_v34, %v1687_v54  ;;  %v3047_v61 = vmul.f32 %v17013_v38, %v13016_v48  ;;  %v17017_v34 = vld [vmem:[#allocation100_spill] sm:$0xff] }
 0x39a   :  { %v2511_v62 = vadd.f32 %v2255_v13, %v1720_v46  ;;  %v1725_v17 = vadd.f32 %v12911_v53, %v934_v26  ;;  %v2512_v60 = vadd.f32 %v2256_v58, %v1721_v31  ;;  %v3050_v29 = vmul.f32 %v17012_v33, %v12971_v15  ;;  %17014 = vst [vmem:[#allocation238_spill] sm:$0xff] %v13061_v35 }
 0x39b   :  { %7830 = vset.pattern.permute.xlu1 %v16917_v19  ;;  %5343 = vmatmul.mubr.bf16.gmra.mrb[8].mxu0 %v17015_v63  ;;  %v3051_v42 = vmul.f32 %v17013_v38, %v12971_v15  ;;  %v1724_v54 = vadd.f32 %v12907_v14, %v933_v5  ;;  %v4308_v13 = vmax.f32 %v12946_v57, 0.0  ;;  %v13070_v53 = vmul.f32 %v16289_v9, %v17007_v0 }
 0x39c   :  { %3593 = vperm.xlu1 %7830, %v12726_v3   ;;  %5352 = vmatprep.mubr.bf16.mxu0 %v17017_v34  ;;  %v3838_v26 = vmul.f32 %v16861_v1, %v13061_v35  ;;  %v3837_v58 = vmul.f32 %v16913_v30, %v13061_v35  ;;  %v4307_v46 = vmax.f32 %v12961_v32, 0.0  ;;  %v2516_v31 = vadd.f32 %v2260_v18, %v1725_v17  ;;  %v17019_v3 = vld [vmem:[#allocation105_spill] sm:$0xff]  ;;  %v13087_v19 = vpop.permute.xlu1 %3565  ;;  %v17022_v32 = vld [vmem:[#allocation123_spill] sm:$0xff] }
 0x39d   :  { %17016 = vst [vmem:[#allocation106_spill] sm:$0xff] %v13070_v53  ;;  %v2515_v5 = vadd.f32 %v2259_v40, %v1724_v54  ;;  %v13079_v14 = vpack.c.bf16 %v4308_v13, %v4304_v36  ;;  %v2477_v57 = vadd.f32 %v2221_v12, %v1686_v51  ;;  %v3302_v63 = vadd.f32 %v3046_v21, %v2511_v62  ;;  %v17020_v34 = vld [vmem:[#allocation161_spill] sm:$0xff]  ;;  %v13108_v12 = vld [vmem:[%s15313_s0 + $0x1d0] sm:$0xff] }
 0x39e   :  { %v3303_v0 = vadd.f32 %v3047_v61, %v2512_v60  ;;  %v4303_v53 = vmax.f32 %v4047_v45, 0.0  ;;  %v2473_v15 = vadd.f32 %v17019_v3, %v12974_v7  ;;  %v13085_v49 = vmul.f32 %v17002_v50, %v17020_v34  ;;  %17021 = vst [vmem:[#allocation36_spill] sm:$0xff] %v13087_v19  ;;  %v17023_v61 = vld [vmem:[#allocation137_spill] sm:$0xff]  ;;  %v17025_v60 = vld [vmem:[#allocation151_spill] sm:$0xff] }
 0x39f   :  { %17018 = vst [vmem:[#allocation183_spill] sm:$0xff] %v13079_v14  ;;  %v3307_v35 = vadd.f32 %v3051_v42, %v2516_v31  ;;  %v3306_v48 = vadd.f32 %v3050_v29, %v2515_v5  ;;  %v3269_v17 = vadd.f32 %v17022_v32, %v2478_v39  ;;  %v3842_v62 = vmul.f32 %v16861_v1, %v13087_v19  ;;  %v17030_v31 = vld [vmem:[#allocation108_spill] sm:$0xff]  ;;  %v17063_v14 = vld [vmem:[#allocation33_spill] sm:$0xff] }
 0x3a0   :  { %7831 = vset.pattern.permute.xlu1 %v16939_v47  ;;  %v4094_v21 = vadd.f32 %v3838_v26, %v3303_v0  ;;  %v3841_v40 = vmul.f32 %v16913_v30, %v13087_v19  ;;  %v4093_v7 = vadd.f32 %v3837_v58, %v3302_v63  ;;  %v3009_v51 = vmul.f32 %v16297_v41, %v17023_v61  ;;  %v17028_v26 = vld [vmem:[#allocation193_spill] sm:$0xff]  ;;  %v17031_v5 = vld [vmem:[#allocation172_spill] sm:$0xff]  ;;  %v17032_v63 = vld [vmem:[#allocation150_spill] sm:$0xff]  ;;  %v13130_v3 = vpop.permute.xlu1 %1200 }
 0x3a1   :  { %v13099_v36 = vmul.f32 %v17006_v8, %v17020_v34  ;;  %v13103_v45 = vmul.f32 %v16288_v16, %v17020_v34  ;;  %1228 = vperm.xlu1 %7831, %v13108_v12   ;;  %v3268_v18 = vadd.f32 %v17025_v60, %v2477_v57  ;;  %v13114_v39 = vmul.f32 %v16289_v9, %v17020_v34  ;;  %v17035_v32 = vld [vmem:[#allocation176_spill] sm:$0xff] }
 0x3a2   :  { %v4098_v29 = vadd.f32 %v3842_v62, %v3307_v35  ;;  %v4097_v42 = vadd.f32 %v3841_v40, %v3306_v48  ;;  %v13116_v54 = vpack.c.bf16 %v4307_v46, %v4303_v53  ;;  %v3008_v13 = vmul.f32 %v16293_v27, %v17023_v61  ;;  %17033 = vst [vmem:[#allocation63_spill] sm:$0xff] %v13130_v3  ;;  %v17034_v48 = vld [vmem:[#allocation26_spill] sm:$0xff]  ;;  %v17037_v61 = vld [vmem:[#allocation20_spill] sm:$0xff] }
 0x3a3   :  { %17024 = vst [vmem:[#allocation18_spill] sm:$0xff] %v13103_v45  ;;  %17026 = vst [vmem:[#allocation59_spill] sm:$0xff] %v13114_v39  ;;  %v13122_v58 = vmul.f32 %v17002_v50, %v17028_v26  ;;  %5353 = vmatmul.mubr.bf16.gmra.mrb[12].mxu0 %v17030_v31  ;;  %v3800_v57 = vmul.f32 %v16324_v4, %v17031_v5  ;;  %v13128_v0 = vadd.f32 %v17032_v63, %v3269_v17 }
 0x3a4   :  { %17027 = vst [vmem:[#allocation32_spill] sm:$0xff] %v13116_v54  ;;  %5362 = vmatprep.mubr.bf16.mxu0 %v17034_v48  ;;  %v4350_v35 = vmax.f32 %v4094_v21, 0.0  ;;  %v4354_v53 = vmax.f32 %v4098_v29, 0.0  ;;  %v4349_v46 = vmax.f32 %v4093_v7, 0.0  ;;  %v4353_v34 = vmax.f32 %v4097_v42, 0.0 }
 0x3a5   :  { %17029 = vst [vmem:[#allocation89_spill] sm:$0xff] %v13122_v58  ;;  %v626_v62 = vmul.f32 %v16942_v37, %v17035_v32  ;;  %v13137_v40 = vmul.f32 %v17006_v8, %v17028_v26  ;;  %1232 = vperm.xlu1 %7831, %v13036_v43   ;;  %v3265_v17 = vadd.f32 %v3009_v51, %v13040_v55 }
 0x3a6   :  { %v4059_v60 = vadd.f32 %v17037_v61, %v3268_v18  ;;  %v627_v31 = vmul.f32 %v16943_v2, %v17035_v32  ;;  %v4510_v21 = vpack.c.bf16 %v4354_v53, %v4350_v35  ;;  %v4509_v29 = vpack.c.bf16 %v4353_v34, %v4349_v46  ;;  %v17044_v53 = vld [vmem:[#allocation217_spill] sm:$0xff] }
 0x3a7   :  { %17036 = vst [vmem:[#allocation203_spill] sm:$0xff] %v13137_v40  ;;  %v3799_v7 = vmul.f32 %v16319_v6, %v17031_v5  ;;  %v13148_v42 = vmul.f32 %v16288_v16, %v17028_v26  ;;  %v13152_v63 = vmul.f32 %v16289_v9, %v17028_v26  ;;  %v13156_v55 = vmul.f32 %v17002_v50, %v12738_v25 }
 0x3a8   :  { %v3264_v51 = vadd.f32 %v3008_v13, %v2473_v15  ;;  %v13160_v18 = vmul.f32 %v17006_v8, %v12738_v25  ;;  %v13164_v5 = vmul.f32 %v16288_v16, %v12738_v25  ;;  %v13168_v48 = vmul.f32 %v16289_v9, %v12738_v25  ;;  %5209 = vmatprep.mubr.bf16.mxu1 %v4510_v21  ;;  %v13176_v13 = vpop.permute.xlu1 %1987 }
 0x3a9   :  { %17038 = vst [vmem:[#allocation214_spill] sm:$0xff] %v13148_v42  ;;  %17039 = vst [vmem:[#allocation213_spill] sm:$0xff] %v13152_v63  ;;  %v4056_v26 = vadd.f32 %v3800_v57, %v3265_v17  ;;  %v903_v35 = vadd.f32 %v16777_v24, %v626_v62  ;;  %v1434_v46 = vmul.f32 %v16280_v23, %v17044_v53  ;;  %7833 = vset.pattern.permute.xlu1 %v16547_v10  ;;  %v17046_v62 = vld [vmem:[#allocation102_spill] sm:$0xff] }
 0x3aa   :  { %17040 = vst [vmem:[#allocation48_spill] sm:$0xff] %v13156_v55  ;;  %17041 = vst [vmem:[#allocation173_spill] sm:$0xff] %v13160_v18  ;;  %v1435_v15 = vmul.f32 %v16281_v28, %v17044_v53  ;;  %5210 = vmatmul.mubr.bf16.vlgmr.msra.gmra.mrb[0].mxu1 %v4509_v29  ;;  %v4316_v34 = vmax.f32 %v13128_v0, 0.0  ;;  %v904_v25 = vadd.f32 %v16779_v44, %v627_v31  ;;  %2023 = vperm.xlu1 %7833, %v13036_v43   ;;  %v17049_v31 = vld [vmem:[#allocation235_spill] sm:$0xff]  ;;  %v17051_v29 = vld [vmem:[#allocation140_spill] sm:$0xff] }
 0x3ab   :  { %17042 = vst [vmem:[#allocation121_spill] sm:$0xff] %v13164_v5  ;;  %17043 = vst [vmem:[#allocation49_spill] sm:$0xff] %v13168_v48  ;;  %v4055_v57 = vadd.f32 %v3799_v7, %v3264_v51  ;;  %v4315_v32 = vmax.f32 %v4059_v60, 0.0  ;;  %v13183_v17 = vmul.f32 %v16324_v4, %v17046_v62  ;;  %v13187_v61 = vmul.f32 %v16913_v30, %v12766_v56  ;;  %v17054_v48 = vld [vmem:[#allocation163_spill] sm:$0xff]  ;;  %v17055_v18 = vld [vmem:[#allocation113_spill] sm:$0xff] }
 0x3ac   :  { %17045 = vst [vmem:[#allocation25_spill] sm:$0xff] %v13176_v13  ;;  %v13191_v21 = vmul.f32 %v16861_v1, %v12766_v56  ;;  %v13195_v0 = vmul.f32 %v16319_v6, %v12766_v56  ;;  %5363 = vmatmul.mubr.bf16.gmra.mrb[16].mxu0 %v17049_v31  ;;  %v13200_v60 = vmul.f32 %v16319_v6, %v17046_v62  ;;  %v4312_v5 = vmax.f32 %v4056_v26, 0.0  ;;  %v17056_v55 = vld [vmem:[#allocation158_spill] sm:$0xff]  ;;  %v17061_v26 = vld [vmem:[#allocation224_spill] sm:$0xff] }
 0x3ad   :  { %17047 = vst [vmem:[#allocation138_spill] sm:$0xff] %v13183_v17  ;;  %v1438_v7 = vmul.f32 %v16280_v23, %v17051_v29  ;;  %v13206_v51 = vmul.f32 %v16324_v4, %v12766_v56  ;;  %v13210_v53 = vmul.f32 %v16913_v30, %v12823_v52  ;;  %5372 = vmatprep.mubr.bf16.mxu0 %v17054_v48  ;;  %v4311_v48 = vmax.f32 %v4055_v57, 0.0  ;;  %v17065_v57 = vld [vmem:[#allocation79_spill] sm:$0xff]  ;;  %v17076_v17 = vld [vmem:[#allocation81_spill] sm:$0xff] }
 0x3ae   :  { %17048 = vst [vmem:[#allocation143_spill] sm:$0xff] %v13195_v0  ;;  %17050 = vst [vmem:[#allocation42_spill] sm:$0xff] %v13200_v60  ;;  %v1690_v31 = vadd.f32 %v1434_v46, %v17055_v18  ;;  %v1691_v0 = vadd.f32 %v1435_v15, %v17056_v55  ;;  %v1439_v62 = vmul.f32 %v16281_v28, %v17051_v29  ;;  %7834 = vset.pattern.permute.xlu1 %v16971_v11  ;;  %v13232_v55 = vpop.permute.xlu1 %2778 }
 0x3af   :  { %17052 = vst [vmem:[#allocation110_spill] sm:$0xff] %v13206_v51  ;;  %17053 = vst [vmem:[#allocation43_spill] sm:$0xff] %v13210_v53  ;;  %v13219_v54 = vmul.f32 %v16861_v1, %v12823_v52  ;;  %v13223_v56 = vmul.f32 %v16319_v6, %v12823_v52  ;;  %v13227_v51 = vmul.f32 %v16324_v4, %v12823_v52  ;;  %v17062_v52 = vld [vmem:[#allocation82_spill] sm:$0xff]  ;;  %2810 = vperm.xlu1 %7834, %v13108_v12  }
 0x3b0   :  { %v1477_v18 = vmul.f32 %v16704_v59, %v13130_v3  ;;  %17060 = vst [vmem:[#allocation223_spill] sm:$0xff] %v13232_v55  ;;  %v2229_v46 = vmul.f32 %v16288_v16, %v17061_v26  ;;  %v2230_v15 = vmul.f32 %v16289_v9, %v17061_v26  ;;  %v661_v29 = vmul.f32 %v16565_v22, %v13019_v20 }
 0x3b1   :  { %17057 = vst [vmem:[#allocation209_spill] sm:$0xff] %v13219_v54  ;;  %17058 = vst [vmem:[#allocation191_spill] sm:$0xff] %v13223_v56  ;;  %v1476_v58 = vmul.f32 %v17062_v52, %v13130_v3  ;;  %v1694_v40 = vadd.f32 %v1438_v7, %v903_v35  ;;  %v13245_v42 = vmul.f32 %v16913_v30, %v17063_v14  ;;  %v17070_v35 = vld [vmem:[#allocation222_spill] sm:$0xff] }
 0x3b2   :  { %17059 = vst [vmem:[#allocation98_spill] sm:$0xff] %v13227_v51  ;;  %v660_v63 = vmul.f32 %v17065_v57, %v13019_v20  ;;  %v13249_v19 = vpack.c.bf16 %v4316_v34, %v4312_v5  ;;  %v1695_v60 = vadd.f32 %v1439_v62, %v904_v25  ;;  %v13253_v26 = vmul.f32 %v16861_v1, %v17063_v14  ;;  %v17073_v5 = vld [vmem:[#allocation237_spill] sm:$0xff]  ;;  %v17074_v25 = vld [vmem:[#allocation135_spill] sm:$0xff] }
 0x3b3   :  { %17064 = vst [vmem:[#allocation16_spill] sm:$0xff] %v13245_v42  ;;  %v13257_v3 = vmul.f32 %v16319_v6, %v17063_v14  ;;  %v13261_v12 = vmul.f32 %v16324_v4, %v17063_v14  ;;  %v1733_v7 = vadd.f32 %v1477_v18, %v17070_v35  ;;  %v13264_v42 = vpop.permute.xlu1 %2782  ;;  %v13266_v20 = vpack.c.bf16 %v4315_v32, %v4311_v48  ;;  %v17078_v14 = vld [vmem:[#allocation241_spill] sm:$0xff]  ;;  %v17080_v18 = vld [vmem:[#allocation84_spill] sm:$0xff] }
 0x3b4   :  { %17066 = vst [vmem:[#allocation219_spill] sm:$0xff] %v13249_v19  ;;  %17067 = vst [vmem:[#allocation104_spill] sm:$0xff] %v13253_v26  ;;  %v2482_v34 = vadd.f32 %v17073_v5, %v1691_v0  ;;  %v2481_v62 = vadd.f32 %v17074_v25, %v1690_v31  ;;  %v17075_v19 = vld [vmem:[#allocation85_spill] sm:$0xff]  ;;  %v1732_v56 = vadd.f32 %v1476_v58, %v17076_v17  ;;  %v17077_v51 = vmov 0   ;;  %v17081_v0 = vld [vmem:[#allocation146_spill] sm:$0xff] }
 0x3b5   :  { %17068 = vst [vmem:[#allocation27_spill] sm:$0xff] %v13257_v3  ;;  %17069 = vst [vmem:[#allocation52_spill] sm:$0xff] %v13261_v12  ;;  %v938_v26 = vadd.f32 %v17075_v19, %v661_v29  ;;  %7835 = vset.pattern.permute.xlu1 %v17077_v51  ;;  %v2486_v3 = vadd.f32 %v2230_v15, %v1695_v60  ;;  %v2485_v53 = vadd.f32 %v2229_v46, %v1694_v40  ;;  %v13284_v31 = vld [vmem:[%s15313_s0 + $0x1e0] sm:$0xff]  ;;  %v17086_v48 = vld [vmem:[#allocation236_spill] sm:$0xff] }
 0x3b6   :  { %17071 = vst [vmem:[#allocation69_spill] sm:$0xff] %v13264_v42  ;;  %17072 = vst [vmem:[#allocation66_spill] sm:$0xff] %v13266_v20  ;;  %v13275_v12 = vmul.f32 %v16913_v30, %v17078_v14  ;;  %v937_v35 = vadd.f32 %v17080_v18, %v660_v63  ;;  %v3059_v32 = vmul.f32 %v17013_v38, %v13264_v42  ;;  %5373 = vmatmul.mubr.bf16.gmra.mrb[20].mxu0 %v17081_v0  ;;  %v17085_v60 = vld [vmem:[#allocation90_spill] sm:$0xff]  ;;  %v17087_v5 = vld [vmem:[#allocation200_spill] sm:$0xff] }
 0x3b7   :  { %421 = vperm.xlu1 %7835, %v13284_v31   ;;  %v13289_v58 = vmul.f32 %v16861_v1, %v17078_v14  ;;  %v13293_v40 = vmul.f32 %v16319_v6, %v17078_v14  ;;  %v13297_v63 = vmul.f32 %v16324_v4, %v17078_v14  ;;  %v3058_v17 = vmul.f32 %v17012_v33, %v13264_v42  ;;  %v13309_v0 = vpop.permute.xlu1 %386  ;;  %v17088_v14 = vld [vmem:[#allocation197_spill] sm:$0xff] }
 0x3b8   :  { %17079 = vst [vmem:[#allocation218_spill] sm:$0xff] %v13275_v12  ;;  %5382 = vmatprep.mubr.bf16.mxu0 %v17085_v60  ;;  %v3017_v46 = vmul.f32 %v16297_v41, %v17086_v48  ;;  %v2263_v15 = vmul.f32 %v17002_v50, %v13176_v13  ;;  %v2264_v29 = vmul.f32 %v17006_v8, %v13176_v13  ;;  %v17091_v60 = vld [vmem:[#allocation97_spill] sm:$0xff] }
 0x3b9   :  { %17082 = vst [vmem:[#allocation111_spill] sm:$0xff] %v13289_v58  ;;  %17083 = vst [vmem:[#allocation207_spill] sm:$0xff] %v13293_v40  ;;  %v2524_v25 = vadd.f32 %v17087_v5, %v1733_v7  ;;  %v1729_v40 = vadd.f32 %v17088_v14, %v938_v26  ;;  %v17090_v58 = vld [vmem:[#allocation71_spill] sm:$0xff]  ;;  %v13315_v42 = vadd.f32 %v17091_v60, %v2485_v53  ;;  %v17093_v53 = vld [vmem:[#allocation154_spill] sm:$0xff] }
 0x3ba   :  { %17084 = vst [vmem:[#allocation212_spill] sm:$0xff] %v13297_v63  ;;  %v17089_v63 = vld [vmem:[#allocation165_spill] sm:$0xff]  ;;  %v3277_v20 = vadd.f32 %v17090_v58, %v2486_v3  ;;  %v3054_v54 = vmul.f32 %v17012_v33, %v13232_v55  ;;  %v3055_v45 = vmul.f32 %v17013_v38, %v13232_v55  ;;  %v13324_v7 = vld [vmem:[%s15313_s0 + $0x1e8] sm:$0xff]  ;;  %v3016_v3 = vmul.f32 %v16293_v27, %v17086_v48  ;;  %v17096_v60 = vld [vmem:[#allocation96_spill] sm:$0xff] }
 0x3bb   :  { %v2523_v12 = vadd.f32 %v17089_v63, %v1732_v56  ;;  %426 = vperm.xlu1 %7835, %v13324_v7   ;;  %v3315_v26 = vadd.f32 %v3059_v32, %v2524_v25  ;;  %v17092_v56 = vld [vmem:[#allocation196_spill] sm:$0xff]  ;;  %v13332_v58 = vmul.f32 %v16293_v27, %v17093_v53  ;;  %v13336_v5 = vmul.f32 %v16297_v41, %v17093_v53  ;;  %v17097_v25 = vld [vmem:[#allocation142_spill] sm:$0xff] }
 0x3bc   :  { %v1728_v63 = vadd.f32 %v17092_v56, %v937_v35  ;;  %v630_v55 = vmul.f32 %v16942_v37, %v17096_v60  ;;  %v2520_v13 = vadd.f32 %v2264_v29, %v1729_v40  ;;  %v3273_v32 = vadd.f32 %v3017_v46, %v2482_v34 }
 0x3bd   :  { %17094 = vst [vmem:[#allocation145_spill] sm:$0xff] %v13332_v58  ;;  %17095 = vst [vmem:[#allocation125_spill] sm:$0xff] %v13336_v5  ;;  %v3314_v14 = vadd.f32 %v3058_v17, %v2523_v12  ;;  %v631_v35 = vmul.f32 %v16943_v2, %v17096_v60  ;;  %v634_v48 = vmul.f32 %v16942_v37, %v17097_v25  ;;  %v17098_v58 = vld [vmem:[#allocation64_spill] sm:$0xff]  ;;  %v17100_v12 = vmov 4   ;;  %v13350_v17 = vpop.permute.xlu1 %3569 }
 0x3be   :  { %v2519_v39 = vadd.f32 %v2263_v15, %v1728_v63  ;;  %v635_v56 = vmul.f32 %v16943_v2, %v17097_v25  ;;  %v3812_v53 = vmul.f32 %v16324_v4, %v17098_v58  ;;  %v17099_v5 = vld [vmem:[#allocation148_spill] sm:$0xff]  ;;  %17101 = vst [vmem:[#allocation229_spill] sm:$0xff] %v13350_v17  ;;  %v3311_v40 = vadd.f32 %v3055_v45, %v2520_v13  ;;  %v17102_v15 = vld [vmem:[#allocation62_spill] sm:$0xff]  ;;  %v17103_v25 = vld [vmem:[#allocation107_spill] sm:$0xff] }
 0x3bf   :  { %5383 = vmatmul.mubr.bf16.gmra.mrb[24].mxu0 %v17099_v5  ;;  %7837 = vset.pattern.permute.xlu1 %v17100_v12  ;;  %v4106_v34 = vadd.f32 %v13191_v21, %v3315_v26  ;;  %v3846_v29 = vmul.f32 %v16861_v1, %v13350_v17  ;;  %v3845_v63 = vmul.f32 %v16913_v30, %v13350_v17  ;;  %v17104_v17 = vld [vmem:[#allocation239_spill] sm:$0xff]  ;;  %v17107_v1 = vld [vmem:[#allocation10_spill] sm:$0xff] }
 0x3c0   :  { %v3310_v46 = vadd.f32 %v3054_v54, %v2519_v39  ;;  %5392 = vmatprep.mubr.bf16.mxu0 %v17102_v15  ;;  %3605 = vperm.xlu1 %7837, %v13036_v43   ;;  %v4105_v5 = vadd.f32 %v13187_v61, %v3314_v14  ;;  %v907_v60 = vadd.f32 %v16777_v24, %v630_v55 }
 0x3c1   :  { %v1442_v45 = vmul.f32 %v16280_v23, %v17103_v25  ;;  %v1443_v39 = vmul.f32 %v16281_v28, %v17103_v25  ;;  %v3272_v54 = vadd.f32 %v3016_v3, %v2481_v62  ;;  %v908_v13 = vadd.f32 %v16779_v44, %v631_v35  ;;  %v13373_v30 = vpop.permute.xlu1 %1204 }
 0x3c2   :  { %v911_v43 = vadd.f32 %v16777_v24, %v634_v48  ;;  %v4102_v21 = vadd.f32 %v3846_v29, %v3311_v40  ;;  %v4101_v26 = vadd.f32 %v3845_v63, %v3310_v46  ;;  %v912_v15 = vadd.f32 %v16779_v44, %v635_v56  ;;  %v17105_v46 = vld [vmem:[#allocation159_spill] sm:$0xff]  ;;  %v17106_v29 = vld [vmem:[#allocation70_spill] sm:$0xff] }
 0x3c3   :  { %v2233_v61 = vmul.f32 %v16288_v16, %v17104_v17  ;;  %v2234_v55 = vmul.f32 %v16289_v9, %v17104_v17  ;;  %v4068_v14 = vadd.f32 %v3812_v53, %v3277_v20  ;;  %v4362_v3 = vmax.f32 %v4106_v34, 0.0 }
 0x3c4   :  { %7838 = vset.pattern.permute.xlu1 %v16939_v47  ;;  %v4358_v62 = vmax.f32 %v4102_v21, 0.0  ;;  %v4357_v35 = vmax.f32 %v4101_v26, 0.0  ;;  %v4361_v25 = vmax.f32 %v4105_v5, 0.0  ;;  %v1698_v48 = vadd.f32 %v1442_v45, %v907_v60  ;;  %v17108_v5 = vld [vmem:[#allocation50_spill] sm:$0xff]  ;;  %v17109_v60 = vld [vmem:[#allocation31_spill] sm:$0xff]  ;;  %v17111_v26 = vld [vmem:[#allocation156_spill] sm:$0xff] }
 0x3c5   :  { %v1699_v40 = vadd.f32 %v1443_v39, %v908_v13  ;;  %v2238_v56 = vmul.f32 %v16289_v9, %v17105_v46  ;;  %1236 = vperm.xlu1 %7838, %v13284_v31   ;;  %v4064_v63 = vadd.f32 %v17106_v29, %v3273_v32  ;;  %v638_v20 = vmul.f32 %v16942_v37, %v17107_v1  ;;  %v17110_v39 = vld [vmem:[#allocation35_spill] sm:$0xff]  ;;  %v17112_v29 = vld [vmem:[#allocation61_spill] sm:$0xff]  ;;  %v13392_v47 = vpop.permute.xlu1 %1208 }
 0x3c6   :  { %v639_v53 = vmul.f32 %v16943_v2, %v17107_v1  ;;  %v4514_v17 = vpack.c.bf16 %v4362_v3, %v4358_v62  ;;  %v4513_v21 = vpack.c.bf16 %v4361_v25, %v4357_v35  ;;  %v2237_v34 = vmul.f32 %v16288_v16, %v17105_v46  ;;  %v17113_v25 = vld [vmem:[#allocation208_spill] sm:$0xff] }
 0x3c7   :  { %5393 = vmatmul.mubr.bf16.gmra.mrb[28].mxu0 %v17108_v5  ;;  %v13387_v45 = vadd.f32 %v17109_v60, %v3272_v54  ;;  %v1703_v13 = vadd.f32 %v17110_v39, %v912_v15  ;;  %v1702_v32 = vadd.f32 %v17111_v26, %v911_v43  ;;  %v4324_v1 = vmax.f32 %v4068_v14, 0.0  ;;  %v17114_v15 = vld [vmem:[#allocation41_spill] sm:$0xff] }
 0x3c8   :  { %5402 = vmatprep.mubr.bf16.mxu0 %v17112_v29  ;;  %5219 = vmatprep.mubr.bf16.mxu1 %v4514_v17  ;;  %v3811_v62 = vmul.f32 %v16319_v6, %v17098_v58  ;;  %v2490_v3 = vadd.f32 %v2234_v55, %v1699_v40  ;;  %v2489_v35 = vadd.f32 %v2233_v61, %v1698_v48  ;;  %v4320_v58 = vmax.f32 %v4064_v63, 0.0  ;;  %v17115_v61 = vld [vmem:[#allocation74_spill] sm:$0xff]  ;;  %v17116_v48 = vld [vmem:[#allocation39_spill] sm:$0xff] }
 0x3c9   :  { %v3028_v46 = vmul.f32 %v16293_v27, %v17113_v25  ;;  %v3029_v54 = vmul.f32 %v16297_v41, %v17113_v25  ;;  %v1455_v43 = vmul.f32 %v16281_v28, %v17114_v15  ;;  %7839 = vset.pattern.permute.xlu1 %v16547_v10  ;;  %v2494_v5 = vadd.f32 %v2238_v56, %v1703_v13  ;;  %v17119_v13 = vld [vmem:[#allocation30_spill] sm:$0xff] }
 0x3ca   :  { %v915_v17 = vadd.f32 %v16777_v24, %v638_v20  ;;  %v916_v14 = vadd.f32 %v16779_v44, %v639_v53  ;;  %5220 = vmatmul.mubr.bf16.gmra.mrb[4].mxu1 %v4513_v21  ;;  %2027 = vperm.xlu1 %7839, %v13284_v31   ;;  %v3816_v55 = vmul.f32 %v16324_v4, %v17115_v61  ;;  %v17118_v21 = vld [vmem:[#allocation199_spill] sm:$0xff]  ;;  %v7947_v29 = vld [vmem:[%s15318_s5] sm:$0xff]  }
 0x3cb   :  { %v3820_v40 = vmul.f32 %v16324_v4, %v17116_v48  ;;  %v2493_v60 = vadd.f32 %v2237_v34, %v1702_v32  ;;  %v3815_v39 = vmul.f32 %v16319_v6, %v17115_v61  ;;  %v3819_v56 = vmul.f32 %v16319_v6, %v17116_v48  ;;  %v17120_v32 = vld [vmem:[#allocation103_spill] sm:$0xff]  ;;  %v2000_v61 = vpop.permute.xlu1 %1999  ;;  %5971 = vmatpush1.bf16.msra.mxu1 %v7947_v29 }
 0x3cc   :  { %v13414_v20 = vpack.c.bf16 %v4324_v1, %v4320_v58  ;;  %v13417_v53 = vadd.f32 %v3811_v62, %v13315_v42  ;;  %v3281_v63 = vadd.f32 %v17118_v21, %v2490_v3  ;;  %v3280_v26 = vadd.f32 %v17119_v13, %v2489_v35  ;;  %v17121_v3 = vld [vmem:[#allocation34_spill] sm:$0xff]  ;;  %v17122_v58 = vld [vmem:[#allocation93_spill] sm:$0xff]  ;;  %v17123_v13 = vld [vmem:[#allocation55_spill] sm:$0xff]  ;;  %5972 = vmatprep.subr.bf16.mxu1 %v17077_v51 }
 0x3cd   :  { %v1454_v34 = vmul.f32 %v16280_v23, %v17114_v15  ;;  %v1711_v25 = vadd.f32 %v1455_v43, %v17120_v32  ;;  %v3285_v48 = vadd.f32 %v3029_v54, %v2494_v5  ;;  %v3284_v1 = vadd.f32 %v3028_v46, %v2493_v60  ;;  %v7948_v60 = vld [vmem:[%s15318_s5 + $0x8] sm:$0xff]  }
 0x3ce   :  { %17117 = vst [vmem:[#allocation122_spill] sm:$0xff] %v13414_v20  ;;  %v1481_v42 = vmul.f32 %v16704_v59, %v13373_v30  ;;  %2031 = vperm.xlu1 %7839, %v13324_v7   ;;  %v13430_v62 = vadd.f32 %v3816_v55, %v3281_v63  ;;  %v13433_v35 = vadd.f32 %v17121_v3, %v916_v14  ;;  %v17125_v55 = vld [vmem:[#allocation56_spill] sm:$0xff]  ;;  %v17128_v32 = vld [vmem:[#allocation202_spill] sm:$0xff]  ;;  %v17130_v20 = vld [vmem:[#allocation13_spill] sm:$0xff] }
 0x3cf   :  { %v13436_v21 = vadd.f32 %v17122_v58, %v915_v17  ;;  %5403 = vmatmul.mubr.bf16.gmra.mrb[32].mxu0 %v17123_v13  ;;  %v13439_v15 = vadd.f32 %v3820_v40, %v3285_v48  ;;  %v13441_v43 = vadd.f32 %v3815_v39, %v3280_v26  ;;  %v13443_v46 = vadd.f32 %v3819_v56, %v3284_v1  ;;  %v2791_v40 = vpop.permute.xlu0 %2790  ;;  %v17126_v39 = vld [vmem:[#allocation174_spill] sm:$0xff]  ;;  %v17127_v63 = vld [vmem:[#allocation152_spill] sm:$0xff]  ;;  %v2787_v13 = vpop.permute.xlu1 %2786 }
 0x3d0   :  { %v672_v54 = vmul.f32 %v17065_v57, %v13309_v0  ;;  %v673_v5 = vmul.f32 %v16565_v22, %v13309_v0  ;;  %v674_v14 = vmul.f32 %v16942_v37, %v13309_v0  ;;  %v675_v17 = vmul.f32 %v16943_v2, %v13309_v0  ;;  %5412 = vmatprep.mubr.bf16.mxu0 %v17125_v55  ;;  %v17129_v3 = vld [vmem:[#allocation46_spill] sm:$0xff] }
 0x3d1   :  { %17124 = vst [vmem:[#allocation128_spill] sm:$0xff] %v13441_v43  ;;  %v13458_v56 = vadd.f32 %v1454_v34, %v17126_v39  ;;  %v13462_v26 = vmul.f32 %v16288_v16, %v17127_v63  ;;  %v1480_v29 = vmul.f32 %v17062_v52, %v13373_v30  ;;  %v13467_v48 = vadd.f32 %v17128_v32, %v1711_v25 }
 0x3d2   :  { %v2242_v0 = vmul.f32 %v16289_v9, %v17127_v63  ;;  %v1482_v1 = vmul.f32 %v16280_v23, %v13373_v30  ;;  %v1483_v34 = vmul.f32 %v16281_v28, %v13373_v30  ;;  %v1737_v58 = vadd.f32 %v1481_v42, %v17129_v3  ;;  %7841 = vset.pattern.permute.xlu1 %v16971_v11 }
 0x3d3   :  { %v13479_v55 = vmul.f32 %v17012_v33, %v2791_v40  ;;  %v13482_v25 = vmul.f32 %v17013_v38, %v2791_v40  ;;  %v13485_v39 = vmul.f32 %v16293_v27, %v2791_v40  ;;  %v13488_v63 = vmul.f32 %v16297_v41, %v2791_v40  ;;  %2822 = vperm.xlu1 %7841, %v13324_v7   ;;  %v13516_v43 = vpop.permute.xlu1 %391 }
 0x3d4   :  { %v949_v30 = vadd.f32 %v17080_v18, %v672_v54  ;;  %v950_v42 = vadd.f32 %v17075_v19, %v673_v5  ;;  %v951_v32 = vadd.f32 %v16777_v24, %v674_v14  ;;  %v952_v3 = vadd.f32 %v16779_v44, %v675_v17  ;;  %5973 = vmatpush1.bf16.msra.mxu1 %v7948_v60  ;;  %v7949_v54 = vld [vmem:[%s15318_s5 + $0x10] sm:$0xff]   ;;  %v17131_v5 = vld [vmem:[#allocation118_spill] sm:$0xff] }
 0x3d5   :  { %v1736_v22 = vadd.f32 %v1480_v29, %v17130_v20  ;;  %v1484_v57 = vmul.f32 %v17062_v52, %v13392_v47  ;;  %v1485_v40 = vmul.f32 %v16704_v59, %v13392_v47  ;;  %v1486_v11 = vmul.f32 %v16280_v23, %v13392_v47  ;;  %5974 = vmatprep.subr.bf16.mxu1 %v17077_v51  ;;  %v17132_v17 = vld [vmem:[#allocation47_spill] sm:$0xff]  ;;  %v17133_v52 = vld [vmem:[#allocation24_spill] sm:$0xff] }
 0x3d6   :  { %v1738_v14 = vadd.f32 %v1482_v1, %v17131_v5  ;;  %v1739_v60 = vadd.f32 %v1483_v34, %v17132_v17  ;;  %v1487_v20 = vmul.f32 %v16281_v28, %v13392_v47  ;;  %v2528_v29 = vadd.f32 %v13099_v36, %v1737_v58  ;;  %17134 = vst [vmem:[#allocation228_spill] sm:$0xff] %v13516_v43  ;;  %v17135_v58 = vld [vmem:[#allocation65_spill] sm:$0xff] }
 0x3d7   :  { %v2275_v19 = vmul.f32 %v17002_v50, %v2000_v61  ;;  %v2276_v18 = vmul.f32 %v17006_v8, %v2000_v61  ;;  %v2277_v59 = vmul.f32 %v16288_v16, %v2000_v61  ;;  %5413 = vmatmul.mubr.bf16.gmra.mrb[36].mxu0 %v17133_v52  ;;  %7842 = vset.pattern.permute.xlu1 %v17077_v51  ;;  %v13526_v52 = vld [vmem:[%s15313_s0 + $0x1f0] sm:$0xff] }
 0x3d8   :  { %v2278_v1 = vmul.f32 %v16289_v9, %v2000_v61  ;;  %v3062_v34 = vmul.f32 %v17012_v33, %v2787_v13  ;;  %v3063_v47 = vmul.f32 %v17013_v38, %v2787_v13  ;;  %v3065_v36 = vmul.f32 %v16297_v41, %v2787_v13  ;;  %5422 = vmatprep.mubr.bf16.mxu0 %v17135_v58  ;;  %v7950_v61 = vld [vmem:[%s15318_s5 + $0x18] sm:$0xff]   ;;  %v17138_v38 = vld [vmem:[#allocation18_spill] sm:$0xff] }
 0x3d9   :  { %v1740_v5 = vadd.f32 %v1484_v57, %v949_v30  ;;  %v1741_v17 = vadd.f32 %v1485_v40, %v950_v42  ;;  %v1742_v8 = vadd.f32 %v1486_v11, %v951_v32  ;;  %17136 = vst [vmem:[#allocation29_spill] sm:$0xff] %v13526_v52  ;;  %431 = vperm.xlu1 %7842, %v13526_v52   ;;  %v17137_v11 = vld [vmem:[#allocation59_spill] sm:$0xff]  ;;  %v13536_v40 = vpop.permute.xlu1 %396 }
 0x3da   :  { %5975 = vmatpush1.bf16.msra.mxu1 %v7949_v54  ;;  %v1743_v50 = vadd.f32 %v1487_v20, %v952_v3  ;;  %v3064_v43 = vmul.f32 %v16293_v27, %v2787_v13  ;;  %v2527_v58 = vadd.f32 %v13085_v49, %v1736_v22  ;;  %v2530_v57 = vadd.f32 %v17137_v11, %v1739_v60  ;;  %v7951_v49 = vld [vmem:[%s15318_s5 + $0x20] sm:$0xff]   ;;  %v17143_v20 = vld [vmem:[#allocation179_spill] sm:$0xff] }
 0x3db   :  { %5976 = vmatprep.subr.bf16.mxu1 %v17077_v51  ;;  %v2531_v30 = vadd.f32 %v2275_v19, %v1740_v5  ;;  %v2532_v42 = vadd.f32 %v2276_v18, %v1741_v17  ;;  %v2533_v32 = vadd.f32 %v2277_v59, %v1742_v8  ;;  %v2529_v54 = vadd.f32 %v17138_v38, %v1738_v14  ;;  %v17139_v19 = vld [vmem:[#allocation227_spill] sm:$0xff]  ;;  %v17141_v38 = vld [vmem:[#allocation170_spill] sm:$0xff]  ;;  %v17142_v3 = vld [vmem:[#allocation177_spill] sm:$0xff] }
 0x3dc   :  { %v2534_v33 = vadd.f32 %v2278_v1, %v1743_v50  ;;  %v3319_v52 = vadd.f32 %v3063_v47, %v2528_v29  ;;  %v3318_v9 = vadd.f32 %v3062_v34, %v2527_v58  ;;  %v3321_v16 = vadd.f32 %v3065_v36, %v2530_v57  ;;  %v17140_v50 = vld [vmem:[#allocation188_spill] sm:$0xff]  ;;  %v17144_v1 = vld [vmem:[#allocation209_spill] sm:$0xff] }
 0x3dd   :  { %7844 = vset.pattern.permute.xlu1 %v17100_v12  ;;  %v13541_v13 = vadd.f32 %v2242_v0, %v13433_v35  ;;  %v13545_v22 = vadd.f32 %v13462_v26, %v13436_v21  ;;  %v2501_v59 = vadd.f32 %v17139_v19, %v13458_v56  ;;  %v3032_v8 = vmul.f32 %v16293_v27, %v17140_v50  ;;  %v3582_v29 = vpop.permute.xlu1 %3581 }
 0x3de   :  { %5977 = vmatpush1.bf16.msra.mxu1 %v7950_v61  ;;  %v3036_v18 = vmul.f32 %v16293_v27, %v17141_v38  ;;  %v3037_v35 = vmul.f32 %v16297_v41, %v17141_v38  ;;  %3609 = vperm.xlu1 %7844, %v13284_v31   ;;  %v3320_v21 = vadd.f32 %v3064_v43, %v2529_v54  ;;  %v4319_v14 = vmax.f32 %v13387_v45, 0.0  ;;  %v17145_v43 = vld [vmem:[#allocation43_spill] sm:$0xff] }
 0x3df   :  { %v3322_v26 = vadd.f32 %v13479_v55, %v2531_v30  ;;  %v3323_v56 = vadd.f32 %v13482_v25, %v2532_v42  ;;  %v3324_v0 = vadd.f32 %v13485_v39, %v2533_v32  ;;  %5423 = vmatmul.mubr.bf16.gmra.mrb[40].mxu0 %v17142_v3  ;;  %5978 = vmatprep.subr.bf16.mxu1 %v17077_v51  ;;  %v17146_v55 = vld [vmem:[#allocation98_spill] sm:$0xff]  ;;  %v17148_v39 = vld [vmem:[#allocation95_spill] sm:$0xff] }
 0x3e0   :  { %v3325_v60 = vadd.f32 %v13488_v63, %v2534_v33  ;;  %5432 = vmatprep.mubr.bf16.mxu0 %v17143_v20  ;;  %v4110_v31 = vadd.f32 %v17144_v1, %v3319_v52  ;;  %v4109_v34 = vadd.f32 %v17145_v43, %v3318_v9  ;;  %v4112_v47 = vadd.f32 %v17146_v55, %v3321_v16  ;;  %v17147_v25 = vld [vmem:[#allocation94_spill] sm:$0xff]  ;;  %v17149_v52 = vld [vmem:[#allocation191_spill] sm:$0xff]  ;;  %v17156_v43 = vld [vmem:[#allocation141_spill] sm:$0xff] }
 0x3e1   :  { %v3858_v36 = vmul.f32 %v17147_v25, %v3582_v29  ;;  %v3857_v5 = vmul.f32 %v17148_v39, %v3582_v29  ;;  %v3860_v17 = vmul.f32 %v16324_v4, %v3582_v29  ;;  %v3859_v61 = vmul.f32 %v16319_v6, %v3582_v29  ;;  %v7952_v33 = vld [vmem:[%s15318_s5 + $0x28] sm:$0xff]   ;;  %v13584_v38 = vpop.permute.xlu1 %1212  ;;  %v17157_v55 = vld [vmem:[#allocation149_spill] sm:$0xff] }
 0x3e2   :  { %5979 = vmatpush1.bf16.msra.mxu1 %v7951_v49  ;;  %v3033_v63 = vmul.f32 %v16297_v41, %v17140_v50  ;;  %3613 = vperm.xlu1 %7844, %v13324_v7   ;;  %v4323_v16 = vmax.f32 %v13417_v53, 0.0  ;;  %v3293_v9 = vadd.f32 %v3037_v35, %v13467_v48  ;;  %v4111_v58 = vadd.f32 %v17149_v52, %v3320_v21  ;;  %v17151_v48 = vld [vmem:[#allocation184_spill] sm:$0xff] }
 0x3e3   :  { %5980 = vmatprep.subr.bf16.mxu1 %v17077_v51  ;;  %v4114_v11 = vadd.f32 %v3858_v36, %v3323_v56  ;;  %v4113_v57 = vadd.f32 %v3857_v5, %v3322_v26  ;;  %v4116_v30 = vadd.f32 %v3860_v17, %v3325_v60  ;;  %v4115_v42 = vadd.f32 %v3859_v61, %v3324_v0  ;;  %v17153_v56 = vld [vmem:[#allocation178_spill] sm:$0xff]  ;;  %v17154_v60 = vld [vmem:[#allocation109_spill] sm:$0xff]  ;;  %v7953_v17 = vld [vmem:[%s15318_s5 + $0x30] sm:$0xff]  }
 0x3e4   :  { %v4366_v32 = vmax.f32 %v4110_v31, 0.0  ;;  %v4365_v54 = vmax.f32 %v4109_v34, 0.0  ;;  %v3292_v19 = vadd.f32 %v3036_v18, %v2501_v59  ;;  %v4368_v49 = vmax.f32 %v4112_v47, 0.0  ;;  %17150 = vst [vmem:[#allocation21_spill] sm:$0xff] %v13584_v38  ;;  %v13598_v18 = vld [vmem:[%s15313_s0 + $0x1f8] sm:$0xff] }
 0x3e5   :  { %v4370_v50 = vmax.f32 %v4114_v11, 0.0  ;;  %v4369_v7 = vmax.f32 %v4113_v57, 0.0  ;;  %v4372_v3 = vmax.f32 %v4116_v30, 0.0  ;;  %v4371_v53 = vmax.f32 %v4115_v42, 0.0  ;;  %v17162_v42 = vld [vmem:[#allocation42_spill] sm:$0xff] }
 0x3e6   :  { %5981 = vmatpush1.bf16.msra.mxu1 %v7952_v33  ;;  %v650_v35 = vmul.f32 %v16942_v37, %v17151_v48  ;;  %v651_v21 = vmul.f32 %v16943_v2, %v17151_v48  ;;  %v17152_v26 = vmov 1   ;;  %v3824_v0 = vmul.f32 %v16324_v4, %v17153_v56 }
 0x3e7   :  { %7845 = vset.pattern.permute.xlu1 %v17152_v26  ;;  %v3823_v59 = vmul.f32 %v16319_v6, %v17153_v56  ;;  %5433 = vmatmul.mubr.bf16.gmra.mrb[44].mxu0 %v17154_v60  ;;  %v4518_v20 = vpack.c.bf16 %v4370_v50, %v4366_v32  ;;  %v4517_v29 = vpack.c.bf16 %v4369_v7, %v4365_v54  ;;  %v4367_v31 = vmax.f32 %v4111_v58, 0.0  ;;  %v17163_v54 = vld [vmem:[#allocation190_spill] sm:$0xff]  ;;  %v17164_v50 = vld [vmem:[#allocation192_spill] sm:$0xff]  ;;  %v17167_v26 = vld [vmem:[#allocation29_spill] sm:$0xff] }
 0x3e8   :  { %1248 = vperm.xlu1 %7845, %v13598_v18   ;;  %v13602_v1 = vpack.c.bf16 %v4372_v3, %v4368_v49  ;;  %v1459_v34 = vmul.f32 %v16281_v28, %v17156_v43  ;;  %5442 = vmatprep.mubr.bf16.mxu0 %v17157_v55  ;;  %v4328_v47 = vmax.f32 %v13430_v62, 0.0  ;;  %v3289_v36 = vadd.f32 %v3033_v63, %v13541_v13  ;;  %v17159_v62 = vld [vmem:[#allocation182_spill] sm:$0xff] }
 0x3e9   :  { %v3288_v5 = vadd.f32 %v3032_v8, %v13545_v22  ;;  %v1458_v61 = vmul.f32 %v16280_v23, %v17156_v43  ;;  %5229 = vmatprep.mubr.bf16.mxu1 %v4518_v20  ;;  %v4332_v33 = vmax.f32 %v13439_v15, 0.0  ;;  %v4331_v52 = vmax.f32 %v13443_v46, 0.0  ;;  %5982 = vmatprep.subr.bf16.mxu1 %v17077_v51  ;;  %v13624_v8 = vpop.permute.xlu1 %2003  ;;  %v17161_v46 = vld [vmem:[#allocation138_spill] sm:$0xff]  ;;  %v17173_v43 = vld [vmem:[#allocation167_spill] sm:$0xff] }
 0x3ea   :  { %17155 = vst [vmem:[#allocation130_spill] sm:$0xff] %v13602_v1  ;;  %v13617_v58 = vpack.c.bf16 %v4371_v53, %v4367_v31  ;;  %v1462_v13 = vmul.f32 %v16280_v23, %v17159_v62  ;;  %v1463_v22 = vmul.f32 %v16281_v28, %v17159_v62  ;;  %17160 = vst [vmem:[#allocation160_spill] sm:$0xff] %v13624_v8  ;;  %5230 = vmatmul.mubr.bf16.gmra.mrb[8].mxu1 %v4517_v29  ;;  %v17165_v7 = vld [vmem:[#allocation14_spill] sm:$0xff]  ;;  %v17166_v53 = vld [vmem:[#allocation15_spill] sm:$0xff] }
 0x3eb   :  { %v4080_v63 = vadd.f32 %v3824_v0, %v3289_v36  ;;  %v4079_v11 = vadd.f32 %v3823_v59, %v3288_v5  ;;  %v927_v57 = vadd.f32 %v16777_v24, %v650_v35  ;;  %v928_v15 = vadd.f32 %v16779_v44, %v651_v21  ;;  %5983 = vmatpush1.bf16.msra.mxu1 %v7953_v17  ;;  %v17168_v35 = vld [vmem:[#allocation189_spill] sm:$0xff]  ;;  %v17177_v17 = vld [vmem:[#allocation226_spill] sm:$0xff] }
 0x3ec   :  { %17158 = vst [vmem:[#allocation153_spill] sm:$0xff] %v13617_v58  ;;  %7846 = vset.pattern.permute.xlu1 %v16547_v10  ;;  %v4084_v30 = vadd.f32 %v17161_v46, %v3293_v9  ;;  %v4083_v32 = vadd.f32 %v17162_v42, %v3292_v19  ;;  %v1715_v49 = vadd.f32 %v1459_v34, %v17163_v54  ;;  %v17171_v19 = vld [vmem:[#allocation128_spill] sm:$0xff]  ;;  %v17174_v34 = vld [vmem:[#allocation19_spill] sm:$0xff]  ;;  %v17176_v36 = vmov 3  }
 0x3ed   :  { %v2253_v3 = vmul.f32 %v17165_v7, %v17164_v50  ;;  %v2254_v48 = vmul.f32 %v17166_v53, %v17164_v50  ;;  %2035 = vperm.xlu1 %7846, %v17167_v26   ;;  %v1714_v56 = vadd.f32 %v1458_v61, %v17168_v35  ;;  %v13640_v10 = vpack.c.bf16 %v4323_v16, %v4319_v14  ;;  %v13646_v60 = vpop.permute.xlu1 %2007  ;;  %v7954_v31 = vld [vmem:[%s15318_s5 + $0x38] sm:$0xff]   ;;  %v2795_v16 = vpop.permute.xlu0 %2794  ;;  %v17203_v58 = vld [vmem:[#allocation87_spill] sm:$0xff] }
 0x3ee   :  { %v13642_v9 = vpack.c.bf16 %v4332_v33, %v4328_v47  ;;  %v4327_v21 = vmax.f32 %v17171_v19, 0.0  ;;  %5984 = vmatprep.subr.bf16.mxu1 %v17077_v51  ;;  %v1718_v0 = vadd.f32 %v1462_v13, %v927_v57  ;;  %v1719_v59 = vadd.f32 %v1463_v22, %v928_v15  ;;  %17172 = vst [vmem:[#allocation120_spill] sm:$0xff] %v13646_v60  ;;  %v17178_v13 = vld [vmem:[#allocation77_spill] sm:$0xff]  ;;  %v17179_v22 = vld [vmem:[#allocation211_spill] sm:$0xff] }
 0x3ef   :  { %17169 = vst [vmem:[#allocation119_spill] sm:$0xff] %v13640_v10  ;;  %v4336_v20 = vmax.f32 %v4080_v63, 0.0  ;;  %v4335_v29 = vmax.f32 %v4079_v11, 0.0  ;;  %v3040_v45 = vmul.f32 %v16293_v27, %v17173_v43  ;;  %v3041_v14 = vmul.f32 %v16297_v41, %v17173_v43  ;;  %5443 = vmatmul.mubr.bf16.gmra.mrb[48].mxu0 %v17174_v34  ;;  %v17180_v11 = vld [vmem:[#allocation51_spill] sm:$0xff]  ;;  %5985 = vmatpush1.bf16.msra.mxu1 %v7954_v31  ;;  %v17192_v43 = vld [vmem:[#allocation45_spill] sm:$0xff] }
 0x3f0   :  { %17170 = vst [vmem:[#allocation58_spill] sm:$0xff] %v13642_v9  ;;  %v13656_v55 = vpack.c.bf16 %v4331_v52, %v4327_v21  ;;  %v4340_v47 = vmax.f32 %v4084_v30, 0.0  ;;  %v4339_v5 = vmax.f32 %v4083_v32, 0.0  ;;  %v2506_v61 = vadd.f32 %v17177_v17, %v1715_v49  ;;  %5452 = vmatprep.mubr.bf16.mxu0 %v17178_v13  ;;  %v17181_v15 = vld [vmem:[#allocation91_spill] sm:$0xff]  ;;  %v17182_v30 = vld [vmem:[#allocation92_spill] sm:$0xff]  ;;  %v7955_v49 = vld [vmem:[%s15318_s5 + $0x40] sm:$0xff]   ;;  %5986 = vmatprep.subr.bf16.mxu1 %v17077_v51 }
 0x3f1   :  { %7848 = vset.pattern.permute.xlu1 %v17176_v36  ;;  %v2510_v33 = vadd.f32 %v2254_v48, %v1719_v59  ;;  %v2509_v62 = vadd.f32 %v2253_v3, %v1718_v0  ;;  %v3832_v63 = vmul.f32 %v16324_v4, %v17179_v22  ;;  %v2505_v57 = vadd.f32 %v17180_v11, %v1714_v56  ;;  %v13686_v48 = vpop.permute.xlu1 %2798  ;;  %v17188_v56 = vld [vmem:[#allocation228_spill] sm:$0xff]  ;;  %v17189_v19 = vld [vmem:[#allocation79_spill] sm:$0xff]  ;;  %v17193_v36 = vld [vmem:[#allocation82_spill] sm:$0xff] }
 0x3f2   :  { %17175 = vst [vmem:[#allocation194_spill] sm:$0xff] %v13656_v55  ;;  %2826 = vperm.xlu1 %7848, %v17167_v26   ;;  %v3831_v52 = vmul.f32 %v16319_v6, %v17179_v22  ;;  %v13668_v46 = vmul.f32 %v17181_v15, %v2795_v16  ;;  %v13671_v42 = vmul.f32 %v17182_v30, %v2795_v16  ;;  %17187 = vst [vmem:[#allocation57_spill] sm:$0xff] %v13686_v48  ;;  %v17190_v0 = vld [vmem:[#allocation80_spill] sm:$0xff]  ;;  %v17194_v17 = vld [vmem:[#allocation83_spill] sm:$0xff] }
 0x3f3   :  { %v13673_v32 = vpack.c.bf16 %v4340_v47, %v4336_v20  ;;  %v13675_v54 = vpack.c.bf16 %v4339_v5, %v4335_v29  ;;  %v13681_v50 = vmul.f32 %v16293_v27, %v2795_v16  ;;  %v13684_v3 = vmul.f32 %v16297_v41, %v2795_v16  ;;  %v2815_v20 = vpop.permute.xlu0 %2814  ;;  %v17191_v29 = vld [vmem:[#allocation195_spill] sm:$0xff]  ;;  %5987 = vmatpush1.bf16.msra.mxu1 %v7955_v49  ;;  %v17197_v22 = vld [vmem:[#allocation198_spill] sm:$0xff]  ;;  %v17202_v49 = vld [vmem:[#allocation85_spill] sm:$0xff] }
 0x3f4   :  { %v3297_v26 = vadd.f32 %v3041_v14, %v2506_v61  ;;  %v3296_v35 = vadd.f32 %v3040_v45, %v2505_v57  ;;  %v676_v21 = vmul.f32 %v17189_v19, %v17188_v56  ;;  %v677_v59 = vmul.f32 %v17190_v0, %v17188_v56  ;;  %v7956_v13 = vld [vmem:[%s15318_s5 + $0x48] sm:$0xff]   ;;  %5988 = vmatprep.subr.bf16.mxu1 %v17077_v51 }
 0x3f5   :  { %17183 = vst [vmem:[#allocation11_spill] sm:$0xff] %v13673_v32  ;;  %17184 = vst [vmem:[#allocation240_spill] sm:$0xff] %v13675_v54  ;;  %v3301_v31 = vadd.f32 %v17191_v29, %v2510_v33  ;;  %v3300_v34 = vadd.f32 %v17192_v43, %v2509_v62  ;;  %v680_v16 = vmul.f32 %v17189_v19, %v13536_v40  ;;  %v17198_v11 = vld [vmem:[#allocation162_spill] sm:$0xff] }
 0x3f6   :  { %17185 = vst [vmem:[#allocation126_spill] sm:$0xff] %v13681_v50  ;;  %17186 = vst [vmem:[#allocation68_spill] sm:$0xff] %v13684_v3  ;;  %v681_v14 = vmul.f32 %v17190_v0, %v13536_v40  ;;  %2830 = vperm.xlu1 %7848, %v13598_v18   ;;  %v13700_v45 = vadd.f32 %v3832_v63, %v3297_v26  ;;  %v13702_v47 = vadd.f32 %v3831_v52, %v3296_v35  ;;  %v17200_v52 = vld [vmem:[#allocation44_spill] sm:$0xff] }
 0x3f7   :  { %v1488_v5 = vmul.f32 %v17193_v36, %v13584_v38  ;;  %v1489_v61 = vmul.f32 %v17194_v17, %v13584_v38  ;;  %v13709_v33 = vmul.f32 %v17181_v15, %v2815_v20  ;;  %v13712_v62 = vmul.f32 %v17182_v30, %v2815_v20  ;;  %5453 = vmatmul.mubr.bf16.gmra.mrb[52].mxu0 %v17198_v11  ;;  %v17201_v35 = vld [vmem:[#allocation84_spill] sm:$0xff]  ;;  %v13733_v11 = vpop.permute.xlu1 %401 }
 0x3f8   :  { %v658_v63 = vmul.f32 %v16942_v37, %v17197_v22  ;;  %v13721_v57 = vmul.f32 %v16293_v27, %v2815_v20  ;;  %v3836_v26 = vmul.f32 %v16324_v4, %v17200_v52  ;;  %v953_v29 = vadd.f32 %v17201_v35, %v676_v21  ;;  %v17204_v3 = vld [vmem:[#allocation88_spill] sm:$0xff]  ;;  %17206 = vst [vmem:[#allocation205_spill] sm:$0xff] %v13733_v11 }
 0x3f9   :  { %17195 = vst [vmem:[#allocation37_spill] sm:$0xff] %v13709_v33  ;;  %17196 = vst [vmem:[#allocation147_spill] sm:$0xff] %v13712_v62  ;;  %v954_v43 = vadd.f32 %v17202_v49, %v677_v59  ;;  %v2279_v1 = vmul.f32 %v17203_v58, %v13624_v8  ;;  %v2280_v33 = vmul.f32 %v17204_v3, %v13624_v8  ;;  %v17205_v62 = vld [vmem:[#allocation164_spill] sm:$0xff]  ;;  %5989 = vmatpush1.bf16.msra.mxu1 %v7956_v13 }
 0x3fa   :  { %17199 = vst [vmem:[#allocation215_spill] sm:$0xff] %v13721_v57  ;;  %5462 = vmatprep.mubr.bf16.mxu0 %v17205_v62  ;;  %v957_v57 = vadd.f32 %v17201_v35, %v680_v16  ;;  %v958_v54 = vadd.f32 %v17202_v49, %v681_v14  ;;  %7850 = vset.pattern.permute.xlu1 %v17100_v12  ;;  %v2819_v62 = vpop.permute.xlu0 %2818  ;;  %v7957_v16 = vld [vmem:[%s15318_s5 + $0x50] sm:$0xff]  }
 0x3fb   :  { %v13739_v21 = vmul.f32 %v16297_v41, %v2815_v20  ;;  %v3835_v59 = vmul.f32 %v16319_v6, %v17200_v52  ;;  %v659_v50 = vmul.f32 %v16943_v2, %v17197_v22  ;;  %v1744_v32 = vadd.f32 %v1488_v5, %v953_v29  ;;  %3621 = vperm.xlu1 %7850, %v13598_v18  }
 0x3fc   :  { %v1745_v55 = vadd.f32 %v1489_v61, %v954_v43  ;;  %v2283_v12 = vmul.f32 %v17203_v58, %v13646_v60  ;;  %v2284_v20 = vmul.f32 %v17204_v3, %v13646_v60  ;;  %v13754_v14 = vmul.f32 %v17181_v15, %v2819_v62  ;;  %5990 = vmatprep.subr.bf16.mxu1 %v17077_v51  ;;  %v13769_v43 = vpop.permute.xlu1 %3585 }
 0x3fd   :  { %17207 = vst [vmem:[#allocation7_spill] sm:$0xff] %v13739_v21  ;;  %v13756_v22 = vadd.f32 %v3836_v26, %v3301_v31  ;;  %v13760_v18 = vadd.f32 %v16777_v24, %v658_v63  ;;  %v2535_v5 = vadd.f32 %v2279_v1, %v1744_v32  ;;  %v13763_v13 = vmul.f32 %v17182_v30, %v2819_v62  ;;  %v17211_v31 = vld [vmem:[#allocation127_spill] sm:$0xff] }
 0x3fe   :  { %17208 = vst [vmem:[#allocation8_spill] sm:$0xff] %v13754_v14  ;;  %v2536_v61 = vadd.f32 %v2280_v33, %v1745_v55  ;;  %v3074_v52 = vmul.f32 %v17181_v15, %v13686_v48  ;;  %v3075_v29 = vmul.f32 %v17182_v30, %v13686_v48  ;;  %17210 = vst [vmem:[#allocation73_spill] sm:$0xff] %v13769_v43  ;;  %v17212_v14 = vld [vmem:[#allocation124_spill] sm:$0xff]  ;;  %5991 = vmatpush1.bf16.msra.mxu1 %v7957_v16 }
 0x3ff   :  { %17209 = vst [vmem:[#allocation134_spill] sm:$0xff] %v13763_v13  ;;  %v1749_v26 = vadd.f32 %v17211_v31, %v958_v54  ;;  %v1748_v21 = vadd.f32 %v17212_v14, %v957_v57  ;;  %v936_v63 = vadd.f32 %v16779_v44, %v659_v50  ;;  %v3862_v1 = vmul.f32 %v17147_v25, %v13769_v43  ;;  %v7958_v33 = vld [vmem:[%s15318_s5 + $0x58] sm:$0xff]   ;;  %v17213_v13 = vld [vmem:[#allocation115_spill] sm:$0xff] }
 0x400   :  { %v3861_v55 = vmul.f32 %v17148_v39, %v13769_v43  ;;  %v13778_v32 = vadd.f32 %v3835_v59, %v3300_v34  ;;  %v1466_v54 = vmul.f32 %v16280_v23, %v17213_v13  ;;  %v17214_v31 = vld [vmem:[#allocation101_spill] sm:$0xff]  ;;  %v4344_v14 = vmax.f32 %v13700_v45, 0.0  ;;  %5992 = vmatprep.subr.bf16.mxu1 %v17077_v51  ;;  %v17215_v43 = vld [vmem:[#allocation78_spill] sm:$0xff]  ;;  %v407_v45 = vpop.permute.xlu0 %406 }
 0x401   :  { %5463 = vmatmul.mubr.bf16.gmra.mrb[56].mxu0 %v17214_v31  ;;  %v2540_v57 = vadd.f32 %v2284_v20, %v1749_v26  ;;  %v2539_v50 = vadd.f32 %v2283_v12, %v1748_v21  ;;  %v1467_v34 = vmul.f32 %v16281_v28, %v17213_v13  ;;  %v3326_v59 = vadd.f32 %v13668_v46, %v2535_v5  ;;  %v13799_v21 = vpop.permute.xlu1 %3589  ;;  %v17219_v13 = vld [vmem:[#allocation180_spill] sm:$0xff] }
 0x402   :  { %v3327_v16 = vadd.f32 %v13671_v42, %v2536_v61  ;;  %5472 = vmatprep.mubr.bf16.mxu0 %v17215_v43  ;;  %v13794_v48 = vmul.f32 %v16293_v27, %v2819_v62  ;;  %v13797_v31 = vmul.f32 %v16297_v41, %v2819_v62  ;;  %17218 = vst [vmem:[#allocation40_spill] sm:$0xff] %v13799_v21  ;;  %v4348_v26 = vmax.f32 %v13756_v22, 0.0  ;;  %v7959_v62 = vld [vmem:[%s15318_s5 + $0x60] sm:$0xff]  }
 0x403   :  { %v3331_v12 = vadd.f32 %v3075_v29, %v2540_v57  ;;  %v3330_v20 = vadd.f32 %v3074_v52, %v2539_v50  ;;  %v3866_v46 = vmul.f32 %v17147_v25, %v13799_v21  ;;  %v3865_v42 = vmul.f32 %v17148_v39, %v13799_v21  ;;  %5993 = vmatpush1.bf16.msra.mxu1 %v7958_v33  ;;  %v17221_v29 = vld [vmem:[#allocation9_spill] sm:$0xff] }
 0x404   :  { %17216 = vst [vmem:[#allocation204_spill] sm:$0xff] %v13794_v48  ;;  %17217 = vst [vmem:[#allocation144_spill] sm:$0xff] %v13797_v31  ;;  %v4118_v5 = vadd.f32 %v3862_v1, %v3327_v16  ;;  %v4117_v61 = vadd.f32 %v3861_v55, %v3326_v59  ;;  %v1722_v43 = vadd.f32 %v1466_v54, %v17219_v13  ;;  %v17220_v48 = vld [vmem:[#allocation220_spill] sm:$0xff]  ;;  %v4347_v22 = vmax.f32 %v13778_v32, 0.0  ;;  %v17222_v1 = vld [vmem:[#allocation221_spill] sm:$0xff] }
 0x405   :  { %v2257_v52 = vmul.f32 %v17165_v7, %v17220_v48  ;;  %v1727_v57 = vadd.f32 %v17221_v29, %v936_v63  ;;  %5994 = vmatprep.subr.bf16.mxu1 %v17077_v51  ;;  %v1723_v50 = vadd.f32 %v1467_v34, %v17222_v1  ;;  %v688_v55 = vmul.f32 %v17189_v19, %v407_v45  ;;  %v17223_v31 = vld [vmem:[#allocation201_spill] sm:$0xff]  ;;  %v1225_v21 = vpop.permute.xlu1 %1224  ;;  %v7960_v34 = vld [vmem:[%s15318_s5 + $0x68] sm:$0xff]  }
 0x406   :  { %v4122_v33 = vadd.f32 %v3866_v46, %v3331_v12  ;;  %v4121_v59 = vadd.f32 %v3865_v42, %v3330_v20  ;;  %v2258_v16 = vmul.f32 %v17166_v53, %v17220_v48  ;;  %v663_v54 = vmul.f32 %v16943_v2, %v17223_v31  ;;  %v17224_v20 = vld [vmem:[#allocation232_spill] sm:$0xff]  ;;  %v17225_v1 = vld [vmem:[#allocation38_spill] sm:$0xff] }
 0x407   :  { %v689_v13 = vmul.f32 %v17190_v0, %v407_v45  ;;  %v690_v32 = vmul.f32 %v16942_v37, %v407_v45  ;;  %v4374_v63 = vmax.f32 %v4118_v5, 0.0  ;;  %v4373_v60 = vmax.f32 %v4117_v61, 0.0  ;;  %5995 = vmatpush1.bf16.msra.mxu1 %v7959_v62  ;;  %v17226_v61 = vld [vmem:[#allocation230_spill] sm:$0xff] }
 0x408   :  { %v4378_v29 = vmax.f32 %v4122_v33, 0.0  ;;  %v4377_v9 = vmax.f32 %v4121_v59, 0.0  ;;  %v2513_v12 = vadd.f32 %v2257_v52, %v1722_v43  ;;  %v2262_v48 = vmul.f32 %v17166_v53, %v17224_v20  ;;  %5996 = vmatprep.subr.bf16.mxu1 %v17077_v51  ;;  %v17227_v52 = vld [vmem:[#allocation216_spill] sm:$0xff] }
 0x409   :  { %v662_v46 = vmul.f32 %v16942_v37, %v17223_v31  ;;  %v691_v42 = vmul.f32 %v16943_v2, %v407_v45  ;;  %5473 = vmatmul.mubr.bf16.gmra.mrb[60].mxu0 %v17225_v1  ;;  %v2261_v5 = vmul.f32 %v17165_v7, %v17224_v20  ;;  %v4343_v59 = vmax.f32 %v13702_v47, 0.0  ;;  %v17229_v45 = vld [vmem:[#allocation6_spill] sm:$0xff] }
 0x40a   :  { %5482 = vmatprep.mubr.bf16.mxu0 %v17226_v61  ;;  %v4522_v62 = vpack.c.bf16 %v4378_v29, %v4374_v63  ;;  %v4521_v33 = vpack.c.bf16 %v4377_v9, %v4373_v60  ;;  %v2514_v43 = vadd.f32 %v2258_v16, %v1723_v50  ;;  %v3053_v8 = vmul.f32 %v16297_v41, %v17227_v52  ;;  %v7961_v60 = vld [vmem:[%s15318_s5 + $0x70] sm:$0xff]   ;;  %v17232_v16 = vld [vmem:[#allocation145_spill] sm:$0xff]  ;;  %v412_v29 = vpop.permute.xlu0 %411 }
 0x40b   :  { %v13839_v31 = vpack.c.bf16 %v4348_v26, %v4344_v14  ;;  %v1726_v1 = vadd.f32 %v17229_v45, %v13760_v18  ;;  %v3052_v20 = vmul.f32 %v16293_v27, %v17227_v52  ;;  %v940_v61 = vadd.f32 %v16779_v44, %v663_v54  ;;  %5997 = vmatpush1.bf16.msra.mxu1 %v7960_v34  ;;  %v13854_v18 = vpop.permute.xlu1 %2011  ;;  %v17234_v52 = vld [vmem:[#allocation238_spill] sm:$0xff]  ;;  %v17237_v45 = vld [vmem:[#allocation116_spill] sm:$0xff] }
 0x40c   :  { %5239 = vmatprep.mubr.bf16.mxu1 %v4522_v62  ;;  %v13846_v9 = vpack.c.bf16 %v4347_v22, %v4343_v59  ;;  %v939_v47 = vadd.f32 %v16777_v24, %v662_v46  ;;  %v965_v14 = vadd.f32 %v17201_v35, %v688_v55  ;;  %v966_v26 = vadd.f32 %v17202_v49, %v689_v13  ;;  %v17233_v62 = vld [vmem:[#allocation125_spill] sm:$0xff] }
 0x40d   :  { %17228 = vst [vmem:[#allocation171_spill] sm:$0xff] %v13839_v31  ;;  %17231 = vst [vmem:[#allocation86_spill] sm:$0xff] %v13854_v18  ;;  %5240 = vmatmul.mubr.bf16.gmra.mrb[12].mxu1 %v4521_v33  ;;  %v2518_v50 = vadd.f32 %v2262_v48, %v1727_v57  ;;  %v3304_v54 = vadd.f32 %v17232_v16, %v2513_v12  ;;  %v967_v22 = vadd.f32 %v16777_v24, %v690_v32  ;;  %v17235_v12 = vld [vmem:[#allocation206_spill] sm:$0xff]  ;;  %v17240_v16 = vld [vmem:[#allocation36_spill] sm:$0xff] }
 0x40e   :  { %17230 = vst [vmem:[#allocation175_spill] sm:$0xff] %v13846_v9  ;;  %v968_v63 = vadd.f32 %v16779_v44, %v691_v42  ;;  %v2517_v34 = vadd.f32 %v2261_v5, %v1726_v1  ;;  %5998 = vmatprep.subr.bf16.mxu1 %v17077_v51  ;;  %v3305_v46 = vadd.f32 %v17233_v62, %v2514_v43  ;;  %v7962_v5 = vld [vmem:[%s15318_s5 + $0x78] sm:$0xff]   ;;  %v17236_v33 = vld [vmem:[#allocation210_spill] sm:$0xff] }
 0x40f   :  { %v1502_v55 = vmul.f32 %v16280_v23, %v1225_v21  ;;  %v1503_v13 = vmul.f32 %v16281_v28, %v1225_v21  ;;  %v3309_v59 = vadd.f32 %v3053_v8, %v2518_v50  ;;  %v3840_v57 = vmul.f32 %v16324_v4, %v17234_v52  ;;  %5999 = vmatpush1.bf16.msra.mxu1 %v7961_v60  ;;  %v17238_v60 = vld [vmem:[#allocation181_spill] sm:$0xff]  ;;  %v13883_v50 = vpop.permute.xlu1 %2802 }
 0x410   :  { %v3308_v48 = vadd.f32 %v3052_v20, %v2517_v34  ;;  %v3839_v32 = vmul.f32 %v16319_v6, %v17234_v52  ;;  %v13868_v42 = vadd.f32 %v17235_v12, %v940_v61  ;;  %v692_v43 = vmul.f32 %v17189_v19, %v412_v29  ;;  %6000 = vmatprep.subr.bf16.mxu1 %v17077_v51 }
 0x411   :  { %5483 = vmatmul.mubr.bf16.gmra.mrb[64].mxu0 %v17236_v33  ;;  %v693_v8 = vmul.f32 %v17190_v0, %v412_v29  ;;  %v13877_v1 = vadd.f32 %v17237_v45, %v939_v47  ;;  %v1500_v20 = vmul.f32 %v17193_v36, %v1225_v21  ;;  %v1501_v61 = vmul.f32 %v17194_v17, %v1225_v21  ;;  %v17241_v33 = vld [vmem:[#allocation63_spill] sm:$0xff] }
 0x412   :  { %5492 = vmatprep.mubr.bf16.mxu0 %v17238_v60  ;;  %17239 = vst [vmem:[#allocation169_spill] sm:$0xff] %v13883_v50  ;;  %v3844_v34 = vmul.f32 %v16324_v4, %v17240_v16  ;;  %v3843_v62 = vmul.f32 %v16319_v6, %v17240_v16  ;;  %v1758_v52 = vadd.f32 %v1502_v55, %v967_v22 }
 0x413   :  { %v1759_v12 = vadd.f32 %v1503_v13, %v968_v63  ;;  %v694_v47 = vmul.f32 %v16942_v37, %v412_v29  ;;  %v13891_v51 = vmul.f32 %v16943_v2, %v412_v29  ;;  %v1478_v21 = vmul.f32 %v16280_v23, %v17241_v33  ;;  %6001 = vmatpush1.bf16.msra.mxu1 %v7962_v5 }
 0x414   :  { %v1479_v45 = vmul.f32 %v16281_v28, %v17241_v33  ;;  %v684_v60 = vmul.f32 %v17189_v19, %v13733_v11  ;;  %v685_v9 = vmul.f32 %v17190_v0, %v13733_v11  ;;  %v13902_v22 = vadd.f32 %v17201_v35, %v692_v43  ;;  %v2807_v33 = vpop.permute.xlu1 %2806  ;;  %v17244_v43 = vld [vmem:[#allocation213_spill] sm:$0xff] }
 0x415   :  { %v13905_v63 = vadd.f32 %v17202_v49, %v693_v8  ;;  %v13907_v29 = vadd.f32 %v3840_v57, %v3305_v46  ;;  %v13909_v55 = vadd.f32 %v3839_v32, %v3304_v54  ;;  %v1756_v13 = vadd.f32 %v1500_v20, %v965_v14  ;;  %v17247_v57 = vld [vmem:[#allocation133_spill] sm:$0xff] }
 0x416   :  { %17242 = vst [vmem:[#allocation168_spill] sm:$0xff] %v13902_v22  ;;  %v1757_v16 = vadd.f32 %v1501_v61, %v966_v26  ;;  %v13911_v31 = vadd.f32 %v3844_v34, %v3309_v59  ;;  %v13913_v38 = vadd.f32 %v3843_v62, %v3308_v48  ;;  %v3084_v11 = vmul.f32 %v16293_v27, %v2807_v33  ;;  %v17245_v22 = vld [vmem:[#allocation214_spill] sm:$0xff]  ;;  %v17248_v32 = vld [vmem:[#allocation117_spill] sm:$0xff] }
 0x417   :  { %17243 = vst [vmem:[#allocation112_spill] sm:$0xff] %v13905_v63  ;;  %v3085_v5 = vmul.f32 %v16297_v41, %v2807_v33  ;;  %v2550_v10 = vadd.f32 %v17244_v43, %v1759_v12  ;;  %v2549_v8 = vadd.f32 %v17245_v22, %v1758_v52  ;;  %v17246_v63 = vld [vmem:[#allocation225_spill] sm:$0xff]  ;;  %v1735_v54 = vadd.f32 %v1479_v45, %v17247_v57 }
 0x418   :  { %v1734_v46 = vadd.f32 %v1478_v21, %v17246_v63  ;;  %v961_v14 = vadd.f32 %v17201_v35, %v684_v60  ;;  %v962_v26 = vadd.f32 %v17202_v49, %v685_v9  ;;  %v3082_v59 = vmul.f32 %v17181_v15, %v2807_v33  ;;  %v17249_v34 = vld [vmem:[#allocation25_spill] sm:$0xff]  ;;  %v17250_v21 = vld [vmem:[#allocation183_spill] sm:$0xff]  ;;  %v13935_v45 = vpop.permute.xlu1 %416  ;;  %v17253_v63 = vld [vmem:[#allocation52_spill] sm:$0xff] }
 0x419   :  { %v3083_v48 = vmul.f32 %v17182_v30, %v2807_v33  ;;  %5493 = vmatmul.mubr.bf16.gmra.mrb[68].mxu0 %v17248_v32  ;;  %v3341_v20 = vadd.f32 %v3085_v5, %v2550_v10  ;;  %v3340_v61 = vadd.f32 %v3084_v11, %v2549_v8  ;;  %v2265_v62 = vmul.f32 %v17165_v7, %v17249_v34  ;;  %v17251_v60 = vld [vmem:[#allocation203_spill] sm:$0xff]  ;;  %v17252_v10 = vld [vmem:[#allocation89_spill] sm:$0xff] }
 0x41a   :  { %v2266_v52 = vmul.f32 %v17166_v53, %v17249_v34  ;;  %v2287_v12 = vmul.f32 %v17203_v58, %v13854_v18  ;;  %v2288_v9 = vmul.f32 %v17204_v3, %v13854_v18  ;;  %5502 = vmatprep.mubr.bf16.mxu0 %v17250_v21  ;;  %v2548_v22 = vadd.f32 %v17251_v60, %v1757_v16  ;;  %v17255_v5 = vld [vmem:[#allocation27_spill] sm:$0xff]  ;;  %v17258_v21 = vld [vmem:[#allocation114_spill] sm:$0xff] }
 0x41b   :  { %v2547_v11 = vadd.f32 %v17252_v10, %v1756_v13  ;;  %v13940_v33 = vadd.f32 %v17253_v63, %v3341_v20  ;;  %v13943_v43 = vadd.f32 %v17255_v5, %v3340_v61  ;;  %v3078_v8 = vmul.f32 %v17181_v15, %v13883_v50  ;;  %v17257_v32 = vld [vmem:[#allocation99_spill] sm:$0xff] }
 0x41c   :  { %v3079_v57 = vmul.f32 %v17182_v30, %v13883_v50  ;;  %v1753_v34 = vadd.f32 %v17257_v32, %v962_v26  ;;  %v1752_v18 = vadd.f32 %v17258_v21, %v961_v14  ;;  %v13952_v16 = vadd.f32 %v16777_v24, %v694_v47  ;;  %v17259_v10 = vld [vmem:[#allocation223_spill] sm:$0xff]  ;;  %v17261_v14 = vld [vmem:[#allocation106_spill] sm:$0xff] }
 0x41d   :  { %17254 = vst [vmem:[#allocation139_spill] sm:$0xff] %v13940_v33  ;;  %17256 = vst [vmem:[#allocation72_spill] sm:$0xff] %v13943_v43  ;;  %v3339_v13 = vadd.f32 %v3083_v48, %v2548_v22  ;;  %v3338_v60 = vadd.f32 %v3082_v59, %v2547_v11  ;;  %v4352_v20 = vmax.f32 %v13907_v29, 0.0  ;;  %v3057_v61 = vmul.f32 %v16297_v41, %v17259_v10  ;;  %v17260_v33 = vld [vmem:[#allocation69_spill] sm:$0xff]  ;;  %v17262_v47 = vld [vmem:[#allocation166_spill] sm:$0xff]  ;;  %v13963_v48 = vpop.permute.xlu1 %3593 }
 0x41e   :  { %v2544_v63 = vadd.f32 %v2288_v9, %v1753_v34  ;;  %v2543_v5 = vadd.f32 %v2287_v12, %v1752_v18  ;;  %v4356_v43 = vmax.f32 %v13911_v31, 0.0  ;;  %v3061_v50 = vmul.f32 %v16297_v41, %v17260_v33  ;;  %17263 = vst [vmem:[#allocation136_spill] sm:$0xff] %v13963_v48  ;;  %v17264_v18 = vld [vmem:[#allocation32_spill] sm:$0xff] }
 0x41f   :  { %v4355_v26 = vmax.f32 %v13913_v38, 0.0  ;;  %v2526_v32 = vadd.f32 %v17261_v14, %v1735_v54  ;;  %v2525_v21 = vadd.f32 %v17262_v47, %v1734_v46  ;;  %v2522_v22 = vadd.f32 %v2266_v52, %v13868_v42  ;;  %v17265_v12 = vld [vmem:[#allocation104_spill] sm:$0xff]  ;;  %v17267_v52 = vld [vmem:[#allocation219_spill] sm:$0xff] }
 0x420   :  { %v3335_v59 = vadd.f32 %v3079_v57, %v2544_v63  ;;  %v3334_v29 = vadd.f32 %v3078_v8, %v2543_v5  ;;  %v2521_v9 = vadd.f32 %v2265_v62, %v13877_v1  ;;  %v3870_v31 = vmul.f32 %v17147_v25, %v13963_v48  ;;  %v17266_v54 = vld [vmem:[#allocation16_spill] sm:$0xff]  ;;  %v437_v1 = vpop.permute.xlu0 %436  ;;  %v17268_v8 = vld [vmem:[#allocation229_spill] sm:$0xff] }
 0x421   :  { %5503 = vmatmul.mubr.bf16.gmra.mrb[72].mxu0 %v17264_v18  ;;  %v4130_v11 = vadd.f32 %v17265_v12, %v3339_v13  ;;  %v3869_v38 = vmul.f32 %v17148_v39, %v13963_v48  ;;  %v4129_v46 = vadd.f32 %v17266_v54, %v3338_v60  ;;  %v3056_v57 = vmul.f32 %v16293_v27, %v17259_v10  ;;  %v1229_v18 = vpop.permute.xlu1 %1228 }
 0x422   :  { %v3060_v42 = vmul.f32 %v16293_v27, %v17260_v33  ;;  %5512 = vmatprep.mubr.bf16.mxu0 %v17267_v52  ;;  %v3313_v62 = vadd.f32 %v3057_v61, %v2522_v22  ;;  %v3848_v34 = vmul.f32 %v16324_v4, %v17268_v8  ;;  %v4126_v63 = vadd.f32 %v3870_v31, %v3335_v59 }
 0x423   :  { %v4125_v13 = vadd.f32 %v3869_v38, %v3334_v29  ;;  %v712_v5 = vmul.f32 %v17189_v19, %v437_v1  ;;  %v3317_v14 = vadd.f32 %v3061_v50, %v2526_v32  ;;  %v713_v60 = vmul.f32 %v17190_v0, %v437_v1 }
 0x424   :  { %v714_v47 = vmul.f32 %v16942_v37, %v437_v1  ;;  %v715_v10 = vmul.f32 %v16943_v2, %v437_v1  ;;  %v3847_v33 = vmul.f32 %v16319_v6, %v17268_v8  ;;  %v4382_v12 = vmax.f32 %v4126_v63, 0.0 }
 0x425   :  { %v4386_v61 = vmax.f32 %v4130_v11, 0.0  ;;  %v4381_v22 = vmax.f32 %v4125_v13, 0.0  ;;  %v4385_v54 = vmax.f32 %v4129_v46, 0.0  ;;  %v4351_v59 = vmax.f32 %v13909_v55, 0.0  ;;  %v17270_v11 = vld [vmem:[#allocation110_spill] sm:$0xff]  ;;  %v13999_v55 = vpop.permute.xlu1 %1232 }
 0x426   :  { %v4104_v29 = vadd.f32 %v3848_v34, %v3313_v62  ;;  %v3312_v31 = vadd.f32 %v3056_v57, %v2521_v9  ;;  %v3316_v38 = vadd.f32 %v3060_v42, %v2525_v21  ;;  %v972_v50 = vadd.f32 %v16779_v44, %v13891_v51  ;;  %v17271_v13 = vld [vmem:[#allocation66_spill] sm:$0xff]  ;;  %v17276_v62 = vld [vmem:[#allocation143_spill] sm:$0xff] }
 0x427   :  { %v4526_v32 = vpack.c.bf16 %v4386_v61, %v4382_v12  ;;  %v4525_v52 = vpack.c.bf16 %v4385_v54, %v4381_v22  ;;  %v13990_v48 = vpack.c.bf16 %v4356_v43, %v4352_v20  ;;  %v13993_v1 = vadd.f32 %v17201_v35, %v712_v5  ;;  %v1241_v20 = vpop.permute.xlu0 %1240  ;;  %v17275_v57 = vld [vmem:[#allocation122_spill] sm:$0xff] }
 0x428   :  { %v13995_v8 = vpack.c.bf16 %v4355_v26, %v4351_v59  ;;  %v4108_v63 = vadd.f32 %v17270_v11, %v3317_v14  ;;  %v4103_v46 = vadd.f32 %v3847_v33, %v3312_v31  ;;  %v14002_v21 = vadd.f32 %v17202_v49, %v713_v60 }
 0x429   :  { %17269 = vst [vmem:[#allocation187_spill] sm:$0xff] %v13993_v1  ;;  %5513 = vmatmul.mubr.bf16.gmra.mrb[76].mxu0 %v17271_v13  ;;  %5249 = vmatprep.mubr.bf16.mxu1 %v4526_v32  ;;  %v14005_v51 = vadd.f32 %v16777_v24, %v714_v47  ;;  %v14008_v43 = vadd.f32 %v16779_v44, %v715_v10  ;;  %v4360_v42 = vmax.f32 %v4104_v29, 0.0  ;;  %v2024_v31 = vpop.permute.xlu1 %2023 }
 0x42a   :  { %17272 = vst [vmem:[#allocation12_spill] sm:$0xff] %v14002_v21  ;;  %v682_v26 = vmul.f32 %v16942_v37, %v13536_v40  ;;  %v683_v9 = vmul.f32 %v16943_v2, %v13536_v40  ;;  %5522 = vmatprep.mubr.bf16.mxu0 %v17275_v57  ;;  %v4107_v34 = vadd.f32 %v17276_v62, %v3316_v38  ;;  %v4364_v33 = vmax.f32 %v4108_v63, 0.0  ;;  %v17282_v63 = vld [vmem:[#allocation112_spill] sm:$0xff]  ;;  %v17292_v21 = vld [vmem:[#allocation173_spill] sm:$0xff] }
 0x42b   :  { %17273 = vst [vmem:[#allocation185_spill] sm:$0xff] %v14005_v51  ;;  %17274 = vst [vmem:[#allocation231_spill] sm:$0xff] %v14008_v43  ;;  %v1504_v5 = vmul.f32 %v17193_v36, %v1229_v18  ;;  %v1505_v14 = vmul.f32 %v17194_v17, %v1229_v18  ;;  %v1506_v60 = vmul.f32 %v16280_v23, %v1229_v18  ;;  %5250 = vmatmul.mubr.bf16.gmra.mrb[16].mxu1 %v4525_v52  ;;  %v14036_v59 = vpop.permute.xlu0 %1244  ;;  %v17281_v52 = vld [vmem:[#allocation168_spill] sm:$0xff] }
 0x42c   :  { %v1507_v47 = vmul.f32 %v16281_v28, %v1229_v18  ;;  %v678_v10 = vmul.f32 %v16942_v37, %v17188_v56  ;;  %v679_v40 = vmul.f32 %v16943_v2, %v17188_v56  ;;  %v4359_v12 = vmax.f32 %v4103_v46, 0.0 }
 0x42d   :  { %v14025_v61 = vmul.f32 %v17193_v36, %v1241_v20  ;;  %v14028_v22 = vmul.f32 %v17194_v17, %v1241_v20  ;;  %v14031_v54 = vmul.f32 %v16280_v23, %v1241_v20  ;;  %v14034_v18 = vmul.f32 %v16281_v28, %v1241_v20 }
 0x42e   :  { %v959_v29 = vadd.f32 %v16777_v24, %v682_v26  ;;  %v960_v56 = vadd.f32 %v16779_v44, %v683_v9  ;;  %v14040_v38 = vpack.c.bf16 %v4364_v33, %v4360_v42  ;;  %v4363_v32 = vmax.f32 %v4107_v34, 0.0  ;;  %v17285_v34 = vld [vmem:[#allocation119_spill] sm:$0xff] }
 0x42f   :  { %17277 = vst [vmem:[#allocation54_spill] sm:$0xff] %v14025_v61  ;;  %17278 = vst [vmem:[#allocation22_spill] sm:$0xff] %v14028_v22  ;;  %v1760_v11 = vadd.f32 %v1504_v5, %v17281_v52  ;;  %v1761_v46 = vadd.f32 %v1505_v14, %v17282_v63  ;;  %v1762_v13 = vadd.f32 %v1506_v60, %v13952_v16  ;;  %v17286_v5 = vld [vmem:[#allocation21_spill] sm:$0xff]  ;;  %v17287_v60 = vld [vmem:[#allocation160_spill] sm:$0xff]  ;;  %v2811_v52 = vpop.permute.xlu1 %2810 }
 0x430   :  { %17279 = vst [vmem:[#allocation155_spill] sm:$0xff] %v14031_v54  ;;  %17280 = vst [vmem:[#allocation60_spill] sm:$0xff] %v14034_v18  ;;  %v1763_v57 = vadd.f32 %v1507_v47, %v972_v50  ;;  %v955_v20 = vadd.f32 %v16777_v24, %v678_v10  ;;  %v956_v62 = vadd.f32 %v16779_v44, %v679_v40  ;;  %v17288_v10 = vld [vmem:[#allocation58_spill] sm:$0xff]  ;;  %v17289_v40 = vld [vmem:[#allocation17_spill] sm:$0xff] }
 0x431   :  { %v14047_v43 = vpack.c.bf16 %v4363_v32, %v4359_v12  ;;  %v14051_v26 = vmul.f32 %v17193_v36, %v14036_v59  ;;  %v696_v9 = vmul.f32 %v17189_v19, %v13935_v45  ;;  %v697_v42 = vmul.f32 %v17190_v0, %v13935_v45  ;;  %5523 = vmatmul.mubr.bf16.gmra.mrb[80].mxu0 %v17285_v34  ;;  %v17290_v12 = vld [vmem:[#allocation132_spill] sm:$0xff]  ;;  %v17294_v34 = vld [vmem:[#allocation49_spill] sm:$0xff] }
 0x432   :  { %v698_v16 = vmul.f32 %v16942_v37, %v13935_v45  ;;  %v699_v50 = vmul.f32 %v16943_v2, %v13935_v45  ;;  %v1490_v14 = vmul.f32 %v16280_v23, %v17286_v5  ;;  %v2281_v47 = vmul.f32 %v17165_v7, %v17287_v60  ;;  %5532 = vmatprep.mubr.bf16.mxu0 %v17288_v10  ;;  %v17291_v63 = vld [vmem:[#allocation48_spill] sm:$0xff]  ;;  %v17293_v45 = vld [vmem:[#allocation121_spill] sm:$0xff] }
 0x433   :  { %17283 = vst [vmem:[#allocation28_spill] sm:$0xff] %v14047_v43  ;;  %17284 = vst [vmem:[#allocation129_spill] sm:$0xff] %v14051_v26  ;;  %v1751_v33 = vadd.f32 %v17289_v40, %v960_v56  ;;  %v1750_v32 = vadd.f32 %v17290_v12, %v959_v29  ;;  %v2551_v51 = vadd.f32 %v17291_v63, %v1760_v11  ;;  %v17302_v43 = vld [vmem:[#allocation57_spill] sm:$0xff] }
 0x434   :  { %v2552_v1 = vadd.f32 %v17292_v21, %v1761_v46  ;;  %v2553_v26 = vadd.f32 %v17293_v45, %v1762_v13  ;;  %v2554_v18 = vadd.f32 %v17294_v34, %v1763_v57  ;;  %v3086_v54 = vmul.f32 %v17181_v15, %v2811_v52 }
 0x435   :  { %v3087_v22 = vmul.f32 %v17182_v30, %v2811_v52  ;;  %v3088_v61 = vmul.f32 %v16293_v27, %v2811_v52  ;;  %v3089_v10 = vmul.f32 %v16297_v41, %v2811_v52  ;;  %v973_v56 = vadd.f32 %v17201_v35, %v696_v9 }
 0x436   :  { %v974_v29 = vadd.f32 %v17202_v49, %v697_v42  ;;  %v975_v11 = vadd.f32 %v16777_v24, %v698_v16  ;;  %v976_v21 = vadd.f32 %v16779_v44, %v699_v50  ;;  %v3342_v46 = vadd.f32 %v3086_v54, %v2551_v51  ;;  %v14089_v42 = vpop.permute.xlu1 %421  ;;  %v17295_v16 = vld [vmem:[#allocation111_spill] sm:$0xff] }
 0x437   :  { %v3343_v13 = vadd.f32 %v3087_v22, %v2552_v1  ;;  %v3344_v40 = vadd.f32 %v3088_v61, %v2553_v26  ;;  %v3345_v57 = vadd.f32 %v3089_v10, %v2554_v18  ;;  %v1508_v12 = vmul.f32 %v17193_v36, %v13999_v55  ;;  %v17296_v1 = vld [vmem:[#allocation218_spill] sm:$0xff]  ;;  %v17297_v61 = vld [vmem:[#allocation212_spill] sm:$0xff]  ;;  %v17298_v54 = vld [vmem:[#allocation207_spill] sm:$0xff] }
 0x438   :  { %v1509_v63 = vmul.f32 %v17194_v17, %v13999_v55  ;;  %v1510_v52 = vmul.f32 %v16280_v23, %v13999_v55  ;;  %v1511_v9 = vmul.f32 %v16281_v28, %v13999_v55  ;;  %v14095_v51 = vadd.f32 %v17296_v1, %v3342_v46  ;;  %v17299_v10 = vld [vmem:[#allocation194_spill] sm:$0xff]  ;;  %v17301_v1 = vld [vmem:[#allocation11_spill] sm:$0xff] }
 0x439   :  { %v14092_v50 = vadd.f32 %v17295_v16, %v3343_v13  ;;  %v14098_v22 = vadd.f32 %v17297_v61, %v3345_v57  ;;  %v14101_v18 = vadd.f32 %v17298_v54, %v3344_v40  ;;  %v2299_v26 = vmul.f32 %v17203_v58, %v2024_v31  ;;  %5533 = vmatmul.mubr.bf16.gmra.mrb[84].mxu0 %v17299_v10  ;;  %v17300_v16 = vld [vmem:[#allocation120_spill] sm:$0xff] }
 0x43a   :  { %v2300_v45 = vmul.f32 %v17204_v3, %v2024_v31  ;;  %v2301_v55 = vmul.f32 %v17165_v7, %v2024_v31  ;;  %v2302_v34 = vmul.f32 %v17166_v53, %v2024_v31  ;;  %v1491_v46 = vmul.f32 %v16281_v28, %v17286_v5  ;;  %5542 = vmatprep.mubr.bf16.mxu0 %v17301_v1 }
 0x43b   :  { %v1746_v13 = vadd.f32 %v1490_v14, %v955_v20  ;;  %v2285_v57 = vmul.f32 %v17165_v7, %v17300_v16  ;;  %v2286_v40 = vmul.f32 %v17166_v53, %v17300_v16  ;;  %v1764_v61 = vadd.f32 %v1508_v12, %v973_v56  ;;  %v14121_v14 = vpop.permute.xlu1 %426 }
 0x43c   :  { %v1765_v54 = vadd.f32 %v1509_v63, %v974_v29  ;;  %v1766_v30 = vadd.f32 %v1510_v52, %v975_v11  ;;  %v1767_v15 = vadd.f32 %v1511_v9, %v976_v21  ;;  %v2282_v31 = vmul.f32 %v17166_v53, %v17287_v60 }
 0x43d   :  { %v2537_v10 = vadd.f32 %v2281_v47, %v1746_v13  ;;  %v3076_v5 = vmul.f32 %v16293_v27, %v17302_v43  ;;  %v3077_v20 = vmul.f32 %v16297_v41, %v17302_v43  ;;  %v2555_v49 = vadd.f32 %v2299_v26, %v1764_v61  ;;  %v17303_v47 = vld [vmem:[#allocation205_spill] sm:$0xff]  ;;  %v17306_v26 = vld [vmem:[#allocation147_spill] sm:$0xff] }
 0x43e   :  { %v2556_v16 = vadd.f32 %v2300_v45, %v1765_v54  ;;  %v2557_v35 = vadd.f32 %v2301_v55, %v1766_v30  ;;  %v2558_v1 = vadd.f32 %v2302_v34, %v1767_v15  ;;  %v1747_v56 = vadd.f32 %v1491_v46, %v956_v62  ;;  %v17304_v62 = vld [vmem:[#allocation126_spill] sm:$0xff]  ;;  %v17307_v55 = vld [vmem:[#allocation37_spill] sm:$0xff]  ;;  %v17308_v46 = vld [vmem:[#allocation7_spill] sm:$0xff] }
 0x43f   :  { %v14125_v29 = vmul.f32 %v17194_v17, %v14036_v59  ;;  %v2542_v11 = vadd.f32 %v2286_v40, %v1751_v33  ;;  %v2541_v60 = vadd.f32 %v2285_v57, %v1750_v32  ;;  %v686_v21 = vmul.f32 %v16942_v37, %v17303_v47  ;;  %v17305_v32 = vld [vmem:[#allocation240_spill] sm:$0xff]  ;;  %v3606_v9 = vpop.permute.xlu1 %3605  ;;  %v17309_v57 = vld [vmem:[#allocation215_spill] sm:$0xff] }
 0x440   :  { %v687_v12 = vmul.f32 %v16943_v2, %v17303_v47  ;;  %v14133_v43 = vmul.f32 %v16280_v23, %v14036_v59  ;;  %v14137_v15 = vmul.f32 %v16281_v28, %v14036_v59  ;;  %v2538_v30 = vadd.f32 %v2282_v31, %v1747_v56 }
 0x441   :  { %v3328_v63 = vadd.f32 %v17304_v62, %v2537_v10  ;;  %v3333_v52 = vadd.f32 %v3077_v20, %v2542_v11  ;;  %v3332_v33 = vadd.f32 %v3076_v5, %v2541_v60  ;;  %5543 = vmatmul.mubr.bf16.gmra.mrb[88].mxu0 %v17305_v32  ;;  %v3347_v45 = vadd.f32 %v17306_v26, %v2556_v16  ;;  %v17310_v10 = vld [vmem:[#allocation171_spill] sm:$0xff]  ;;  %v17311_v16 = vld [vmem:[#allocation40_spill] sm:$0xff] }
 0x442   :  { %v3346_v34 = vadd.f32 %v17307_v55, %v2555_v49  ;;  %v3349_v13 = vadd.f32 %v17308_v46, %v2558_v1  ;;  %v3348_v40 = vadd.f32 %v17309_v57, %v2557_v35  ;;  %v3881_v61 = vmul.f32 %v17148_v39, %v3606_v9  ;;  %5552 = vmatprep.mubr.bf16.mxu0 %v17310_v10  ;;  %v17312_v57 = vld [vmem:[#allocation86_spill] sm:$0xff] }
 0x443   :  { %v3882_v59 = vmul.f32 %v17147_v25, %v3606_v9  ;;  %v3883_v54 = vmul.f32 %v16319_v6, %v3606_v9  ;;  %v3884_v31 = vmul.f32 %v16324_v4, %v3606_v9  ;;  %v963_v5 = vadd.f32 %v16777_v24, %v686_v21 }
 0x444   :  { %v964_v20 = vadd.f32 %v16779_v44, %v687_v12  ;;  %v3868_v49 = vmul.f32 %v16324_v4, %v17311_v16  ;;  %v3867_v35 = vmul.f32 %v16319_v6, %v17311_v16  ;;  %v4137_v56 = vadd.f32 %v3881_v61, %v3346_v34  ;;  %v14160_v9 = vpop.permute.xlu1 %1236  ;;  %v2040_v61 = vpop.permute.xlu0 %2039  ;;  %v17317_v16 = vld [vmem:[#allocation175_spill] sm:$0xff] }
 0x445   :  { %v4138_v1 = vadd.f32 %v3882_v59, %v3347_v45  ;;  %v4140_v11 = vadd.f32 %v3884_v31, %v3349_v13  ;;  %v4139_v60 = vadd.f32 %v3883_v54, %v3348_v40  ;;  %v4390_v47 = vmax.f32 %v14092_v50, 0.0  ;;  %v17313_v13 = vld [vmem:[#allocation73_spill] sm:$0xff]  ;;  %v17316_v31 = vld [vmem:[#allocation68_spill] sm:$0xff] }
 0x446   :  { %v4389_v62 = vmax.f32 %v14095_v51, 0.0  ;;  %v4392_v32 = vmax.f32 %v14098_v22, 0.0  ;;  %v4391_v21 = vmax.f32 %v14101_v18, 0.0  ;;  %v4393_v26 = vmax.f32 %v4137_v56, 0.0  ;;  %v4605_v40 = vld [vmem:[%s15317_s4] sm:$0x3] }
 0x447   :  { %v4394_v12 = vmax.f32 %v4138_v1, 0.0  ;;  %v4396_v55 = vmax.f32 %v4140_v11, 0.0  ;;  %v4395_v46 = vmax.f32 %v4139_v60, 0.0  ;;  %v2289_v45 = vmul.f32 %v17165_v7, %v17312_v57  ;;  %v17318_v11 = vld [vmem:[#allocation23_spill] sm:$0xff] }
 0x448   :  { %v2290_v34 = vmul.f32 %v17166_v53, %v17312_v57  ;;  %v3864_v50 = vmul.f32 %v16324_v4, %v17313_v13  ;;  %v3863_v51 = vmul.f32 %v16319_v6, %v17313_v13  ;;  %v4529_v18 = vpack.c.bf16 %v4393_v26, %v4389_v62  ;;  %v17319_v57 = vld [vmem:[#allocation169_spill] sm:$0xff]  ;;  %v17321_v26 = vld [vmem:[#allocation75_spill] sm:$0xff] }
 0x449   :  { %v4530_v22 = vpack.c.bf16 %v4394_v12, %v4390_v47  ;;  %v14173_v59 = vpack.c.bf16 %v4396_v55, %v4392_v32  ;;  %v14175_v54 = vpack.c.bf16 %v4395_v46, %v4391_v21  ;;  %v3329_v10 = vadd.f32 %v17316_v31, %v2538_v30  ;;  %5553 = vmatmul.mubr.bf16.gmra.mrb[92].mxu0 %v17317_v16  ;;  %v17320_v32 = vld [vmem:[#allocation67_spill] sm:$0xff]  ;;  %v2028_v12 = vpop.permute.xlu1 %2027 }
 0x44a   :  { %v4124_v1 = vadd.f32 %v3868_v49, %v3333_v52  ;;  %v4123_v56 = vadd.f32 %v3867_v35, %v3332_v33  ;;  %v1755_v60 = vadd.f32 %v17318_v11, %v964_v20  ;;  %v3080_v47 = vmul.f32 %v16293_v27, %v17319_v57  ;;  %5562 = vmatprep.mubr.bf16.mxu0 %v13990_v48  ;;  %v17322_v52 = vld [vmem:[#allocation76_spill] sm:$0xff] }
 0x44b   :  { %17314 = vst [vmem:[#allocation233_spill] sm:$0xff] %v14173_v59  ;;  %17315 = vst [vmem:[#allocation234_spill] sm:$0xff] %v14175_v54  ;;  %v3081_v62 = vmul.f32 %v16297_v41, %v17319_v57  ;;  %5259 = vmatprep.mubr.bf16.mxu1 %v4530_v22  ;;  %v1754_v21 = vadd.f32 %v17320_v32, %v963_v5  ;;  %v4120_v30 = vadd.f32 %v3864_v50, %v3329_v10  ;;  %v17323_v35 = vld [vmem:[#allocation136_spill] sm:$0xff]  ;;  %v3618_v22 = vpop.permute.xlu0 %3617 }
 0x44c   :  { %5260 = vmatmul.mubr.bf16.gmra.mrb[20].mxu1 %v4529_v18  ;;  %v14187_v55 = vrot.slane %v4605_v40, %v17321_v26  ;;  %v14190_v33 = vrot.slane %v4605_v40, %v17322_v52  ;;  %v4119_v20 = vadd.f32 %v3863_v51, %v3328_v63  ;;  %v2546_v49 = vadd.f32 %v2290_v34, %v1755_v60  ;;  %v17332_v52 = vld [vmem:[#allocation139_spill] sm:$0xff] }
 0x44d   :  { %v3872_v46 = vmul.f32 %v16324_v4, %v17323_v35  ;;  %v2545_v13 = vadd.f32 %v2289_v45, %v1754_v21  ;;  %v3871_v48 = vmul.f32 %v16319_v6, %v17323_v35  ;;  %v4380_v5 = vmax.f32 %v4124_v1, 0.0  ;;  %v2032_v51 = vpop.permute.xlu1 %2031 }
 0x44e   :  { %v4379_v31 = vmax.f32 %v4123_v56, 0.0  ;;  %v14197_v50 = vmul.f32 %v17203_v58, %v2040_v61  ;;  %v14200_v18 = vmul.f32 %v17204_v3, %v2040_v61  ;;  %v3337_v40 = vadd.f32 %v3081_v62, %v2546_v49  ;;  %v17333_v49 = vld [vmem:[#allocation72_spill] sm:$0xff] }
 0x44f   :  { %v14203_v63 = vmul.f32 %v17165_v7, %v2040_v61  ;;  %v14206_v34 = vmul.f32 %v17166_v53, %v2040_v61  ;;  %v3336_v45 = vadd.f32 %v3080_v47, %v2545_v13  ;;  %v4376_v10 = vmax.f32 %v4120_v30, 0.0 }
 0x450   :  { %17324 = vst [vmem:[#allocation157_spill] sm:$0xff] %v14197_v50  ;;  %17325 = vst [vmem:[#allocation186_spill] sm:$0xff] %v14200_v18  ;;  %v4375_v16 = vmax.f32 %v4119_v20, 0.0  ;;  %v14209_v1 = vmul.f32 %v17148_v39, %v3618_v22  ;;  %v14212_v56 = vmul.f32 %v17147_v25, %v3618_v22  ;;  %v4128_v11 = vadd.f32 %v3872_v46, %v3337_v40  ;;  %v17336_v18 = vld [vmem:[#allocation28_spill] sm:$0xff] }
 0x451   :  { %17326 = vst [vmem:[#allocation131_spill] sm:$0xff] %v14203_v63  ;;  %17327 = vst [vmem:[#allocation53_spill] sm:$0xff] %v14206_v34  ;;  %v4127_v60 = vadd.f32 %v3871_v48, %v3336_v45  ;;  %v14215_v57 = vmul.f32 %v16319_v6, %v3618_v22  ;;  %v14218_v62 = vmul.f32 %v16324_v4, %v3618_v22  ;;  %5563 = vmatmul.mubr.bf16.gmra.mrb[96].mxu0 %v13995_v8  ;;  %v17334_v45 = vld [vmem:[#allocation84_spill] sm:$0xff] }
 0x452   :  { %17328 = vst [vmem:[#allocation100_spill] sm:$0xff] %v14209_v1  ;;  %17329 = vst [vmem:[#allocation105_spill] sm:$0xff] %v14212_v56  ;;  %v700_v61 = vmul.f32 %v17189_v19, %v14089_v42  ;;  %v701_v47 = vmul.f32 %v17190_v0, %v14089_v42  ;;  %v14225_v32 = vpack.c.bf16 %v4380_v5, %v4376_v10  ;;  %5572 = vmatprep.mubr.bf16.mxu0 %v14040_v38  ;;  %v2823_v5 = vpop.permute.xlu1 %2822 }
 0x453   :  { %17330 = vst [vmem:[#allocation161_spill] sm:$0xff] %v14215_v57  ;;  %17331 = vst [vmem:[#allocation123_spill] sm:$0xff] %v14218_v62  ;;  %v14227_v21 = vpack.c.bf16 %v4379_v31, %v4375_v16  ;;  %v702_v30 = vmul.f32 %v16942_v37, %v14089_v42  ;;  %v704_v26 = vmul.f32 %v17189_v19, %v14121_v14  ;;  %v4388_v20 = vmax.f32 %v17332_v52, 0.0  ;;  %v17335_v16 = vld [vmem:[#allocation85_spill] sm:$0xff] }
 0x454   :  { %v4387_v35 = vmax.f32 %v17333_v49, 0.0  ;;  %v705_v46 = vmul.f32 %v17190_v0, %v14121_v14  ;;  %v706_v8 = vmul.f32 %v16942_v37, %v14121_v14  ;;  %v1512_v13 = vmul.f32 %v17193_v36, %v14160_v9 }
 0x455   :  { %v1513_v48 = vmul.f32 %v17194_v17, %v14160_v9  ;;  %v703_v22 = vmul.f32 %v16943_v2, %v14089_v42  ;;  %v707_v38 = vmul.f32 %v16943_v2, %v14121_v14  ;;  %v4384_v31 = vmax.f32 %v4128_v11, 0.0 }
 0x456   :  { %v4383_v40 = vmax.f32 %v4127_v60, 0.0  ;;  %v977_v10 = vadd.f32 %v17334_v45, %v700_v61  ;;  %v978_v52 = vadd.f32 %v17335_v16, %v701_v47  ;;  %v2303_v49 = vmul.f32 %v17203_v58, %v2028_v12 }
 0x457   :  { %v2304_v57 = vmul.f32 %v17204_v3, %v2028_v12  ;;  %v979_v1 = vadd.f32 %v16777_v24, %v702_v30  ;;  %v981_v62 = vadd.f32 %v17334_v45, %v704_v26  ;;  %v1514_v42 = vmul.f32 %v16280_v23, %v14160_v9 }
 0x458   :  { %v1515_v14 = vmul.f32 %v16281_v28, %v14160_v9  ;;  %v982_v11 = vadd.f32 %v17335_v16, %v705_v46  ;;  %v983_v60 = vadd.f32 %v16777_v24, %v706_v8  ;;  %v1768_v61 = vadd.f32 %v1512_v13, %v977_v10  ;;  %v17339_v10 = vld [vmem:[#allocation54_spill] sm:$0xff] }
 0x459   :  { %v1769_v47 = vadd.f32 %v1513_v48, %v978_v52  ;;  %v980_v56 = vadd.f32 %v16779_v44, %v703_v22  ;;  %v984_v54 = vadd.f32 %v16779_v44, %v707_v38  ;;  %v2305_v30 = vmul.f32 %v17165_v7, %v2028_v12  ;;  %5573 = vmatmul.mubr.bf16.gmra.mrb[100].mxu0 %v17336_v18  ;;  %v432_v48 = vpop.permute.xlu1 %431  ;;  %v17337_v22 = vld [vmem:[#allocation130_spill] sm:$0xff]  ;;  %v17342_v18 = vld [vmem:[#allocation60_spill] sm:$0xff] }
 0x45a   :  { %v2306_v26 = vmul.f32 %v17166_v53, %v2028_v12  ;;  %v2559_v59 = vadd.f32 %v2303_v49, %v1768_v61  ;;  %v2307_v63 = vmul.f32 %v17203_v58, %v2032_v51  ;;  %v14266_v9 = vpack.c.bf16 %v4388_v20, %v4384_v31  ;;  %5582 = vmatprep.mubr.bf16.mxu0 %v17337_v22  ;;  %v17340_v12 = vld [vmem:[#allocation22_spill] sm:$0xff] }
 0x45b   :  { %v2560_v34 = vadd.f32 %v2304_v57, %v1769_v47  ;;  %v1770_v46 = vadd.f32 %v1514_v42, %v979_v1  ;;  %v1771_v8 = vadd.f32 %v1515_v14, %v980_v56  ;;  %v2308_v13 = vmul.f32 %v17204_v3, %v2032_v51  ;;  %v17341_v57 = vld [vmem:[#allocation155_spill] sm:$0xff]  ;;  %v17344_v22 = vld [vmem:[#allocation134_spill] sm:$0xff] }
 0x45c   :  { %v14270_v38 = vpack.c.bf16 %v4387_v35, %v4383_v40  ;;  %v1772_v52 = vadd.f32 %v17339_v10, %v981_v62  ;;  %v1773_v49 = vadd.f32 %v17340_v12, %v982_v11  ;;  %v1774_v61 = vadd.f32 %v17341_v57, %v983_v60  ;;  %v17343_v14 = vld [vmem:[#allocation91_spill] sm:$0xff]  ;;  %v17345_v40 = vld [vmem:[#allocation8_spill] sm:$0xff] }
 0x45d   :  { %v2309_v47 = vmul.f32 %v17165_v7, %v2032_v51  ;;  %v1775_v20 = vadd.f32 %v17342_v18, %v984_v54  ;;  %v2561_v31 = vadd.f32 %v2305_v30, %v1770_v46  ;;  %v2562_v1 = vadd.f32 %v2306_v26, %v1771_v8  ;;  %v17346_v10 = vld [vmem:[#allocation92_spill] sm:$0xff] }
 0x45e   :  { %17338 = vst [vmem:[#allocation137_spill] sm:$0xff] %v14270_v38  ;;  %v2310_v56 = vmul.f32 %v17166_v53, %v2032_v51  ;;  %v2563_v42 = vadd.f32 %v2307_v63, %v1772_v52  ;;  %v3098_v50 = vmul.f32 %v17343_v14, %v2823_v5  ;;  %v3351_v35 = vadd.f32 %v17344_v22, %v2560_v34  ;;  %v3610_v51 = vpop.permute.xlu1 %3609  ;;  %v17347_v52 = vld [vmem:[#allocation153_spill] sm:$0xff] }
 0x45f   :  { %v3350_v38 = vadd.f32 %v17345_v40, %v2559_v59  ;;  %v2564_v62 = vadd.f32 %v2308_v13, %v1773_v49  ;;  %v3099_v11 = vmul.f32 %v17346_v10, %v2823_v5  ;;  %v3100_v60 = vmul.f32 %v16293_v27, %v2823_v5 }
 0x460   :  { %v3101_v12 = vmul.f32 %v16297_v41, %v2823_v5  ;;  %v2565_v57 = vadd.f32 %v2309_v47, %v1774_v61  ;;  %v708_v54 = vmul.f32 %v17189_v19, %v432_v48  ;;  %v709_v30 = vmul.f32 %v17190_v0, %v432_v48  ;;  %v17348_v5 = vld [vmem:[#allocation144_spill] sm:$0xff] }
 0x461   :  { %v710_v63 = vmul.f32 %v16942_v37, %v432_v48  ;;  %v2566_v26 = vadd.f32 %v2310_v56, %v1775_v20  ;;  %v711_v34 = vmul.f32 %v16943_v2, %v432_v48  ;;  %v3885_v59 = vmul.f32 %v17148_v39, %v3610_v51  ;;  %5583 = vmatmul.mubr.bf16.gmra.mrb[104].mxu0 %v17347_v52  ;;  %v17349_v19 = vld [vmem:[#allocation204_spill] sm:$0xff]  ;;  %v5324_v56 = vpop.f32.mrb[0].mxu0 }
 0x462   :  { %v3886_v46 = vmul.f32 %v17147_v25, %v3610_v51  ;;  %v3354_v8 = vadd.f32 %v3098_v50, %v2563_v42  ;;  %v3888_v13 = vmul.f32 %v16324_v4, %v3610_v51  ;;  %v3353_v49 = vadd.f32 %v17348_v5, %v2562_v1  ;;  %5592 = vmatprep.mubr.bf16.mxu0 %v14225_v32  ;;  %v3614_v20 = vpop.permute.xlu1 %3613 }
 0x463   :  { %v14294_v61 = vadd.f32 %v17349_v19, %v2561_v31  ;;  %v3355_v0 = vadd.f32 %v3099_v11, %v2564_v62  ;;  %v14296_v37 = vadd.f32 %v3100_v60, %v2565_v57  ;;  %v3357_v47 = vadd.f32 %v3101_v12, %v2566_v26  ;;  %v5326_v62 = vpop.f32.mrb[1].mxu0 }
 0x464   :  { %v4142_v2 = vadd.f32 %v3886_v46, %v3351_v35  ;;  %v985_v48 = vadd.f32 %v17334_v45, %v708_v54  ;;  %v986_v50 = vadd.f32 %v17335_v16, %v709_v30  ;;  %v987_v18 = vadd.f32 %v16777_v24, %v710_v63  ;;  %v5328_v35 = vpop.f32.mrb[2].mxu0 }
 0x465   :  { %v4141_v42 = vadd.f32 %v3885_v59, %v3350_v38  ;;  %v988_v1 = vadd.f32 %v16779_v44, %v711_v34  ;;  %v3889_v31 = vmul.f32 %v17148_v39, %v3614_v20  ;;  %v3890_v22 = vmul.f32 %v17147_v25, %v3614_v20  ;;  %v5330_v38 = vpop.f32.mrb[3].mxu0 }
 0x466   :  { %v3892_v40 = vmul.f32 %v16324_v4, %v3614_v20  ;;  %v3887_v32 = vmul.f32 %v16319_v6, %v3610_v51  ;;  %v7428_v45 = vadd.f32 %v5324_v56, %v14187_v55  ;;  %v7429_v16 = vadd.f32 %v5326_v62, %v14190_v33  ;;  %v17352_v62 = vld [vmem:[#allocation12_spill] sm:$0xff] }
 0x467   :  { %v4144_v24 = vadd.f32 %v3888_v13, %v3353_v49  ;;  %v7430_v11 = vadd.f32 %v5328_v35, %v14187_v55  ;;  %v4146_v60 = vadd.f32 %v3890_v22, %v3355_v0  ;;  %v4398_v44 = vmax.f32 %v4142_v2, 0.0  ;;  %v1249_v51 = vpop.permute.xlu1 %1248  ;;  %v17350_v2 = vld [vmem:[#allocation129_spill] sm:$0xff]  ;;  %v17351_v22 = vld [vmem:[#allocation187_spill] sm:$0xff] }
 0x468   :  { %v4145_v12 = vadd.f32 %v3889_v31, %v3354_v8  ;;  %v5643_v57 = vmax.f32 %v7428_v45, 0.0  ;;  %v7431_v54 = vadd.f32 %v5330_v38, %v14190_v33  ;;  %v4397_v30 = vmax.f32 %v4141_v42, 0.0 }
 0x469   :  { %v4148_v63 = vadd.f32 %v3892_v40, %v3357_v47  ;;  %v5644_v26 = vmax.f32 %v7429_v16, 0.0  ;;  %v5645_v34 = vmax.f32 %v7430_v11, 0.0  ;;  %v4402_v59 = vmax.f32 %v4146_v60, 0.0  ;;  %5593 = vmatmul.mubr.bf16.gmra.mrb[108].mxu0 %v14227_v21  ;;  %v17354_v16 = vld [vmem:[#allocation231_spill] sm:$0xff] }
 0x46a   :  { %v4401_v46 = vmax.f32 %v4145_v12, 0.0  ;;  %v5646_v52 = vmax.f32 %v7431_v54, 0.0  ;;  %v1524_v5 = vmul.f32 %v17193_v36, %v1249_v51  ;;  %v1525_v13 = vmul.f32 %v17194_v17, %v1249_v51  ;;  %5602 = vmatprep.mubr.bf16.mxu0 %v14266_v9  ;;  %v5334_v36 = vpop.f32.mrb[4].mxu0 }
 0x46b   :  { %v1526_v49 = vmul.f32 %v16280_v23, %v1249_v51  ;;  %v14315_v8 = vpack.c.bf16 %v5645_v34, %v5643_v57  ;;  %v1527_v19 = vmul.f32 %v16281_v28, %v1249_v51  ;;  %v4534_v0 = vpack.c.bf16 %v4402_v59, %v4398_v44  ;;  %v5336_v9 = vpop.f32.mrb[5].mxu0  ;;  %v17356_v34 = vld [vmem:[#allocation186_spill] sm:$0xff]  ;;  %v17357_v51 = vld [vmem:[#allocation131_spill] sm:$0xff] }
 0x46c   :  { %v4533_v47 = vpack.c.bf16 %v4401_v46, %v4397_v30  ;;  %v1776_v56 = vadd.f32 %v17350_v2, %v985_v48  ;;  %v3891_v42 = vmul.f32 %v16319_v6, %v3614_v20  ;;  %v14321_v31 = vpack.c.bf16 %v5646_v52, %v5644_v26  ;;  %v14330_v48 = vld [vmem:[%s15320_s7] sm:$0xff]  }
 0x46d   :  { %v4404_v17 = vmax.f32 %v4148_v63, 0.0  ;;  %v1777_v23 = vadd.f32 %v14125_v29, %v986_v50  ;;  %v1778_v21 = vadd.f32 %v14133_v43, %v987_v18  ;;  %v1780_v40 = vadd.f32 %v1524_v5, %v17351_v22  ;;  %5269 = vmatprep.mubr.bf16.mxu1 %v4534_v0  ;;  %v17353_v20 = vld [vmem:[#allocation185_spill] sm:$0xff]  ;;  %v2036_v29 = vpop.permute.xlu1 %2035  ;;  %v5338_v43 = vpop.f32.mrb[6].mxu0  ;;  %7316 = vmatprep.subr.bf16.mxu1 %v14330_v48 }
 0x46e   :  { %v1781_v28 = vadd.f32 %v1525_v13, %v17352_v62  ;;  %v1782_v45 = vadd.f32 %v1526_v49, %v17353_v20  ;;  %v1783_v35 = vadd.f32 %v1527_v19, %v17354_v16  ;;  %v7432_v11 = vadd.f32 %v5334_v36, %v14187_v55  ;;  %5270 = vmatmul.mubr.bf16.gmra.mrb[24].mxu1 %v4533_v47  ;;  %v5340_v44 = vpop.f32.mrb[7].mxu0  ;;  %v17355_v26 = vld [vmem:[#allocation157_spill] sm:$0xff] }
 0x46f   :  { %v4400_v50 = vmax.f32 %v4144_v24, 0.0  ;;  %v1779_v18 = vadd.f32 %v14137_v15, %v988_v1  ;;  %v2311_v38 = vmul.f32 %v17203_v58, %v2036_v29  ;;  %v7433_v60 = vadd.f32 %v5336_v9, %v14190_v33  ;;  %v17360_v0 = vld [vmem:[#allocation233_spill] sm:$0xff]  ;;  %v5344_v36 = vpop.f32.mrb[8].mxu0 }
 0x470   :  { %v4143_v12 = vadd.f32 %v3887_v32, %v14294_v61  ;;  %v2312_v57 = vmul.f32 %v17204_v3, %v2036_v29  ;;  %v7434_v54 = vadd.f32 %v5338_v43, %v14187_v55  ;;  %v4147_v63 = vadd.f32 %v3891_v42, %v14296_v37  ;;  %v17358_v61 = vld [vmem:[#allocation53_spill] sm:$0xff] }
 0x471   :  { %v4536_v30 = vpack.c.bf16 %v4404_v17, %v4400_v50  ;;  %v2571_v24 = vadd.f32 %v17355_v26, %v1780_v40  ;;  %v2572_v15 = vadd.f32 %v17356_v34, %v1781_v28  ;;  %v2314_v58 = vmul.f32 %v17166_v53, %v2036_v29  ;;  %v17359_v3 = vld [vmem:[#allocation137_spill] sm:$0xff]  ;;  %v2827_v19 = vpop.permute.xlu1 %2826  ;;  %v17361_v34 = vld [vmem:[#allocation234_spill] sm:$0xff] }
 0x472   :  { %v7435_v1 = vadd.f32 %v5340_v44, %v14190_v33  ;;  %v2573_v59 = vadd.f32 %v17357_v51, %v1782_v45  ;;  %v2574_v32 = vadd.f32 %v17358_v61, %v1783_v35  ;;  %v5647_v46 = vmax.f32 %v7432_v11, 0.0  ;;  %5603 = vmatmul.mubr.bf16.gmra.mrb[112].mxu0 %v17359_v3 }
 0x473   :  { %v5649_v52 = vmax.f32 %v7434_v54, 0.0  ;;  %v2313_v5 = vmul.f32 %v17165_v7, %v2036_v29  ;;  %v2567_v13 = vadd.f32 %v2311_v38, %v1776_v56  ;;  %v5648_v37 = vmax.f32 %v7433_v60, 0.0  ;;  %5612 = vmatprep.mubr.bf16.mxu0 %v17360_v0  ;;  %v5346_v56 = vpop.f32.mrb[9].mxu0 }
 0x474   :  { %v5650_v49 = vmax.f32 %v7435_v1, 0.0  ;;  %v2568_v47 = vadd.f32 %v2312_v57, %v1777_v23  ;;  %v3102_v2 = vmul.f32 %v17343_v14, %v2827_v19  ;;  %v3103_v42 = vmul.f32 %v17346_v10, %v2827_v19  ;;  %v5348_v9 = vpop.f32.mrb[10].mxu0  ;;  %v17362_v1 = vld [vmem:[#allocation105_spill] sm:$0xff] }
 0x475   :  { %v14352_v53 = vpack.c.bf16 %v5649_v52, %v5647_v46  ;;  %v2570_v17 = vadd.f32 %v2314_v58, %v1779_v18  ;;  %v3105_v40 = vmul.f32 %v16297_v41, %v2827_v19  ;;  %v7436_v7 = vadd.f32 %v5344_v36, %v14187_v55  ;;  %v2831_v35 = vpop.permute.xlu1 %2830  ;;  %v5350_v29 = vpop.f32.mrb[11].mxu0 }
 0x476   :  { %v14356_v22 = vpack.c.bf16 %v5650_v49, %v5648_v37  ;;  %v3104_v62 = vmul.f32 %v16293_v27, %v2827_v19  ;;  %v3359_v28 = vadd.f32 %v3103_v42, %v2568_v47  ;;  %v7437_v23 = vadd.f32 %v5346_v56, %v14190_v33 }
 0x477   :  { %v4403_v20 = vmax.f32 %v4147_v63, 0.0  ;;  %v2569_v45 = vadd.f32 %v2313_v5, %v1778_v21  ;;  %v3361_v16 = vadd.f32 %v3105_v40, %v2570_v17  ;;  %v7438_v11 = vadd.f32 %v5348_v9, %v14187_v55  ;;  %v5354_v5 = vpop.f32.mrb[12].mxu0 }
 0x478   :  { %v4399_v43 = vmax.f32 %v4143_v12, 0.0  ;;  %v3358_v50 = vadd.f32 %v3102_v2, %v2567_v13  ;;  %v3106_v18 = vmul.f32 %v17343_v14, %v2831_v35  ;;  %v3107_v38 = vmul.f32 %v17346_v10, %v2831_v35  ;;  %v17363_v10 = vld [vmem:[#allocation123_spill] sm:$0xff]  ;;  %v17364_v13 = vld [vmem:[#allocation100_spill] sm:$0xff]  ;;  %v5356_v47 = vpop.f32.mrb[13].mxu0 }
 0x479   :  { %v3108_v60 = vmul.f32 %v16293_v27, %v2831_v35  ;;  %v5651_v44 = vmax.f32 %v7436_v7, 0.0  ;;  %v3109_v57 = vmul.f32 %v16297_v41, %v2831_v35  ;;  %v5653_v54 = vmax.f32 %v7438_v11, 0.0  ;;  %v17365_v35 = vld [vmem:[#allocation161_spill] sm:$0xff] }
 0x47a   :  { %v7439_v63 = vadd.f32 %v5350_v29, %v14190_v33  ;;  %v3360_v21 = vadd.f32 %v3104_v62, %v2569_v45  ;;  %v5652_v26 = vmax.f32 %v7437_v23, 0.0  ;;  %5613 = vmatmul.mubr.bf16.gmra.mrb[116].mxu0 %v17361_v34  ;;  %v4535_v58 = vpack.c.bf16 %v4403_v20, %v4399_v43  ;;  %v3622_v3 = vpop.permute.xlu1 %3621 }
 0x47b   :  { %v4150_v12 = vadd.f32 %v17362_v1, %v3359_v28  ;;  %v3362_v51 = vadd.f32 %v3106_v18, %v2571_v24  ;;  %v14370_v61 = vpack.c.bf16 %v5653_v54, %v5651_v44  ;;  %5622 = vmatprep.mubr.bf16.mxu0 %v4536_v30  ;;  %v4152_v27 = vadd.f32 %v17363_v10, %v3361_v16 }
 0x47c   :  { %v5654_v14 = vmax.f32 %v7439_v63, 0.0  ;;  %v3363_v46 = vadd.f32 %v3107_v38, %v2572_v15  ;;  %v3364_v52 = vadd.f32 %v3108_v60, %v2573_v59  ;;  %v3365_v41 = vadd.f32 %v3109_v57, %v2574_v32  ;;  %v5358_v59 = vpop.f32.mrb[14].mxu0 }
 0x47d   :  { %v4149_v37 = vadd.f32 %v17364_v13, %v3358_v50  ;;  %v3897_v19 = vmul.f32 %v17148_v39, %v3622_v3  ;;  %v3898_v0 = vmul.f32 %v17147_v25, %v3622_v3  ;;  %v3899_v24 = vmul.f32 %v16319_v6, %v3622_v3  ;;  %v5360_v36 = vpop.f32.mrb[15].mxu0  ;;  %v14384_v45 = vpop.f32.mrb[0].mxu1 }
 0x47e   :  { %v14374_v49 = vpack.c.bf16 %v5654_v14, %v5652_v26  ;;  %v3900_v30 = vmul.f32 %v16324_v4, %v3622_v3  ;;  %v7440_v2 = vadd.f32 %v5354_v5, %v14187_v55  ;;  %v7441_v15 = vadd.f32 %v5356_v47, %v14190_v33  ;;  %v14389_v43 = vpop.f32.mrb[1].mxu1 }
 0x47f   :  { %v4406_v32 = vmax.f32 %v4150_v12, 0.0  ;;  %v7442_v42 = vadd.f32 %v5358_v59, %v14187_v55  ;;  %v4154_v17 = vadd.f32 %v3898_v0, %v3363_v46  ;;  %v4408_v40 = vmax.f32 %v4152_v27, 0.0  ;;  %v14393_v60 = vpop.f32.mrb[2].mxu1  ;;  %v5364_v44 = vpop.f32.mrb[16].mxu0 }
 0x480   :  { %v4153_v7 = vadd.f32 %v3897_v19, %v3362_v51  ;;  %v7443_v39 = vadd.f32 %v5360_v36, %v14190_v33  ;;  %v4156_v25 = vadd.f32 %v3900_v30, %v3365_v41  ;;  %v4405_v56 = vmax.f32 %v4149_v37, 0.0  ;;  %v14396_v26 = vpop.f32.mrb[3].mxu1  ;;  %v5366_v34 = vpop.f32.mrb[17].mxu0  ;;  %v7964_v37 = vld [vmem:[%s15320_s7 + $0x8] sm:$0xff]  }
 0x481   :  { %v4155_v6 = vadd.f32 %v3899_v24, %v3364_v52  ;;  %v5655_v62 = vmax.f32 %v7440_v2, 0.0  ;;  %v5657_v28 = vmax.f32 %v7442_v42, 0.0  ;;  %v4410_v4 = vmax.f32 %v4154_v17, 0.0 }
 0x482   :  { %v4409_v23 = vmax.f32 %v4153_v7, 0.0  ;;  %v5656_v9 = vmax.f32 %v7441_v15, 0.0  ;;  %v5658_v20 = vmax.f32 %v7443_v39, 0.0  ;;  %5623 = vmatmul.mubr.bf16.gmra.mrb[120].mxu0 %v4535_v58  ;;  %v4412_v16 = vmax.f32 %v4156_v25, 0.0  ;;  %v5368_v58 = vpop.f32.mrb[18].mxu0 }
 0x483   :  { %v4151_v11 = vadd.f32 %v17365_v35, %v3360_v21  ;;  %v14387_v29 = vpack.c.bf16 %v5657_v28, %v5655_v62  ;;  %v4538_v50 = vpack.c.bf16 %v4410_v4, %v4406_v32  ;;  %v4411_v54 = vmax.f32 %v4155_v6, 0.0  ;;  %v5370_v51 = vpop.f32.mrb[19].mxu0 }
 0x484   :  { %v4537_v18 = vpack.c.bf16 %v4409_v23, %v4405_v56  ;;  %v14391_v38 = vpack.c.bf16 %v5658_v20, %v5656_v9  ;;  %v4540_v57 = vpack.c.bf16 %v4412_v16, %v4408_v40  ;;  %v7444_v63 = vadd.f32 %v5364_v44, %v14187_v55 }
 0x485   :  { %5279 = vmatprep.mubr.bf16.mxu1 %v4538_v50  ;;  %v7445_v21 = vadd.f32 %v5366_v34, %v14190_v33  ;;  %v4407_v1 = vmax.f32 %v4151_v11, 0.0  ;;  %v7446_v12 = vadd.f32 %v5368_v58, %v14187_v55  ;;  %v7447_v14 = vadd.f32 %v5370_v51, %v14190_v33 }
 0x486   :  { %5632 = vmatprep.mubr.bf16.mxu0 %v4540_v57  ;;  %5280 = vmatmul.mubr.bf16.gmra.mrb[28].mxu1 %v4537_v18  ;;  %v5659_v27 = vmax.f32 %v7444_v63, 0.0 }
 0x487   :  { %6002 = vmatprep.mubr.bf16.mxu1 %v14321_v31  ;;  %v4539_v10 = vpack.c.bf16 %v4411_v54, %v4407_v1  ;;  %v5661_v46 = vmax.f32 %v7446_v12, 0.0  ;;  %v5660_v52 = vmax.f32 %v7445_v21, 0.0  ;;  %v5662_v41 = vmax.f32 %v7447_v14, 0.0 }
 0x489   :  { %v14402_v3 = vpack.c.bf16 %v5661_v46, %v5659_v27  ;;  %v5780_v5 = vpack.c.bf16 %v5662_v41, %v5660_v52  ;;  %v5374_v13 = vpop.f32.mrb[20].mxu0 }
 0x48a   :  { %5633 = vmatmul.mubr.bf16.gmra.mrb[124].mxu0 %v4539_v10  ;;  %v7448_v19 = vadd.f32 %v5374_v13, %v14187_v55  ;;  %v5376_v31 = vpop.f32.mrb[21].mxu0 }
 0x48b   :  { %v7449_v0 = vadd.f32 %v5376_v31, %v14190_v33  ;;  %v5378_v24 = vpop.f32.mrb[22].mxu0 }
 0x48c   :  { %v7450_v47 = vadd.f32 %v5378_v24, %v14187_v55  ;;  %v5380_v30 = vpop.f32.mrb[23].mxu0  ;;  %v5663_v15 = vmax.f32 %v7448_v19, 0.0 }
 0x48d   :  { %v7451_v2 = vadd.f32 %v5380_v30, %v14190_v33  ;;  %v5664_v32 = vmax.f32 %v7449_v0, 0.0 }
 0x48e   :  { %6003 = vmatmul.mubr.bf16.vlgmr.msra.gmra.mrb[32].mxu1 %v14315_v8  ;;  %v5665_v59 = vmax.f32 %v7450_v47, 0.0 }
 0x48f   :  { %6010 = vmatprep.mubr.bf16.mxu1 %v14356_v22  ;;  %7317 = vmatpush3.bf16.msra.mxu1 %v14330_v48  ;;  %v5666_v42 = vmax.f32 %v7451_v2, 0.0 }
 0x490   :  { %7318 = vmatprep.subr.bf16.mxu1 %v7964_v37  ;;  %v14414_v36 = vpack.c.bf16 %v5665_v59, %v5663_v15 }
 0x491   :  { %v5782_v8 = vpack.c.bf16 %v5666_v42, %v5664_v32 }
 0x492   :  { %v5384_v17 = vpop.f32.mrb[24].mxu0 }
 0x493   :  { %7319 = vmatpush3.bf16.msra.mxu1 %v7964_v37  ;;  %v7452_v40 = vadd.f32 %v5384_v17, %v14187_v55  ;;  %v5386_v22 = vpop.f32.mrb[25].mxu0 }
 0x494   :  { %v7453_v48 = vadd.f32 %v5386_v22, %v14190_v33  ;;  %v5388_v7 = vpop.f32.mrb[26].mxu0 }
 0x495   :  { %v7454_v39 = vadd.f32 %v5388_v7, %v14187_v55  ;;  %v5390_v25 = vpop.f32.mrb[27].mxu0  ;;  %v5667_v6 = vmax.f32 %v7452_v40, 0.0 }
 0x496   :  { %6011 = vmatmul.mubr.bf16.gmra.mrb[36].mxu1 %v14352_v53  ;;  %v7455_v56 = vadd.f32 %v5390_v25, %v14190_v33  ;;  %v5668_v28 = vmax.f32 %v7453_v48, 0.0 }
 0x497   :  { %6018 = vmatprep.mubr.bf16.mxu1 %v14374_v49  ;;  %v5669_v62 = vmax.f32 %v7454_v39, 0.0 }
 0x498   :  { %v5670_v4 = vmax.f32 %v7455_v56, 0.0 }
 0x499   :  { %v14422_v23 = vpack.c.bf16 %v5669_v62, %v5667_v6 }
 0x49a   :  { %v5784_v9 = vpack.c.bf16 %v5670_v4, %v5668_v28  ;;  %v5394_v20 = vpop.f32.mrb[28].mxu0 }
 0x49b   :  { %v7456_v53 = vadd.f32 %v5394_v20, %v14187_v55  ;;  %v5396_v16 = vpop.f32.mrb[29].mxu0 }
 0x49c   :  { %v7457_v49 = vadd.f32 %v5396_v16, %v14190_v33  ;;  %v5398_v35 = vpop.f32.mrb[30].mxu0 }
 0x49d   :  { %v7458_v11 = vadd.f32 %v5398_v35, %v14187_v55  ;;  %v14429_v50 = vpop.f32.mrb[4].mxu1  ;;  %v5400_v18 = vpop.f32.mrb[31].mxu0  ;;  %v5671_v54 = vmax.f32 %v7456_v53, 0.0 }
 0x49e   :  { %6019 = vmatmul.mubr.bf16.gmra.mrb[40].mxu1 %v14370_v61  ;;  %v7459_v44 = vadd.f32 %v5400_v18, %v14190_v33  ;;  %v14432_v57 = vpop.f32.mrb[5].mxu1  ;;  %v5672_v21 = vmax.f32 %v7457_v49, 0.0 }
 0x49f   :  { %6026 = vmatprep.mubr.bf16.mxu1 %v14391_v38  ;;  %v5673_v63 = vmax.f32 %v7458_v11, 0.0  ;;  %v14434_v34 = vpop.f32.mrb[6].mxu1 }
 0x4a0   :  { %v5674_v61 = vmax.f32 %v7459_v44, 0.0  ;;  %v14436_v58 = vpop.f32.mrb[7].mxu1 }
 0x4a1   :  { %v14438_v1 = vpack.c.bf16 %v5673_v63, %v5671_v54 }
 0x4a2   :  { %v5786_v38 = vpack.c.bf16 %v5674_v61, %v5672_v21  ;;  %v5404_v12 = vpop.f32.mrb[32].mxu0 }
 0x4a3   :  { %v7460_v51 = vadd.f32 %v5404_v12, %v14187_v55  ;;  %v5406_v14 = vpop.f32.mrb[33].mxu0 }
 0x4a4   :  { %v7461_v10 = vadd.f32 %v5406_v14, %v14190_v33  ;;  %v5408_v27 = vpop.f32.mrb[34].mxu0 }
 0x4a5   :  { %v7462_v46 = vadd.f32 %v5408_v27, %v14187_v55  ;;  %v5410_v52 = vpop.f32.mrb[35].mxu0  ;;  %v5675_v13 = vmax.f32 %v7460_v51, 0.0 }
 0x4a6   :  { %6027 = vmatmul.mubr.bf16.gmra.mrb[44].mxu1 %v14387_v29  ;;  %v7463_v41 = vadd.f32 %v5410_v52, %v14190_v33  ;;  %v5676_v19 = vmax.f32 %v7461_v10, 0.0  ;;  %v7965_v29 = vld [vmem:[%s15320_s7 + $0x10] sm:$0xff]  }
 0x4a7   :  { %6034 = vmatprep.mubr.bf16.mxu1 %v5780_v5  ;;  %v5677_v37 = vmax.f32 %v7462_v46, 0.0  ;;  %7320 = vmatprep.subr.bf16.mxu1 %v7965_v29 }
 0x4a8   :  { %v5678_v31 = vmax.f32 %v7463_v41, 0.0  ;;  %7321 = vmatpush3.bf16.msra.mxu1 %v7965_v29 }
 0x4a9   :  { %v14445_v0 = vpack.c.bf16 %v5677_v37, %v5675_v13 }
 0x4aa   :  { %v5788_v24 = vpack.c.bf16 %v5678_v31, %v5676_v19  ;;  %v5414_v47 = vpop.f32.mrb[36].mxu0 }
 0x4ab   :  { %v7464_v30 = vadd.f32 %v5414_v47, %v14187_v55  ;;  %v5416_v5 = vpop.f32.mrb[37].mxu0 }
 0x4ac   :  { %v7465_v2 = vadd.f32 %v5416_v5, %v14190_v33  ;;  %v5418_v15 = vpop.f32.mrb[38].mxu0 }
 0x4ad   :  { %v7466_v59 = vadd.f32 %v5418_v15, %v14187_v55  ;;  %v5420_v32 = vpop.f32.mrb[39].mxu0  ;;  %v5679_v17 = vmax.f32 %v7464_v30, 0.0 }
 0x4ae   :  { %6035 = vmatmul.mubr.bf16.gmra.mrb[48].mxu1 %v14402_v3  ;;  %v7467_v42 = vadd.f32 %v5420_v32, %v14190_v33  ;;  %v5680_v22 = vmax.f32 %v7465_v2, 0.0 }
 0x4af   :  { %6042 = vmatprep.mubr.bf16.mxu1 %v5782_v8  ;;  %v5681_v40 = vmax.f32 %v7466_v59, 0.0 }
 0x4b0   :  { %v5682_v48 = vmax.f32 %v7467_v42, 0.0 }
 0x4b1   :  { %v14455_v7 = vpack.c.bf16 %v5681_v40, %v5679_v17 }
 0x4b2   :  { %v5790_v39 = vpack.c.bf16 %v5682_v48, %v5680_v22  ;;  %v5424_v25 = vpop.f32.mrb[40].mxu0 }
 0x4b3   :  { %v7468_v3 = vadd.f32 %v5424_v25, %v14187_v55  ;;  %v5426_v56 = vpop.f32.mrb[41].mxu0 }
 0x4b4   :  { %v7469_v8 = vadd.f32 %v5426_v56, %v14190_v33  ;;  %v5428_v6 = vpop.f32.mrb[42].mxu0 }
 0x4b5   :  { %v7470_v62 = vadd.f32 %v5428_v6, %v14187_v55  ;;  %v5430_v28 = vpop.f32.mrb[43].mxu0  ;;  %v5683_v20 = vmax.f32 %v7468_v3, 0.0 }
 0x4b6   :  { %6043 = vmatmul.mubr.bf16.gmra.mrb[52].mxu1 %v14414_v36  ;;  %v7471_v4 = vadd.f32 %v5430_v28, %v14190_v33  ;;  %v5684_v16 = vmax.f32 %v7469_v8, 0.0 }
 0x4b7   :  { %6050 = vmatprep.mubr.bf16.mxu1 %v5784_v9  ;;  %v5685_v53 = vmax.f32 %v7470_v62, 0.0 }
 0x4b8   :  { %v5686_v49 = vmax.f32 %v7471_v4, 0.0 }
 0x4b9   :  { %v14462_v35 = vpack.c.bf16 %v5685_v53, %v5683_v20 }
 0x4ba   :  { %v5792_v11 = vpack.c.bf16 %v5686_v49, %v5684_v16  ;;  %v5434_v18 = vpop.f32.mrb[44].mxu0 }
 0x4bb   :  { %v7472_v44 = vadd.f32 %v5434_v18, %v14187_v55  ;;  %v5436_v36 = vpop.f32.mrb[45].mxu0 }
 0x4bc   :  { %v7473_v9 = vadd.f32 %v5436_v36, %v14190_v33  ;;  %v5438_v54 = vpop.f32.mrb[46].mxu0 }
 0x4bd   :  { %v7474_v63 = vadd.f32 %v5438_v54, %v14187_v55  ;;  %v5440_v21 = vpop.f32.mrb[47].mxu0  ;;  %v14468_v61 = vpop.f32.mrb[8].mxu1  ;;  %v5687_v14 = vmax.f32 %v7472_v44, 0.0 }
 0x4be   :  { %6051 = vmatmul.mubr.bf16.gmra.mrb[56].mxu1 %v14422_v23  ;;  %v7475_v12 = vadd.f32 %v5440_v21, %v14190_v33  ;;  %v14471_v51 = vpop.f32.mrb[9].mxu1  ;;  %v5688_v46 = vmax.f32 %v7473_v9, 0.0 }
 0x4bf   :  { %6058 = vmatprep.mubr.bf16.mxu1 %v5786_v38  ;;  %v5689_v10 = vmax.f32 %v7474_v63, 0.0  ;;  %v14473_v27 = vpop.f32.mrb[10].mxu1 }
 0x4c0   :  { %v5690_v52 = vmax.f32 %v7475_v12, 0.0  ;;  %v14475_v23 = vpop.f32.mrb[11].mxu1 }
 0x4c1   :  { %v14477_v41 = vpack.c.bf16 %v5689_v10, %v5687_v14 }
 0x4c2   :  { %v5794_v38 = vpack.c.bf16 %v5690_v52, %v5688_v46  ;;  %v5444_v13 = vpop.f32.mrb[48].mxu0 }
 0x4c3   :  { %v7476_v37 = vadd.f32 %v5444_v13, %v14187_v55  ;;  %v5446_v19 = vpop.f32.mrb[49].mxu0 }
 0x4c4   :  { %v7477_v31 = vadd.f32 %v5446_v19, %v14190_v33  ;;  %v5448_v47 = vpop.f32.mrb[50].mxu0 }
 0x4c5   :  { %v7478_v29 = vadd.f32 %v5448_v47, %v14187_v55  ;;  %v5450_v30 = vpop.f32.mrb[51].mxu0  ;;  %v5691_v2 = vmax.f32 %v7476_v37, 0.0 }
 0x4c6   :  { %6059 = vmatmul.mubr.bf16.gmra.mrb[60].mxu1 %v14438_v1  ;;  %v7479_v5 = vadd.f32 %v5450_v30, %v14190_v33  ;;  %v5692_v59 = vmax.f32 %v7477_v31, 0.0  ;;  %v7966_v1 = vld [vmem:[%s15320_s7 + $0x18] sm:$0xff]  }
 0x4c7   :  { %6066 = vmatprep.mubr.bf16.mxu1 %v5788_v24  ;;  %v5693_v15 = vmax.f32 %v7478_v29, 0.0  ;;  %7322 = vmatprep.subr.bf16.mxu1 %v7966_v1 }
 0x4c8   :  { %v5694_v32 = vmax.f32 %v7479_v5, 0.0  ;;  %7323 = vmatpush3.bf16.msra.mxu1 %v7966_v1 }
 0x4c9   :  { %v14484_v42 = vpack.c.bf16 %v5693_v15, %v5691_v2 }
 0x4ca   :  { %v5796_v17 = vpack.c.bf16 %v5694_v32, %v5692_v59  ;;  %v5454_v40 = vpop.f32.mrb[52].mxu0 }
 0x4cb   :  { %v7480_v22 = vadd.f32 %v5454_v40, %v14187_v55  ;;  %v5456_v24 = vpop.f32.mrb[53].mxu0 }
 0x4cc   :  { %v7481_v48 = vadd.f32 %v5456_v24, %v14190_v33  ;;  %v5458_v25 = vpop.f32.mrb[54].mxu0 }
 0x4cd   :  { %v7482_v3 = vadd.f32 %v5458_v25, %v14187_v55  ;;  %v5460_v56 = vpop.f32.mrb[55].mxu0  ;;  %v5695_v6 = vmax.f32 %v7480_v22, 0.0 }
 0x4ce   :  { %6067 = vmatmul.mubr.bf16.gmra.mrb[64].mxu1 %v14445_v0  ;;  %v7483_v8 = vadd.f32 %v5460_v56, %v14190_v33  ;;  %v5696_v28 = vmax.f32 %v7481_v48, 0.0 }
 0x4cf   :  { %6074 = vmatprep.mubr.bf16.mxu1 %v5790_v39  ;;  %v5697_v62 = vmax.f32 %v7482_v3, 0.0 }
 0x4d0   :  { %v5698_v4 = vmax.f32 %v7483_v8, 0.0 }
 0x4d1   :  { %v14494_v20 = vpack.c.bf16 %v5697_v62, %v5695_v6 }
 0x4d2   :  { %v5798_v53 = vpack.c.bf16 %v5698_v4, %v5696_v28 }
 0x4d4   :  { %v5464_v16 = vpop.f32.mrb[56].mxu0 }
 0x4d5   :  { %v7484_v0 = vadd.f32 %v5464_v16, %v14187_v55  ;;  %v5466_v49 = vpop.f32.mrb[57].mxu0  ;;  %v7967_v16 = vld [vmem:[%s15320_s7 + $0x20] sm:$0xff]  }
 0x4d6   :  { %6075 = vmatmul.mubr.bf16.gmra.mrb[68].mxu1 %v14455_v7  ;;  %v7485_v39 = vadd.f32 %v5466_v49, %v14190_v33  ;;  %v5468_v18 = vpop.f32.mrb[58].mxu0  ;;  %7324 = vmatprep.subr.bf16.mxu1 %v7967_v16 }
 0x4d7   :  { %6082 = vmatprep.mubr.bf16.mxu1 %v5792_v11  ;;  %v7486_v44 = vadd.f32 %v5468_v18, %v14187_v55  ;;  %v5470_v36 = vpop.f32.mrb[59].mxu0  ;;  %v5699_v54 = vmax.f32 %v7484_v0, 0.0  ;;  %7325 = vmatpush3.bf16.msra.mxu1 %v7967_v16 }
 0x4d8   :  { %v7487_v9 = vadd.f32 %v5470_v36, %v14190_v33  ;;  %v5700_v21 = vmax.f32 %v7485_v39, 0.0 }
 0x4d9   :  { %v5701_v63 = vmax.f32 %v7486_v44, 0.0 }
 0x4da   :  { %v5702_v12 = vmax.f32 %v7487_v9, 0.0 }
 0x4db   :  { %v14501_v14 = vpack.c.bf16 %v5701_v63, %v5699_v54 }
 0x4dc   :  { %v5800_v10 = vpack.c.bf16 %v5702_v12, %v5700_v21  ;;  %v5474_v46 = vpop.f32.mrb[60].mxu0 }
 0x4dd   :  { %v7488_v52 = vadd.f32 %v5474_v46, %v14187_v55  ;;  %v5476_v7 = vpop.f32.mrb[61].mxu0 }
 0x4de   :  { %6083 = vmatmul.mubr.bf16.gmra.mrb[72].mxu1 %v14462_v35  ;;  %v7489_v11 = vadd.f32 %v5476_v7, %v14190_v33  ;;  %v5478_v13 = vpop.f32.mrb[62].mxu0 }
 0x4df   :  { %6090 = vmatprep.mubr.bf16.mxu1 %v5794_v38  ;;  %v7490_v37 = vadd.f32 %v5478_v13, %v14187_v55  ;;  %v5480_v19 = vpop.f32.mrb[63].mxu0  ;;  %v5703_v29 = vmax.f32 %v7488_v52, 0.0 }
 0x4e0   :  { %v7491_v31 = vadd.f32 %v5480_v19, %v14190_v33  ;;  %v14508_v47 = vpop.f32.mrb[12].mxu1  ;;  %v5704_v2 = vmax.f32 %v7489_v11, 0.0 }
 0x4e1   :  { %v5705_v30 = vmax.f32 %v7490_v37, 0.0  ;;  %v14510_v5 = vpop.f32.mrb[13].mxu1 }
 0x4e2   :  { %v5706_v15 = vmax.f32 %v7491_v31, 0.0  ;;  %v14512_v59 = vpop.f32.mrb[14].mxu1 }
 0x4e3   :  { %v14514_v35 = vpack.c.bf16 %v5705_v30, %v5703_v29  ;;  %v14516_v32 = vpop.f32.mrb[15].mxu1 }
 0x4e4   :  { %v5802_v38 = vpack.c.bf16 %v5706_v15, %v5704_v2  ;;  %v5484_v40 = vpop.f32.mrb[64].mxu0 }
 0x4e5   :  { %v7492_v1 = vadd.f32 %v5484_v40, %v14187_v55  ;;  %v5486_v22 = vpop.f32.mrb[65].mxu0 }
 0x4e6   :  { %6091 = vmatmul.mubr.bf16.gmra.mrb[76].mxu1 %v14477_v41  ;;  %v7493_v24 = vadd.f32 %v5486_v22, %v14190_v33  ;;  %v5488_v48 = vpop.f32.mrb[66].mxu0 }
 0x4e7   :  { %6098 = vmatprep.mubr.bf16.mxu1 %v5796_v17  ;;  %v7494_v25 = vadd.f32 %v5488_v48, %v14187_v55  ;;  %v5490_v3 = vpop.f32.mrb[67].mxu0  ;;  %v5707_v8 = vmax.f32 %v7492_v1, 0.0 }
 0x4e8   :  { %v7495_v56 = vadd.f32 %v5490_v3, %v14190_v33  ;;  %v5708_v62 = vmax.f32 %v7493_v24, 0.0 }
 0x4e9   :  { %v5709_v6 = vmax.f32 %v7494_v25, 0.0 }
 0x4ea   :  { %v5710_v28 = vmax.f32 %v7495_v56, 0.0 }
 0x4eb   :  { %v14523_v4 = vpack.c.bf16 %v5709_v6, %v5707_v8 }
 0x4ec   :  { %v5804_v41 = vpack.c.bf16 %v5710_v28, %v5708_v62  ;;  %v5494_v0 = vpop.f32.mrb[68].mxu0 }
 0x4ed   :  { %v7496_v49 = vadd.f32 %v5494_v0, %v14187_v55  ;;  %v5496_v17 = vpop.f32.mrb[69].mxu0 }
 0x4ee   :  { %6099 = vmatmul.mubr.bf16.gmra.mrb[80].mxu1 %v14484_v42  ;;  %v7497_v39 = vadd.f32 %v5496_v17, %v14190_v33  ;;  %v5498_v18 = vpop.f32.mrb[70].mxu0 }
 0x4ef   :  { %6106 = vmatprep.mubr.bf16.mxu1 %v5798_v53  ;;  %v7498_v44 = vadd.f32 %v5498_v18, %v14187_v55  ;;  %v5500_v36 = vpop.f32.mrb[71].mxu0  ;;  %v5711_v54 = vmax.f32 %v7496_v49, 0.0 }
 0x4f0   :  { %v7499_v9 = vadd.f32 %v5500_v36, %v14190_v33  ;;  %v5712_v21 = vmax.f32 %v7497_v39, 0.0 }
 0x4f1   :  { %v5713_v63 = vmax.f32 %v7498_v44, 0.0 }
 0x4f2   :  { %v5714_v12 = vmax.f32 %v7499_v9, 0.0 }
 0x4f3   :  { %v14533_v46 = vpack.c.bf16 %v5713_v63, %v5711_v54 }
 0x4f4   :  { %v14535_v52 = vpack.c.bf16 %v5714_v12, %v5712_v21  ;;  %v5504_v42 = vpop.f32.mrb[72].mxu0  ;;  %v7969_v12 = vld [vmem:[%s15320_s7 + $0x30] sm:$0xff]  }
 0x4f5   :  { %v7500_v7 = vadd.f32 %v5504_v42, %v14187_v55  ;;  %v5506_v11 = vpop.f32.mrb[73].mxu0 }
 0x4f6   :  { %6107 = vmatmul.mubr.bf16.gmra.mrb[84].mxu1 %v14494_v20  ;;  %v7501_v53 = vadd.f32 %v5506_v11, %v14190_v33  ;;  %v5508_v13 = vpop.f32.mrb[74].mxu0 }
 0x4f7   :  { %6114 = vmatprep.mubr.bf16.mxu1 %v5800_v10  ;;  %v7502_v37 = vadd.f32 %v5508_v13, %v14187_v55  ;;  %v5510_v19 = vpop.f32.mrb[75].mxu0  ;;  %v5715_v29 = vmax.f32 %v7500_v7, 0.0 }
 0x4f8   :  { %v7503_v31 = vadd.f32 %v5510_v19, %v14190_v33  ;;  %v5716_v2 = vmax.f32 %v7501_v53, 0.0 }
 0x4f9   :  { %v5717_v30 = vmax.f32 %v7502_v37, 0.0 }
 0x4fa   :  { %v5718_v15 = vmax.f32 %v7503_v31, 0.0 }
 0x4fb   :  { %v14542_v40 = vpack.c.bf16 %v5717_v30, %v5715_v29 }
 0x4fc   :  { %v14544_v1 = vpack.c.bf16 %v5718_v15, %v5716_v2  ;;  %v5514_v22 = vpop.f32.mrb[76].mxu0 }
 0x4fd   :  { %v7504_v20 = vadd.f32 %v5514_v22, %v14187_v55  ;;  %v5516_v24 = vpop.f32.mrb[77].mxu0 }
 0x4fe   :  { %6115 = vmatmul.mubr.bf16.gmra.mrb[88].mxu1 %v14501_v14  ;;  %v7505_v10 = vadd.f32 %v5516_v24, %v14190_v33  ;;  %v14549_v48 = vpop.f32.mrb[16].mxu1  ;;  %v5518_v25 = vpop.f32.mrb[78].mxu0 }
 0x4ff   :  { %6122 = vmatprep.mubr.bf16.mxu1 %v5802_v38  ;;  %v7506_v3 = vadd.f32 %v5518_v25, %v14187_v55  ;;  %v14552_v56 = vpop.f32.mrb[17].mxu1  ;;  %v5520_v8 = vpop.f32.mrb[79].mxu0  ;;  %v5719_v28 = vmax.f32 %v7504_v20, 0.0  ;;  %v7968_v38 = vld [vmem:[%s15320_s7 + $0x28] sm:$0xff]  }
 0x500   :  { %v7507_v6 = vadd.f32 %v5520_v8, %v14190_v33  ;;  %v14555_v62 = vpop.f32.mrb[18].mxu1  ;;  %v5720_v14 = vmax.f32 %v7505_v10, 0.0  ;;  %7326 = vmatprep.subr.bf16.mxu1 %v7968_v38 }
 0x501   :  { %v5721_v16 = vmax.f32 %v7506_v3, 0.0  ;;  %v14557_v0 = vpop.f32.mrb[19].mxu1  ;;  %7327 = vmatpush3.bf16.msra.mxu1 %v7968_v38 }
 0x502   :  { %v5722_v49 = vmax.f32 %v7507_v6, 0.0  ;;  %7328 = vmatprep.subr.bf16.mxu1 %v7969_v12 }
 0x503   :  { %v14559_v17 = vpack.c.bf16 %v5721_v16, %v5719_v28 }
 0x504   :  { %v5810_v39 = vpack.c.bf16 %v5722_v49, %v5720_v14  ;;  %v5524_v18 = vpop.f32.mrb[80].mxu0 }
 0x505   :  { %v7508_v44 = vadd.f32 %v5524_v18, %v14187_v55  ;;  %v5526_v36 = vpop.f32.mrb[81].mxu0  ;;  %7329 = vmatpush3.bf16.msra.mxu1 %v7969_v12 }
 0x506   :  { %6123 = vmatmul.mubr.bf16.gmra.mrb[92].mxu1 %v14514_v35  ;;  %v7509_v9 = vadd.f32 %v5526_v36, %v14190_v33  ;;  %v5528_v54 = vpop.f32.mrb[82].mxu0 }
 0x507   :  { %6130 = vmatprep.mubr.bf16.mxu1 %v5804_v41  ;;  %v7510_v63 = vadd.f32 %v5528_v54, %v14187_v55  ;;  %v5530_v21 = vpop.f32.mrb[83].mxu0  ;;  %v5723_v7 = vmax.f32 %v7508_v44, 0.0  ;;  %v7970_v41 = vld [vmem:[%s15320_s7 + $0x38] sm:$0xff]  }
 0x508   :  { %v7511_v42 = vadd.f32 %v5530_v21, %v14190_v33  ;;  %v5724_v53 = vmax.f32 %v7509_v9, 0.0  ;;  %7330 = vmatprep.subr.bf16.mxu1 %v7970_v41 }
 0x509   :  { %v5725_v11 = vmax.f32 %v7510_v63, 0.0  ;;  %7331 = vmatpush3.bf16.msra.mxu1 %v7970_v41 }
 0x50a   :  { %v5726_v35 = vmax.f32 %v7511_v42, 0.0 }
 0x50b   :  { %v14572_v13 = vpack.c.bf16 %v5725_v11, %v5723_v7 }
 0x50c   :  { %v14577_v37 = vpack.c.bf16 %v5726_v35, %v5724_v53  ;;  %v5534_v19 = vpop.f32.mrb[84].mxu0 }
 0x50d   :  { %v7512_v31 = vadd.f32 %v5534_v19, %v14187_v55  ;;  %v5536_v29 = vpop.f32.mrb[85].mxu0 }
 0x50e   :  { %6131 = vmatmul.mubr.bf16.gmra.mrb[96].mxu1 %v14523_v4  ;;  %v7513_v30 = vadd.f32 %v5536_v29, %v14190_v33  ;;  %v5538_v2 = vpop.f32.mrb[86].mxu0 }
 0x50f   :  { %6138 = vmatprep.mubr.bf16.mxu1 %v14535_v52  ;;  %v7514_v15 = vadd.f32 %v5538_v2, %v14187_v55  ;;  %v5540_v22 = vpop.f32.mrb[87].mxu0  ;;  %v5727_v24 = vmax.f32 %v7512_v31, 0.0 }
 0x510   :  { %v7515_v20 = vadd.f32 %v5540_v22, %v14190_v33  ;;  %v5728_v25 = vmax.f32 %v7513_v30, 0.0 }
 0x511   :  { %v5729_v10 = vmax.f32 %v7514_v15, 0.0 }
 0x512   :  { %v5730_v3 = vmax.f32 %v7515_v20, 0.0  ;;  %v5214_v20 = vadd.f32 %v14389_v43, %v14190_v33 }
 0x513   :  { %v14585_v8 = vpack.c.bf16 %v5729_v10, %v5727_v24 }
 0x514   :  { %v14587_v6 = vpack.c.bf16 %v5730_v3, %v5728_v25  ;;  %v5544_v4 = vpop.f32.mrb[88].mxu0  ;;  %v5216_v25 = vadd.f32 %v14393_v60, %v14187_v55  ;;  %v5222_v60 = vadd.f32 %v14429_v50, %v14187_v55 }
 0x515   :  { %v7516_v28 = vadd.f32 %v5544_v4, %v14187_v55  ;;  %v5546_v16 = vpop.f32.mrb[89].mxu0 }
 0x516   :  { %6139 = vmatmul.mubr.bf16.gmra.mrb[100].mxu1 %v14533_v46  ;;  %v7517_v52 = vadd.f32 %v5546_v16, %v14190_v33  ;;  %v5548_v14 = vpop.f32.mrb[90].mxu0 }
 0x517   :  { %6146 = vmatprep.mubr.bf16.mxu1 %v14544_v1  ;;  %v7518_v49 = vadd.f32 %v5548_v14, %v14187_v55  ;;  %v5550_v38 = vpop.f32.mrb[91].mxu0  ;;  %v5731_v44 = vmax.f32 %v7516_v28, 0.0  ;;  %v5218_v28 = vadd.f32 %v14396_v26, %v14190_v33 }
 0x518   :  { %v7519_v18 = vadd.f32 %v5550_v38, %v14190_v33  ;;  %v5732_v9 = vmax.f32 %v7517_v52, 0.0 }
 0x519   :  { %v5733_v36 = vmax.f32 %v7518_v49, 0.0 }
 0x51a   :  { %v5734_v54 = vmax.f32 %v7519_v18, 0.0 }
 0x51b   :  { %v14595_v63 = vpack.c.bf16 %v5733_v36, %v5731_v44 }
 0x51c   :  { %v14597_v21 = vpack.c.bf16 %v5734_v54, %v5732_v9  ;;  %v5554_v12 = vpop.f32.mrb[92].mxu0 }
 0x51d   :  { %v7520_v46 = vadd.f32 %v5554_v12, %v14187_v55  ;;  %v5556_v42 = vpop.f32.mrb[93].mxu0 }
 0x51e   :  { %6147 = vmatmul.mubr.bf16.gmra.mrb[104].mxu1 %v14542_v40  ;;  %v7521_v1 = vadd.f32 %v5556_v42, %v14190_v33  ;;  %v5558_v7 = vpop.f32.mrb[94].mxu0 }
 0x51f   :  { %6154 = vmatprep.mubr.bf16.mxu1 %v5810_v39  ;;  %v14602_v11 = vpop.f32.mrb[20].mxu1  ;;  %v7522_v53 = vadd.f32 %v5558_v7, %v14187_v55  ;;  %v5560_v35 = vpop.f32.mrb[95].mxu0  ;;  %v5735_v29 = vmax.f32 %v7520_v46, 0.0  ;;  %v5212_v39 = vadd.f32 %v14384_v45, %v14187_v55  ;;  %v5228_v46 = vadd.f32 %v14436_v58, %v14190_v33 }
 0x520   :  { %v14605_v41 = vpop.f32.mrb[21].mxu1  ;;  %v7523_v19 = vadd.f32 %v5560_v35, %v14190_v33  ;;  %v5736_v40 = vmax.f32 %v7521_v1, 0.0 }
 0x521   :  { %v14608_v31 = vpop.f32.mrb[22].mxu1  ;;  %v5737_v30 = vmax.f32 %v7522_v53, 0.0 }
 0x522   :  { %v14610_v2 = vpop.f32.mrb[23].mxu1  ;;  %v5738_v15 = vmax.f32 %v7523_v19, 0.0 }
 0x523   :  { %v14614_v22 = vpack.c.bf16 %v5737_v30, %v5735_v29 }
 0x524   :  { %v14618_v24 = vpack.c.bf16 %v5738_v15, %v5736_v40  ;;  %v5564_v10 = vpop.f32.mrb[96].mxu0 }
 0x525   :  { %v5565_v3 = vadd.f32 %v5564_v10, %v5212_v39  ;;  %v5566_v4 = vpop.f32.mrb[97].mxu0 }
 0x526   :  { %6155 = vmatmul.mubr.bf16.gmra.mrb[108].mxu1 %v14559_v17  ;;  %v5567_v16 = vadd.f32 %v5566_v4, %v5214_v20  ;;  %v5568_v45 = vpop.f32.mrb[98].mxu0  ;;  %v5224_v17 = vadd.f32 %v14432_v57, %v14190_v33  ;;  %v5238_v20 = vadd.f32 %v14475_v23, %v14190_v33 }
 0x527   :  { %6162 = vmatprep.mubr.bf16.mxu1 %v14577_v37  ;;  %v5569_v52 = vadd.f32 %v5568_v45, %v5216_v25  ;;  %v5570_v14 = vpop.f32.mrb[99].mxu0  ;;  %v5739_v49 = vmax.f32 %v5565_v3, 0.0  ;;  %v5226_v37 = vadd.f32 %v14434_v34, %v14187_v55  ;;  %v5232_v34 = vadd.f32 %v14468_v61, %v14187_v55 }
 0x528   :  { %v5571_v43 = vadd.f32 %v5570_v14, %v5218_v28  ;;  %v5740_v18 = vmax.f32 %v5567_v16, 0.0 }
 0x529   :  { %v5741_v38 = vmax.f32 %v5569_v52, 0.0 }
 0x52a   :  { %v5742_v44 = vmax.f32 %v5571_v43, 0.0 }
 0x52b   :  { %v14628_v36 = vpack.c.bf16 %v5741_v38, %v5739_v49  ;;  %v5248_v38 = vadd.f32 %v14516_v32, %v14190_v33 }
 0x52c   :  { %v14632_v26 = vpack.c.bf16 %v5742_v44, %v5740_v18  ;;  %v5574_v9 = vpop.f32.mrb[100].mxu0 }
 0x52d   :  { %v5575_v54 = vadd.f32 %v5574_v9, %v5222_v60  ;;  %v5576_v12 = vpop.f32.mrb[101].mxu0 }
 0x52e   :  { %6163 = vmatmul.mubr.bf16.gmra.mrb[112].mxu1 %v14572_v13  ;;  %v5577_v42 = vadd.f32 %v5576_v12, %v5224_v17  ;;  %v5578_v50 = vpop.f32.mrb[102].mxu0  ;;  %v5234_v13 = vadd.f32 %v14471_v51, %v14190_v33 }
 0x52f   :  { %6170 = vmatprep.mubr.bf16.mxu1 %v14587_v6  ;;  %v5579_v1 = vadd.f32 %v5578_v50, %v5226_v37  ;;  %v5580_v7 = vpop.f32.mrb[103].mxu0  ;;  %v5743_v53 = vmax.f32 %v5575_v54, 0.0  ;;  %v5236_v6 = vadd.f32 %v14473_v27, %v14187_v55  ;;  %v5242_v27 = vadd.f32 %v14508_v47, %v14187_v55 }
 0x530   :  { %v5581_v57 = vadd.f32 %v5580_v7, %v5228_v46  ;;  %v5744_v19 = vmax.f32 %v5577_v42, 0.0  ;;  %v5254_v50 = vadd.f32 %v14552_v56, %v14190_v33  ;;  %v5256_v7 = vadd.f32 %v14555_v62, %v14187_v55 }
 0x531   :  { %v5745_v35 = vmax.f32 %v5579_v1, 0.0  ;;  %v5262_v62 = vadd.f32 %v14602_v11, %v14187_v55 }
 0x532   :  { %v5746_v29 = vmax.f32 %v5581_v57, 0.0 }
 0x533   :  { %v14642_v30 = vpack.c.bf16 %v5745_v35, %v5743_v53  ;;  %v5258_v35 = vadd.f32 %v14557_v0, %v14190_v33 }
 0x534   :  { %v14646_v58 = vpack.c.bf16 %v5746_v29, %v5744_v19  ;;  %v5584_v40 = vpop.f32.mrb[104].mxu0 }
 0x535   :  { %v5585_v15 = vadd.f32 %v5584_v40, %v5232_v34  ;;  %v5586_v39 = vpop.f32.mrb[105].mxu0 }
 0x536   :  { %6171 = vmatmul.mubr.bf16.gmra.mrb[116].mxu1 %v14585_v8  ;;  %v5587_v10 = vadd.f32 %v5586_v39, %v5234_v13  ;;  %v5588_v61 = vpop.f32.mrb[106].mxu0  ;;  %v5244_v8 = vadd.f32 %v14510_v5, %v14190_v33 }
 0x537   :  { %6178 = vmatprep.mubr.bf16.mxu1 %v14597_v21  ;;  %v5589_v25 = vadd.f32 %v5588_v61, %v5236_v6  ;;  %v5590_v3 = vpop.f32.mrb[107].mxu0  ;;  %v5747_v4 = vmax.f32 %v5585_v15, 0.0  ;;  %v5246_v21 = vadd.f32 %v14512_v59, %v14187_v55 }
 0x538   :  { %v5591_v51 = vadd.f32 %v5590_v3, %v5238_v20  ;;  %v5748_v16 = vmax.f32 %v5587_v10, 0.0 }
 0x539   :  { %v5749_v28 = vmax.f32 %v5589_v25, 0.0  ;;  %v5268_v25 = vadd.f32 %v14610_v2, %v14190_v33 }
 0x53a   :  { %v5750_v45 = vmax.f32 %v5591_v51, 0.0 }
 0x53b   :  { %v14656_v52 = vpack.c.bf16 %v5749_v28, %v5747_v4 }
 0x53c   :  { %v14660_v23 = vpack.c.bf16 %v5750_v45, %v5748_v16  ;;  %v5594_v14 = vpop.f32.mrb[108].mxu0 }
 0x53d   :  { %v5595_v43 = vadd.f32 %v5594_v14, %v5242_v27  ;;  %v5596_v49 = vpop.f32.mrb[109].mxu0 }
 0x53e   :  { %6179 = vmatmul.mubr.bf16.gmra.mrb[120].mxu1 %v14595_v63  ;;  %v5597_v18 = vadd.f32 %v5596_v49, %v5244_v8  ;;  %v5598_v47 = vpop.f32.mrb[110].mxu0  ;;  %v5252_v63 = vadd.f32 %v14549_v48, %v14187_v55 }
 0x53f   :  { %6186 = vmatprep.mubr.bf16.mxu1 %v14618_v24  ;;  %v5599_v44 = vadd.f32 %v5598_v47, %v5246_v21  ;;  %v5600_v60 = vpop.f32.mrb[111].mxu0  ;;  %v5751_v9 = vmax.f32 %v5595_v43, 0.0 }
 0x540   :  { %v5601_v5 = vadd.f32 %v5600_v60, %v5248_v38  ;;  %v5752_v12 = vmax.f32 %v5597_v18, 0.0 }
 0x541   :  { %v5271_v17 = vpop.f32.mrb[24].mxu1  ;;  %v5753_v37 = vmax.f32 %v5599_v44, 0.0 }
 0x542   :  { %v5273_v54 = vpop.f32.mrb[25].mxu1  ;;  %v5754_v59 = vmax.f32 %v5601_v5, 0.0 }
 0x543   :  { %v5275_v46 = vpop.f32.mrb[26].mxu1  ;;  %v14670_v42 = vpack.c.bf16 %v5753_v37, %v5751_v9 }
 0x544   :  { %v5277_v32 = vpop.f32.mrb[27].mxu1  ;;  %v14674_v24 = vpack.c.bf16 %v5754_v59, %v5752_v12  ;;  %v5276_v21 = vadd.f32 %v5275_v46, %v14187_v55 }
 0x545   :  { %v5604_v1 = vpop.f32.mrb[112].mxu0  ;;  %v5278_v49 = vadd.f32 %v5277_v32, %v14190_v33 }
 0x546   :  { %v5605_v57 = vadd.f32 %v5604_v1, %v5252_v63  ;;  %v5606_v53 = vpop.f32.mrb[113].mxu0  ;;  %6187 = vmatmul.mubr.bf16.gmra.mrb[124].mxu1 %v14614_v22  ;;  %v5264_v22 = vadd.f32 %v14605_v41, %v14190_v33 }
 0x547   :  { %v5607_v48 = vadd.f32 %v5606_v53, %v5254_v50  ;;  %v5608_v19 = vpop.f32.mrb[114].mxu0  ;;  %6194 = vmatprep.mubr.bf16.mxu1 %v14632_v26  ;;  %v5266_v26 = vadd.f32 %v14608_v31, %v14187_v55  ;;  %v5272_v31 = vadd.f32 %v5271_v17, %v14187_v55 }
 0x548   :  { %v5609_v29 = vadd.f32 %v5608_v19, %v5256_v7  ;;  %v5610_v34 = vpop.f32.mrb[115].mxu0  ;;  %v5755_v13 = vmax.f32 %v5605_v57, 0.0  ;;  %v14717_v19 = vld [vmem:[%s15319_s6] ss:$0 sm:$0xff] }
 0x549   :  { %v5611_v56 = vadd.f32 %v5610_v34, %v5258_v35  ;;  %v5756_v6 = vmax.f32 %v5607_v48, 0.0 }
 0x54a   :  { %v5757_v40 = vmax.f32 %v5609_v29, 0.0 }
 0x54b   :  { %v5758_v15 = vmax.f32 %v5611_v56, 0.0 }
 0x54c   :  { %v14684_v39 = vpack.c.bf16 %v5757_v40, %v5755_v13 }
 0x54d   :  { %v14688_v0 = vpack.c.bf16 %v5758_v15, %v5756_v6  ;;  %v5614_v20 = vpop.f32.mrb[116].mxu0 }
 0x54e   :  { %v5615_v10 = vadd.f32 %v5614_v20, %v5262_v62  ;;  %v5616_v61 = vpop.f32.mrb[117].mxu0  ;;  %6195 = vmatmul.mubr.bf16.gmra.mrb[128].mxu1 %v14628_v36  ;;  %v5274_v36 = vadd.f32 %v5273_v54, %v14190_v33 }
 0x54f   :  { %v5617_v3 = vadd.f32 %v5616_v61, %v5264_v22  ;;  %v5618_v11 = vpop.f32.mrb[118].mxu0  ;;  %6202 = vmatprep.mubr.bf16.mxu1 %v14646_v58 }
 0x550   :  { %v5619_v51 = vadd.f32 %v5618_v11, %v5266_v26  ;;  %v5620_v4 = vpop.f32.mrb[119].mxu0  ;;  %v5759_v28 = vmax.f32 %v5615_v10, 0.0 }
 0x551   :  { %v5621_v41 = vadd.f32 %v5620_v4, %v5268_v25  ;;  %v5760_v45 = vmax.f32 %v5617_v3, 0.0 }
 0x552   :  { %v5761_v16 = vmax.f32 %v5619_v51, 0.0 }
 0x553   :  { %v5762_v27 = vmax.f32 %v5621_v41, 0.0 }
 0x554   :  { %v14697_v8 = vpack.c.bf16 %v5761_v16, %v5759_v28 }
 0x555   :  { %v14700_v14 = vpack.c.bf16 %v5762_v27, %v5760_v45  ;;  %v5624_v2 = vpop.f32.mrb[120].mxu0 }
 0x556   :  { %v5625_v43 = vadd.f32 %v5624_v2, %v5272_v31  ;;  %v5626_v58 = vpop.f32.mrb[121].mxu0  ;;  %6203 = vmatmul.mubr.bf16.gmra.mrb[132].mxu1 %v14642_v30 }
 0x557   :  { %v5627_v38 = vadd.f32 %v5626_v58, %v5274_v36  ;;  %v5628_v18 = vpop.f32.mrb[122].mxu0  ;;  %6210 = vmatprep.mubr.bf16.mxu1 %v14660_v23 }
 0x558   :  { %v5629_v47 = vadd.f32 %v5628_v18, %v5276_v21  ;;  %v5630_v44 = vpop.f32.mrb[123].mxu0  ;;  %v5763_v17 = vmax.f32 %v5625_v43, 0.0 }
 0x559   :  { %v5631_v60 = vadd.f32 %v5630_v44, %v5278_v49  ;;  %v5281_v5 = vpop.f32.mrb[28].mxu1  ;;  %v5764_v54 = vmax.f32 %v5627_v38, 0.0 }
 0x55a   :  { %v5765_v9 = vmax.f32 %v5629_v47, 0.0  ;;  %v5283_v37 = vpop.f32.mrb[29].mxu1  ;;  %v5282_v30 = vadd.f32 %v5281_v5, %v14187_v55 }
 0x55b   :  { %v5766_v12 = vmax.f32 %v5631_v60, 0.0  ;;  %v5285_v59 = vpop.f32.mrb[30].mxu1  ;;  %v5284_v50 = vadd.f32 %v5283_v37, %v14190_v33 }
 0x55c   :  { %v14706_v46 = vpack.c.bf16 %v5765_v9, %v5763_v17  ;;  %v5287_v63 = vpop.f32.mrb[31].mxu1  ;;  %v5286_v23 = vadd.f32 %v5285_v59, %v14187_v55 }
 0x55d   :  { %v5832_v32 = vpack.c.bf16 %v5766_v12, %v5764_v54  ;;  %v5634_v1 = vpop.f32.mrb[124].mxu0  ;;  %v5288_v53 = vadd.f32 %v5287_v63, %v14190_v33 }
 0x55e   :  { %v5635_v7 = vadd.f32 %v5634_v1, %v5282_v30  ;;  %v5636_v57 = vpop.f32.mrb[125].mxu0  ;;  %6211 = vmatmul.mubr.bf16.gmra.mrb[136].mxu1 %v14656_v52 }
 0x55f   :  { %v5637_v35 = vadd.f32 %v5636_v57, %v5284_v50  ;;  %v5638_v48 = vpop.f32.mrb[126].mxu0  ;;  %6218 = vmatprep.mubr.bf16.mxu1 %v14674_v24 }
 0x560   :  { %v5639_v29 = vadd.f32 %v5638_v48, %v5286_v23  ;;  %v5640_v34 = vpop.f32.mrb[127].mxu0  ;;  %v5767_v55 = vmax.f32 %v5635_v7, 0.0 }
 0x561   :  { %v5641_v56 = vadd.f32 %v5640_v34, %v5288_v53  ;;  %v6004_v13 = vpop.f32.mrb[32].mxu1  ;;  %v5768_v15 = vmax.f32 %v5637_v35, 0.0 }
 0x562   :  { %v5769_v40 = vmax.f32 %v5639_v29, 0.0  ;;  %v6005_v6 = vadd.f32 %v14717_v19, %v6004_v13  ;;  %v6006_v52 = vpop.f32.mrb[33].mxu1 }
 0x563   :  { %v5770_v33 = vmax.f32 %v5641_v56, 0.0  ;;  %v6007_v62 = vpop.f32.mrb[34].mxu1 }
 0x564   :  { %v5833_v22 = vpack.c.bf16 %v5769_v40, %v5767_v55  ;;  %v6008_v24 = vadd.f32 %v14717_v19, %v6007_v62  ;;  %v6009_v20 = vpop.f32.mrb[35].mxu1  ;;  %v6259_v10 = vmax.f32 %v6005_v6, 0.0 }
 0x565   :  { %v5834_v26 = vpack.c.bf16 %v5770_v33, %v5768_v15 }
 0x566   :  { %v6260_v61 = vmax.f32 %v6008_v24, 0.0  ;;  %6219 = vmatmul.mubr.bf16.gmra.mrb[140].mxu1 %v14670_v42 }
 0x567   :  { %6226 = vmatprep.mubr.bf16.mxu1 %v14688_v0 }
 0x568   :  { %v6323_v25 = vpack.c.bf16 %v6260_v61, %v6259_v10 }
 0x569   :  { %v6012_v3 = vpop.f32.mrb[36].mxu1 }
 0x56a   :  { %v6013_v11 = vadd.f32 %v14717_v19, %v6012_v3  ;;  %v6014_v51 = vpop.f32.mrb[37].mxu1 }
 0x56b   :  { %v6015_v4 = vpop.f32.mrb[38].mxu1 }
 0x56c   :  { %v6016_v41 = vadd.f32 %v14717_v19, %v6015_v4  ;;  %v6017_v28 = vpop.f32.mrb[39].mxu1  ;;  %v6261_v16 = vmax.f32 %v6013_v11, 0.0 }
 0x56e   :  { %v6262_v45 = vmax.f32 %v6016_v41, 0.0  ;;  %6227 = vmatmul.mubr.bf16.gmra.mrb[144].mxu1 %v14684_v39 }
 0x56f   :  { %6234 = vmatprep.mubr.bf16.mxu1 %v14700_v14 }
 0x570   :  { %v6324_v27 = vpack.c.bf16 %v6262_v45, %v6261_v16 }
 0x571   :  { %v6020_v31 = vpop.f32.mrb[40].mxu1 }
 0x572   :  { %v6021_v42 = vadd.f32 %v14717_v19, %v6020_v31  ;;  %v6022_v0 = vpop.f32.mrb[41].mxu1 }
 0x573   :  { %v6023_v36 = vpop.f32.mrb[42].mxu1 }
 0x574   :  { %v6024_v2 = vadd.f32 %v14717_v19, %v6023_v36  ;;  %v6025_v21 = vpop.f32.mrb[43].mxu1  ;;  %v6263_v43 = vmax.f32 %v6021_v42, 0.0 }
 0x576   :  { %v6264_v58 = vmax.f32 %v6024_v2, 0.0  ;;  %6235 = vmatmul.mubr.bf16.gmra.mrb[148].mxu1 %v14697_v8 }
 0x577   :  { %6242 = vmatprep.mubr.bf16.mxu1 %v5832_v32 }
 0x578   :  { %v6325_v49 = vpack.c.bf16 %v6264_v58, %v6263_v43 }
 0x579   :  { %v6028_v38 = vpop.f32.mrb[44].mxu1 }
 0x57a   :  { %v6029_v39 = vadd.f32 %v14717_v19, %v6028_v38  ;;  %v6030_v18 = vpop.f32.mrb[45].mxu1 }
 0x57b   :  { %v6031_v14 = vpop.f32.mrb[46].mxu1 }
 0x57c   :  { %v6032_v47 = vadd.f32 %v14717_v19, %v6031_v14  ;;  %v6033_v44 = vpop.f32.mrb[47].mxu1  ;;  %v6265_v60 = vmax.f32 %v6029_v39, 0.0 }
 0x57e   :  { %v6266_v5 = vmax.f32 %v6032_v47, 0.0  ;;  %6243 = vmatmul.mubr.bf16.gmra.mrb[152].mxu1 %v14706_v46 }
 0x57f   :  { %6250 = vmatprep.mubr.bf16.mxu1 %v5834_v26 }
 0x580   :  { %v6326_v17 = vpack.c.bf16 %v6266_v5, %v6265_v60 }
 0x581   :  { %v6036_v9 = vpop.f32.mrb[48].mxu1 }
 0x582   :  { %v6037_v37 = vadd.f32 %v14717_v19, %v6036_v9  ;;  %v6038_v8 = vpop.f32.mrb[49].mxu1 }
 0x583   :  { %v6039_v54 = vpop.f32.mrb[50].mxu1 }
 0x584   :  { %v6040_v12 = vadd.f32 %v14717_v19, %v6039_v54  ;;  %v6041_v59 = vpop.f32.mrb[51].mxu1  ;;  %v6267_v30 = vmax.f32 %v6037_v37, 0.0 }
 0x586   :  { %v6268_v63 = vmax.f32 %v6040_v12, 0.0  ;;  %6251 = vmatmul.mubr.bf16.gmra.mrb[156].mxu1 %v5833_v22 }
 0x587   :  { %7332 = vmatprep.mubr.bf16.mxu1 %v6323_v25 }
 0x588   :  { %v6327_v32 = vpack.c.bf16 %v6268_v63, %v6267_v30 }
 0x589   :  { %v6044_v50 = vpop.f32.mrb[52].mxu1 }
 0x58a   :  { %v6045_v1 = vadd.f32 %v14717_v19, %v6044_v50  ;;  %v6046_v23 = vpop.f32.mrb[53].mxu1 }
 0x58b   :  { %v6047_v46 = vpop.f32.mrb[54].mxu1 }
 0x58c   :  { %v6048_v7 = vadd.f32 %v14717_v19, %v6047_v46  ;;  %v6049_v57 = vpop.f32.mrb[55].mxu1  ;;  %v6269_v53 = vmax.f32 %v6045_v1, 0.0 }
 0x58e   :  { %v6270_v35 = vmax.f32 %v6048_v7, 0.0  ;;  %7333 = vmatmul.mubr.bf16.vlgmr.msra.gmra.mrb[160].mxu1 %v6324_v27 }
 0x58f   :  { %7336 = vmatprep.mubr.bf16.mxu1 %v6325_v49 }
 0x590   :  { %v6328_v48 = vpack.c.bf16 %v6270_v35, %v6269_v53 }
 0x591   :  { %v6052_v29 = vpop.f32.mrb[56].mxu1 }
 0x592   :  { %v6053_v34 = vadd.f32 %v14717_v19, %v6052_v29  ;;  %v6054_v56 = vpop.f32.mrb[57].mxu1 }
 0x593   :  { %v6055_v13 = vpop.f32.mrb[58].mxu1 }
 0x594   :  { %v6056_v55 = vadd.f32 %v14717_v19, %v6055_v13  ;;  %v6057_v40 = vpop.f32.mrb[59].mxu1  ;;  %v6271_v6 = vmax.f32 %v6053_v34, 0.0 }
 0x596   :  { %v6272_v52 = vmax.f32 %v6056_v55, 0.0  ;;  %7337 = vmatmul.mubr.bf16.gmra.mrb[164].mxu1 %v6326_v17 }
 0x597   :  { %7340 = vmatprep.mubr.bf16.mxu1 %v6327_v32 }
 0x598   :  { %v6329_v15 = vpack.c.bf16 %v6272_v52, %v6271_v6 }
 0x599   :  { %v6060_v33 = vpop.f32.mrb[60].mxu1 }
 0x59a   :  { %v6061_v62 = vadd.f32 %v14717_v19, %v6060_v33  ;;  %v6062_v22 = vpop.f32.mrb[61].mxu1 }
 0x59b   :  { %v6063_v24 = vpop.f32.mrb[62].mxu1 }
 0x59c   :  { %v6064_v20 = vadd.f32 %v14717_v19, %v6063_v24  ;;  %v6065_v26 = vpop.f32.mrb[63].mxu1  ;;  %v6273_v10 = vmax.f32 %v6061_v62, 0.0 }
 0x59e   :  { %v6274_v61 = vmax.f32 %v6064_v20, 0.0  ;;  %7341 = vmatmul.mubr.bf16.gmra.mrb[168].mxu1 %v6328_v48 }
 0x59f   :  { %7344 = vmatprep.mubr.bf16.mxu1 %v6329_v15 }
 0x5a0   :  { %v6330_v25 = vpack.c.bf16 %v6274_v61, %v6273_v10 }
 0x5a1   :  { %v6068_v3 = vpop.f32.mrb[64].mxu1 }
 0x5a2   :  { %v6069_v11 = vadd.f32 %v14717_v19, %v6068_v3  ;;  %v6070_v51 = vpop.f32.mrb[65].mxu1 }
 0x5a3   :  { %v6071_v4 = vpop.f32.mrb[66].mxu1 }
 0x5a4   :  { %v6072_v41 = vadd.f32 %v14717_v19, %v6071_v4  ;;  %v6073_v28 = vpop.f32.mrb[67].mxu1  ;;  %v6275_v16 = vmax.f32 %v6069_v11, 0.0 }
 0x5a6   :  { %v6276_v45 = vmax.f32 %v6072_v41, 0.0  ;;  %7345 = vmatmul.mubr.bf16.gmra.mrb[172].mxu1 %v6330_v25 }
 0x5a8   :  { %v6331_v27 = vpack.c.bf16 %v6276_v45, %v6275_v16 }
 0x5a9   :  { %v6076_v31 = vpop.f32.mrb[68].mxu1 }
 0x5aa   :  { %v6077_v42 = vadd.f32 %v14717_v19, %v6076_v31  ;;  %v6078_v0 = vpop.f32.mrb[69].mxu1  ;;  %7348 = vmatprep.mubr.bf16.mxu1 %v6331_v27 }
 0x5ab   :  { %v6079_v36 = vpop.f32.mrb[70].mxu1 }
 0x5ac   :  { %v6080_v2 = vadd.f32 %v14717_v19, %v6079_v36  ;;  %v6081_v21 = vpop.f32.mrb[71].mxu1  ;;  %v6277_v43 = vmax.f32 %v6077_v42, 0.0 }
 0x5ae   :  { %v6278_v58 = vmax.f32 %v6080_v2, 0.0 }
 0x5b0   :  { %v6332_v49 = vpack.c.bf16 %v6278_v58, %v6277_v43 }
 0x5b1   :  { %v6084_v38 = vpop.f32.mrb[72].mxu1 }
 0x5b2   :  { %v6085_v39 = vadd.f32 %v14717_v19, %v6084_v38  ;;  %v6086_v18 = vpop.f32.mrb[73].mxu1  ;;  %7349 = vmatmul.mubr.bf16.gmra.mrb[176].mxu1 %v6332_v49 }
 0x5b3   :  { %v6087_v14 = vpop.f32.mrb[74].mxu1 }
 0x5b4   :  { %v6088_v47 = vadd.f32 %v14717_v19, %v6087_v14  ;;  %v6089_v44 = vpop.f32.mrb[75].mxu1  ;;  %v6279_v60 = vmax.f32 %v6085_v39, 0.0 }
 0x5b6   :  { %v6280_v5 = vmax.f32 %v6088_v47, 0.0 }
 0x5b8   :  { %v6333_v17 = vpack.c.bf16 %v6280_v5, %v6279_v60 }
 0x5b9   :  { %v6092_v9 = vpop.f32.mrb[76].mxu1 }
 0x5ba   :  { %v6093_v37 = vadd.f32 %v14717_v19, %v6092_v9  ;;  %v6094_v8 = vpop.f32.mrb[77].mxu1  ;;  %7352 = vmatprep.mubr.bf16.mxu1 %v6333_v17 }
 0x5bb   :  { %v6095_v54 = vpop.f32.mrb[78].mxu1 }
 0x5bc   :  { %v6096_v12 = vadd.f32 %v14717_v19, %v6095_v54  ;;  %v6097_v59 = vpop.f32.mrb[79].mxu1  ;;  %v6281_v30 = vmax.f32 %v6093_v37, 0.0 }
 0x5be   :  { %v6282_v63 = vmax.f32 %v6096_v12, 0.0 }
 0x5c0   :  { %v6334_v32 = vpack.c.bf16 %v6282_v63, %v6281_v30 }
 0x5c1   :  { %v6100_v50 = vpop.f32.mrb[80].mxu1 }
 0x5c2   :  { %v6101_v1 = vadd.f32 %v14717_v19, %v6100_v50  ;;  %v6102_v23 = vpop.f32.mrb[81].mxu1  ;;  %7353 = vmatmul.mubr.bf16.gmra.mrb[180].mxu1 %v6334_v32 }
 0x5c3   :  { %v6103_v46 = vpop.f32.mrb[82].mxu1 }
 0x5c4   :  { %v6104_v7 = vadd.f32 %v14717_v19, %v6103_v46  ;;  %v6105_v57 = vpop.f32.mrb[83].mxu1  ;;  %v6283_v53 = vmax.f32 %v6101_v1, 0.0 }
 0x5c6   :  { %v6284_v35 = vmax.f32 %v6104_v7, 0.0 }
 0x5c8   :  { %v6335_v48 = vpack.c.bf16 %v6284_v35, %v6283_v53 }
 0x5c9   :  { %v6108_v29 = vpop.f32.mrb[84].mxu1 }
 0x5ca   :  { %v6109_v34 = vadd.f32 %v14717_v19, %v6108_v29  ;;  %v6110_v56 = vpop.f32.mrb[85].mxu1  ;;  %7356 = vmatprep.mubr.bf16.mxu1 %v6335_v48 }
 0x5cb   :  { %v6111_v13 = vpop.f32.mrb[86].mxu1 }
 0x5cc   :  { %v6112_v55 = vadd.f32 %v14717_v19, %v6111_v13  ;;  %v6113_v40 = vpop.f32.mrb[87].mxu1  ;;  %v6285_v6 = vmax.f32 %v6109_v34, 0.0 }
 0x5ce   :  { %v6286_v52 = vmax.f32 %v6112_v55, 0.0 }
 0x5d0   :  { %v6336_v15 = vpack.c.bf16 %v6286_v52, %v6285_v6 }
 0x5d1   :  { %v6116_v33 = vpop.f32.mrb[88].mxu1 }
 0x5d2   :  { %v6117_v62 = vadd.f32 %v14717_v19, %v6116_v33  ;;  %v6118_v22 = vpop.f32.mrb[89].mxu1  ;;  %7357 = vmatmul.mubr.bf16.gmra.mrb[184].mxu1 %v6336_v15 }
 0x5d3   :  { %v6119_v24 = vpop.f32.mrb[90].mxu1 }
 0x5d4   :  { %v6120_v20 = vadd.f32 %v14717_v19, %v6119_v24  ;;  %v6121_v26 = vpop.f32.mrb[91].mxu1  ;;  %v6287_v10 = vmax.f32 %v6117_v62, 0.0 }
 0x5d6   :  { %v6288_v61 = vmax.f32 %v6120_v20, 0.0 }
 0x5d8   :  { %v6337_v25 = vpack.c.bf16 %v6288_v61, %v6287_v10 }
 0x5d9   :  { %v6124_v3 = vpop.f32.mrb[92].mxu1 }
 0x5da   :  { %v6125_v11 = vadd.f32 %v14717_v19, %v6124_v3  ;;  %v6126_v51 = vpop.f32.mrb[93].mxu1  ;;  %7360 = vmatprep.mubr.bf16.mxu1 %v6337_v25 }
 0x5db   :  { %v6127_v4 = vpop.f32.mrb[94].mxu1 }
 0x5dc   :  { %v6128_v41 = vadd.f32 %v14717_v19, %v6127_v4  ;;  %v6129_v28 = vpop.f32.mrb[95].mxu1  ;;  %v6289_v16 = vmax.f32 %v6125_v11, 0.0 }
 0x5de   :  { %v6290_v45 = vmax.f32 %v6128_v41, 0.0 }
 0x5e0   :  { %v6338_v27 = vpack.c.bf16 %v6290_v45, %v6289_v16 }
 0x5e1   :  { %v6132_v31 = vpop.f32.mrb[96].mxu1 }
 0x5e2   :  { %v6133_v42 = vadd.f32 %v14717_v19, %v6132_v31  ;;  %v6134_v0 = vpop.f32.mrb[97].mxu1  ;;  %7361 = vmatmul.mubr.bf16.gmra.mrb[188].mxu1 %v6338_v27 }
 0x5e3   :  { %v6135_v36 = vpop.f32.mrb[98].mxu1 }
 0x5e4   :  { %v6136_v2 = vadd.f32 %v14717_v19, %v6135_v36  ;;  %v6137_v21 = vpop.f32.mrb[99].mxu1  ;;  %v6291_v43 = vmax.f32 %v6133_v42, 0.0 }
 0x5e6   :  { %v6292_v58 = vmax.f32 %v6136_v2, 0.0 }
 0x5e8   :  { %v6339_v49 = vpack.c.bf16 %v6292_v58, %v6291_v43 }
 0x5e9   :  { %v6140_v38 = vpop.f32.mrb[100].mxu1 }
 0x5ea   :  { %v6141_v39 = vadd.f32 %v14717_v19, %v6140_v38  ;;  %v6142_v18 = vpop.f32.mrb[101].mxu1  ;;  %7364 = vmatprep.mubr.bf16.mxu1 %v6339_v49 }
 0x5eb   :  { %v6143_v14 = vpop.f32.mrb[102].mxu1 }
 0x5ec   :  { %v6144_v47 = vadd.f32 %v14717_v19, %v6143_v14  ;;  %v6145_v44 = vpop.f32.mrb[103].mxu1  ;;  %v6293_v60 = vmax.f32 %v6141_v39, 0.0 }
 0x5ee   :  { %v6294_v5 = vmax.f32 %v6144_v47, 0.0 }
 0x5f0   :  { %v6340_v17 = vpack.c.bf16 %v6294_v5, %v6293_v60 }
 0x5f1   :  { %v6148_v9 = vpop.f32.mrb[104].mxu1 }
 0x5f2   :  { %v6149_v37 = vadd.f32 %v14717_v19, %v6148_v9  ;;  %v6150_v8 = vpop.f32.mrb[105].mxu1  ;;  %7365 = vmatmul.mubr.bf16.gmra.mrb[192].mxu1 %v6340_v17 }
 0x5f3   :  { %v6151_v54 = vpop.f32.mrb[106].mxu1 }
 0x5f4   :  { %v6152_v12 = vadd.f32 %v14717_v19, %v6151_v54  ;;  %v6153_v59 = vpop.f32.mrb[107].mxu1  ;;  %v6295_v30 = vmax.f32 %v6149_v37, 0.0 }
 0x5f6   :  { %v6296_v63 = vmax.f32 %v6152_v12, 0.0 }
 0x5f8   :  { %v6341_v32 = vpack.c.bf16 %v6296_v63, %v6295_v30 }
 0x5f9   :  { %v6156_v50 = vpop.f32.mrb[108].mxu1 }
 0x5fa   :  { %v6157_v1 = vadd.f32 %v14717_v19, %v6156_v50  ;;  %v6158_v23 = vpop.f32.mrb[109].mxu1  ;;  %7368 = vmatprep.mubr.bf16.mxu1 %v6341_v32 }
 0x5fb   :  { %v6159_v46 = vpop.f32.mrb[110].mxu1 }
 0x5fc   :  { %v6160_v7 = vadd.f32 %v14717_v19, %v6159_v46  ;;  %v6161_v57 = vpop.f32.mrb[111].mxu1  ;;  %v6297_v53 = vmax.f32 %v6157_v1, 0.0 }
 0x5fe   :  { %v6298_v35 = vmax.f32 %v6160_v7, 0.0 }
 0x600   :  { %v6342_v48 = vpack.c.bf16 %v6298_v35, %v6297_v53 }
 0x601   :  { %v6164_v29 = vpop.f32.mrb[112].mxu1 }
 0x602   :  { %v6165_v34 = vadd.f32 %v14717_v19, %v6164_v29  ;;  %v6166_v56 = vpop.f32.mrb[113].mxu1  ;;  %7369 = vmatmul.mubr.bf16.gmra.mrb[196].mxu1 %v6342_v48 }
 0x603   :  { %v6167_v13 = vpop.f32.mrb[114].mxu1 }
 0x604   :  { %v6168_v55 = vadd.f32 %v14717_v19, %v6167_v13  ;;  %v6169_v40 = vpop.f32.mrb[115].mxu1  ;;  %v6299_v6 = vmax.f32 %v6165_v34, 0.0 }
 0x606   :  { %v6300_v52 = vmax.f32 %v6168_v55, 0.0 }
 0x608   :  { %v6343_v15 = vpack.c.bf16 %v6300_v52, %v6299_v6 }
 0x609   :  { %v6172_v33 = vpop.f32.mrb[116].mxu1 }
 0x60a   :  { %v6173_v62 = vadd.f32 %v14717_v19, %v6172_v33  ;;  %v6174_v22 = vpop.f32.mrb[117].mxu1  ;;  %7372 = vmatprep.mubr.bf16.mxu1 %v6343_v15 }
 0x60b   :  { %v6175_v24 = vpop.f32.mrb[118].mxu1 }
 0x60c   :  { %v6176_v20 = vadd.f32 %v14717_v19, %v6175_v24  ;;  %v6177_v26 = vpop.f32.mrb[119].mxu1  ;;  %v6301_v10 = vmax.f32 %v6173_v62, 0.0 }
 0x60e   :  { %v6302_v61 = vmax.f32 %v6176_v20, 0.0 }
 0x610   :  { %v6344_v25 = vpack.c.bf16 %v6302_v61, %v6301_v10 }
 0x611   :  { %v6180_v3 = vpop.f32.mrb[120].mxu1 }
 0x612   :  { %v6181_v11 = vadd.f32 %v14717_v19, %v6180_v3  ;;  %v6182_v51 = vpop.f32.mrb[121].mxu1  ;;  %7373 = vmatmul.mubr.bf16.gmra.mrb[200].mxu1 %v6344_v25 }
 0x613   :  { %v6183_v4 = vpop.f32.mrb[122].mxu1 }
 0x614   :  { %v6184_v41 = vadd.f32 %v14717_v19, %v6183_v4  ;;  %v6185_v28 = vpop.f32.mrb[123].mxu1  ;;  %v6303_v16 = vmax.f32 %v6181_v11, 0.0 }
 0x616   :  { %v6304_v45 = vmax.f32 %v6184_v41, 0.0 }
 0x618   :  { %v6345_v27 = vpack.c.bf16 %v6304_v45, %v6303_v16 }
 0x619   :  { %v6188_v31 = vpop.f32.mrb[124].mxu1 }
 0x61a   :  { %v6189_v42 = vadd.f32 %v14717_v19, %v6188_v31  ;;  %v6190_v0 = vpop.f32.mrb[125].mxu1  ;;  %7376 = vmatprep.mubr.bf16.mxu1 %v6345_v27 }
 0x61b   :  { %v6191_v36 = vpop.f32.mrb[126].mxu1 }
 0x61c   :  { %v6192_v2 = vadd.f32 %v14717_v19, %v6191_v36  ;;  %v6193_v21 = vpop.f32.mrb[127].mxu1  ;;  %v6305_v43 = vmax.f32 %v6189_v42, 0.0 }
 0x61e   :  { %v6306_v58 = vmax.f32 %v6192_v2, 0.0 }
 0x620   :  { %v6346_v49 = vpack.c.bf16 %v6306_v58, %v6305_v43 }
 0x621   :  { %v6196_v38 = vpop.f32.mrb[128].mxu1 }
 0x622   :  { %v6197_v39 = vadd.f32 %v14717_v19, %v6196_v38  ;;  %v6198_v18 = vpop.f32.mrb[129].mxu1  ;;  %7377 = vmatmul.mubr.bf16.gmra.mrb[204].mxu1 %v6346_v49 }
 0x623   :  { %v6199_v14 = vpop.f32.mrb[130].mxu1 }
 0x624   :  { %v6200_v47 = vadd.f32 %v14717_v19, %v6199_v14  ;;  %v6201_v44 = vpop.f32.mrb[131].mxu1  ;;  %v6307_v60 = vmax.f32 %v6197_v39, 0.0 }
 0x626   :  { %v6308_v5 = vmax.f32 %v6200_v47, 0.0 }
 0x628   :  { %v6347_v17 = vpack.c.bf16 %v6308_v5, %v6307_v60 }
 0x629   :  { %v6204_v9 = vpop.f32.mrb[132].mxu1 }
 0x62a   :  { %v6205_v37 = vadd.f32 %v14717_v19, %v6204_v9  ;;  %v6206_v8 = vpop.f32.mrb[133].mxu1  ;;  %7380 = vmatprep.mubr.bf16.mxu1 %v6347_v17  ;;  %v14792_v17 = vld [vmem:[%s15321_s8] ss:$0 sm:$0xff] }
 0x62b   :  { %v6207_v54 = vpop.f32.mrb[134].mxu1 }
 0x62c   :  { %v6208_v12 = vadd.f32 %v14717_v19, %v6207_v54  ;;  %v6209_v59 = vpop.f32.mrb[135].mxu1  ;;  %v6309_v30 = vmax.f32 %v6205_v37, 0.0 }
 0x62e   :  { %v6310_v63 = vmax.f32 %v6208_v12, 0.0  ;;  %v14798_v12 = vld [vmem:[%s15322_s9] ss:$0 sm:$0xff] }
 0x630   :  { %v6348_v32 = vpack.c.bf16 %v6310_v63, %v6309_v30 }
 0x631   :  { %v6212_v50 = vpop.f32.mrb[136].mxu1 }
 0x632   :  { %v6213_v1 = vadd.f32 %v14717_v19, %v6212_v50  ;;  %v6214_v23 = vpop.f32.mrb[137].mxu1  ;;  %7381 = vmatmul.mubr.bf16.gmra.mrb[208].mxu1 %v6348_v32 }
 0x633   :  { %v6215_v46 = vpop.f32.mrb[138].mxu1 }
 0x634   :  { %v6216_v7 = vadd.f32 %v14717_v19, %v6215_v46  ;;  %v6217_v57 = vpop.f32.mrb[139].mxu1  ;;  %v6311_v53 = vmax.f32 %v6213_v1, 0.0 }
 0x636   :  { %v6312_v35 = vmax.f32 %v6216_v7, 0.0 }
 0x638   :  { %v6349_v48 = vpack.c.bf16 %v6312_v35, %v6311_v53 }
 0x639   :  { %v6220_v29 = vpop.f32.mrb[140].mxu1 }
 0x63a   :  { %v6221_v34 = vadd.f32 %v14717_v19, %v6220_v29  ;;  %v6222_v56 = vpop.f32.mrb[141].mxu1  ;;  %7384 = vmatprep.mubr.bf16.mxu1 %v6349_v48 }
 0x63b   :  { %v6223_v13 = vpop.f32.mrb[142].mxu1 }
 0x63c   :  { %v6224_v55 = vadd.f32 %v14717_v19, %v6223_v13  ;;  %v6225_v40 = vpop.f32.mrb[143].mxu1  ;;  %v6313_v6 = vmax.f32 %v6221_v34, 0.0 }
 0x63e   :  { %v6314_v52 = vmax.f32 %v6224_v55, 0.0 }
 0x640   :  { %v6350_v15 = vpack.c.bf16 %v6314_v52, %v6313_v6 }
 0x641   :  { %v6228_v33 = vpop.f32.mrb[144].mxu1 }
 0x642   :  { %v6229_v62 = vadd.f32 %v14717_v19, %v6228_v33  ;;  %v6230_v22 = vpop.f32.mrb[145].mxu1  ;;  %7385 = vmatmul.mubr.bf16.gmra.mrb[212].mxu1 %v6350_v15 }
 0x643   :  { %v6231_v24 = vpop.f32.mrb[146].mxu1 }
 0x644   :  { %v6232_v20 = vadd.f32 %v14717_v19, %v6231_v24  ;;  %v6233_v26 = vpop.f32.mrb[147].mxu1  ;;  %v6315_v10 = vmax.f32 %v6229_v62, 0.0 }
 0x646   :  { %v6316_v61 = vmax.f32 %v6232_v20, 0.0 }
 0x648   :  { %v6351_v25 = vpack.c.bf16 %v6316_v61, %v6315_v10 }
 0x649   :  { %v6236_v3 = vpop.f32.mrb[148].mxu1 }
 0x64a   :  { %v6237_v11 = vadd.f32 %v14717_v19, %v6236_v3  ;;  %v6238_v51 = vpop.f32.mrb[149].mxu1  ;;  %7388 = vmatprep.mubr.bf16.mxu1 %v6351_v25 }
 0x64b   :  { %v6239_v4 = vpop.f32.mrb[150].mxu1 }
 0x64c   :  { %v6240_v41 = vadd.f32 %v14717_v19, %v6239_v4  ;;  %v6241_v28 = vpop.f32.mrb[151].mxu1  ;;  %v6317_v16 = vmax.f32 %v6237_v11, 0.0 }
 0x64e   :  { %v6318_v45 = vmax.f32 %v6240_v41, 0.0 }
 0x650   :  { %v6352_v27 = vpack.c.bf16 %v6318_v45, %v6317_v16 }
 0x651   :  { %v6244_v31 = vpop.f32.mrb[152].mxu1 }
 0x652   :  { %v6245_v42 = vadd.f32 %v14717_v19, %v6244_v31  ;;  %v6246_v0 = vpop.f32.mrb[153].mxu1  ;;  %7389 = vmatmul.mubr.bf16.gmra.mrb[216].mxu1 %v6352_v27 }
 0x653   :  { %v6247_v36 = vpop.f32.mrb[154].mxu1 }
 0x654   :  { %v6248_v2 = vadd.f32 %v14717_v19, %v6247_v36  ;;  %v6249_v21 = vpop.f32.mrb[155].mxu1  ;;  %v6319_v43 = vmax.f32 %v6245_v42, 0.0 }
 0x656   :  { %v6320_v58 = vmax.f32 %v6248_v2, 0.0 }
 0x658   :  { %v6353_v49 = vpack.c.bf16 %v6320_v58, %v6319_v43 }
 0x659   :  { %v6252_v38 = vpop.f32.mrb[156].mxu1 }
 0x65a   :  { %v6253_v39 = vadd.f32 %v14717_v19, %v6252_v38  ;;  %v6254_v18 = vpop.f32.mrb[157].mxu1  ;;  %7392 = vmatprep.mubr.bf16.mxu1 %v6353_v49 }
 0x65b   :  { %v6255_v14 = vpop.f32.mrb[158].mxu1 }
 0x65c   :  { %v6256_v47 = vadd.f32 %v14717_v19, %v6255_v14  ;;  %v6257_v44 = vpop.f32.mrb[159].mxu1  ;;  %v6321_v60 = vmax.f32 %v6253_v39, 0.0 }
 0x65e   :  { %v6322_v5 = vmax.f32 %v6256_v47, 0.0 }
 0x660   :  { %v6354_v9 = vpack.c.bf16 %v6322_v5, %v6321_v60 }
 0x661   :  { %v7334_v37 = vpop.f32.mrb[160].mxu1 }
 0x662   :  { %v6469_v8 = vadd.f32 %v7334_v37, %v14792_v17  ;;  %v6460_v54 = vpop.f32.mrb[161].mxu1  ;;  %7393 = vmatmul.mubr.bf16.gmra.mrb[220].mxu1 %v6354_v9 }
 0x663   :  { %v6461_v19 = vadd.f32 %v14792_v17, %v6460_v54  ;;  %v7335_v59 = vpop.f32.mrb[162].mxu1 }
 0x664   :  { %v6717_v30 = vmax.f32 %v6469_v8, 0.0  ;;  %v6472_v63 = vadd.f32 %v7335_v59, %v14792_v17  ;;  %v6463_v32 = vpop.f32.mrb[163].mxu1 }
 0x665   :  { %v6715_v50 = vmax.f32 %v6461_v19, 0.0  ;;  %v6464_v1 = vadd.f32 %v14792_v17, %v6463_v32 }
 0x666   :  { %v6788_v23 = vmul.f32 %v14798_v12, %v6717_v30  ;;  %v6718_v46 = vmax.f32 %v6472_v63, 0.0 }
 0x667   :  { %v6786_v7 = vmul.f32 %v14798_v12, %v6715_v50  ;;  %v6716_v57 = vmax.f32 %v6464_v1, 0.0 }
 0x668   :  { %v6857_v53 = vsel %vm6850_vm0, %v6788_v23, 0.0  ;;  %v6789_v35 = vmul.f32 %v14798_v12, %v6718_v46 }
 0x669   :  { %v6787_v48 = vmul.f32 %v14798_v12, %v6716_v57  ;;  %6858 = vadd.xlane.f32.xlu0 %v6857_v53  ;;  %v7338_v29 = vpop.f32.mrb[164].mxu1  ;;  %v6851_v34 = vsel %vm6850_vm0, %v6786_v7, 0.0 }
 0x66a   :  { %v6485_v56 = vadd.f32 %v7338_v29, %v14792_v17  ;;  %v6476_v13 = vpop.f32.mrb[165].mxu1  ;;  %6852 = vadd.xlane.f32.xlu1 %v6851_v34  ;;  %v6860_v24 = vsel %vm6850_vm0, %v6789_v35, 0.0 }
 0x66b   :  { %v6477_v55 = vadd.f32 %v14792_v17, %v6476_v13  ;;  %v7339_v40 = vpop.f32.mrb[166].mxu1  ;;  %v6854_v6 = vsel %vm6850_vm0, %v6787_v48, 0.0 }
 0x66c   :  { %v6721_v52 = vmax.f32 %v6485_v56, 0.0  ;;  %v6488_v15 = vadd.f32 %v7339_v40, %v14792_v17  ;;  %v6479_v33 = vpop.f32.mrb[167].mxu1 }
 0x66d   :  { %v6719_v62 = vmax.f32 %v6477_v55, 0.0  ;;  %v6480_v22 = vadd.f32 %v14792_v17, %v6479_v33  ;;  %6855 = vadd.xlane.f32.xlu0 %v6854_v6 }
 0x66e   :  { %v6792_v20 = vmul.f32 %v14798_v12, %v6721_v52  ;;  %v6722_v26 = vmax.f32 %v6488_v15, 0.0  ;;  %6861 = vadd.xlane.f32.xlu1 %v6860_v24 }
 0x66f   :  { %v6720_v10 = vmax.f32 %v6480_v22, 0.0  ;;  %v6790_v61 = vmul.f32 %v14798_v12, %v6719_v62 }
 0x670   :  { %v6793_v25 = vmul.f32 %v14798_v12, %v6722_v26  ;;  %v6869_v3 = vsel %vm6850_vm0, %v6792_v20, 0.0 }
 0x671   :  { %v7342_v11 = vpop.f32.mrb[168].mxu1  ;;  %6870 = vadd.xlane.f32.xlu0 %v6869_v3  ;;  %v6791_v51 = vmul.f32 %v14798_v12, %v6720_v10  ;;  %v6863_v0 = vsel %vm6850_vm0, %v6790_v61, 0.0 }
 0x672   :  { %v6501_v4 = vadd.f32 %v7342_v11, %v14792_v17  ;;  %v6492_v41 = vpop.f32.mrb[169].mxu1  ;;  %v6872_v28 = vsel %vm6850_vm0, %v6793_v25, 0.0 }
 0x673   :  { %v6493_v16 = vadd.f32 %v14792_v17, %v6492_v41  ;;  %v7343_v45 = vpop.f32.mrb[170].mxu1  ;;  %6873 = vadd.xlane.f32.xlu1 %v6872_v28  ;;  %v6866_v58 = vsel %vm6850_vm0, %v6791_v51, 0.0 }
 0x674   :  { %v6725_v27 = vmax.f32 %v6501_v4, 0.0  ;;  %v6504_v31 = vadd.f32 %v7343_v45, %v14792_v17  ;;  %v6495_v42 = vpop.f32.mrb[171].mxu1 }
 0x675   :  { %v6723_v36 = vmax.f32 %v6493_v16, 0.0  ;;  %v6496_v2 = vadd.f32 %v14792_v17, %v6495_v42  ;;  %6864 = vadd.xlane.f32.xlu0 %v6863_v0 }
 0x676   :  { %v6796_v21 = vmul.f32 %v14798_v12, %v6725_v27  ;;  %v6726_v43 = vmax.f32 %v6504_v31, 0.0 }
 0x677   :  { %v6724_v49 = vmax.f32 %v6496_v2, 0.0  ;;  %6867 = vadd.xlane.f32.xlu1 %v6866_v58  ;;  %v6794_v38 = vmul.f32 %v14798_v12, %v6723_v36 }
 0x678   :  { %v6797_v39 = vmul.f32 %v14798_v12, %v6726_v43  ;;  %v6881_v18 = vsel %vm6850_vm0, %v6796_v21, 0.0 }
 0x679   :  { %v7346_v14 = vpop.f32.mrb[172].mxu1  ;;  %6882 = vadd.xlane.f32.xlu0 %v6881_v18  ;;  %v6795_v47 = vmul.f32 %v14798_v12, %v6724_v49  ;;  %v6875_v59 = vsel %vm6850_vm0, %v6794_v38, 0.0 }
 0x67a   :  { %v6517_v44 = vadd.f32 %v7346_v14, %v14792_v17  ;;  %v6508_v60 = vpop.f32.mrb[173].mxu1  ;;  %v6884_v5 = vsel %vm6850_vm0, %v6797_v39, 0.0 }
 0x67b   :  { %v6509_v9 = vadd.f32 %v14792_v17, %v6508_v60  ;;  %v7347_v37 = vpop.f32.mrb[174].mxu1  ;;  %6885 = vadd.xlane.f32.xlu1 %v6884_v5  ;;  %v6878_v1 = vsel %vm6850_vm0, %v6795_v47, 0.0 }
 0x67c   :  { %v6729_v8 = vmax.f32 %v6517_v44, 0.0  ;;  %v6520_v54 = vadd.f32 %v7347_v37, %v14792_v17  ;;  %v6511_v19 = vpop.f32.mrb[175].mxu1 }
 0x67d   :  { %v6727_v30 = vmax.f32 %v6509_v9, 0.0  ;;  %v6512_v63 = vadd.f32 %v14792_v17, %v6511_v19  ;;  %6876 = vadd.xlane.f32.xlu0 %v6875_v59 }
 0x67e   :  { %v6800_v32 = vmul.f32 %v14798_v12, %v6729_v8  ;;  %v6730_v50 = vmax.f32 %v6520_v54, 0.0 }
 0x67f   :  { %v6728_v23 = vmax.f32 %v6512_v63, 0.0  ;;  %6879 = vadd.xlane.f32.xlu1 %v6878_v1  ;;  %v6798_v46 = vmul.f32 %v14798_v12, %v6727_v30 }
 0x680   :  { %v6801_v7 = vmul.f32 %v14798_v12, %v6730_v50  ;;  %v6893_v57 = vsel %vm6850_vm0, %v6800_v32, 0.0 }
 0x681   :  { %6894 = vadd.xlane.f32.xlu0 %v6893_v57  ;;  %v6799_v53 = vmul.f32 %v14798_v12, %v6728_v23  ;;  %v6887_v48 = vsel %vm6850_vm0, %v6798_v46, 0.0 }
 0x682   :  { %v6896_v35 = vsel %vm6850_vm0, %v6801_v7, 0.0 }
 0x683   :  { %6897 = vadd.xlane.f32.xlu1 %v6896_v35  ;;  %v6890_v13 = vsel %vm6850_vm0, %v6799_v53, 0.0 }
 0x685   :  { %v7350_v29 = vpop.f32.mrb[176].mxu1  ;;  %6888 = vadd.xlane.f32.xlu0 %v6887_v48 }
 0x686   :  { %v6533_v34 = vadd.f32 %v7350_v29, %v14792_v17  ;;  %v6524_v56 = vpop.f32.mrb[177].mxu1 }
 0x687   :  { %v6525_v55 = vadd.f32 %v14792_v17, %v6524_v56  ;;  %v7351_v40 = vpop.f32.mrb[178].mxu1  ;;  %6891 = vadd.xlane.f32.xlu1 %v6890_v13 }
 0x688   :  { %v6733_v6 = vmax.f32 %v6533_v34, 0.0  ;;  %v6536_v52 = vadd.f32 %v7351_v40, %v14792_v17  ;;  %v6527_v15 = vpop.f32.mrb[179].mxu1 }
 0x689   :  { %v6731_v33 = vmax.f32 %v6525_v55, 0.0  ;;  %v6528_v62 = vadd.f32 %v14792_v17, %v6527_v15 }
 0x68a   :  { %v6804_v22 = vmul.f32 %v14798_v12, %v6733_v6  ;;  %v6734_v24 = vmax.f32 %v6536_v52, 0.0 }
 0x68b   :  { %v6732_v20 = vmax.f32 %v6528_v62, 0.0  ;;  %v6802_v26 = vmul.f32 %v14798_v12, %v6731_v33 }
 0x68c   :  { %v6805_v10 = vmul.f32 %v14798_v12, %v6734_v24  ;;  %v6905_v61 = vsel %vm6850_vm0, %v6804_v22, 0.0 }
 0x68d   :  { %6906 = vadd.xlane.f32.xlu0 %v6905_v61  ;;  %v6803_v25 = vmul.f32 %v14798_v12, %v6732_v20  ;;  %v6899_v11 = vsel %vm6850_vm0, %v6802_v26, 0.0 }
 0x68e   :  { %v6908_v3 = vsel %vm6850_vm0, %v6805_v10, 0.0 }
 0x68f   :  { %6909 = vadd.xlane.f32.xlu1 %v6908_v3  ;;  %v6902_v51 = vsel %vm6850_vm0, %v6803_v25, 0.0 }
 0x691   :  { %6900 = vadd.xlane.f32.xlu0 %v6899_v11 }
 0x693   :  { %6903 = vadd.xlane.f32.xlu1 %v6902_v51 }
 0x695   :  { %v7354_v4 = vpop.f32.mrb[180].mxu1 }
 0x696   :  { %v6549_v41 = vadd.f32 %v7354_v4, %v14792_v17  ;;  %v6540_v28 = vpop.f32.mrb[181].mxu1 }
 0x697   :  { %v6541_v16 = vadd.f32 %v14792_v17, %v6540_v28  ;;  %v7355_v45 = vpop.f32.mrb[182].mxu1 }
 0x698   :  { %v6737_v27 = vmax.f32 %v6549_v41, 0.0  ;;  %v6552_v31 = vadd.f32 %v7355_v45, %v14792_v17  ;;  %v6543_v42 = vpop.f32.mrb[183].mxu1 }
 0x699   :  { %v6735_v0 = vmax.f32 %v6541_v16, 0.0  ;;  %v6544_v36 = vadd.f32 %v14792_v17, %v6543_v42 }
 0x69a   :  { %v6808_v2 = vmul.f32 %v14798_v12, %v6737_v27  ;;  %v6738_v21 = vmax.f32 %v6552_v31, 0.0 }
 0x69b   :  { %v6736_v43 = vmax.f32 %v6544_v36, 0.0  ;;  %v6806_v58 = vmul.f32 %v14798_v12, %v6735_v0 }
 0x69c   :  { %v6809_v49 = vmul.f32 %v14798_v12, %v6738_v21  ;;  %v6917_v38 = vsel %vm6850_vm0, %v6808_v2, 0.0 }
 0x69d   :  { %6918 = vadd.xlane.f32.xlu0 %v6917_v38  ;;  %v6807_v39 = vmul.f32 %v14798_v12, %v6736_v43  ;;  %v6911_v14 = vsel %vm6850_vm0, %v6806_v58, 0.0 }
 0x69e   :  { %v6920_v18 = vsel %vm6850_vm0, %v6809_v49, 0.0 }
 0x69f   :  { %6921 = vadd.xlane.f32.xlu1 %v6920_v18  ;;  %v6914_v47 = vsel %vm6850_vm0, %v6807_v39, 0.0 }
 0x6a1   :  { %6912 = vadd.xlane.f32.xlu0 %v6911_v14 }
 0x6a3   :  { %6915 = vadd.xlane.f32.xlu1 %v6914_v47 }
 0x6a5   :  { %v7358_v44 = vpop.f32.mrb[184].mxu1 }
 0x6a6   :  { %v6565_v60 = vadd.f32 %v7358_v44, %v14792_v17  ;;  %v6556_v5 = vpop.f32.mrb[185].mxu1 }
 0x6a7   :  { %v6557_v9 = vadd.f32 %v14792_v17, %v6556_v5  ;;  %v7359_v37 = vpop.f32.mrb[186].mxu1 }
 0x6a8   :  { %v6741_v8 = vmax.f32 %v6565_v60, 0.0  ;;  %v6568_v54 = vadd.f32 %v7359_v37, %v14792_v17  ;;  %v6559_v19 = vpop.f32.mrb[187].mxu1 }
 0x6a9   :  { %v6739_v59 = vmax.f32 %v6557_v9, 0.0  ;;  %v6560_v30 = vadd.f32 %v14792_v17, %v6559_v19 }
 0x6aa   :  { %v6812_v63 = vmul.f32 %v14798_v12, %v6741_v8  ;;  %v6742_v32 = vmax.f32 %v6568_v54, 0.0 }
 0x6ab   :  { %v6740_v50 = vmax.f32 %v6560_v30, 0.0  ;;  %v6810_v1 = vmul.f32 %v14798_v12, %v6739_v59 }
 0x6ac   :  { %v6813_v23 = vmul.f32 %v14798_v12, %v6742_v32  ;;  %v6929_v46 = vsel %vm6850_vm0, %v6812_v63, 0.0 }
 0x6ad   :  { %6930 = vadd.xlane.f32.xlu0 %v6929_v46  ;;  %v6811_v7 = vmul.f32 %v14798_v12, %v6740_v50  ;;  %v6923_v53 = vsel %vm6850_vm0, %v6810_v1, 0.0 }
 0x6ae   :  { %v6932_v57 = vsel %vm6850_vm0, %v6813_v23, 0.0 }
 0x6af   :  { %6933 = vadd.xlane.f32.xlu1 %v6932_v57  ;;  %v6926_v35 = vsel %vm6850_vm0, %v6811_v7, 0.0 }
 0x6b1   :  { %6924 = vadd.xlane.f32.xlu0 %v6923_v53 }
 0x6b3   :  { %6927 = vadd.xlane.f32.xlu1 %v6926_v35 }
 0x6b5   :  { %v7362_v48 = vpop.f32.mrb[188].mxu1 }
 0x6b6   :  { %v6581_v29 = vadd.f32 %v7362_v48, %v14792_v17  ;;  %v6572_v34 = vpop.f32.mrb[189].mxu1 }
 0x6b7   :  { %v6573_v56 = vadd.f32 %v14792_v17, %v6572_v34  ;;  %v7363_v13 = vpop.f32.mrb[190].mxu1 }
 0x6b8   :  { %v6745_v55 = vmax.f32 %v6581_v29, 0.0  ;;  %v6584_v40 = vadd.f32 %v7363_v13, %v14792_v17  ;;  %v6575_v6 = vpop.f32.mrb[191].mxu1 }
 0x6b9   :  { %v6743_v52 = vmax.f32 %v6573_v56, 0.0  ;;  %v6576_v15 = vadd.f32 %v14792_v17, %v6575_v6 }
 0x6ba   :  { %v6816_v33 = vmul.f32 %v14798_v12, %v6745_v55  ;;  %v6746_v62 = vmax.f32 %v6584_v40, 0.0 }
 0x6bb   :  { %v6744_v22 = vmax.f32 %v6576_v15, 0.0  ;;  %v6814_v24 = vmul.f32 %v14798_v12, %v6743_v52 }
 0x6bc   :  { %v6817_v20 = vmul.f32 %v14798_v12, %v6746_v62  ;;  %v6941_v26 = vsel %vm6850_vm0, %v6816_v33, 0.0 }
 0x6bd   :  { %6942 = vadd.xlane.f32.xlu0 %v6941_v26  ;;  %v6815_v10 = vmul.f32 %v14798_v12, %v6744_v22  ;;  %v6935_v25 = vsel %vm6850_vm0, %v6814_v24, 0.0 }
 0x6be   :  { %v6944_v61 = vsel %vm6850_vm0, %v6817_v20, 0.0 }
 0x6bf   :  { %6945 = vadd.xlane.f32.xlu1 %v6944_v61  ;;  %v6938_v3 = vsel %vm6850_vm0, %v6815_v10, 0.0 }
 0x6c1   :  { %6936 = vadd.xlane.f32.xlu0 %v6935_v25  ;;  %v14931_v25 = vld [vmem:[#allocation2] ss:$0 sm:$0xff] }
 0x6c3   :  { %6939 = vadd.xlane.f32.xlu1 %v6938_v3 }
 0x6c5   :  { %v7366_v11 = vpop.f32.mrb[192].mxu1 }
 0x6c6   :  { %v6597_v51 = vadd.f32 %v7366_v11, %v14792_v17  ;;  %v6588_v4 = vpop.f32.mrb[193].mxu1 }
 0x6c7   :  { %v6589_v41 = vadd.f32 %v14792_v17, %v6588_v4  ;;  %v7367_v28 = vpop.f32.mrb[194].mxu1 }
 0x6c8   :  { %v6749_v16 = vmax.f32 %v6597_v51, 0.0  ;;  %v6600_v45 = vadd.f32 %v7367_v28, %v14792_v17  ;;  %v6591_v27 = vpop.f32.mrb[195].mxu1 }
 0x6c9   :  { %v6747_v31 = vmax.f32 %v6589_v41, 0.0  ;;  %v6592_v42 = vadd.f32 %v14792_v17, %v6591_v27 }
 0x6ca   :  { %v6820_v0 = vmul.f32 %v14798_v12, %v6749_v16  ;;  %v6750_v36 = vmax.f32 %v6600_v45, 0.0 }
 0x6cb   :  { %v6748_v2 = vmax.f32 %v6592_v42, 0.0  ;;  %v6818_v21 = vmul.f32 %v14798_v12, %v6747_v31 }
 0x6cc   :  { %v6821_v43 = vmul.f32 %v14798_v12, %v6750_v36  ;;  %v6953_v58 = vsel %vm6850_vm0, %v6820_v0, 0.0 }
 0x6cd   :  { %6954 = vadd.xlane.f32.xlu0 %v6953_v58  ;;  %v6819_v49 = vmul.f32 %v14798_v12, %v6748_v2  ;;  %v6947_v39 = vsel %vm6850_vm0, %v6818_v21, 0.0 }
 0x6ce   :  { %v6956_v38 = vsel %vm6850_vm0, %v6821_v43, 0.0 }
 0x6cf   :  { %6957 = vadd.xlane.f32.xlu1 %v6956_v38  ;;  %v6950_v18 = vsel %vm6850_vm0, %v6819_v49, 0.0 }
 0x6d1   :  { %6948 = vadd.xlane.f32.xlu0 %v6947_v39 }
 0x6d3   :  { %6951 = vadd.xlane.f32.xlu1 %v6950_v18 }
 0x6d5   :  { %v7370_v14 = vpop.f32.mrb[196].mxu1 }
 0x6d6   :  { %v6613_v47 = vadd.f32 %v7370_v14, %v14792_v17  ;;  %v6604_v44 = vpop.f32.mrb[197].mxu1 }
 0x6d7   :  { %v6605_v60 = vadd.f32 %v14792_v17, %v6604_v44  ;;  %v7371_v5 = vpop.f32.mrb[198].mxu1 }
 0x6d8   :  { %v6753_v9 = vmax.f32 %v6613_v47, 0.0  ;;  %v6616_v37 = vadd.f32 %v7371_v5, %v14792_v17  ;;  %v6607_v8 = vpop.f32.mrb[199].mxu1 }
 0x6d9   :  { %v6751_v54 = vmax.f32 %v6605_v60, 0.0  ;;  %v6608_v19 = vadd.f32 %v14792_v17, %v6607_v8 }
 0x6da   :  { %v6824_v59 = vmul.f32 %v14798_v12, %v6753_v9  ;;  %v6754_v30 = vmax.f32 %v6616_v37, 0.0 }
 0x6db   :  { %v6752_v63 = vmax.f32 %v6608_v19, 0.0  ;;  %v6822_v32 = vmul.f32 %v14798_v12, %v6751_v54 }
 0x6dc   :  { %v6825_v50 = vmul.f32 %v14798_v12, %v6754_v30  ;;  %v6965_v1 = vsel %vm6850_vm0, %v6824_v59, 0.0 }
 0x6dd   :  { %6966 = vadd.xlane.f32.xlu0 %v6965_v1  ;;  %v6823_v23 = vmul.f32 %v14798_v12, %v6752_v63  ;;  %v6959_v7 = vsel %vm6850_vm0, %v6822_v32, 0.0 }
 0x6de   :  { %v6968_v46 = vsel %vm6850_vm0, %v6825_v50, 0.0 }
 0x6df   :  { %6969 = vadd.xlane.f32.xlu1 %v6968_v46  ;;  %v6962_v57 = vsel %vm6850_vm0, %v6823_v23, 0.0 }
 0x6e1   :  { %6960 = vadd.xlane.f32.xlu0 %v6959_v7 }
 0x6e3   :  { %6963 = vadd.xlane.f32.xlu1 %v6962_v57 }
 0x6e5   :  { %v7374_v53 = vpop.f32.mrb[200].mxu1 }
 0x6e6   :  { %v6629_v35 = vadd.f32 %v7374_v53, %v14792_v17  ;;  %v6620_v48 = vpop.f32.mrb[201].mxu1 }
 0x6e7   :  { %v6621_v29 = vadd.f32 %v14792_v17, %v6620_v48  ;;  %v7375_v34 = vpop.f32.mrb[202].mxu1 }
 0x6e8   :  { %v6757_v56 = vmax.f32 %v6629_v35, 0.0  ;;  %v6632_v13 = vadd.f32 %v7375_v34, %v14792_v17  ;;  %v6623_v55 = vpop.f32.mrb[203].mxu1 }
 0x6e9   :  { %v6755_v40 = vmax.f32 %v6621_v29, 0.0  ;;  %v6624_v6 = vadd.f32 %v14792_v17, %v6623_v55 }
 0x6ea   :  { %v6828_v52 = vmul.f32 %v14798_v12, %v6757_v56  ;;  %v6758_v15 = vmax.f32 %v6632_v13, 0.0 }
 0x6eb   :  { %v6756_v33 = vmax.f32 %v6624_v6, 0.0  ;;  %v6826_v62 = vmul.f32 %v14798_v12, %v6755_v40 }
 0x6ec   :  { %v6829_v22 = vmul.f32 %v14798_v12, %v6758_v15  ;;  %v6977_v24 = vsel %vm6850_vm0, %v6828_v52, 0.0 }
 0x6ed   :  { %6978 = vadd.xlane.f32.xlu0 %v6977_v24  ;;  %v6827_v20 = vmul.f32 %v14798_v12, %v6756_v33  ;;  %v6971_v10 = vsel %vm6850_vm0, %v6826_v62, 0.0 }
 0x6ee   :  { %v6980_v26 = vsel %vm6850_vm0, %v6829_v22, 0.0 }
 0x6ef   :  { %6981 = vadd.xlane.f32.xlu1 %v6980_v26  ;;  %v6974_v61 = vsel %vm6850_vm0, %v6827_v20, 0.0 }
 0x6f1   :  { %6972 = vadd.xlane.f32.xlu0 %v6971_v10 }
 0x6f3   :  { %6975 = vadd.xlane.f32.xlu1 %v6974_v61 }
 0x6f5   :  { %v7378_v3 = vpop.f32.mrb[204].mxu1 }
 0x6f6   :  { %v6645_v11 = vadd.f32 %v7378_v3, %v14792_v17  ;;  %v6859_v51 = vpop.xlane.xlu0 %6858  ;;  %v6636_v4 = vpop.f32.mrb[205].mxu1 }
 0x6f7   :  { %v7052_v41 = vadd.f32 %v14931_v25, %v6859_v51  ;;  %v6637_v28 = vadd.f32 %v14792_v17, %v6636_v4  ;;  %v7379_v16 = vpop.f32.mrb[206].mxu1  ;;  %v6853_v45 = vpop.xlane.xlu1 %6852 }
 0x6f8   :  { %v6761_v27 = vmax.f32 %v6645_v11, 0.0  ;;  %v6648_v31 = vadd.f32 %v7379_v16, %v14792_v17  ;;  %v7050_v42 = vadd.f32 %v14931_v25, %v6853_v45  ;;  %v6639_v0 = vpop.f32.mrb[207].mxu1 }
 0x6f9   :  { %7117 = vst.msk [vmem:[%s15324_s11 + $0x10] sm:$0xff] %vm7114_vm1, %v7052_v41  ;;  %v6759_v36 = vmax.f32 %v6637_v28, 0.0  ;;  %v6640_v2 = vadd.f32 %v14792_v17, %v6639_v0 }
 0x6fa   :  { %v6832_v21 = vmul.f32 %v14798_v12, %v6761_v27  ;;  %v6762_v43 = vmax.f32 %v6648_v31, 0.0  ;;  %7115 = vst.msk [vmem:[%s15324_s11] sm:$0xff] %vm7114_vm1, %v7050_v42  ;;  %v6856_v58 = vpop.xlane.xlu0 %6855 }
 0x6fb   :  { %v6760_v49 = vmax.f32 %v6640_v2, 0.0  ;;  %v7051_v38 = vadd.f32 %v14931_v25, %v6856_v58  ;;  %v6862_v39 = vpop.xlane.xlu1 %6861  ;;  %v6830_v18 = vmul.f32 %v14798_v12, %v6759_v36 }
 0x6fc   :  { %v6833_v14 = vmul.f32 %v14798_v12, %v6762_v43  ;;  %v7053_v47 = vadd.f32 %v14931_v25, %v6862_v39  ;;  %v6989_v44 = vsel %vm6850_vm0, %v6832_v21, 0.0 }
 0x6fd   :  { %7116 = vst.msk [vmem:[%s15324_s11 + $0x8] sm:$0xff] %vm7114_vm1, %v7051_v38  ;;  %6990 = vadd.xlane.f32.xlu0 %v6989_v44  ;;  %v6831_v60 = vmul.f32 %v14798_v12, %v6760_v49  ;;  %v6983_v54 = vsel %vm6850_vm0, %v6830_v18, 0.0 }
 0x6fe   :  { %7118 = vst.msk [vmem:[%s15324_s11 + $0x18] sm:$0xff] %vm7114_vm1, %v7053_v47  ;;  %v6871_v5 = vpop.xlane.xlu0 %6870  ;;  %v6992_v9 = vsel %vm6850_vm0, %v6833_v14, 0.0 }
 0x6ff   :  { %v7056_v37 = vadd.f32 %v14931_v25, %v6871_v5  ;;  %6993 = vadd.xlane.f32.xlu1 %v6992_v9  ;;  %v6986_v30 = vsel %vm6850_vm0, %v6831_v60, 0.0 }
 0x700   :  { %v6874_v8 = vpop.xlane.xlu1 %6873 }
 0x701   :  { %7121 = vst.msk [vmem:[%s15324_s11 + $0x30] sm:$0xff] %vm7114_vm1, %v7056_v37  ;;  %v7057_v19 = vadd.f32 %v14931_v25, %v6874_v8  ;;  %6984 = vadd.xlane.f32.xlu0 %v6983_v54 }
 0x702   :  { %v6865_v59 = vpop.xlane.xlu0 %6864 }
 0x703   :  { %7122 = vst.msk [vmem:[%s15324_s11 + $0x38] sm:$0xff] %vm7114_vm1, %v7057_v19  ;;  %v7054_v63 = vadd.f32 %v14931_v25, %v6865_v59  ;;  %6987 = vadd.xlane.f32.xlu1 %v6986_v30 }
 0x704   :  { %v6868_v32 = vpop.xlane.xlu1 %6867 }
 0x705   :  { %7119 = vst.msk [vmem:[%s15324_s11 + $0x20] sm:$0xff] %vm7114_vm1, %v7054_v63  ;;  %v7055_v50 = vadd.f32 %v14931_v25, %v6868_v32  ;;  %v7382_v1 = vpop.f32.mrb[208].mxu1 }
 0x706   :  { %v6661_v23 = vadd.f32 %v7382_v1, %v14792_v17  ;;  %v6652_v46 = vpop.f32.mrb[209].mxu1  ;;  %v6883_v7 = vpop.xlane.xlu0 %6882 }
 0x707   :  { %7120 = vst.msk [vmem:[%s15324_s11 + $0x28] sm:$0xff] %vm7114_vm1, %v7055_v50  ;;  %v6653_v57 = vadd.f32 %v14792_v17, %v6652_v46  ;;  %v7060_v53 = vadd.f32 %v14931_v25, %v6883_v7  ;;  %v7383_v35 = vpop.f32.mrb[210].mxu1 }
 0x708   :  { %v6765_v48 = vmax.f32 %v6661_v23, 0.0  ;;  %v6664_v29 = vadd.f32 %v7383_v35, %v14792_v17  ;;  %v6655_v34 = vpop.f32.mrb[211].mxu1  ;;  %v6886_v56 = vpop.xlane.xlu1 %6885 }
 0x709   :  { %v6763_v13 = vmax.f32 %v6653_v57, 0.0  ;;  %7125 = vst.msk [vmem:[%s15324_s11 + $0x50] sm:$0xff] %vm7114_vm1, %v7060_v53  ;;  %v6656_v55 = vadd.f32 %v14792_v17, %v6655_v34  ;;  %v7061_v40 = vadd.f32 %v14931_v25, %v6886_v56 }
 0x70a   :  { %v6836_v6 = vmul.f32 %v14798_v12, %v6765_v48  ;;  %v6766_v52 = vmax.f32 %v6664_v29, 0.0  ;;  %v6877_v15 = vpop.xlane.xlu0 %6876 }
 0x70b   :  { %v6764_v33 = vmax.f32 %v6656_v55, 0.0  ;;  %7126 = vst.msk [vmem:[%s15324_s11 + $0x58] sm:$0xff] %vm7114_vm1, %v7061_v40  ;;  %v7058_v62 = vadd.f32 %v14931_v25, %v6877_v15  ;;  %v6834_v22 = vmul.f32 %v14798_v12, %v6763_v13 }
 0x70c   :  { %v6837_v24 = vmul.f32 %v14798_v12, %v6766_v52  ;;  %v6880_v20 = vpop.xlane.xlu1 %6879  ;;  %v7001_v26 = vsel %vm6850_vm0, %v6836_v6, 0.0 }
 0x70d   :  { %7123 = vst.msk [vmem:[%s15324_s11 + $0x40] sm:$0xff] %vm7114_vm1, %v7058_v62  ;;  %v7059_v10 = vadd.f32 %v14931_v25, %v6880_v20  ;;  %7002 = vadd.xlane.f32.xlu0 %v7001_v26  ;;  %v6835_v61 = vmul.f32 %v14798_v12, %v6764_v33  ;;  %v6995_v41 = vsel %vm6850_vm0, %v6834_v22, 0.0 }
 0x70e   :  { %v6895_v3 = vpop.xlane.xlu0 %6894  ;;  %v7004_v11 = vsel %vm6850_vm0, %v6837_v24, 0.0 }
 0x70f   :  { %7124 = vst.msk [vmem:[%s15324_s11 + $0x48] sm:$0xff] %vm7114_vm1, %v7059_v10  ;;  %v7064_v51 = vadd.f32 %v14931_v25, %v6895_v3  ;;  %7005 = vadd.xlane.f32.xlu1 %v7004_v11  ;;  %v6998_v45 = vsel %vm6850_vm0, %v6835_v61, 0.0 }
 0x710   :  { %v6898_v4 = vpop.xlane.xlu1 %6897 }
 0x711   :  { %7129 = vst.msk [vmem:[%s15324_s11 + $0x70] sm:$0xff] %vm7114_vm1, %v7064_v51  ;;  %v7065_v28 = vadd.f32 %v14931_v25, %v6898_v4  ;;  %6996 = vadd.xlane.f32.xlu0 %v6995_v41 }
 0x712   :  { %v6889_v16 = vpop.xlane.xlu0 %6888 }
 0x713   :  { %7130 = vst.msk [vmem:[%s15324_s11 + $0x78] sm:$0xff] %vm7114_vm1, %v7065_v28  ;;  %v7062_v27 = vadd.f32 %v14931_v25, %v6889_v16  ;;  %6999 = vadd.xlane.f32.xlu1 %v6998_v45 }
 0x714   :  { %v6892_v31 = vpop.xlane.xlu1 %6891 }
 0x715   :  { %7127 = vst.msk [vmem:[%s15324_s11 + $0x60] sm:$0xff] %vm7114_vm1, %v7062_v27  ;;  %v7063_v42 = vadd.f32 %v14931_v25, %v6892_v31  ;;  %v7386_v0 = vpop.f32.mrb[212].mxu1 }
 0x716   :  { %v6677_v36 = vadd.f32 %v7386_v0, %v14792_v17  ;;  %v6668_v2 = vpop.f32.mrb[213].mxu1 }
 0x717   :  { %7128 = vst.msk [vmem:[%s15324_s11 + $0x68] sm:$0xff] %vm7114_vm1, %v7063_v42  ;;  %v6669_v21 = vadd.f32 %v14792_v17, %v6668_v2  ;;  %v7387_v43 = vpop.f32.mrb[214].mxu1 }
 0x718   :  { %v6769_v58 = vmax.f32 %v6677_v36, 0.0  ;;  %v6680_v49 = vadd.f32 %v7387_v43, %v14792_v17  ;;  %v6671_v38 = vpop.f32.mrb[215].mxu1 }
 0x719   :  { %v6767_v39 = vmax.f32 %v6669_v21, 0.0  ;;  %v6672_v18 = vadd.f32 %v14792_v17, %v6671_v38 }
 0x71a   :  { %v6840_v14 = vmul.f32 %v14798_v12, %v6769_v58  ;;  %v6770_v47 = vmax.f32 %v6680_v49, 0.0  ;;  %v6907_v44 = vpop.xlane.xlu0 %6906 }
 0x71b   :  { %v6768_v60 = vmax.f32 %v6672_v18, 0.0  ;;  %v7068_v5 = vadd.f32 %v14931_v25, %v6907_v44  ;;  %v6838_v9 = vmul.f32 %v14798_v12, %v6767_v39 }
 0x71c   :  { %v6841_v37 = vmul.f32 %v14798_v12, %v6770_v47  ;;  %v6910_v8 = vpop.xlane.xlu1 %6909  ;;  %v7013_v54 = vsel %vm6850_vm0, %v6840_v14, 0.0 }
 0x71d   :  { %7133 = vst.msk [vmem:[%s15324_s11 + $0x90] sm:$0xff] %vm7114_vm1, %v7068_v5  ;;  %v7069_v19 = vadd.f32 %v14931_v25, %v6910_v8  ;;  %7014 = vadd.xlane.f32.xlu0 %v7013_v54  ;;  %v6839_v59 = vmul.f32 %v14798_v12, %v6768_v60  ;;  %v7007_v1 = vsel %vm6850_vm0, %v6838_v9, 0.0 }
 0x71e   :  { %v6901_v30 = vpop.xlane.xlu0 %6900  ;;  %v7016_v63 = vsel %vm6850_vm0, %v6841_v37, 0.0 }
 0x71f   :  { %7134 = vst.msk [vmem:[%s15324_s11 + $0x98] sm:$0xff] %vm7114_vm1, %v7069_v19  ;;  %v7066_v32 = vadd.f32 %v14931_v25, %v6901_v30  ;;  %7017 = vadd.xlane.f32.xlu1 %v7016_v63  ;;  %v7010_v46 = vsel %vm6850_vm0, %v6839_v59, 0.0 }
 0x720   :  { %v6904_v50 = vpop.xlane.xlu1 %6903 }
 0x721   :  { %7131 = vst.msk [vmem:[%s15324_s11 + $0x80] sm:$0xff] %vm7114_vm1, %v7066_v32  ;;  %v7067_v23 = vadd.f32 %v14931_v25, %v6904_v50  ;;  %7008 = vadd.xlane.f32.xlu0 %v7007_v1 }
 0x723   :  { %7132 = vst.msk [vmem:[%s15324_s11 + $0x88] sm:$0xff] %vm7114_vm1, %v7067_v23  ;;  %7011 = vadd.xlane.f32.xlu1 %v7010_v46 }
 0x725   :  { %v7390_v7 = vpop.f32.mrb[216].mxu1 }
 0x726   :  { %v6693_v57 = vadd.f32 %v7390_v7, %v14792_v17  ;;  %v6684_v53 = vpop.f32.mrb[217].mxu1 }
 0x727   :  { %v6685_v35 = vadd.f32 %v14792_v17, %v6684_v53  ;;  %v7391_v48 = vpop.f32.mrb[218].mxu1 }
 0x728   :  { %v6773_v29 = vmax.f32 %v6693_v57, 0.0  ;;  %v6696_v34 = vadd.f32 %v7391_v48, %v14792_v17  ;;  %v6687_v56 = vpop.f32.mrb[219].mxu1 }
 0x729   :  { %v6771_v13 = vmax.f32 %v6685_v35, 0.0  ;;  %v6688_v55 = vadd.f32 %v14792_v17, %v6687_v56 }
 0x72a   :  { %v6844_v40 = vmul.f32 %v14798_v12, %v6773_v29  ;;  %v6774_v6 = vmax.f32 %v6696_v34, 0.0  ;;  %v6919_v52 = vpop.xlane.xlu0 %6918 }
 0x72b   :  { %v6772_v15 = vmax.f32 %v6688_v55, 0.0  ;;  %v7072_v33 = vadd.f32 %v14931_v25, %v6919_v52  ;;  %v6842_v62 = vmul.f32 %v14798_v12, %v6771_v13 }
 0x72c   :  { %v6845_v22 = vmul.f32 %v14798_v12, %v6774_v6  ;;  %v6922_v24 = vpop.xlane.xlu1 %6921  ;;  %v7025_v20 = vsel %vm6850_vm0, %v6844_v40, 0.0 }
 0x72d   :  { %7137 = vst.msk [vmem:[%s15324_s11 + $0xb0] sm:$0xff] %vm7114_vm1, %v7072_v33  ;;  %v7073_v26 = vadd.f32 %v14931_v25, %v6922_v24  ;;  %7026 = vadd.xlane.f32.xlu0 %v7025_v20  ;;  %v6843_v10 = vmul.f32 %v14798_v12, %v6772_v15  ;;  %v7019_v4 = vsel %vm6850_vm0, %v6842_v62, 0.0 }
 0x72e   :  { %v6913_v61 = vpop.xlane.xlu0 %6912  ;;  %v7028_v3 = vsel %vm6850_vm0, %v6845_v22, 0.0 }
 0x72f   :  { %7138 = vst.msk [vmem:[%s15324_s11 + $0xb8] sm:$0xff] %vm7114_vm1, %v7073_v26  ;;  %v7070_v11 = vadd.f32 %v14931_v25, %v6913_v61  ;;  %7029 = vadd.xlane.f32.xlu1 %v7028_v3  ;;  %v7022_v28 = vsel %vm6850_vm0, %v6843_v10, 0.0 }
 0x730   :  { %v6916_v51 = vpop.xlane.xlu1 %6915 }
 0x731   :  { %7135 = vst.msk [vmem:[%s15324_s11 + $0xa0] sm:$0xff] %vm7114_vm1, %v7070_v11  ;;  %v7071_v41 = vadd.f32 %v14931_v25, %v6916_v51  ;;  %7020 = vadd.xlane.f32.xlu0 %v7019_v4 }
 0x733   :  { %7136 = vst.msk [vmem:[%s15324_s11 + $0xa8] sm:$0xff] %vm7114_vm1, %v7071_v41  ;;  %7023 = vadd.xlane.f32.xlu1 %v7022_v28 }
 0x735   :  { %v7394_v16 = vpop.f32.mrb[220].mxu1 }
 0x736   :  { %v6709_v45 = vadd.f32 %v7394_v16, %v14792_v17  ;;  %v6700_v27 = vpop.f32.mrb[221].mxu1 }
 0x737   :  { %v6701_v31 = vadd.f32 %v14792_v17, %v6700_v27  ;;  %v7395_v42 = vpop.f32.mrb[222].mxu1 }
 0x738   :  { %v6712_v0 = vadd.f32 %v7395_v42, %v14792_v17  ;;  %v6703_v36 = vpop.f32.mrb[223].mxu1  ;;  %v6777_v2 = vmax.f32 %v6709_v45, 0.0 }
 0x739   :  { %v6775_v21 = vmax.f32 %v6701_v31, 0.0  ;;  %v6704_v43 = vadd.f32 %v14792_v17, %v6703_v36 }
 0x73a   :  { %v6931_v58 = vpop.xlane.xlu0 %6930  ;;  %v6778_v38 = vmax.f32 %v6712_v0, 0.0  ;;  %v6848_v47 = vmul.f32 %v14798_v12, %v6777_v2 }
 0x73b   :  { %v6846_v49 = vmul.f32 %v14798_v12, %v6775_v21  ;;  %v6776_v39 = vmax.f32 %v6704_v43, 0.0  ;;  %v7076_v18 = vadd.f32 %v14931_v25, %v6931_v58 }
 0x73c   :  { %v6934_v14 = vpop.xlane.xlu1 %6933  ;;  %v6849_v9 = vmul.f32 %v14798_v12, %v6778_v38 }
 0x73d   :  { %v6847_v44 = vmul.f32 %v14798_v12, %v6776_v39  ;;  %7141 = vst.msk [vmem:[%s15324_s11 + $0xd0] sm:$0xff] %vm7114_vm1, %v7076_v18  ;;  %v7077_v60 = vadd.f32 %v14931_v25, %v6934_v14  ;;  %v7031_v17 = vsel %vm6850_vm0, %v6846_v49, 0.0  ;;  %v7037_v12 = vsel %vm6850_vm0, %v6848_v47, 0.0 }
 0x73e   :  { %v6925_v5 = vpop.xlane.xlu0 %6924  ;;  %7032 = vadd.xlane.f32.xlu0 %v7031_v17  ;;  %v7040_v59 = vsel %vm6850_vm0, %v6849_v9, 0.0 }
 0x73f   :  { %7142 = vst.msk [vmem:[%s15324_s11 + $0xd8] sm:$0xff] %vm7114_vm1, %v7077_v60  ;;  %v7074_v37 = vadd.f32 %v14931_v25, %v6925_v5  ;;  %v7034_v8 = vsel %vm6850_vm0, %v6847_v44, 0.0 }
 0x740   :  { %v6928_v54 = vpop.xlane.xlu1 %6927  ;;  %7035 = vadd.xlane.f32.xlu1 %v7034_v8 }
 0x741   :  { %7139 = vst.msk [vmem:[%s15324_s11 + $0xc0] sm:$0xff] %vm7114_vm1, %v7074_v37  ;;  %v7075_v19 = vadd.f32 %v14931_v25, %v6928_v54 }
 0x742   :  { %7038 = vadd.xlane.f32.xlu0 %v7037_v12 }
 0x743   :  { %7140 = vst.msk [vmem:[%s15324_s11 + $0xc8] sm:$0xff] %vm7114_vm1, %v7075_v19 }
 0x744   :  { %7041 = vadd.xlane.f32.xlu1 %v7040_v59 }
 0x74a   :  { %v6943_v30 = vpop.xlane.xlu0 %6942 }
 0x74b   :  { %v7080_v63 = vadd.f32 %v14931_v25, %v6943_v30 }
 0x74c   :  { %v6946_v32 = vpop.xlane.xlu1 %6945 }
 0x74d   :  { %7145 = vst.msk [vmem:[%s15324_s11 + $0xf0] sm:$0xff] %vm7114_vm1, %v7080_v63  ;;  %v7081_v50 = vadd.f32 %v14931_v25, %v6946_v32 }
 0x74e   :  { %v6937_v1 = vpop.xlane.xlu0 %6936 }
 0x74f   :  { %7146 = vst.msk [vmem:[%s15324_s11 + $0xf8] sm:$0xff] %vm7114_vm1, %v7081_v50  ;;  %v7078_v23 = vadd.f32 %v14931_v25, %v6937_v1 }
 0x750   :  { %v6940_v46 = vpop.xlane.xlu1 %6939 }
 0x751   :  { %7143 = vst.msk [vmem:[%s15324_s11 + $0xe0] sm:$0xff] %vm7114_vm1, %v7078_v23  ;;  %v7079_v7 = vadd.f32 %v14931_v25, %v6940_v46 }
 0x753   :  { %7144 = vst.msk [vmem:[%s15324_s11 + $0xe8] sm:$0xff] %vm7114_vm1, %v7079_v7 }
 0x75a   :  { %v6955_v57 = vpop.xlane.xlu0 %6954 }
 0x75b   :  { %v7084_v53 = vadd.f32 %v14931_v25, %v6955_v57 }
 0x75c   :  { %v6958_v35 = vpop.xlane.xlu1 %6957 }
 0x75d   :  { %7149 = vst.msk [vmem:[%s15324_s11 + $0x110] sm:$0xff] %vm7114_vm1, %v7084_v53  ;;  %v7085_v48 = vadd.f32 %v14931_v25, %v6958_v35 }
 0x75e   :  { %v6949_v29 = vpop.xlane.xlu0 %6948 }
 0x75f   :  { %7150 = vst.msk [vmem:[%s15324_s11 + $0x118] sm:$0xff] %vm7114_vm1, %v7085_v48  ;;  %v7082_v34 = vadd.f32 %v14931_v25, %v6949_v29 }
 0x760   :  { %v6952_v56 = vpop.xlane.xlu1 %6951 }
 0x761   :  { %7147 = vst.msk [vmem:[%s15324_s11 + $0x100] sm:$0xff] %vm7114_vm1, %v7082_v34  ;;  %v7083_v13 = vadd.f32 %v14931_v25, %v6952_v56 }
 0x763   :  { %7148 = vst.msk [vmem:[%s15324_s11 + $0x108] sm:$0xff] %vm7114_vm1, %v7083_v13 }
 0x76a   :  { %v6967_v55 = vpop.xlane.xlu0 %6966 }
 0x76b   :  { %v7088_v40 = vadd.f32 %v14931_v25, %v6967_v55 }
 0x76c   :  { %v6970_v6 = vpop.xlane.xlu1 %6969 }
 0x76d   :  { %7153 = vst.msk [vmem:[%s15324_s11 + $0x130] sm:$0xff] %vm7114_vm1, %v7088_v40  ;;  %v7089_v52 = vadd.f32 %v14931_v25, %v6970_v6 }
 0x76e   :  { %v6961_v15 = vpop.xlane.xlu0 %6960 }
 0x76f   :  { %7154 = vst.msk [vmem:[%s15324_s11 + $0x138] sm:$0xff] %vm7114_vm1, %v7089_v52  ;;  %v7086_v33 = vadd.f32 %v14931_v25, %v6961_v15 }
 0x770   :  { %v6964_v62 = vpop.xlane.xlu1 %6963 }
 0x771   :  { %7151 = vst.msk [vmem:[%s15324_s11 + $0x120] sm:$0xff] %vm7114_vm1, %v7086_v33  ;;  %v7087_v22 = vadd.f32 %v14931_v25, %v6964_v62 }
 0x773   :  { %7152 = vst.msk [vmem:[%s15324_s11 + $0x128] sm:$0xff] %vm7114_vm1, %v7087_v22 }
 0x77a   :  { %v6979_v24 = vpop.xlane.xlu0 %6978 }
 0x77b   :  { %v7092_v20 = vadd.f32 %v14931_v25, %v6979_v24 }
 0x77c   :  { %v6982_v26 = vpop.xlane.xlu1 %6981 }
 0x77d   :  { %7157 = vst.msk [vmem:[%s15324_s11 + $0x150] sm:$0xff] %vm7114_vm1, %v7092_v20  ;;  %v7093_v10 = vadd.f32 %v14931_v25, %v6982_v26 }
 0x77e   :  { %v6973_v61 = vpop.xlane.xlu0 %6972 }
 0x77f   :  { %7158 = vst.msk [vmem:[%s15324_s11 + $0x158] sm:$0xff] %vm7114_vm1, %v7093_v10  ;;  %v7090_v3 = vadd.f32 %v14931_v25, %v6973_v61 }
 0x780   :  { %v6976_v11 = vpop.xlane.xlu1 %6975 }
 0x781   :  { %7155 = vst.msk [vmem:[%s15324_s11 + $0x140] sm:$0xff] %vm7114_vm1, %v7090_v3  ;;  %v7091_v51 = vadd.f32 %v14931_v25, %v6976_v11 }
 0x783   :  { %7156 = vst.msk [vmem:[%s15324_s11 + $0x148] sm:$0xff] %vm7114_vm1, %v7091_v51 }
 0x78a   :  { %v6991_v4 = vpop.xlane.xlu0 %6990 }
 0x78b   :  { %v7096_v41 = vadd.f32 %v14931_v25, %v6991_v4 }
 0x78c   :  { %v6994_v28 = vpop.xlane.xlu1 %6993 }
 0x78d   :  { %7161 = vst.msk [vmem:[%s15324_s11 + $0x170] sm:$0xff] %vm7114_vm1, %v7096_v41  ;;  %v7097_v16 = vadd.f32 %v14931_v25, %v6994_v28 }
 0x78e   :  { %v6985_v45 = vpop.xlane.xlu0 %6984 }
 0x78f   :  { %7162 = vst.msk [vmem:[%s15324_s11 + $0x178] sm:$0xff] %vm7114_vm1, %v7097_v16  ;;  %v7094_v27 = vadd.f32 %v14931_v25, %v6985_v45 }
 0x790   :  { %v6988_v31 = vpop.xlane.xlu1 %6987 }
 0x791   :  { %7159 = vst.msk [vmem:[%s15324_s11 + $0x160] sm:$0xff] %vm7114_vm1, %v7094_v27  ;;  %v7095_v42 = vadd.f32 %v14931_v25, %v6988_v31 }
 0x793   :  { %7160 = vst.msk [vmem:[%s15324_s11 + $0x168] sm:$0xff] %vm7114_vm1, %v7095_v42 }
 0x79a   :  { %v7003_v0 = vpop.xlane.xlu0 %7002 }
 0x79b   :  { %v7100_v36 = vadd.f32 %v14931_v25, %v7003_v0 }
 0x79c   :  { %v7006_v2 = vpop.xlane.xlu1 %7005 }
 0x79d   :  { %7165 = vst.msk [vmem:[%s15324_s11 + $0x190] sm:$0xff] %vm7114_vm1, %v7100_v36  ;;  %v7101_v21 = vadd.f32 %v14931_v25, %v7006_v2 }
 0x79e   :  { %v6997_v43 = vpop.xlane.xlu0 %6996 }
 0x79f   :  { %7166 = vst.msk [vmem:[%s15324_s11 + $0x198] sm:$0xff] %vm7114_vm1, %v7101_v21  ;;  %v7098_v58 = vadd.f32 %v14931_v25, %v6997_v43 }
 0x7a0   :  { %v7000_v49 = vpop.xlane.xlu1 %6999 }
 0x7a1   :  { %7163 = vst.msk [vmem:[%s15324_s11 + $0x180] sm:$0xff] %vm7114_vm1, %v7098_v58  ;;  %v7099_v38 = vadd.f32 %v14931_v25, %v7000_v49 }
 0x7a3   :  { %7164 = vst.msk [vmem:[%s15324_s11 + $0x188] sm:$0xff] %vm7114_vm1, %v7099_v38 }
 0x7aa   :  { %v7015_v39 = vpop.xlane.xlu0 %7014 }
 0x7ab   :  { %v7104_v18 = vadd.f32 %v14931_v25, %v7015_v39 }
 0x7ac   :  { %v7018_v14 = vpop.xlane.xlu1 %7017 }
 0x7ad   :  { %7169 = vst.msk [vmem:[%s15324_s11 + $0x1b0] sm:$0xff] %vm7114_vm1, %v7104_v18  ;;  %v7105_v47 = vadd.f32 %v14931_v25, %v7018_v14 }
 0x7ae   :  { %v7009_v44 = vpop.xlane.xlu0 %7008 }
 0x7af   :  { %7170 = vst.msk [vmem:[%s15324_s11 + $0x1b8] sm:$0xff] %vm7114_vm1, %v7105_v47  ;;  %v7102_v60 = vadd.f32 %v14931_v25, %v7009_v44 }
 0x7b0   :  { %v7012_v17 = vpop.xlane.xlu1 %7011 }
 0x7b1   :  { %7167 = vst.msk [vmem:[%s15324_s11 + $0x1a0] sm:$0xff] %vm7114_vm1, %v7102_v60  ;;  %v7103_v5 = vadd.f32 %v14931_v25, %v7012_v17 }
 0x7b3   :  { %7168 = vst.msk [vmem:[%s15324_s11 + $0x1a8] sm:$0xff] %vm7114_vm1, %v7103_v5 }
 0x7ba   :  { %v7027_v9 = vpop.xlane.xlu0 %7026 }
 0x7bb   :  { %v7108_v37 = vadd.f32 %v14931_v25, %v7027_v9 }
 0x7bc   :  { %v7030_v8 = vpop.xlane.xlu1 %7029 }
 0x7bd   :  { %7173 = vst.msk [vmem:[%s15324_s11 + $0x1d0] sm:$0xff] %vm7114_vm1, %v7108_v37  ;;  %v7109_v54 = vadd.f32 %v14931_v25, %v7030_v8 }
 0x7be   :  { %v7021_v19 = vpop.xlane.xlu0 %7020 }
 0x7bf   :  { %7174 = vst.msk [vmem:[%s15324_s11 + $0x1d8] sm:$0xff] %vm7114_vm1, %v7109_v54  ;;  %v7106_v12 = vadd.f32 %v14931_v25, %v7021_v19 }
 0x7c0   :  { %v7024_v59 = vpop.xlane.xlu1 %7023 }
 0x7c1   :  { %7171 = vst.msk [vmem:[%s15324_s11 + $0x1c0] sm:$0xff] %vm7114_vm1, %v7106_v12  ;;  %v7107_v30 = vadd.f32 %v14931_v25, %v7024_v59 }
 0x7c3   :  { %7172 = vst.msk [vmem:[%s15324_s11 + $0x1c8] sm:$0xff] %vm7114_vm1, %v7107_v30 }
 0x7cb   :  { %v7033_v63 = vpop.xlane.xlu0 %7032 }
 0x7cc   :  { %v7110_v32 = vadd.f32 %v14931_v25, %v7033_v63 }
 0x7cd   :  { %v7036_v50 = vpop.xlane.xlu1 %7035 }
 0x7ce   :  { %7175 = vst.msk [vmem:[%s15324_s11 + $0x1e0] sm:$0xff] %vm7114_vm1, %v7110_v32  ;;  %v7111_v1 = vadd.f32 %v14931_v25, %v7036_v50 }
 0x7cf   :  { %v7039_v23 = vpop.xlane.xlu0 %7038 }
 0x7d0   :  { %7176 = vst.msk [vmem:[%s15324_s11 + $0x1e8] sm:$0xff] %vm7114_vm1, %v7111_v1  ;;  %v7112_v46 = vadd.f32 %v14931_v25, %v7039_v23 }
 0x7d1   :  { %v7042_v7 = vpop.xlane.xlu1 %7041 }
 0x7d2   :  { %7177 = vst.msk [vmem:[%s15324_s11 + $0x1f0] sm:$0xff] %vm7114_vm1, %v7112_v46  ;;  %v7113_v57 = vadd.f32 %v14931_v25, %v7042_v7 }
 0x7d4   :  { %7178 = vst.msk [vmem:[%s15324_s11 + $0x1f8] sm:$0xff] %vm7114_vm1, %v7113_v57 }
 0x7d5   :  { %7183 = vsyncpa [#allocation4], 1 }

</bundles_post_ra>
